<compile_context>
chip_gen: v7x
topology: tpu7x:2x2x1
jax: 0.10.0
libtpu: 0.0.40
codegen_flags: <defaults>
</compile_context>

<pallas_src>
import jax
import jax.numpy as jnp
from jax import lax
from jax.experimental import pallas as pl
from jax.experimental.pallas import tpu as pltpu

# Set to jnp.bfloat16 on v5e/v6e/v7x for higher MXU throughput / half the
# operand bytes (accumulation stays f32).  Kept f32 here so the kernel matches
# the f32 PyTorch module to ~1e-5; this workload is structure/overhead-bound,
# not MXU-bound, so bf16 buys little at these shapes.
MXU_DTYPE = jnp.float32

_TAPS = [(ky, kx) for ky in range(5) for kx in range(5)]   # 5x5 kernel taps


# ----------------------------- Pallas kernels ------------------------------


def _encoder_conv_kernel(p1_ref, w1_ref, b1_ref, w2_ref, b2_ref, feat_ref,
                         pad_ref):
    """Per-image fused conv1+relu+pool1+conv2+relu+pool2 (all VMEM-resident)."""
    # ---- conv1: one (1024, 75) x (75, 30) MXU matmul + bias + ReLU --------
    # Input scaling (x - 0.5) * 2 fused here; the host padded with 0.5 so the
    # padded entries become exact zeros (== F.conv2d zero padding).
    p1 = (p1_ref[...] - 0.5) * 2.0
    z1 = jnp.dot(p1.astype(MXU_DTYPE), w1_ref[...].astype(MXU_DTYPE),
                 preferred_element_type=jnp.float32)              # (1024, 30)
    z1 = jnp.maximum(z1 + b1_ref[...], 0.0)

    # ---- pool1 (2x2): rows are ordered (pool-phase, parity, u, v) ---------
    pooled1 = jnp.maximum(jnp.maximum(z1[0:256], z1[256:512]),
                          jnp.maximum(z1[512:768], z1[768:1024]))  # (256, 30)
    # pooled1 row = (a*2 + b)*64 + u*8 + v  <->  pooled pixel (i, j) with
    # (a, b) = (i % 2, j % 2) and (u, v) = (i // 2, j // 2).

    # ---- zero-padded parity phases of the conv2 input (VMEM scratch) ------
    # pad_ref[a*2+b, U, V, :] == conv2's zero-padded 20x20x30 input at
    # (y, x) = (2U + a, 2V + b);  interior lives at U, V in [1, 9).
    pad_ref[...] = jnp.zeros_like(pad_ref)
    for ph in range(4):
        blk = pooled1[ph * 64:(ph + 1) * 64].reshape(8, 8, 30)
        pad_ref[ph, pl.ds(1, 8), pl.ds(1, 8), :] = blk

    # ---- conv2: 25 per-tap (256, 30) x (30, 72) MXU matmuls, accumulated --
    # LHS rows are built in (pool2-phase, i2, j2) order so pool2 is again a
    # max over four contiguous 64-row slabs.
    acc2 = jnp.zeros((256, 72), jnp.float32)
    for t, (ky, kx) in enumerate(_TAPS):
        parts = []
        for py2 in range(2):
            for px2 in range(2):
                a, oy = (py2 + ky) % 2, (py2 + ky) // 2
                b, ox = (px2 + kx) % 2, (px2 + kx) // 2
                parts.append(
                    pad_ref[a * 2 + b, pl.ds(oy, 8), pl.ds(ox, 8), :])  # (8,8,30)
        lhs = jnp.concatenate(parts, axis=0).reshape(256, 30)
        acc2 = acc2 + jnp.dot(lhs.astype(MXU_DTYPE),
                              w2_ref[t].astype(MXU_DTYPE),
                              preferred_element_type=jnp.float32)
    z2 = jnp.maximum(acc2 + b2_ref[...], 0.0)                     # (256, 72)

    # ---- pool2 (2x2) + feature store (row = i2*8 + j2, lanes = channel) ---
    feat_ref[...] = jnp.maximum(jnp.maximum(z2[0:64], z2[64:128]),
                                jnp.maximum(z2[128:192], z2[192:256]))


def _fc_kernel(x_ref, w_ref, b_ref, o_ref):
    acc = jnp.dot(x_ref[...].astype(MXU_DTYPE), w_ref[...].astype(MXU_DTYPE),
                  preferred_element_type=jnp.float32)
    o_ref[...] = jnp.maximum(acc + b_ref[...], 0.0)


# ----------------------------- pallas_call wrappers ------------------------


def _fused_conv_stage(p1, w1, b1, w2, b2):
    """p1: (N, 1024, 75) ordered patches -> (N, 64, 72) pooled conv2 features."""
    N = p1.shape[0]
    flops = 2 * N * (1024 * 75 * 30 + 256 * 750 * 72)
    bytes_accessed = 4 * (p1.size + w1.size + b1.size + w2.size + b2.size
                          + N * 64 * 72)
    return pl.pallas_call(
        _encoder_conv_kernel,
        out_shape=jax.ShapeDtypeStruct((N, 64, 72), jnp.float32),
        grid=(N,),
        in_specs=[
            pl.BlockSpec((None, 1024, 75), lambda n: (n, 0, 0)),
            pl.BlockSpec((75, 30), lambda n: (0, 0)),
            pl.BlockSpec((1, 30), lambda n: (0, 0)),
            pl.BlockSpec((25, 30, 72), lambda n: (0, 0, 0)),
            pl.BlockSpec((1, 72), lambda n: (0, 0)),
        ],
        out_specs=pl.BlockSpec((None, 64, 72), lambda n: (n, 0, 0)),
        scratch_shapes=[pltpu.VMEM((4, 10, 10, 30), jnp.float32)],
        compiler_params=pltpu.CompilerParams(
            dimension_semantics=("parallel",)),
        cost_estimate=pl.CostEstimate(flops=flops, transcendentals=0,
                                      bytes_accessed=bytes_accessed),
    )(p1, w1, b1, w2, b2)


def linear_relu(x, w, b):
    """relu(x @ w + b); x: (N, K) lane-dense, w: (K, H), b: (1, H)."""
    N, K = x.shape
    Hd = w.shape[1]
    return pl.pallas_call(
        _fc_kernel,
        out_shape=jax.ShapeDtypeStruct((N, Hd), jnp.float32),
        grid=(1,),
        in_specs=[
            pl.BlockSpec((N, K), lambda i: (0, 0)),
            pl.BlockSpec((K, Hd), lambda i: (0, 0)),
            pl.BlockSpec((1, Hd), lambda i: (0, 0)),
        ],
        out_specs=pl.BlockSpec((N, Hd), lambda i: (0, 0)),
        cost_estimate=pl.CostEstimate(
            flops=2 * N * K * Hd, transcendentals=0,
            bytes_accessed=4 * (N * K + K * Hd + N * Hd)),
    )(x, w, b)


# ------------------------------- JAX glue ----------------------------------


def _conv1_patches(x_nhwc):
    """conv1 im2col with pool/parity-ordered rows.

    Returns (N, 1024, 75): row r = py*512 + px*256 + a*128 + b*64 + u*8 + v is
    conv1 output position (h, w) = (4u + 2a + py, 4v + 2b + px); columns are
    (ky, kx, cin).  Pad value 0.5 so the in-kernel (p - 0.5) * 2 scaling maps
    padded entries to F.conv2d's zero padding.
    """
    N = x_nhwc.shape[0]
    xp = jnp.pad(x_nhwc, ((0, 0), (2, 2), (2, 2), (0, 0)), constant_values=0.5)
    cols = [xp[:, ky:ky + 32, kx:kx + 32, :] for ky, kx in _TAPS]
    p = jnp.stack(cols, axis=3).reshape(N, 32, 32, 75)   # (h, w, (ky,kx,ci))
    p = p.reshape(N, 8, 2, 2, 8, 2, 2, 75)               # (u, a, py, v, b, px)
    p = p.transpose(0, 3, 6, 2, 5, 1, 4, 7)              # (py, px, a, b, u, v)
    return p.reshape(N, 1024, 75)


def cifar_encoder_v1_forward(x_nchw, params):
    """Equivalent of CIFAREncoderV1.forward; x_nchw: (N, 3, 32, 32) float32."""
    N = x_nchw.shape[0]
    x = jnp.transpose(x_nchw, (0, 2, 3, 1))              # NHWC
    p1 = _conv1_patches(x)                               # (N, 1024, 75)
    feat = _fused_conv_stage(p1, params["w1"], params["b1"],
                             params["w2"], params["b2"])  # (N, 64, 72)
    feat = feat.reshape(N, 72 * 8 * 8)                   # free (row-major)
    return linear_relu(feat, params["wf"], params["bf"])


def init_params(key, hidden):
    """Deterministic synthetic parameters with the module's shapes."""
    ks = jax.random.split(key, 6)
    w1 = jax.random.normal(ks[0], (30, 3, 5, 5), jnp.float32) / (3 * 25) ** 0.5
    b1 = jax.random.normal(ks[1], (30,), jnp.float32) * 0.01
    w2 = jax.random.normal(ks[2], (72, 30, 5, 5), jnp.float32) / (30 * 25) ** 0.5
    b2 = jax.random.normal(ks[3], (72,), jnp.float32) * 0.01
    wf = jax.random.normal(ks[4], (hidden, 72 * 8 * 8), jnp.float32) / 4608 ** 0.5
    bf = jax.random.normal(ks[5], (hidden,), jnp.float32) * 0.01
    # fc1 weight permuted so it consumes the kernel's NHWC-ordered feature
    # (row = i2*8 + j2, channel last) directly -- no runtime NCHW transpose.
    wf_nhwc = wf.reshape(hidden, 72, 8, 8).transpose(2, 3, 1, 0).reshape(
        4608, hidden)
    return {
        # kernel-friendly layouts
        "w1": jnp.transpose(w1, (2, 3, 1, 0)).reshape(75, 30),   # (ky,kx,ci,co)
        "b1": b1.reshape(1, 30),
        "w2": jnp.transpose(w2, (2, 3, 1, 0)).reshape(25, 30, 72),
        "b2": b2.reshape(1, 72),
        "wf": wf_nhwc,
        "bf": bf.reshape(1, hidden),
        # original torch-style layouts (for the pure-JAX reference)
        "w1_oihw": w1, "b1_raw": b1,
        "w2_oihw": w2, "b2_raw": b2,
        "wf_raw": wf, "bf_raw": bf,
    }


def _maxpool_nchw_ref(y):
    N, C, H, W = y.shape
    return y.reshape(N, C, H // 2, 2, W // 2, 2).max(axis=(3, 5))


def reference_forward(x_nchw, params):
    x = (x_nchw - 0.5) * 2.0
    y = lax.conv_general_dilated(x, params["w1_oihw"], (1, 1), ((2, 2), (2, 2)),
                                 dimension_numbers=("NCHW", "OIHW", "NCHW"))
    y = jax.nn.relu(y + params["b1_raw"][None, :, None, None])
    y = _maxpool_nchw_ref(y)
    y = lax.conv_general_dilated(y, params["w2_oihw"], (1, 1), ((2, 2), (2, 2)),
                                 dimension_numbers=("NCHW", "OIHW", "NCHW"))
    y = jax.nn.relu(y + params["b2_raw"][None, :, None, None])
    y = _maxpool_nchw_ref(y)
    y = y.reshape(y.shape[0], -1)
    return jax.nn.relu(y @ params["wf_raw"].T + params["bf_raw"])


if __name__ == "__main__":
    hidden_layer_size = 64
    key = jax.random.PRNGKey(0)
    k_x, k_p = jax.random.split(key)

    # CIFAR-like NCHW input; spatial must be 32x32 because fc1 expects 72*8*8.
    x = jax.random.uniform(k_x, (2, 3, 32, 32), jnp.float32)
    params = init_params(k_p, hidden_layer_size)

    fwd = jax.jit(cifar_encoder_v1_forward)
    out = jax.block_until_ready(fwd(x, params))
    ref = jax.block_until_ready(reference_forward(x, params))

    assert out.shape == (2, hidden_layer_size), out.shape
    max_err = float(jnp.max(jnp.abs(out - ref)))
    assert jnp.allclose(out, ref, atol=2e-3, rtol=2e-3), max_err
    print("KERNEL_OK")
</pallas_src>

<mosaic_0001>
module attributes {stable_mosaic.version = 11 : i64} {
  func.func @_encoder_conv_kernel(%arg0: i32, %arg1: memref<1x1024x75xf32, #tpu.memory_space<vmem>>, %arg2: memref<75x30xf32, #tpu.memory_space<vmem>>, %arg3: memref<1x30xf32, #tpu.memory_space<vmem>>, %arg4: memref<25x30x72xf32, #tpu.memory_space<vmem>>, %arg5: memref<1x72xf32, #tpu.memory_space<vmem>>, %arg6: memref<1x64x72xf32, #tpu.memory_space<vmem>>, %arg7: memref<4x10x10x30xf32, #tpu.memory_space<vmem>>) attributes {dimension_semantics = [#tpu.dimension_semantics<parallel>], iteration_bounds = array<i64: 2>, scalar_prefetch = 0 : i64, scratch_operands = 1 : i64, tpu.core_type = #tpu.core_type<tc>, window_params = [{transform_indices = @transform_0, window_bounds = array<i64: 1, 1024, 75>}, {pipeline_mode = #tpu.pipeline_mode<synchronous>, transform_indices = @transform_1, window_bounds = array<i64: 75, 30>}, {pipeline_mode = #tpu.pipeline_mode<synchronous>, transform_indices = @transform_2, window_bounds = array<i64: 1, 30>}, {pipeline_mode = #tpu.pipeline_mode<synchronous>, transform_indices = @transform_3, window_bounds = array<i64: 25, 30, 72>}, {pipeline_mode = #tpu.pipeline_mode<synchronous>, transform_indices = @transform_4, window_bounds = array<i64: 1, 72>}, {transform_indices = @transform_5, window_bounds = array<i64: 1, 64, 72>}]} {
    %c0 = arith.constant 0 : index
    %c0_0 = arith.constant 0 : index
    %c0_1 = arith.constant 0 : index
    %0 = vector.load %arg1[%c0, %c0_0, %c0_1] : memref<1x1024x75xf32, #tpu.memory_space<vmem>>, vector<1x1024x75xf32>
    %1 = vector.shape_cast %0 : vector<1x1024x75xf32> to vector<1024x75xf32>
    %cst = arith.constant 5.000000e-01 : f32
    %2 = vector.broadcast %cst : f32 to vector<1024x75xf32>
    %3 = arith.subf %1, %2 : vector<1024x75xf32>
    %cst_2 = arith.constant 2.000000e+00 : f32
    %4 = vector.broadcast %cst_2 : f32 to vector<1024x75xf32>
    %5 = arith.mulf %3, %4 : vector<1024x75xf32>
    %c0_3 = arith.constant 0 : index
    %c0_4 = arith.constant 0 : index
    %6 = vector.load %arg2[%c0_3, %c0_4] : memref<75x30xf32, #tpu.memory_space<vmem>>, vector<75x30xf32>
    %cst_5 = arith.constant dense<0.000000e+00> : vector<1024x30xf32>
    %7 = tpu.matmul %5, %6, %cst_5 {dimension_numbers = #tpu.dot_dimension_numbers<[1], [0], [0], [1], [0, 0, 1, 1], [], []>} : vector<1024x75xf32>, vector<75x30xf32>, vector<1024x30xf32> -> vector<1024x30xf32>
    %c0_6 = arith.constant 0 : index
    %c0_7 = arith.constant 0 : index
    %8 = vector.load %arg3[%c0_6, %c0_7] : memref<1x30xf32, #tpu.memory_space<vmem>>, vector<1x30xf32>
    %9 = vector.broadcast %8 : vector<1x30xf32> to vector<1024x30xf32>
    %10 = arith.addf %7, %9 : vector<1024x30xf32>
    %cst_8 = arith.constant 0.000000e+00 : f32
    %11 = vector.broadcast %cst_8 : f32 to vector<1024x30xf32>
    %12 = arith.maximumf %10, %11 : vector<1024x30xf32>
    %13 = vector.extract_strided_slice %12 {offsets = [0, 0], sizes = [256, 30], strides = [1, 1]} : vector<1024x30xf32> to vector<256x30xf32>
    %14 = vector.extract_strided_slice %12 {offsets = [256, 0], sizes = [256, 30], strides = [1, 1]} : vector<1024x30xf32> to vector<256x30xf32>
    %15 = arith.maximumf %13, %14 : vector<256x30xf32>
    %16 = vector.extract_strided_slice %12 {offsets = [512, 0], sizes = [256, 30], strides = [1, 1]} : vector<1024x30xf32> to vector<256x30xf32>
    %17 = vector.extract_strided_slice %12 {offsets = [768, 0], sizes = [256, 30], strides = [1, 1]} : vector<1024x30xf32> to vector<256x30xf32>
    %18 = arith.maximumf %16, %17 : vector<256x30xf32>
    %19 = arith.maximumf %15, %18 : vector<256x30xf32>
    %cst_9 = arith.constant 0.000000e+00 : f32
    %20 = vector.broadcast %cst_9 : f32 to vector<4x10x10x30xf32>
    %c0_10 = arith.constant 0 : index
    %c0_11 = arith.constant 0 : index
    %c0_12 = arith.constant 0 : index
    %c0_13 = arith.constant 0 : index
    %21 = vector.load %arg7[%c0_10, %c0_11, %c0_12, %c0_13] : memref<4x10x10x30xf32, #tpu.memory_space<vmem>>, vector<4x10x10x30xf32>
    tpu.vector_store %arg7[%c0_10, %c0_11, %c0_12, %c0_13], %20 {strides = array<i32>} : memref<4x10x10x30xf32, #tpu.memory_space<vmem>>, vector<4x10x10x30xf32>,
    %22 = vector.extract_strided_slice %19 {offsets = [0, 0], sizes = [64, 30], strides = [1, 1]} : vector<256x30xf32> to vector<64x30xf32>
    %23 = vector.shape_cast %22 : vector<64x30xf32> to vector<8x8x30xf32>
    %c0_14 = arith.constant 0 : index
    %c1 = arith.constant 1 : index
    %c1_15 = arith.constant 1 : index
    %c0_16 = arith.constant 0 : index
    %24 = vector.load %arg7[%c0_14, %c1, %c1_15, %c0_16] : memref<4x10x10x30xf32, #tpu.memory_space<vmem>>, vector<1x8x8x30xf32>
    %25 = vector.shape_cast %24 : vector<1x8x8x30xf32> to vector<8x8x30xf32>
    %26 = vector.shape_cast %23 : vector<8x8x30xf32> to vector<1x8x8x30xf32>
    tpu.vector_store %arg7[%c0_14, %c1, %c1_15, %c0_16], %26 {strides = array<i32>} : memref<4x10x10x30xf32, #tpu.memory_space<vmem>>, vector<1x8x8x30xf32>,
    %27 = vector.extract_strided_slice %19 {offsets = [64, 0], sizes = [64, 30], strides = [1, 1]} : vector<256x30xf32> to vector<64x30xf32>
    %28 = vector.shape_cast %27 : vector<64x30xf32> to vector<8x8x30xf32>
    %c1_17 = arith.constant 1 : index
    %c1_18 = arith.constant 1 : index
    %c1_19 = arith.constant 1 : index
    %c0_20 = arith.constant 0 : index
    %29 = vector.load %arg7[%c1_17, %c1_18, %c1_19, %c0_20] : memref<4x10x10x30xf32, #tpu.memory_space<vmem>>, vector<1x8x8x30xf32>
    %30 = vector.shape_cast %29 : vector<1x8x8x30xf32> to vector<8x8x30xf32>
    %31 = vector.shape_cast %28 : vector<8x8x30xf32> to vector<1x8x8x30xf32>
    tpu.vector_store %arg7[%c1_17, %c1_18, %c1_19, %c0_20], %31 {strides = array<i32>} : memref<4x10x10x30xf32, #tpu.memory_space<vmem>>, vector<1x8x8x30xf32>,
    %32 = vector.extract_strided_slice %19 {offsets = [128, 0], sizes = [64, 30], strides = [1, 1]} : vector<256x30xf32> to vector<64x30xf32>
    %33 = vector.shape_cast %32 : vector<64x30xf32> to vector<8x8x30xf32>
    %c2 = arith.constant 2 : index
    %c1_21 = arith.constant 1 : index
    %c1_22 = arith.constant 1 : index
    %c0_23 = arith.constant 0 : index
    %34 = vector.load %arg7[%c2, %c1_21, %c1_22, %c0_23] : memref<4x10x10x30xf32, #tpu.memory_space<vmem>>, vector<1x8x8x30xf32>
    %35 = vector.shape_cast %34 : vector<1x8x8x30xf32> to vector<8x8x30xf32>
    %36 = vector.shape_cast %33 : vector<8x8x30xf32> to vector<1x8x8x30xf32>
    tpu.vector_store %arg7[%c2, %c1_21, %c1_22, %c0_23], %36 {strides = array<i32>} : memref<4x10x10x30xf32, #tpu.memory_space<vmem>>, vector<1x8x8x30xf32>,
    %37 = vector.extract_strided_slice %19 {offsets = [192, 0], sizes = [64, 30], strides = [1, 1]} : vector<256x30xf32> to vector<64x30xf32>
    %38 = vector.shape_cast %37 : vector<64x30xf32> to vector<8x8x30xf32>
    %c3 = arith.constant 3 : index
    %c1_24 = arith.constant 1 : index
    %c1_25 = arith.constant 1 : index
    %c0_26 = arith.constant 0 : index
    %39 = vector.load %arg7[%c3, %c1_24, %c1_25, %c0_26] : memref<4x10x10x30xf32, #tpu.memory_space<vmem>>, vector<1x8x8x30xf32>
    %40 = vector.shape_cast %39 : vector<1x8x8x30xf32> to vector<8x8x30xf32>
    %41 = vector.shape_cast %38 : vector<8x8x30xf32> to vector<1x8x8x30xf32>
    tpu.vector_store %arg7[%c3, %c1_24, %c1_25, %c0_26], %41 {strides = array<i32>} : memref<4x10x10x30xf32, #tpu.memory_space<vmem>>, vector<1x8x8x30xf32>,
    %cst_27 = arith.constant 0.000000e+00 : f32
    %42 = vector.broadcast %cst_27 : f32 to vector<256x72xf32>
    %c0_28 = arith.constant 0 : index
    %c0_29 = arith.constant 0 : index
    %c0_30 = arith.constant 0 : index
    %c0_31 = arith.constant 0 : index
    %43 = vector.load %arg7[%c0_28, %c0_29, %c0_30, %c0_31] : memref<4x10x10x30xf32, #tpu.memory_space<vmem>>, vector<1x8x8x30xf32>
    %44 = vector.shape_cast %43 : vector<1x8x8x30xf32> to vector<8x8x30xf32>
    %c1_32 = arith.constant 1 : index
    %c0_33 = arith.constant 0 : index
    %c0_34 = arith.constant 0 : index
    %c0_35 = arith.constant 0 : index
    %45 = vector.load %arg7[%c1_32, %c0_33, %c0_34, %c0_35] : memref<4x10x10x30xf32, #tpu.memory_space<vmem>>, vector<1x8x8x30xf32>
    %46 = vector.shape_cast %45 : vector<1x8x8x30xf32> to vector<8x8x30xf32>
    %c2_36 = arith.constant 2 : index
    %c0_37 = arith.constant 0 : index
    %c0_38 = arith.constant 0 : index
    %c0_39 = arith.constant 0 : index
    %47 = vector.load %arg7[%c2_36, %c0_37, %c0_38, %c0_39] : memref<4x10x10x30xf32, #tpu.memory_space<vmem>>, vector<1x8x8x30xf32>
    %48 = vector.shape_cast %47 : vector<1x8x8x30xf32> to vector<8x8x30xf32>
    %c3_40 = arith.constant 3 : index
    %c0_41 = arith.constant 0 : index
    %c0_42 = arith.constant 0 : index
    %c0_43 = arith.constant 0 : index
    %49 = vector.load %arg7[%c3_40, %c0_41, %c0_42, %c0_43] : memref<4x10x10x30xf32, #tpu.memory_space<vmem>>, vector<1x8x8x30xf32>
    %50 = vector.shape_cast %49 : vector<1x8x8x30xf32> to vector<8x8x30xf32>
    %51 = tpu.concatenate %44, %46, %48, %50 in 0 : vector<8x8x30xf32>, vector<8x8x30xf32>, vector<8x8x30xf32>, vector<8x8x30xf32> -> vector<32x8x30xf32>
    %52 = vector.shape_cast %51 : vector<32x8x30xf32> to vector<256x30xf32>
    %c0_44 = arith.constant 0 : index
    %c0_45 = arith.constant 0 : index
    %c0_46 = arith.constant 0 : index
    %53 = vector.load %arg4[%c0_44, %c0_45, %c0_46] : memref<25x30x72xf32, #tpu.memory_space<vmem>>, vector<1x30x72xf32>
    %54 = vector.shape_cast %53 : vector<1x30x72xf32> to vector<30x72xf32>
    %cst_47 = arith.constant dense<0.000000e+00> : vector<256x72xf32>
    %55 = tpu.matmul %52, %54, %cst_47 {dimension_numbers = #tpu.dot_dimension_numbers<[1], [0], [0], [1], [0, 0, 1, 1], [], []>} : vector<256x30xf32>, vector<30x72xf32>, vector<256x72xf32> -> vector<256x72xf32>
    %56 = arith.addf %42, %55 : vector<256x72xf32>
    %c1_48 = arith.constant 1 : index
    %c0_49 = arith.constant 0 : index
    %c0_50 = arith.constant 0 : index
    %c0_51 = arith.constant 0 : index
    %57 = vector.load %arg7[%c1_48, %c0_49, %c0_50, %c0_51] : memref<4x10x10x30xf32, #tpu.memory_space<vmem>>, vector<1x8x8x30xf32>
    %58 = vector.shape_cast %57 : vector<1x8x8x30xf32> to vector<8x8x30xf32>
    %c0_52 = arith.constant 0 : index
    %c0_53 = arith.constant 0 : index
    %c1_54 = arith.constant 1 : index
    %c0_55 = arith.constant 0 : index
    %59 = vector.load %arg7[%c0_52, %c0_53, %c1_54, %c0_55] : memref<4x10x10x30xf32, #tpu.memory_space<vmem>>, vector<1x8x8x30xf32>
    %60 = vector.shape_cast %59 : vector<1x8x8x30xf32> to vector<8x8x30xf32>
    %c3_56 = arith.constant 3 : index
    %c0_57 = arith.constant 0 : index
    %c0_58 = arith.constant 0 : index
    %c0_59 = arith.constant 0 : index
    %61 = vector.load %arg7[%c3_56, %c0_57, %c0_58, %c0_59] : memref<4x10x10x30xf32, #tpu.memory_space<vmem>>, vector<1x8x8x30xf32>
    %62 = vector.shape_cast %61 : vector<1x8x8x30xf32> to vector<8x8x30xf32>
    %c2_60 = arith.constant 2 : index
    %c0_61 = arith.constant 0 : index
    %c1_62 = arith.constant 1 : index
    %c0_63 = arith.constant 0 : index
    %63 = vector.load %arg7[%c2_60, %c0_61, %c1_62, %c0_63] : memref<4x10x10x30xf32, #tpu.memory_space<vmem>>, vector<1x8x8x30xf32>
    %64 = vector.shape_cast %63 : vector<1x8x8x30xf32> to vector<8x8x30xf32>
    %65 = tpu.concatenate %58, %60, %62, %64 in 0 : vector<8x8x30xf32>, vector<8x8x30xf32>, vector<8x8x30xf32>, vector<8x8x30xf32> -> vector<32x8x30xf32>
    %66 = vector.shape_cast %65 : vector<32x8x30xf32> to vector<256x30xf32>
    %c1_64 = arith.constant 1 : index
    %c0_65 = arith.constant 0 : index
    %c0_66 = arith.constant 0 : index
    %67 = vector.load %arg4[%c1_64, %c0_65, %c0_66] : memref<25x30x72xf32, #tpu.memory_space<vmem>>, vector<1x30x72xf32>
    %68 = vector.shape_cast %67 : vector<1x30x72xf32> to vector<30x72xf32>
    %cst_67 = arith.constant dense<0.000000e+00> : vector<256x72xf32>
    %69 = tpu.matmul %66, %68, %cst_67 {dimension_numbers = #tpu.dot_dimension_numbers<[1], [0], [0], [1], [0, 0, 1, 1], [], []>} : vector<256x30xf32>, vector<30x72xf32>, vector<256x72xf32> -> vector<256x72xf32>
    %70 = arith.addf %56, %69 : vector<256x72xf32>
    %c0_68 = arith.constant 0 : index
    %c0_69 = arith.constant 0 : index
    %c1_70 = arith.constant 1 : index
    %c0_71 = arith.constant 0 : index
    %71 = vector.load %arg7[%c0_68, %c0_69, %c1_70, %c0_71] : memref<4x10x10x30xf32, #tpu.memory_space<vmem>>, vector<1x8x8x30xf32>
    %72 = vector.shape_cast %71 : vector<1x8x8x30xf32> to vector<8x8x30xf32>
    %c1_72 = arith.constant 1 : index
    %c0_73 = arith.constant 0 : index
    %c1_74 = arith.constant 1 : index
    %c0_75 = arith.constant 0 : index
    %73 = vector.load %arg7[%c1_72, %c0_73, %c1_74, %c0_75] : memref<4x10x10x30xf32, #tpu.memory_space<vmem>>, vector<1x8x8x30xf32>
    %74 = vector.shape_cast %73 : vector<1x8x8x30xf32> to vector<8x8x30xf32>
    %c2_76 = arith.constant 2 : index
    %c0_77 = arith.constant 0 : index
    %c1_78 = arith.constant 1 : index
    %c0_79 = arith.constant 0 : index
    %75 = vector.load %arg7[%c2_76, %c0_77, %c1_78, %c0_79] : memref<4x10x10x30xf32, #tpu.memory_space<vmem>>, vector<1x8x8x30xf32>
    %76 = vector.shape_cast %75 : vector<1x8x8x30xf32> to vector<8x8x30xf32>
    %c3_80 = arith.constant 3 : index
    %c0_81 = arith.constant 0 : index
    %c1_82 = arith.constant 1 : index
    %c0_83 = arith.constant 0 : index
    %77 = vector.load %arg7[%c3_80, %c0_81, %c1_82, %c0_83] : memref<4x10x10x30xf32, #tpu.memory_space<vmem>>, vector<1x8x8x30xf32>
    %78 = vector.shape_cast %77 : vector<1x8x8x30xf32> to vector<8x8x30xf32>
    %79 = tpu.concatenate %72, %74, %76, %78 in 0 : vector<8x8x30xf32>, vector<8x8x30xf32>, vector<8x8x30xf32>, vector<8x8x30xf32> -> vector<32x8x30xf32>
    %80 = vector.shape_cast %79 : vector<32x8x30xf32> to vector<256x30xf32>
    %c2_84 = arith.constant 2 : index
    %c0_85 = arith.constant 0 : index
    %c0_86 = arith.constant 0 : index
    %81 = vector.load %arg4[%c2_84, %c0_85, %c0_86] : memref<25x30x72xf32, #tpu.memory_space<vmem>>, vector<1x30x72xf32>
    %82 = vector.shape_cast %81 : vector<1x30x72xf32> to vector<30x72xf32>
    %cst_87 = arith.constant dense<0.000000e+00> : vector<256x72xf32>
    %83 = tpu.matmul %80, %82, %cst_87 {dimension_numbers = #tpu.dot_dimension_numbers<[1], [0], [0], [1], [0, 0, 1, 1], [], []>} : vector<256x30xf32>, vector<30x72xf32>, vector<256x72xf32> -> vector<256x72xf32>
    %84 = arith.addf %70, %83 : vector<256x72xf32>
    %c1_88 = arith.constant 1 : index
    %c0_89 = arith.constant 0 : index
    %c1_90 = arith.constant 1 : index
    %c0_91 = arith.constant 0 : index
    %85 = vector.load %arg7[%c1_88, %c0_89, %c1_90, %c0_91] : memref<4x10x10x30xf32, #tpu.memory_space<vmem>>, vector<1x8x8x30xf32>
    %86 = vector.shape_cast %85 : vector<1x8x8x30xf32> to vector<8x8x30xf32>
    %c0_92 = arith.constant 0 : index
    %c0_93 = arith.constant 0 : index
    %c2_94 = arith.constant 2 : index
    %c0_95 = arith.constant 0 : index
    %87 = vector.load %arg7[%c0_92, %c0_93, %c2_94, %c0_95] : memref<4x10x10x30xf32, #tpu.memory_space<vmem>>, vector<1x8x8x30xf32>
    %88 = vector.shape_cast %87 : vector<1x8x8x30xf32> to vector<8x8x30xf32>
    %c3_96 = arith.constant 3 : index
    %c0_97 = arith.constant 0 : index
    %c1_98 = arith.constant 1 : index
    %c0_99 = arith.constant 0 : index
    %89 = vector.load %arg7[%c3_96, %c0_97, %c1_98, %c0_99] : memref<4x10x10x30xf32, #tpu.memory_space<vmem>>, vector<1x8x8x30xf32>
    %90 = vector.shape_cast %89 : vector<1x8x8x30xf32> to vector<8x8x30xf32>
    %c2_100 = arith.constant 2 : index
    %c0_101 = arith.constant 0 : index
    %c2_102 = arith.constant 2 : index
    %c0_103 = arith.constant 0 : index
    %91 = vector.load %arg7[%c2_100, %c0_101, %c2_102, %c0_103] : memref<4x10x10x30xf32, #tpu.memory_space<vmem>>, vector<1x8x8x30xf32>
    %92 = vector.shape_cast %91 : vector<1x8x8x30xf32> to vector<8x8x30xf32>
    %93 = tpu.concatenate %86, %88, %90, %92 in 0 : vector<8x8x30xf32>, vector<8x8x30xf32>, vector<8x8x30xf32>, vector<8x8x30xf32> -> vector<32x8x30xf32>
    %94 = vector.shape_cast %93 : vector<32x8x30xf32> to vector<256x30xf32>
    %c3_104 = arith.constant 3 : index
    %c0_105 = arith.constant 0 : index
    %c0_106 = arith.constant 0 : index
    %95 = vector.load %arg4[%c3_104, %c0_105, %c0_106] : memref<25x30x72xf32, #tpu.memory_space<vmem>>, vector<1x30x72xf32>
    %96 = vector.shape_cast %95 : vector<1x30x72xf32> to vector<30x72xf32>
    %cst_107 = arith.constant dense<0.000000e+00> : vector<256x72xf32>
    %97 = tpu.matmul %94, %96, %cst_107 {dimension_numbers = #tpu.dot_dimension_numbers<[1], [0], [0], [1], [0, 0, 1, 1], [], []>} : vector<256x30xf32>, vector<30x72xf32>, vector<256x72xf32> -> vector<256x72xf32>
    %98 = arith.addf %84, %97 : vector<256x72xf32>
    %c0_108 = arith.constant 0 : index
    %c0_109 = arith.constant 0 : index
    %c2_110 = arith.constant 2 : index
    %c0_111 = arith.constant 0 : index
    %99 = vector.load %arg7[%c0_108, %c0_109, %c2_110, %c0_111] : memref<4x10x10x30xf32, #tpu.memory_space<vmem>>, vector<1x8x8x30xf32>
    %100 = vector.shape_cast %99 : vector<1x8x8x30xf32> to vector<8x8x30xf32>
    %c1_112 = arith.constant 1 : index
    %c0_113 = arith.constant 0 : index
    %c2_114 = arith.constant 2 : index
    %c0_115 = arith.constant 0 : index
    %101 = vector.load %arg7[%c1_112, %c0_113, %c2_114, %c0_115] : memref<4x10x10x30xf32, #tpu.memory_space<vmem>>, vector<1x8x8x30xf32>
    %102 = vector.shape_cast %101 : vector<1x8x8x30xf32> to vector<8x8x30xf32>
    %c2_116 = arith.constant 2 : index
    %c0_117 = arith.constant 0 : index
    %c2_118 = arith.constant 2 : index
    %c0_119 = arith.constant 0 : index
    %103 = vector.load %arg7[%c2_116, %c0_117, %c2_118, %c0_119] : memref<4x10x10x30xf32, #tpu.memory_space<vmem>>, vector<1x8x8x30xf32>
    %104 = vector.shape_cast %103 : vector<1x8x8x30xf32> to vector<8x8x30xf32>
    %c3_120 = arith.constant 3 : index
    %c0_121 = arith.constant 0 : index
    %c2_122 = arith.constant 2 : index
    %c0_123 = arith.constant 0 : index
    %105 = vector.load %arg7[%c3_120, %c0_121, %c2_122, %c0_123] : memref<4x10x10x30xf32, #tpu.memory_space<vmem>>, vector<1x8x8x30xf32>
    %106 = vector.shape_cast %105 : vector<1x8x8x30xf32> to vector<8x8x30xf32>
    %107 = tpu.concatenate %100, %102, %104, %106 in 0 : vector<8x8x30xf32>, vector<8x8x30xf32>, vector<8x8x30xf32>, vector<8x8x30xf32> -> vector<32x8x30xf32>
    %108 = vector.shape_cast %107 : vector<32x8x30xf32> to vector<256x30xf32>
    %c4 = arith.constant 4 : index
    %c0_124 = arith.constant 0 : index
    %c0_125 = arith.constant 0 : index
    %109 = vector.load %arg4[%c4, %c0_124, %c0_125] : memref<25x30x72xf32, #tpu.memory_space<vmem>>, vector<1x30x72xf32>
    %110 = vector.shape_cast %109 : vector<1x30x72xf32> to vector<30x72xf32>
    %cst_126 = arith.constant dense<0.000000e+00> : vector<256x72xf32>
    %111 = tpu.matmul %108, %110, %cst_126 {dimension_numbers = #tpu.dot_dimension_numbers<[1], [0], [0], [1], [0, 0, 1, 1], [], []>} : vector<256x30xf32>, vector<30x72xf32>, vector<256x72xf32> -> vector<256x72xf32>
    %112 = arith.addf %98, %111 : vector<256x72xf32>
    %c2_127 = arith.constant 2 : index
    %c0_128 = arith.constant 0 : index
    %c0_129 = arith.constant 0 : index
    %c0_130 = arith.constant 0 : index
    %113 = vector.load %arg7[%c2_127, %c0_128, %c0_129, %c0_130] : memref<4x10x10x30xf32, #tpu.memory_space<vmem>>, vector<1x8x8x30xf32>
    %114 = vector.shape_cast %113 : vector<1x8x8x30xf32> to vector<8x8x30xf32>
    %c3_131 = arith.constant 3 : index
    %c0_132 = arith.constant 0 : index
    %c0_133 = arith.constant 0 : index
    %c0_134 = arith.constant 0 : index
    %115 = vector.load %arg7[%c3_131, %c0_132, %c0_133, %c0_134] : memref<4x10x10x30xf32, #tpu.memory_space<vmem>>, vector<1x8x8x30xf32>
    %116 = vector.shape_cast %115 : vector<1x8x8x30xf32> to vector<8x8x30xf32>
    %c0_135 = arith.constant 0 : index
    %c1_136 = arith.constant 1 : index
    %c0_137 = arith.constant 0 : index
    %c0_138 = arith.constant 0 : index
    %117 = vector.load %arg7[%c0_135, %c1_136, %c0_137, %c0_138] : memref<4x10x10x30xf32, #tpu.memory_space<vmem>>, vector<1x8x8x30xf32>
    %118 = vector.shape_cast %117 : vector<1x8x8x30xf32> to vector<8x8x30xf32>
    %c1_139 = arith.constant 1 : index
    %c1_140 = arith.constant 1 : index
    %c0_141 = arith.constant 0 : index
    %c0_142 = arith.constant 0 : index
    %119 = vector.load %arg7[%c1_139, %c1_140, %c0_141, %c0_142] : memref<4x10x10x30xf32, #tpu.memory_space<vmem>>, vector<1x8x8x30xf32>
    %120 = vector.shape_cast %119 : vector<1x8x8x30xf32> to vector<8x8x30xf32>
    %121 = tpu.concatenate %114, %116, %118, %120 in 0 : vector<8x8x30xf32>, vector<8x8x30xf32>, vector<8x8x30xf32>, vector<8x8x30xf32> -> vector<32x8x30xf32>
    %122 = vector.shape_cast %121 : vector<32x8x30xf32> to vector<256x30xf32>
    %c5 = arith.constant 5 : index
    %c0_143 = arith.constant 0 : index
    %c0_144 = arith.constant 0 : index
    %123 = vector.load %arg4[%c5, %c0_143, %c0_144] : memref<25x30x72xf32, #tpu.memory_space<vmem>>, vector<1x30x72xf32>
    %124 = vector.shape_cast %123 : vector<1x30x72xf32> to vector<30x72xf32>
    %cst_145 = arith.constant dense<0.000000e+00> : vector<256x72xf32>
    %125 = tpu.matmul %122, %124, %cst_145 {dimension_numbers = #tpu.dot_dimension_numbers<[1], [0], [0], [1], [0, 0, 1, 1], [], []>} : vector<256x30xf32>, vector<30x72xf32>, vector<256x72xf32> -> vector<256x72xf32>
    %126 = arith.addf %112, %125 : vector<256x72xf32>
    %c3_146 = arith.constant 3 : index
    %c0_147 = arith.constant 0 : index
    %c0_148 = arith.constant 0 : index
    %c0_149 = arith.constant 0 : index
    %127 = vector.load %arg7[%c3_146, %c0_147, %c0_148, %c0_149] : memref<4x10x10x30xf32, #tpu.memory_space<vmem>>, vector<1x8x8x30xf32>
    %128 = vector.shape_cast %127 : vector<1x8x8x30xf32> to vector<8x8x30xf32>
    %c2_150 = arith.constant 2 : index
    %c0_151 = arith.constant 0 : index
    %c1_152 = arith.constant 1 : index
    %c0_153 = arith.constant 0 : index
    %129 = vector.load %arg7[%c2_150, %c0_151, %c1_152, %c0_153] : memref<4x10x10x30xf32, #tpu.memory_space<vmem>>, vector<1x8x8x30xf32>
    %130 = vector.shape_cast %129 : vector<1x8x8x30xf32> to vector<8x8x30xf32>
    %c1_154 = arith.constant 1 : index
    %c1_155 = arith.constant 1 : index
    %c0_156 = arith.constant 0 : index
    %c0_157 = arith.constant 0 : index
    %131 = vector.load %arg7[%c1_154, %c1_155, %c0_156, %c0_157] : memref<4x10x10x30xf32, #tpu.memory_space<vmem>>, vector<1x8x8x30xf32>
    %132 = vector.shape_cast %131 : vector<1x8x8x30xf32> to vector<8x8x30xf32>
    %c0_158 = arith.constant 0 : index
    %c1_159 = arith.constant 1 : index
    %c1_160 = arith.constant 1 : index
    %c0_161 = arith.constant 0 : index
    %133 = vector.load %arg7[%c0_158, %c1_159, %c1_160, %c0_161] : memref<4x10x10x30xf32, #tpu.memory_space<vmem>>, vector<1x8x8x30xf32>
    %134 = vector.shape_cast %133 : vector<1x8x8x30xf32> to vector<8x8x30xf32>
    %135 = tpu.concatenate %128, %130, %132, %134 in 0 : vector<8x8x30xf32>, vector<8x8x30xf32>, vector<8x8x30xf32>, vector<8x8x30xf32> -> vector<32x8x30xf32>
    %136 = vector.shape_cast %135 : vector<32x8x30xf32> to vector<256x30xf32>
    %c6 = arith.constant 6 : index
    %c0_162 = arith.constant 0 : index
    %c0_163 = arith.constant 0 : index
    %137 = vector.load %arg4[%c6, %c0_162, %c0_163] : memref<25x30x72xf32, #tpu.memory_space<vmem>>, vector<1x30x72xf32>
    %138 = vector.shape_cast %137 : vector<1x30x72xf32> to vector<30x72xf32>
    %cst_164 = arith.constant dense<0.000000e+00> : vector<256x72xf32>
    %139 = tpu.matmul %136, %138, %cst_164 {dimension_numbers = #tpu.dot_dimension_numbers<[1], [0], [0], [1], [0, 0, 1, 1], [], []>} : vector<256x30xf32>, vector<30x72xf32>, vector<256x72xf32> -> vector<256x72xf32>
    %140 = arith.addf %126, %139 : vector<256x72xf32>
    %c2_165 = arith.constant 2 : index
    %c0_166 = arith.constant 0 : index
    %c1_167 = arith.constant 1 : index
    %c0_168 = arith.constant 0 : index
    %141 = vector.load %arg7[%c2_165, %c0_166, %c1_167, %c0_168] : memref<4x10x10x30xf32, #tpu.memory_space<vmem>>, vector<1x8x8x30xf32>
    %142 = vector.shape_cast %141 : vector<1x8x8x30xf32> to vector<8x8x30xf32>
    %c3_169 = arith.constant 3 : index
    %c0_170 = arith.constant 0 : index
    %c1_171 = arith.constant 1 : index
    %c0_172 = arith.constant 0 : index
    %143 = vector.load %arg7[%c3_169, %c0_170, %c1_171, %c0_172] : memref<4x10x10x30xf32, #tpu.memory_space<vmem>>, vector<1x8x8x30xf32>
    %144 = vector.shape_cast %143 : vector<1x8x8x30xf32> to vector<8x8x30xf32>
    %c0_173 = arith.constant 0 : index
    %c1_174 = arith.constant 1 : index
    %c1_175 = arith.constant 1 : index
    %c0_176 = arith.constant 0 : index
    %145 = vector.load %arg7[%c0_173, %c1_174, %c1_175, %c0_176] : memref<4x10x10x30xf32, #tpu.memory_space<vmem>>, vector<1x8x8x30xf32>
    %146 = vector.shape_cast %145 : vector<1x8x8x30xf32> to vector<8x8x30xf32>
    %c1_177 = arith.constant 1 : index
    %c1_178 = arith.constant 1 : index
    %c1_179 = arith.constant 1 : index
    %c0_180 = arith.constant 0 : index
    %147 = vector.load %arg7[%c1_177, %c1_178, %c1_179, %c0_180] : memref<4x10x10x30xf32, #tpu.memory_space<vmem>>, vector<1x8x8x30xf32>
    %148 = vector.shape_cast %147 : vector<1x8x8x30xf32> to vector<8x8x30xf32>
    %149 = tpu.concatenate %142, %144, %146, %148 in 0 : vector<8x8x30xf32>, vector<8x8x30xf32>, vector<8x8x30xf32>, vector<8x8x30xf32> -> vector<32x8x30xf32>
    %150 = vector.shape_cast %149 : vector<32x8x30xf32> to vector<256x30xf32>
    %c7 = arith.constant 7 : index
    %c0_181 = arith.constant 0 : index
    %c0_182 = arith.constant 0 : index
    %151 = vector.load %arg4[%c7, %c0_181, %c0_182] : memref<25x30x72xf32, #tpu.memory_space<vmem>>, vector<1x30x72xf32>
    %152 = vector.shape_cast %151 : vector<1x30x72xf32> to vector<30x72xf32>
    %cst_183 = arith.constant dense<0.000000e+00> : vector<256x72xf32>
    %153 = tpu.matmul %150, %152, %cst_183 {dimension_numbers = #tpu.dot_dimension_numbers<[1], [0], [0], [1], [0, 0, 1, 1], [], []>} : vector<256x30xf32>, vector<30x72xf32>, vector<256x72xf32> -> vector<256x72xf32>
    %154 = arith.addf %140, %153 : vector<256x72xf32>
    %c3_184 = arith.constant 3 : index
    %c0_185 = arith.constant 0 : index
    %c1_186 = arith.constant 1 : index
    %c0_187 = arith.constant 0 : index
    %155 = vector.load %arg7[%c3_184, %c0_185, %c1_186, %c0_187] : memref<4x10x10x30xf32, #tpu.memory_space<vmem>>, vector<1x8x8x30xf32>
    %156 = vector.shape_cast %155 : vector<1x8x8x30xf32> to vector<8x8x30xf32>
    %c2_188 = arith.constant 2 : index
    %c0_189 = arith.constant 0 : index
    %c2_190 = arith.constant 2 : index
    %c0_191 = arith.constant 0 : index
    %157 = vector.load %arg7[%c2_188, %c0_189, %c2_190, %c0_191] : memref<4x10x10x30xf32, #tpu.memory_space<vmem>>, vector<1x8x8x30xf32>
    %158 = vector.shape_cast %157 : vector<1x8x8x30xf32> to vector<8x8x30xf32>
    %c1_192 = arith.constant 1 : index
    %c1_193 = arith.constant 1 : index
    %c1_194 = arith.constant 1 : index
    %c0_195 = arith.constant 0 : index
    %159 = vector.load %arg7[%c1_192, %c1_193, %c1_194, %c0_195] : memref<4x10x10x30xf32, #tpu.memory_space<vmem>>, vector<1x8x8x30xf32>
    %160 = vector.shape_cast %159 : vector<1x8x8x30xf32> to vector<8x8x30xf32>
    %c0_196 = arith.constant 0 : index
    %c1_197 = arith.constant 1 : index
    %c2_198 = arith.constant 2 : index
    %c0_199 = arith.constant 0 : index
    %161 = vector.load %arg7[%c0_196, %c1_197, %c2_198, %c0_199] : memref<4x10x10x30xf32, #tpu.memory_space<vmem>>, vector<1x8x8x30xf32>
    %162 = vector.shape_cast %161 : vector<1x8x8x30xf32> to vector<8x8x30xf32>
    %163 = tpu.concatenate %156, %158, %160, %162 in 0 : vector<8x8x30xf32>, vector<8x8x30xf32>, vector<8x8x30xf32>, vector<8x8x30xf32> -> vector<32x8x30xf32>
    %164 = vector.shape_cast %163 : vector<32x8x30xf32> to vector<256x30xf32>
    %c8 = arith.constant 8 : index
    %c0_200 = arith.constant 0 : index
    %c0_201 = arith.constant 0 : index
    %165 = vector.load %arg4[%c8, %c0_200, %c0_201] : memref<25x30x72xf32, #tpu.memory_space<vmem>>, vector<1x30x72xf32>
    %166 = vector.shape_cast %165 : vector<1x30x72xf32> to vector<30x72xf32>
    %cst_202 = arith.constant dense<0.000000e+00> : vector<256x72xf32>
    %167 = tpu.matmul %164, %166, %cst_202 {dimension_numbers = #tpu.dot_dimension_numbers<[1], [0], [0], [1], [0, 0, 1, 1], [], []>} : vector<256x30xf32>, vector<30x72xf32>, vector<256x72xf32> -> vector<256x72xf32>
    %168 = arith.addf %154, %167 : vector<256x72xf32>
    %c2_203 = arith.constant 2 : index
    %c0_204 = arith.constant 0 : index
    %c2_205 = arith.constant 2 : index
    %c0_206 = arith.constant 0 : index
    %169 = vector.load %arg7[%c2_203, %c0_204, %c2_205, %c0_206] : memref<4x10x10x30xf32, #tpu.memory_space<vmem>>, vector<1x8x8x30xf32>
    %170 = vector.shape_cast %169 : vector<1x8x8x30xf32> to vector<8x8x30xf32>
    %c3_207 = arith.constant 3 : index
    %c0_208 = arith.constant 0 : index
    %c2_209 = arith.constant 2 : index
    %c0_210 = arith.constant 0 : index
    %171 = vector.load %arg7[%c3_207, %c0_208, %c2_209, %c0_210] : memref<4x10x10x30xf32, #tpu.memory_space<vmem>>, vector<1x8x8x30xf32>
    %172 = vector.shape_cast %171 : vector<1x8x8x30xf32> to vector<8x8x30xf32>
    %c0_211 = arith.constant 0 : index
    %c1_212 = arith.constant 1 : index
    %c2_213 = arith.constant 2 : index
    %c0_214 = arith.constant 0 : index
    %173 = vector.load %arg7[%c0_211, %c1_212, %c2_213, %c0_214] : memref<4x10x10x30xf32, #tpu.memory_space<vmem>>, vector<1x8x8x30xf32>
    %174 = vector.shape_cast %173 : vector<1x8x8x30xf32> to vector<8x8x30xf32>
    %c1_215 = arith.constant 1 : index
    %c1_216 = arith.constant 1 : index
    %c2_217 = arith.constant 2 : index
    %c0_218 = arith.constant 0 : index
    %175 = vector.load %arg7[%c1_215, %c1_216, %c2_217, %c0_218] : memref<4x10x10x30xf32, #tpu.memory_space<vmem>>, vector<1x8x8x30xf32>
    %176 = vector.shape_cast %175 : vector<1x8x8x30xf32> to vector<8x8x30xf32>
    %177 = tpu.concatenate %170, %172, %174, %176 in 0 : vector<8x8x30xf32>, vector<8x8x30xf32>, vector<8x8x30xf32>, vector<8x8x30xf32> -> vector<32x8x30xf32>
    %178 = vector.shape_cast %177 : vector<32x8x30xf32> to vector<256x30xf32>
    %c9 = arith.constant 9 : index
    %c0_219 = arith.constant 0 : index
    %c0_220 = arith.constant 0 : index
    %179 = vector.load %arg4[%c9, %c0_219, %c0_220] : memref<25x30x72xf32, #tpu.memory_space<vmem>>, vector<1x30x72xf32>
    %180 = vector.shape_cast %179 : vector<1x30x72xf32> to vector<30x72xf32>
    %cst_221 = arith.constant dense<0.000000e+00> : vector<256x72xf32>
    %181 = tpu.matmul %178, %180, %cst_221 {dimension_numbers = #tpu.dot_dimension_numbers<[1], [0], [0], [1], [0, 0, 1, 1], [], []>} : vector<256x30xf32>, vector<30x72xf32>, vector<256x72xf32> -> vector<256x72xf32>
    %182 = arith.addf %168, %181 : vector<256x72xf32>
    %c0_222 = arith.constant 0 : index
    %c1_223 = arith.constant 1 : index
    %c0_224 = arith.constant 0 : index
    %c0_225 = arith.constant 0 : index
    %183 = vector.load %arg7[%c0_222, %c1_223, %c0_224, %c0_225] : memref<4x10x10x30xf32, #tpu.memory_space<vmem>>, vector<1x8x8x30xf32>
    %184 = vector.shape_cast %183 : vector<1x8x8x30xf32> to vector<8x8x30xf32>
    %c1_226 = arith.constant 1 : index
    %c1_227 = arith.constant 1 : index
    %c0_228 = arith.constant 0 : index
    %c0_229 = arith.constant 0 : index
    %185 = vector.load %arg7[%c1_226, %c1_227, %c0_228, %c0_229] : memref<4x10x10x30xf32, #tpu.memory_space<vmem>>, vector<1x8x8x30xf32>
    %186 = vector.shape_cast %185 : vector<1x8x8x30xf32> to vector<8x8x30xf32>
    %c2_230 = arith.constant 2 : index
    %c1_231 = arith.constant 1 : index
    %c0_232 = arith.constant 0 : index
    %c0_233 = arith.constant 0 : index
    %187 = vector.load %arg7[%c2_230, %c1_231, %c0_232, %c0_233] : memref<4x10x10x30xf32, #tpu.memory_space<vmem>>, vector<1x8x8x30xf32>
    %188 = vector.shape_cast %187 : vector<1x8x8x30xf32> to vector<8x8x30xf32>
    %c3_234 = arith.constant 3 : index
    %c1_235 = arith.constant 1 : index
    %c0_236 = arith.constant 0 : index
    %c0_237 = arith.constant 0 : index
    %189 = vector.load %arg7[%c3_234, %c1_235, %c0_236, %c0_237] : memref<4x10x10x30xf32, #tpu.memory_space<vmem>>, vector<1x8x8x30xf32>
    %190 = vector.shape_cast %189 : vector<1x8x8x30xf32> to vector<8x8x30xf32>
    %191 = tpu.concatenate %184, %186, %188, %190 in 0 : vector<8x8x30xf32>, vector<8x8x30xf32>, vector<8x8x30xf32>, vector<8x8x30xf32> -> vector<32x8x30xf32>
    %192 = vector.shape_cast %191 : vector<32x8x30xf32> to vector<256x30xf32>
    %c10 = arith.constant 10 : index
    %c0_238 = arith.constant 0 : index
    %c0_239 = arith.constant 0 : index
    %193 = vector.load %arg4[%c10, %c0_238, %c0_239] : memref<25x30x72xf32, #tpu.memory_space<vmem>>, vector<1x30x72xf32>
    %194 = vector.shape_cast %193 : vector<1x30x72xf32> to vector<30x72xf32>
    %cst_240 = arith.constant dense<0.000000e+00> : vector<256x72xf32>
    %195 = tpu.matmul %192, %194, %cst_240 {dimension_numbers = #tpu.dot_dimension_numbers<[1], [0], [0], [1], [0, 0, 1, 1], [], []>} : vector<256x30xf32>, vector<30x72xf32>, vector<256x72xf32> -> vector<256x72xf32>
    %196 = arith.addf %182, %195 : vector<256x72xf32>
    %c1_241 = arith.constant 1 : index
    %c1_242 = arith.constant 1 : index
    %c0_243 = arith.constant 0 : index
    %c0_244 = arith.constant 0 : index
    %197 = vector.load %arg7[%c1_241, %c1_242, %c0_243, %c0_244] : memref<4x10x10x30xf32, #tpu.memory_space<vmem>>, vector<1x8x8x30xf32>
    %198 = vector.shape_cast %197 : vector<1x8x8x30xf32> to vector<8x8x30xf32>
    %c0_245 = arith.constant 0 : index
    %c1_246 = arith.constant 1 : index
    %c1_247 = arith.constant 1 : index
    %c0_248 = arith.constant 0 : index
    %199 = vector.load %arg7[%c0_245, %c1_246, %c1_247, %c0_248] : memref<4x10x10x30xf32, #tpu.memory_space<vmem>>, vector<1x8x8x30xf32>
    %200 = vector.shape_cast %199 : vector<1x8x8x30xf32> to vector<8x8x30xf32>
    %c3_249 = arith.constant 3 : index
    %c1_250 = arith.constant 1 : index
    %c0_251 = arith.constant 0 : index
    %c0_252 = arith.constant 0 : index
    %201 = vector.load %arg7[%c3_249, %c1_250, %c0_251, %c0_252] : memref<4x10x10x30xf32, #tpu.memory_space<vmem>>, vector<1x8x8x30xf32>
    %202 = vector.shape_cast %201 : vector<1x8x8x30xf32> to vector<8x8x30xf32>
    %c2_253 = arith.constant 2 : index
    %c1_254 = arith.constant 1 : index
    %c1_255 = arith.constant 1 : index
    %c0_256 = arith.constant 0 : index
    %203 = vector.load %arg7[%c2_253, %c1_254, %c1_255, %c0_256] : memref<4x10x10x30xf32, #tpu.memory_space<vmem>>, vector<1x8x8x30xf32>
    %204 = vector.shape_cast %203 : vector<1x8x8x30xf32> to vector<8x8x30xf32>
    %205 = tpu.concatenate %198, %200, %202, %204 in 0 : vector<8x8x30xf32>, vector<8x8x30xf32>, vector<8x8x30xf32>, vector<8x8x30xf32> -> vector<32x8x30xf32>
    %206 = vector.shape_cast %205 : vector<32x8x30xf32> to vector<256x30xf32>
    %c11 = arith.constant 11 : index
    %c0_257 = arith.constant 0 : index
    %c0_258 = arith.constant 0 : index
    %207 = vector.load %arg4[%c11, %c0_257, %c0_258] : memref<25x30x72xf32, #tpu.memory_space<vmem>>, vector<1x30x72xf32>
    %208 = vector.shape_cast %207 : vector<1x30x72xf32> to vector<30x72xf32>
    %cst_259 = arith.constant dense<0.000000e+00> : vector<256x72xf32>
    %209 = tpu.matmul %206, %208, %cst_259 {dimension_numbers = #tpu.dot_dimension_numbers<[1], [0], [0], [1], [0, 0, 1, 1], [], []>} : vector<256x30xf32>, vector<30x72xf32>, vector<256x72xf32> -> vector<256x72xf32>
    %210 = arith.addf %196, %209 : vector<256x72xf32>
    %c0_260 = arith.constant 0 : index
    %c1_261 = arith.constant 1 : index
    %c1_262 = arith.constant 1 : index
    %c0_263 = arith.constant 0 : index
    %211 = vector.load %arg7[%c0_260, %c1_261, %c1_262, %c0_263] : memref<4x10x10x30xf32, #tpu.memory_space<vmem>>, vector<1x8x8x30xf32>
    %212 = vector.shape_cast %211 : vector<1x8x8x30xf32> to vector<8x8x30xf32>
    %c1_264 = arith.constant 1 : index
    %c1_265 = arith.constant 1 : index
    %c1_266 = arith.constant 1 : index
    %c0_267 = arith.constant 0 : index
    %213 = vector.load %arg7[%c1_264, %c1_265, %c1_266, %c0_267] : memref<4x10x10x30xf32, #tpu.memory_space<vmem>>, vector<1x8x8x30xf32>
    %214 = vector.shape_cast %213 : vector<1x8x8x30xf32> to vector<8x8x30xf32>
    %c2_268 = arith.constant 2 : index
    %c1_269 = arith.constant 1 : index
    %c1_270 = arith.constant 1 : index
    %c0_271 = arith.constant 0 : index
    %215 = vector.load %arg7[%c2_268, %c1_269, %c1_270, %c0_271] : memref<4x10x10x30xf32, #tpu.memory_space<vmem>>, vector<1x8x8x30xf32>
    %216 = vector.shape_cast %215 : vector<1x8x8x30xf32> to vector<8x8x30xf32>
    %c3_272 = arith.constant 3 : index
    %c1_273 = arith.constant 1 : index
    %c1_274 = arith.constant 1 : index
    %c0_275 = arith.constant 0 : index
    %217 = vector.load %arg7[%c3_272, %c1_273, %c1_274, %c0_275] : memref<4x10x10x30xf32, #tpu.memory_space<vmem>>, vector<1x8x8x30xf32>
    %218 = vector.shape_cast %217 : vector<1x8x8x30xf32> to vector<8x8x30xf32>
    %219 = tpu.concatenate %212, %214, %216, %218 in 0 : vector<8x8x30xf32>, vector<8x8x30xf32>, vector<8x8x30xf32>, vector<8x8x30xf32> -> vector<32x8x30xf32>
    %220 = vector.shape_cast %219 : vector<32x8x30xf32> to vector<256x30xf32>
    %c12 = arith.constant 12 : index
    %c0_276 = arith.constant 0 : index
    %c0_277 = arith.constant 0 : index
    %221 = vector.load %arg4[%c12, %c0_276, %c0_277] : memref<25x30x72xf32, #tpu.memory_space<vmem>>, vector<1x30x72xf32>
    %222 = vector.shape_cast %221 : vector<1x30x72xf32> to vector<30x72xf32>
    %cst_278 = arith.constant dense<0.000000e+00> : vector<256x72xf32>
    %223 = tpu.matmul %220, %222, %cst_278 {dimension_numbers = #tpu.dot_dimension_numbers<[1], [0], [0], [1], [0, 0, 1, 1], [], []>} : vector<256x30xf32>, vector<30x72xf32>, vector<256x72xf32> -> vector<256x72xf32>
    %224 = arith.addf %210, %223 : vector<256x72xf32>
    %c1_279 = arith.constant 1 : index
    %c1_280 = arith.constant 1 : index
    %c1_281 = arith.constant 1 : index
    %c0_282 = arith.constant 0 : index
    %225 = vector.load %arg7[%c1_279, %c1_280, %c1_281, %c0_282] : memref<4x10x10x30xf32, #tpu.memory_space<vmem>>, vector<1x8x8x30xf32>
    %226 = vector.shape_cast %225 : vector<1x8x8x30xf32> to vector<8x8x30xf32>
    %c0_283 = arith.constant 0 : index
    %c1_284 = arith.constant 1 : index
    %c2_285 = arith.constant 2 : index
    %c0_286 = arith.constant 0 : index
    %227 = vector.load %arg7[%c0_283, %c1_284, %c2_285, %c0_286] : memref<4x10x10x30xf32, #tpu.memory_space<vmem>>, vector<1x8x8x30xf32>
    %228 = vector.shape_cast %227 : vector<1x8x8x30xf32> to vector<8x8x30xf32>
    %c3_287 = arith.constant 3 : index
    %c1_288 = arith.constant 1 : index
    %c1_289 = arith.constant 1 : index
    %c0_290 = arith.constant 0 : index
    %229 = vector.load %arg7[%c3_287, %c1_288, %c1_289, %c0_290] : memref<4x10x10x30xf32, #tpu.memory_space<vmem>>, vector<1x8x8x30xf32>
    %230 = vector.shape_cast %229 : vector<1x8x8x30xf32> to vector<8x8x30xf32>
    %c2_291 = arith.constant 2 : index
    %c1_292 = arith.constant 1 : index
    %c2_293 = arith.constant 2 : index
    %c0_294 = arith.constant 0 : index
    %231 = vector.load %arg7[%c2_291, %c1_292, %c2_293, %c0_294] : memref<4x10x10x30xf32, #tpu.memory_space<vmem>>, vector<1x8x8x30xf32>
    %232 = vector.shape_cast %231 : vector<1x8x8x30xf32> to vector<8x8x30xf32>
    %233 = tpu.concatenate %226, %228, %230, %232 in 0 : vector<8x8x30xf32>, vector<8x8x30xf32>, vector<8x8x30xf32>, vector<8x8x30xf32> -> vector<32x8x30xf32>
    %234 = vector.shape_cast %233 : vector<32x8x30xf32> to vector<256x30xf32>
    %c13 = arith.constant 13 : index
    %c0_295 = arith.constant 0 : index
    %c0_296 = arith.constant 0 : index
    %235 = vector.load %arg4[%c13, %c0_295, %c0_296] : memref<25x30x72xf32, #tpu.memory_space<vmem>>, vector<1x30x72xf32>
    %236 = vector.shape_cast %235 : vector<1x30x72xf32> to vector<30x72xf32>
    %cst_297 = arith.constant dense<0.000000e+00> : vector<256x72xf32>
    %237 = tpu.matmul %234, %236, %cst_297 {dimension_numbers = #tpu.dot_dimension_numbers<[1], [0], [0], [1], [0, 0, 1, 1], [], []>} : vector<256x30xf32>, vector<30x72xf32>, vector<256x72xf32> -> vector<256x72xf32>
    %238 = arith.addf %224, %237 : vector<256x72xf32>
    %c0_298 = arith.constant 0 : index
    %c1_299 = arith.constant 1 : index
    %c2_300 = arith.constant 2 : index
    %c0_301 = arith.constant 0 : index
    %239 = vector.load %arg7[%c0_298, %c1_299, %c2_300, %c0_301] : memref<4x10x10x30xf32, #tpu.memory_space<vmem>>, vector<1x8x8x30xf32>
    %240 = vector.shape_cast %239 : vector<1x8x8x30xf32> to vector<8x8x30xf32>
    %c1_302 = arith.constant 1 : index
    %c1_303 = arith.constant 1 : index
    %c2_304 = arith.constant 2 : index
    %c0_305 = arith.constant 0 : index
    %241 = vector.load %arg7[%c1_302, %c1_303, %c2_304, %c0_305] : memref<4x10x10x30xf32, #tpu.memory_space<vmem>>, vector<1x8x8x30xf32>
    %242 = vector.shape_cast %241 : vector<1x8x8x30xf32> to vector<8x8x30xf32>
    %c2_306 = arith.constant 2 : index
    %c1_307 = arith.constant 1 : index
    %c2_308 = arith.constant 2 : index
    %c0_309 = arith.constant 0 : index
    %243 = vector.load %arg7[%c2_306, %c1_307, %c2_308, %c0_309] : memref<4x10x10x30xf32, #tpu.memory_space<vmem>>, vector<1x8x8x30xf32>
    %244 = vector.shape_cast %243 : vector<1x8x8x30xf32> to vector<8x8x30xf32>
    %c3_310 = arith.constant 3 : index
    %c1_311 = arith.constant 1 : index
    %c2_312 = arith.constant 2 : index
    %c0_313 = arith.constant 0 : index
    %245 = vector.load %arg7[%c3_310, %c1_311, %c2_312, %c0_313] : memref<4x10x10x30xf32, #tpu.memory_space<vmem>>, vector<1x8x8x30xf32>
    %246 = vector.shape_cast %245 : vector<1x8x8x30xf32> to vector<8x8x30xf32>
    %247 = tpu.concatenate %240, %242, %244, %246 in 0 : vector<8x8x30xf32>, vector<8x8x30xf32>, vector<8x8x30xf32>, vector<8x8x30xf32> -> vector<32x8x30xf32>
    %248 = vector.shape_cast %247 : vector<32x8x30xf32> to vector<256x30xf32>
    %c14 = arith.constant 14 : index
    %c0_314 = arith.constant 0 : index
    %c0_315 = arith.constant 0 : index
    %249 = vector.load %arg4[%c14, %c0_314, %c0_315] : memref<25x30x72xf32, #tpu.memory_space<vmem>>, vector<1x30x72xf32>
    %250 = vector.shape_cast %249 : vector<1x30x72xf32> to vector<30x72xf32>
    %cst_316 = arith.constant dense<0.000000e+00> : vector<256x72xf32>
    %251 = tpu.matmul %248, %250, %cst_316 {dimension_numbers = #tpu.dot_dimension_numbers<[1], [0], [0], [1], [0, 0, 1, 1], [], []>} : vector<256x30xf32>, vector<30x72xf32>, vector<256x72xf32> -> vector<256x72xf32>
    %252 = arith.addf %238, %251 : vector<256x72xf32>
    %c2_317 = arith.constant 2 : index
    %c1_318 = arith.constant 1 : index
    %c0_319 = arith.constant 0 : index
    %c0_320 = arith.constant 0 : index
    %253 = vector.load %arg7[%c2_317, %c1_318, %c0_319, %c0_320] : memref<4x10x10x30xf32, #tpu.memory_space<vmem>>, vector<1x8x8x30xf32>
    %254 = vector.shape_cast %253 : vector<1x8x8x30xf32> to vector<8x8x30xf32>
    %c3_321 = arith.constant 3 : index
    %c1_322 = arith.constant 1 : index
    %c0_323 = arith.constant 0 : index
    %c0_324 = arith.constant 0 : index
    %255 = vector.load %arg7[%c3_321, %c1_322, %c0_323, %c0_324] : memref<4x10x10x30xf32, #tpu.memory_space<vmem>>, vector<1x8x8x30xf32>
    %256 = vector.shape_cast %255 : vector<1x8x8x30xf32> to vector<8x8x30xf32>
    %c0_325 = arith.constant 0 : index
    %c2_326 = arith.constant 2 : index
    %c0_327 = arith.constant 0 : index
    %c0_328 = arith.constant 0 : index
    %257 = vector.load %arg7[%c0_325, %c2_326, %c0_327, %c0_328] : memref<4x10x10x30xf32, #tpu.memory_space<vmem>>, vector<1x8x8x30xf32>
    %258 = vector.shape_cast %257 : vector<1x8x8x30xf32> to vector<8x8x30xf32>
    %c1_329 = arith.constant 1 : index
    %c2_330 = arith.constant 2 : index
    %c0_331 = arith.constant 0 : index
    %c0_332 = arith.constant 0 : index
    %259 = vector.load %arg7[%c1_329, %c2_330, %c0_331, %c0_332] : memref<4x10x10x30xf32, #tpu.memory_space<vmem>>, vector<1x8x8x30xf32>
    %260 = vector.shape_cast %259 : vector<1x8x8x30xf32> to vector<8x8x30xf32>
    %261 = tpu.concatenate %254, %256, %258, %260 in 0 : vector<8x8x30xf32>, vector<8x8x30xf32>, vector<8x8x30xf32>, vector<8x8x30xf32> -> vector<32x8x30xf32>
    %262 = vector.shape_cast %261 : vector<32x8x30xf32> to vector<256x30xf32>
    %c15 = arith.constant 15 : index
    %c0_333 = arith.constant 0 : index
    %c0_334 = arith.constant 0 : index
    %263 = vector.load %arg4[%c15, %c0_333, %c0_334] : memref<25x30x72xf32, #tpu.memory_space<vmem>>, vector<1x30x72xf32>
    %264 = vector.shape_cast %263 : vector<1x30x72xf32> to vector<30x72xf32>
    %cst_335 = arith.constant dense<0.000000e+00> : vector<256x72xf32>
    %265 = tpu.matmul %262, %264, %cst_335 {dimension_numbers = #tpu.dot_dimension_numbers<[1], [0], [0], [1], [0, 0, 1, 1], [], []>} : vector<256x30xf32>, vector<30x72xf32>, vector<256x72xf32> -> vector<256x72xf32>
    %266 = arith.addf %252, %265 : vector<256x72xf32>
    %c3_336 = arith.constant 3 : index
    %c1_337 = arith.constant 1 : index
    %c0_338 = arith.constant 0 : index
    %c0_339 = arith.constant 0 : index
    %267 = vector.load %arg7[%c3_336, %c1_337, %c0_338, %c0_339] : memref<4x10x10x30xf32, #tpu.memory_space<vmem>>, vector<1x8x8x30xf32>
    %268 = vector.shape_cast %267 : vector<1x8x8x30xf32> to vector<8x8x30xf32>
    %c2_340 = arith.constant 2 : index
    %c1_341 = arith.constant 1 : index
    %c1_342 = arith.constant 1 : index
    %c0_343 = arith.constant 0 : index
    %269 = vector.load %arg7[%c2_340, %c1_341, %c1_342, %c0_343] : memref<4x10x10x30xf32, #tpu.memory_space<vmem>>, vector<1x8x8x30xf32>
    %270 = vector.shape_cast %269 : vector<1x8x8x30xf32> to vector<8x8x30xf32>
    %c1_344 = arith.constant 1 : index
    %c2_345 = arith.constant 2 : index
    %c0_346 = arith.constant 0 : index
    %c0_347 = arith.constant 0 : index
    %271 = vector.load %arg7[%c1_344, %c2_345, %c0_346, %c0_347] : memref<4x10x10x30xf32, #tpu.memory_space<vmem>>, vector<1x8x8x30xf32>
    %272 = vector.shape_cast %271 : vector<1x8x8x30xf32> to vector<8x8x30xf32>
    %c0_348 = arith.constant 0 : index
    %c2_349 = arith.constant 2 : index
    %c1_350 = arith.constant 1 : index
    %c0_351 = arith.constant 0 : index
    %273 = vector.load %arg7[%c0_348, %c2_349, %c1_350, %c0_351] : memref<4x10x10x30xf32, #tpu.memory_space<vmem>>, vector<1x8x8x30xf32>
    %274 = vector.shape_cast %273 : vector<1x8x8x30xf32> to vector<8x8x30xf32>
    %275 = tpu.concatenate %268, %270, %272, %274 in 0 : vector<8x8x30xf32>, vector<8x8x30xf32>, vector<8x8x30xf32>, vector<8x8x30xf32> -> vector<32x8x30xf32>
    %276 = vector.shape_cast %275 : vector<32x8x30xf32> to vector<256x30xf32>
    %c16 = arith.constant 16 : index
    %c0_352 = arith.constant 0 : index
    %c0_353 = arith.constant 0 : index
    %277 = vector.load %arg4[%c16, %c0_352, %c0_353] : memref<25x30x72xf32, #tpu.memory_space<vmem>>, vector<1x30x72xf32>
    %278 = vector.shape_cast %277 : vector<1x30x72xf32> to vector<30x72xf32>
    %cst_354 = arith.constant dense<0.000000e+00> : vector<256x72xf32>
    %279 = tpu.matmul %276, %278, %cst_354 {dimension_numbers = #tpu.dot_dimension_numbers<[1], [0], [0], [1], [0, 0, 1, 1], [], []>} : vector<256x30xf32>, vector<30x72xf32>, vector<256x72xf32> -> vector<256x72xf32>
    %280 = arith.addf %266, %279 : vector<256x72xf32>
    %c2_355 = arith.constant 2 : index
    %c1_356 = arith.constant 1 : index
    %c1_357 = arith.constant 1 : index
    %c0_358 = arith.constant 0 : index
    %281 = vector.load %arg7[%c2_355, %c1_356, %c1_357, %c0_358] : memref<4x10x10x30xf32, #tpu.memory_space<vmem>>, vector<1x8x8x30xf32>
    %282 = vector.shape_cast %281 : vector<1x8x8x30xf32> to vector<8x8x30xf32>
    %c3_359 = arith.constant 3 : index
    %c1_360 = arith.constant 1 : index
    %c1_361 = arith.constant 1 : index
    %c0_362 = arith.constant 0 : index
    %283 = vector.load %arg7[%c3_359, %c1_360, %c1_361, %c0_362] : memref<4x10x10x30xf32, #tpu.memory_space<vmem>>, vector<1x8x8x30xf32>
    %284 = vector.shape_cast %283 : vector<1x8x8x30xf32> to vector<8x8x30xf32>
    %c0_363 = arith.constant 0 : index
    %c2_364 = arith.constant 2 : index
    %c1_365 = arith.constant 1 : index
    %c0_366 = arith.constant 0 : index
    %285 = vector.load %arg7[%c0_363, %c2_364, %c1_365, %c0_366] : memref<4x10x10x30xf32, #tpu.memory_space<vmem>>, vector<1x8x8x30xf32>
    %286 = vector.shape_cast %285 : vector<1x8x8x30xf32> to vector<8x8x30xf32>
    %c1_367 = arith.constant 1 : index
    %c2_368 = arith.constant 2 : index
    %c1_369 = arith.constant 1 : index
    %c0_370 = arith.constant 0 : index
    %287 = vector.load %arg7[%c1_367, %c2_368, %c1_369, %c0_370] : memref<4x10x10x30xf32, #tpu.memory_space<vmem>>, vector<1x8x8x30xf32>
    %288 = vector.shape_cast %287 : vector<1x8x8x30xf32> to vector<8x8x30xf32>
    %289 = tpu.concatenate %282, %284, %286, %288 in 0 : vector<8x8x30xf32>, vector<8x8x30xf32>, vector<8x8x30xf32>, vector<8x8x30xf32> -> vector<32x8x30xf32>
    %290 = vector.shape_cast %289 : vector<32x8x30xf32> to vector<256x30xf32>
    %c17 = arith.constant 17 : index
    %c0_371 = arith.constant 0 : index
    %c0_372 = arith.constant 0 : index
    %291 = vector.load %arg4[%c17, %c0_371, %c0_372] : memref<25x30x72xf32, #tpu.memory_space<vmem>>, vector<1x30x72xf32>
    %292 = vector.shape_cast %291 : vector<1x30x72xf32> to vector<30x72xf32>
    %cst_373 = arith.constant dense<0.000000e+00> : vector<256x72xf32>
    %293 = tpu.matmul %290, %292, %cst_373 {dimension_numbers = #tpu.dot_dimension_numbers<[1], [0], [0], [1], [0, 0, 1, 1], [], []>} : vector<256x30xf32>, vector<30x72xf32>, vector<256x72xf32> -> vector<256x72xf32>
    %294 = arith.addf %280, %293 : vector<256x72xf32>
    %c3_374 = arith.constant 3 : index
    %c1_375 = arith.constant 1 : index
    %c1_376 = arith.constant 1 : index
    %c0_377 = arith.constant 0 : index
    %295 = vector.load %arg7[%c3_374, %c1_375, %c1_376, %c0_377] : memref<4x10x10x30xf32, #tpu.memory_space<vmem>>, vector<1x8x8x30xf32>
    %296 = vector.shape_cast %295 : vector<1x8x8x30xf32> to vector<8x8x30xf32>
    %c2_378 = arith.constant 2 : index
    %c1_379 = arith.constant 1 : index
    %c2_380 = arith.constant 2 : index
    %c0_381 = arith.constant 0 : index
    %297 = vector.load %arg7[%c2_378, %c1_379, %c2_380, %c0_381] : memref<4x10x10x30xf32, #tpu.memory_space<vmem>>, vector<1x8x8x30xf32>
    %298 = vector.shape_cast %297 : vector<1x8x8x30xf32> to vector<8x8x30xf32>
    %c1_382 = arith.constant 1 : index
    %c2_383 = arith.constant 2 : index
    %c1_384 = arith.constant 1 : index
    %c0_385 = arith.constant 0 : index
    %299 = vector.load %arg7[%c1_382, %c2_383, %c1_384, %c0_385] : memref<4x10x10x30xf32, #tpu.memory_space<vmem>>, vector<1x8x8x30xf32>
    %300 = vector.shape_cast %299 : vector<1x8x8x30xf32> to vector<8x8x30xf32>
    %c0_386 = arith.constant 0 : index
    %c2_387 = arith.constant 2 : index
    %c2_388 = arith.constant 2 : index
    %c0_389 = arith.constant 0 : index
    %301 = vector.load %arg7[%c0_386, %c2_387, %c2_388, %c0_389] : memref<4x10x10x30xf32, #tpu.memory_space<vmem>>, vector<1x8x8x30xf32>
    %302 = vector.shape_cast %301 : vector<1x8x8x30xf32> to vector<8x8x30xf32>
    %303 = tpu.concatenate %296, %298, %300, %302 in 0 : vector<8x8x30xf32>, vector<8x8x30xf32>, vector<8x8x30xf32>, vector<8x8x30xf32> -> vector<32x8x30xf32>
    %304 = vector.shape_cast %303 : vector<32x8x30xf32> to vector<256x30xf32>
    %c18 = arith.constant 18 : index
    %c0_390 = arith.constant 0 : index
    %c0_391 = arith.constant 0 : index
    %305 = vector.load %arg4[%c18, %c0_390, %c0_391] : memref<25x30x72xf32, #tpu.memory_space<vmem>>, vector<1x30x72xf32>
    %306 = vector.shape_cast %305 : vector<1x30x72xf32> to vector<30x72xf32>
    %cst_392 = arith.constant dense<0.000000e+00> : vector<256x72xf32>
    %307 = tpu.matmul %304, %306, %cst_392 {dimension_numbers = #tpu.dot_dimension_numbers<[1], [0], [0], [1], [0, 0, 1, 1], [], []>} : vector<256x30xf32>, vector<30x72xf32>, vector<256x72xf32> -> vector<256x72xf32>
    %308 = arith.addf %294, %307 : vector<256x72xf32>
    %c2_393 = arith.constant 2 : index
    %c1_394 = arith.constant 1 : index
    %c2_395 = arith.constant 2 : index
    %c0_396 = arith.constant 0 : index
    %309 = vector.load %arg7[%c2_393, %c1_394, %c2_395, %c0_396] : memref<4x10x10x30xf32, #tpu.memory_space<vmem>>, vector<1x8x8x30xf32>
    %310 = vector.shape_cast %309 : vector<1x8x8x30xf32> to vector<8x8x30xf32>
    %c3_397 = arith.constant 3 : index
    %c1_398 = arith.constant 1 : index
    %c2_399 = arith.constant 2 : index
    %c0_400 = arith.constant 0 : index
    %311 = vector.load %arg7[%c3_397, %c1_398, %c2_399, %c0_400] : memref<4x10x10x30xf32, #tpu.memory_space<vmem>>, vector<1x8x8x30xf32>
    %312 = vector.shape_cast %311 : vector<1x8x8x30xf32> to vector<8x8x30xf32>
    %c0_401 = arith.constant 0 : index
    %c2_402 = arith.constant 2 : index
    %c2_403 = arith.constant 2 : index
    %c0_404 = arith.constant 0 : index
    %313 = vector.load %arg7[%c0_401, %c2_402, %c2_403, %c0_404] : memref<4x10x10x30xf32, #tpu.memory_space<vmem>>, vector<1x8x8x30xf32>
    %314 = vector.shape_cast %313 : vector<1x8x8x30xf32> to vector<8x8x30xf32>
    %c1_405 = arith.constant 1 : index
    %c2_406 = arith.constant 2 : index
    %c2_407 = arith.constant 2 : index
    %c0_408 = arith.constant 0 : index
    %315 = vector.load %arg7[%c1_405, %c2_406, %c2_407, %c0_408] : memref<4x10x10x30xf32, #tpu.memory_space<vmem>>, vector<1x8x8x30xf32>
    %316 = vector.shape_cast %315 : vector<1x8x8x30xf32> to vector<8x8x30xf32>
    %317 = tpu.concatenate %310, %312, %314, %316 in 0 : vector<8x8x30xf32>, vector<8x8x30xf32>, vector<8x8x30xf32>, vector<8x8x30xf32> -> vector<32x8x30xf32>
    %318 = vector.shape_cast %317 : vector<32x8x30xf32> to vector<256x30xf32>
    %c19 = arith.constant 19 : index
    %c0_409 = arith.constant 0 : index
    %c0_410 = arith.constant 0 : index
    %319 = vector.load %arg4[%c19, %c0_409, %c0_410] : memref<25x30x72xf32, #tpu.memory_space<vmem>>, vector<1x30x72xf32>
    %320 = vector.shape_cast %319 : vector<1x30x72xf32> to vector<30x72xf32>
    %cst_411 = arith.constant dense<0.000000e+00> : vector<256x72xf32>
    %321 = tpu.matmul %318, %320, %cst_411 {dimension_numbers = #tpu.dot_dimension_numbers<[1], [0], [0], [1], [0, 0, 1, 1], [], []>} : vector<256x30xf32>, vector<30x72xf32>, vector<256x72xf32> -> vector<256x72xf32>
    %322 = arith.addf %308, %321 : vector<256x72xf32>
    %c0_412 = arith.constant 0 : index
    %c2_413 = arith.constant 2 : index
    %c0_414 = arith.constant 0 : index
    %c0_415 = arith.constant 0 : index
    %323 = vector.load %arg7[%c0_412, %c2_413, %c0_414, %c0_415] : memref<4x10x10x30xf32, #tpu.memory_space<vmem>>, vector<1x8x8x30xf32>
    %324 = vector.shape_cast %323 : vector<1x8x8x30xf32> to vector<8x8x30xf32>
    %c1_416 = arith.constant 1 : index
    %c2_417 = arith.constant 2 : index
    %c0_418 = arith.constant 0 : index
    %c0_419 = arith.constant 0 : index
    %325 = vector.load %arg7[%c1_416, %c2_417, %c0_418, %c0_419] : memref<4x10x10x30xf32, #tpu.memory_space<vmem>>, vector<1x8x8x30xf32>
    %326 = vector.shape_cast %325 : vector<1x8x8x30xf32> to vector<8x8x30xf32>
    %c2_420 = arith.constant 2 : index
    %c2_421 = arith.constant 2 : index
    %c0_422 = arith.constant 0 : index
    %c0_423 = arith.constant 0 : index
    %327 = vector.load %arg7[%c2_420, %c2_421, %c0_422, %c0_423] : memref<4x10x10x30xf32, #tpu.memory_space<vmem>>, vector<1x8x8x30xf32>
    %328 = vector.shape_cast %327 : vector<1x8x8x30xf32> to vector<8x8x30xf32>
    %c3_424 = arith.constant 3 : index
    %c2_425 = arith.constant 2 : index
    %c0_426 = arith.constant 0 : index
    %c0_427 = arith.constant 0 : index
    %329 = vector.load %arg7[%c3_424, %c2_425, %c0_426, %c0_427] : memref<4x10x10x30xf32, #tpu.memory_space<vmem>>, vector<1x8x8x30xf32>
    %330 = vector.shape_cast %329 : vector<1x8x8x30xf32> to vector<8x8x30xf32>
    %331 = tpu.concatenate %324, %326, %328, %330 in 0 : vector<8x8x30xf32>, vector<8x8x30xf32>, vector<8x8x30xf32>, vector<8x8x30xf32> -> vector<32x8x30xf32>
    %332 = vector.shape_cast %331 : vector<32x8x30xf32> to vector<256x30xf32>
    %c20 = arith.constant 20 : index
    %c0_428 = arith.constant 0 : index
    %c0_429 = arith.constant 0 : index
    %333 = vector.load %arg4[%c20, %c0_428, %c0_429] : memref<25x30x72xf32, #tpu.memory_space<vmem>>, vector<1x30x72xf32>
    %334 = vector.shape_cast %333 : vector<1x30x72xf32> to vector<30x72xf32>
    %cst_430 = arith.constant dense<0.000000e+00> : vector<256x72xf32>
    %335 = tpu.matmul %332, %334, %cst_430 {dimension_numbers = #tpu.dot_dimension_numbers<[1], [0], [0], [1], [0, 0, 1, 1], [], []>} : vector<256x30xf32>, vector<30x72xf32>, vector<256x72xf32> -> vector<256x72xf32>
    %336 = arith.addf %322, %335 : vector<256x72xf32>
    %c1_431 = arith.constant 1 : index
    %c2_432 = arith.constant 2 : index
    %c0_433 = arith.constant 0 : index
    %c0_434 = arith.constant 0 : index
    %337 = vector.load %arg7[%c1_431, %c2_432, %c0_433, %c0_434] : memref<4x10x10x30xf32, #tpu.memory_space<vmem>>, vector<1x8x8x30xf32>
    %338 = vector.shape_cast %337 : vector<1x8x8x30xf32> to vector<8x8x30xf32>
    %c0_435 = arith.constant 0 : index
    %c2_436 = arith.constant 2 : index
    %c1_437 = arith.constant 1 : index
    %c0_438 = arith.constant 0 : index
    %339 = vector.load %arg7[%c0_435, %c2_436, %c1_437, %c0_438] : memref<4x10x10x30xf32, #tpu.memory_space<vmem>>, vector<1x8x8x30xf32>
    %340 = vector.shape_cast %339 : vector<1x8x8x30xf32> to vector<8x8x30xf32>
    %c3_439 = arith.constant 3 : index
    %c2_440 = arith.constant 2 : index
    %c0_441 = arith.constant 0 : index
    %c0_442 = arith.constant 0 : index
    %341 = vector.load %arg7[%c3_439, %c2_440, %c0_441, %c0_442] : memref<4x10x10x30xf32, #tpu.memory_space<vmem>>, vector<1x8x8x30xf32>
    %342 = vector.shape_cast %341 : vector<1x8x8x30xf32> to vector<8x8x30xf32>
    %c2_443 = arith.constant 2 : index
    %c2_444 = arith.constant 2 : index
    %c1_445 = arith.constant 1 : index
    %c0_446 = arith.constant 0 : index
    %343 = vector.load %arg7[%c2_443, %c2_444, %c1_445, %c0_446] : memref<4x10x10x30xf32, #tpu.memory_space<vmem>>, vector<1x8x8x30xf32>
    %344 = vector.shape_cast %343 : vector<1x8x8x30xf32> to vector<8x8x30xf32>
    %345 = tpu.concatenate %338, %340, %342, %344 in 0 : vector<8x8x30xf32>, vector<8x8x30xf32>, vector<8x8x30xf32>, vector<8x8x30xf32> -> vector<32x8x30xf32>
    %346 = vector.shape_cast %345 : vector<32x8x30xf32> to vector<256x30xf32>
    %c21 = arith.constant 21 : index
    %c0_447 = arith.constant 0 : index
    %c0_448 = arith.constant 0 : index
    %347 = vector.load %arg4[%c21, %c0_447, %c0_448] : memref<25x30x72xf32, #tpu.memory_space<vmem>>, vector<1x30x72xf32>
    %348 = vector.shape_cast %347 : vector<1x30x72xf32> to vector<30x72xf32>
    %cst_449 = arith.constant dense<0.000000e+00> : vector<256x72xf32>
    %349 = tpu.matmul %346, %348, %cst_449 {dimension_numbers = #tpu.dot_dimension_numbers<[1], [0], [0], [1], [0, 0, 1, 1], [], []>} : vector<256x30xf32>, vector<30x72xf32>, vector<256x72xf32> -> vector<256x72xf32>
    %350 = arith.addf %336, %349 : vector<256x72xf32>
    %c0_450 = arith.constant 0 : index
    %c2_451 = arith.constant 2 : index
    %c1_452 = arith.constant 1 : index
    %c0_453 = arith.constant 0 : index
    %351 = vector.load %arg7[%c0_450, %c2_451, %c1_452, %c0_453] : memref<4x10x10x30xf32, #tpu.memory_space<vmem>>, vector<1x8x8x30xf32>
    %352 = vector.shape_cast %351 : vector<1x8x8x30xf32> to vector<8x8x30xf32>
    %c1_454 = arith.constant 1 : index
    %c2_455 = arith.constant 2 : index
    %c1_456 = arith.constant 1 : index
    %c0_457 = arith.constant 0 : index
    %353 = vector.load %arg7[%c1_454, %c2_455, %c1_456, %c0_457] : memref<4x10x10x30xf32, #tpu.memory_space<vmem>>, vector<1x8x8x30xf32>
    %354 = vector.shape_cast %353 : vector<1x8x8x30xf32> to vector<8x8x30xf32>
    %c2_458 = arith.constant 2 : index
    %c2_459 = arith.constant 2 : index
    %c1_460 = arith.constant 1 : index
    %c0_461 = arith.constant 0 : index
    %355 = vector.load %arg7[%c2_458, %c2_459, %c1_460, %c0_461] : memref<4x10x10x30xf32, #tpu.memory_space<vmem>>, vector<1x8x8x30xf32>
    %356 = vector.shape_cast %355 : vector<1x8x8x30xf32> to vector<8x8x30xf32>
    %c3_462 = arith.constant 3 : index
    %c2_463 = arith.constant 2 : index
    %c1_464 = arith.constant 1 : index
    %c0_465 = arith.constant 0 : index
    %357 = vector.load %arg7[%c3_462, %c2_463, %c1_464, %c0_465] : memref<4x10x10x30xf32, #tpu.memory_space<vmem>>, vector<1x8x8x30xf32>
    %358 = vector.shape_cast %357 : vector<1x8x8x30xf32> to vector<8x8x30xf32>
    %359 = tpu.concatenate %352, %354, %356, %358 in 0 : vector<8x8x30xf32>, vector<8x8x30xf32>, vector<8x8x30xf32>, vector<8x8x30xf32> -> vector<32x8x30xf32>
    %360 = vector.shape_cast %359 : vector<32x8x30xf32> to vector<256x30xf32>
    %c22 = arith.constant 22 : index
    %c0_466 = arith.constant 0 : index
    %c0_467 = arith.constant 0 : index
    %361 = vector.load %arg4[%c22, %c0_466, %c0_467] : memref<25x30x72xf32, #tpu.memory_space<vmem>>, vector<1x30x72xf32>
    %362 = vector.shape_cast %361 : vector<1x30x72xf32> to vector<30x72xf32>
    %cst_468 = arith.constant dense<0.000000e+00> : vector<256x72xf32>
    %363 = tpu.matmul %360, %362, %cst_468 {dimension_numbers = #tpu.dot_dimension_numbers<[1], [0], [0], [1], [0, 0, 1, 1], [], []>} : vector<256x30xf32>, vector<30x72xf32>, vector<256x72xf32> -> vector<256x72xf32>
    %364 = arith.addf %350, %363 : vector<256x72xf32>
    %c1_469 = arith.constant 1 : index
    %c2_470 = arith.constant 2 : index
    %c1_471 = arith.constant 1 : index
    %c0_472 = arith.constant 0 : index
    %365 = vector.load %arg7[%c1_469, %c2_470, %c1_471, %c0_472] : memref<4x10x10x30xf32, #tpu.memory_space<vmem>>, vector<1x8x8x30xf32>
    %366 = vector.shape_cast %365 : vector<1x8x8x30xf32> to vector<8x8x30xf32>
    %c0_473 = arith.constant 0 : index
    %c2_474 = arith.constant 2 : index
    %c2_475 = arith.constant 2 : index
    %c0_476 = arith.constant 0 : index
    %367 = vector.load %arg7[%c0_473, %c2_474, %c2_475, %c0_476] : memref<4x10x10x30xf32, #tpu.memory_space<vmem>>, vector<1x8x8x30xf32>
    %368 = vector.shape_cast %367 : vector<1x8x8x30xf32> to vector<8x8x30xf32>
    %c3_477 = arith.constant 3 : index
    %c2_478 = arith.constant 2 : index
    %c1_479 = arith.constant 1 : index
    %c0_480 = arith.constant 0 : index
    %369 = vector.load %arg7[%c3_477, %c2_478, %c1_479, %c0_480] : memref<4x10x10x30xf32, #tpu.memory_space<vmem>>, vector<1x8x8x30xf32>
    %370 = vector.shape_cast %369 : vector<1x8x8x30xf32> to vector<8x8x30xf32>
    %c2_481 = arith.constant 2 : index
    %c2_482 = arith.constant 2 : index
    %c2_483 = arith.constant 2 : index
    %c0_484 = arith.constant 0 : index
    %371 = vector.load %arg7[%c2_481, %c2_482, %c2_483, %c0_484] : memref<4x10x10x30xf32, #tpu.memory_space<vmem>>, vector<1x8x8x30xf32>
    %372 = vector.shape_cast %371 : vector<1x8x8x30xf32> to vector<8x8x30xf32>
    %373 = tpu.concatenate %366, %368, %370, %372 in 0 : vector<8x8x30xf32>, vector<8x8x30xf32>, vector<8x8x30xf32>, vector<8x8x30xf32> -> vector<32x8x30xf32>
    %374 = vector.shape_cast %373 : vector<32x8x30xf32> to vector<256x30xf32>
    %c23 = arith.constant 23 : index
    %c0_485 = arith.constant 0 : index
    %c0_486 = arith.constant 0 : index
    %375 = vector.load %arg4[%c23, %c0_485, %c0_486] : memref<25x30x72xf32, #tpu.memory_space<vmem>>, vector<1x30x72xf32>
    %376 = vector.shape_cast %375 : vector<1x30x72xf32> to vector<30x72xf32>
    %cst_487 = arith.constant dense<0.000000e+00> : vector<256x72xf32>
    %377 = tpu.matmul %374, %376, %cst_487 {dimension_numbers = #tpu.dot_dimension_numbers<[1], [0], [0], [1], [0, 0, 1, 1], [], []>} : vector<256x30xf32>, vector<30x72xf32>, vector<256x72xf32> -> vector<256x72xf32>
    %378 = arith.addf %364, %377 : vector<256x72xf32>
    %c0_488 = arith.constant 0 : index
    %c2_489 = arith.constant 2 : index
    %c2_490 = arith.constant 2 : index
    %c0_491 = arith.constant 0 : index
    %379 = vector.load %arg7[%c0_488, %c2_489, %c2_490, %c0_491] : memref<4x10x10x30xf32, #tpu.memory_space<vmem>>, vector<1x8x8x30xf32>
    %380 = vector.shape_cast %379 : vector<1x8x8x30xf32> to vector<8x8x30xf32>
    %c1_492 = arith.constant 1 : index
    %c2_493 = arith.constant 2 : index
    %c2_494 = arith.constant 2 : index
    %c0_495 = arith.constant 0 : index
    %381 = vector.load %arg7[%c1_492, %c2_493, %c2_494, %c0_495] : memref<4x10x10x30xf32, #tpu.memory_space<vmem>>, vector<1x8x8x30xf32>
    %382 = vector.shape_cast %381 : vector<1x8x8x30xf32> to vector<8x8x30xf32>
    %c2_496 = arith.constant 2 : index
    %c2_497 = arith.constant 2 : index
    %c2_498 = arith.constant 2 : index
    %c0_499 = arith.constant 0 : index
    %383 = vector.load %arg7[%c2_496, %c2_497, %c2_498, %c0_499] : memref<4x10x10x30xf32, #tpu.memory_space<vmem>>, vector<1x8x8x30xf32>
    %384 = vector.shape_cast %383 : vector<1x8x8x30xf32> to vector<8x8x30xf32>
    %c3_500 = arith.constant 3 : index
    %c2_501 = arith.constant 2 : index
    %c2_502 = arith.constant 2 : index
    %c0_503 = arith.constant 0 : index
    %385 = vector.load %arg7[%c3_500, %c2_501, %c2_502, %c0_503] : memref<4x10x10x30xf32, #tpu.memory_space<vmem>>, vector<1x8x8x30xf32>
    %386 = vector.shape_cast %385 : vector<1x8x8x30xf32> to vector<8x8x30xf32>
    %387 = tpu.concatenate %380, %382, %384, %386 in 0 : vector<8x8x30xf32>, vector<8x8x30xf32>, vector<8x8x30xf32>, vector<8x8x30xf32> -> vector<32x8x30xf32>
    %388 = vector.shape_cast %387 : vector<32x8x30xf32> to vector<256x30xf32>
    %c24 = arith.constant 24 : index
    %c0_504 = arith.constant 0 : index
    %c0_505 = arith.constant 0 : index
    %389 = vector.load %arg4[%c24, %c0_504, %c0_505] : memref<25x30x72xf32, #tpu.memory_space<vmem>>, vector<1x30x72xf32>
    %390 = vector.shape_cast %389 : vector<1x30x72xf32> to vector<30x72xf32>
    %cst_506 = arith.constant dense<0.000000e+00> : vector<256x72xf32>
    %391 = tpu.matmul %388, %390, %cst_506 {dimension_numbers = #tpu.dot_dimension_numbers<[1], [0], [0], [1], [0, 0, 1, 1], [], []>} : vector<256x30xf32>, vector<30x72xf32>, vector<256x72xf32> -> vector<256x72xf32>
    %392 = arith.addf %378, %391 : vector<256x72xf32>
    %c0_507 = arith.constant 0 : index
    %c0_508 = arith.constant 0 : index
    %393 = vector.load %arg5[%c0_507, %c0_508] : memref<1x72xf32, #tpu.memory_space<vmem>>, vector<1x72xf32>
    %394 = vector.broadcast %393 : vector<1x72xf32> to vector<256x72xf32>
    %395 = arith.addf %392, %394 : vector<256x72xf32>
    %cst_509 = arith.constant 0.000000e+00 : f32
    %396 = vector.broadcast %cst_509 : f32 to vector<256x72xf32>
    %397 = arith.maximumf %395, %396 : vector<256x72xf32>
    %398 = vector.extract_strided_slice %397 {offsets = [0, 0], sizes = [64, 72], strides = [1, 1]} : vector<256x72xf32> to vector<64x72xf32>
    %399 = vector.extract_strided_slice %397 {offsets = [64, 0], sizes = [64, 72], strides = [1, 1]} : vector<256x72xf32> to vector<64x72xf32>
    %400 = arith.maximumf %398, %399 : vector<64x72xf32>
    %401 = vector.extract_strided_slice %397 {offsets = [128, 0], sizes = [64, 72], strides = [1, 1]} : vector<256x72xf32> to vector<64x72xf32>
    %402 = vector.extract_strided_slice %397 {offsets = [192, 0], sizes = [64, 72], strides = [1, 1]} : vector<256x72xf32> to vector<64x72xf32>
    %403 = arith.maximumf %401, %402 : vector<64x72xf32>
    %404 = arith.maximumf %400, %403 : vector<64x72xf32>
    %c0_510 = arith.constant 0 : index
    %c0_511 = arith.constant 0 : index
    %c0_512 = arith.constant 0 : index
    %405 = vector.load %arg6[%c0_510, %c0_511, %c0_512] : memref<1x64x72xf32, #tpu.memory_space<vmem>>, vector<1x64x72xf32>
    %406 = vector.shape_cast %405 : vector<1x64x72xf32> to vector<64x72xf32>
    %407 = vector.shape_cast %404 : vector<64x72xf32> to vector<1x64x72xf32>
    tpu.vector_store %arg6[%c0_510, %c0_511, %c0_512], %407 {strides = array<i32>} : memref<1x64x72xf32, #tpu.memory_space<vmem>>, vector<1x64x72xf32>,
    return
  }
  func.func @transform_0(%arg0: i32) -> (i32, i32, i32) {
    %c0_i32 = arith.constant 0 : i32
    %c0_i32_0 = arith.constant 0 : i32
    %c0_i32_1 = arith.constant 0 : i32
    return %arg0, %c0_i32, %c0_i32_0 : i32, i32, i32
  }
  func.func @transform_1(%arg0: i32) -> (i32, i32) {
    %c0_i32 = arith.constant 0 : i32
    %c0_i32_0 = arith.constant 0 : i32
    %c0_i32_1 = arith.constant 0 : i32
    return %c0_i32, %c0_i32_0 : i32, i32
  }
  func.func @transform_2(%arg0: i32) -> (i32, i32) {
    %c0_i32 = arith.constant 0 : i32
    %c0_i32_0 = arith.constant 0 : i32
    %c0_i32_1 = arith.constant 0 : i32
    return %c0_i32, %c0_i32_0 : i32, i32
  }
  func.func @transform_3(%arg0: i32) -> (i32, i32, i32) {
    %c0_i32 = arith.constant 0 : i32
    %c0_i32_0 = arith.constant 0 : i32
    %c0_i32_1 = arith.constant 0 : i32
    %c0_i32_2 = arith.constant 0 : i32
    return %c0_i32, %c0_i32_0, %c0_i32_1 : i32, i32, i32
  }
  func.func @transform_4(%arg0: i32) -> (i32, i32) {
    %c0_i32 = arith.constant 0 : i32
    %c0_i32_0 = arith.constant 0 : i32
    %c0_i32_1 = arith.constant 0 : i32
    return %c0_i32, %c0_i32_0 : i32, i32
  }
  func.func @transform_5(%arg0: i32) -> (i32, i32, i32) {
    %c0_i32 = arith.constant 0 : i32
    %c0_i32_0 = arith.constant 0 : i32
    %c0_i32_1 = arith.constant 0 : i32
    return %arg0, %c0_i32, %c0_i32_0 : i32, i32, i32
  }
}

module attributes {stable_mosaic.version = 11 : i64} {
  func.func @_fc_kernel(%arg0: i32, %arg1: memref<2x4608xf32, #tpu.memory_space<vmem>>, %arg2: memref<4608x64xf32, #tpu.memory_space<vmem>>, %arg3: memref<1x64xf32, #tpu.memory_space<vmem>>, %arg4: memref<2x64xf32, #tpu.memory_space<vmem>>) attributes {dimension_semantics = [#tpu.dimension_semantics<arbitrary>], iteration_bounds = array<i64: 1>, scalar_prefetch = 0 : i64, scratch_operands = 0 : i64, tpu.core_type = #tpu.core_type<tc>, window_params = [{pipeline_mode = #tpu.pipeline_mode<synchronous>, transform_indices = @transform_0, window_bounds = array<i64: 2, 4608>}, {pipeline_mode = #tpu.pipeline_mode<synchronous>, transform_indices = @transform_1, window_bounds = array<i64: 4608, 64>}, {pipeline_mode = #tpu.pipeline_mode<synchronous>, transform_indices = @transform_2, window_bounds = array<i64: 1, 64>}, {pipeline_mode = #tpu.pipeline_mode<synchronous>, transform_indices = @transform_3, window_bounds = array<i64: 2, 64>}]} {
    %c0 = arith.constant 0 : index
    %c0_0 = arith.constant 0 : index
    %0 = vector.load %arg1[%c0, %c0_0] : memref<2x4608xf32, #tpu.memory_space<vmem>>, vector<2x4608xf32>
    %c0_1 = arith.constant 0 : index
    %c0_2 = arith.constant 0 : index
    %1 = vector.load %arg2[%c0_1, %c0_2] : memref<4608x64xf32, #tpu.memory_space<vmem>>, vector<4608x64xf32>
    %cst = arith.constant dense<0.000000e+00> : vector<2x64xf32>
    %2 = tpu.matmul %0, %1, %cst {dimension_numbers = #tpu.dot_dimension_numbers<[1], [0], [0], [1], [0, 0, 1, 1], [], []>} : vector<2x4608xf32>, vector<4608x64xf32>, vector<2x64xf32> -> vector<2x64xf32>
    %c0_3 = arith.constant 0 : index
    %c0_4 = arith.constant 0 : index
    %3 = vector.load %arg3[%c0_3, %c0_4] : memref<1x64xf32, #tpu.memory_space<vmem>>, vector<1x64xf32>
    %4 = vector.broadcast %3 : vector<1x64xf32> to vector<2x64xf32>
    %5 = arith.addf %2, %4 : vector<2x64xf32>
    %cst_5 = arith.constant 0.000000e+00 : f32
    %6 = vector.broadcast %cst_5 : f32 to vector<2x64xf32>
    %7 = arith.maximumf %5, %6 : vector<2x64xf32>
    %c0_6 = arith.constant 0 : index
    %c0_7 = arith.constant 0 : index
    %8 = vector.load %arg4[%c0_6, %c0_7] : memref<2x64xf32, #tpu.memory_space<vmem>>, vector<2x64xf32>
    tpu.vector_store %arg4[%c0_6, %c0_7], %7 {strides = array<i32>} : memref<2x64xf32, #tpu.memory_space<vmem>>, vector<2x64xf32>,
    return
  }
  func.func @transform_0(%arg0: i32) -> (i32, i32) {
    %c0_i32 = arith.constant 0 : i32
    %c0_i32_0 = arith.constant 0 : i32
    %c0_i32_1 = arith.constant 0 : i32
    return %c0_i32, %c0_i32_0 : i32, i32
  }
  func.func @transform_1(%arg0: i32) -> (i32, i32) {
    %c0_i32 = arith.constant 0 : i32
    %c0_i32_0 = arith.constant 0 : i32
    %c0_i32_1 = arith.constant 0 : i32
    return %c0_i32, %c0_i32_0 : i32, i32
  }
  func.func @transform_2(%arg0: i32) -> (i32, i32) {
    %c0_i32 = arith.constant 0 : i32
    %c0_i32_0 = arith.constant 0 : i32
    %c0_i32_1 = arith.constant 0 : i32
    return %c0_i32, %c0_i32_0 : i32, i32
  }
  func.func @transform_3(%arg0: i32) -> (i32, i32) {
    %c0_i32 = arith.constant 0 : i32
    %c0_i32_0 = arith.constant 0 : i32
    %c0_i32_1 = arith.constant 0 : i32
    return %c0_i32, %c0_i32_0 : i32, i32
  }
}

</mosaic_0001>

<bundles_post_ra>
// kernel: cifar_encoder_v1_forward.3
= control target key start
LH: loop header
LB: loop body
LE: loop exit
PB: predicated region body
PF: predicated region fallthrough
CT: control target
= control target key end

     0   :  { %v3324_v47 = vmov 1983009808   ;;  %v620_v49 = vlaneseq  ;;  %s5219_s0 = inlined_call_operand.vmem [shape: f32[2,4608], index: 0, kind: input, shape index: {}]   ;;  %s5220_s1 = inlined_call_operand.vmem [shape: f32[4608,64], index: 1, kind: input, shape index: {}]   ;;  %s5221_s2 = inlined_call_operand.vmem [shape: f32[1,64], index: 2, kind: input, shape index: {}]   ;;  %s5222_s3 = inlined_call_operand.hbm [shape: f32[2,64], index: 3, kind: output, shape index: {}]  }
   0x1   :  { %v40_v0 = vld [vmem:[%s5220_s1 + $0x80] sm:$0xff]  ;;  %v41_v1 = vld [vmem:[%s5220_s1 + $0x88] sm:$0xff]  ;;  %v42_v11 = vld [vmem:[%s5220_s1 + $0x90] sm:$0xff]  ;;  %v618_v48 = vunpack.c.l.s4 %v3324_v47 }
   0x2   :  { %v24_v2 = vld [vmem:[%s5220_s1] sm:$0xff]  ;;  %v2713_v3 = vpack.c.bf16 %v41_v1, %v40_v0  ;;  %v25_v4 = vld [vmem:[%s5220_s1 + $0x8] sm:$0xff]  ;;  %v43_v13 = vld [vmem:[%s5220_s1 + $0x98] sm:$0xff]  ;;  %v621_v0 = vshrl.u32 %v620_v49, 7 }
   0x3   :  { %v72_v5 = vld [vmem:[%s5220_s1 + $0x180] sm:$0xff]  ;;  %v73_v6 = vld [vmem:[%s5220_s1 + $0x188] sm:$0xff]  ;;  %v2715_v7 = vpack.c.bf16 %v25_v4, %v24_v2  ;;  %v26_v14 = vld [vmem:[%s5220_s1 + $0x10] sm:$0xff]  ;;  %v2717_v16 = vpack.c.bf16 %v43_v13, %v42_v11  ;;  %v619_v63 = vunpack.c.0.s8 %v618_v48 }
   0x4   :  { %v2745_v8 = vpack.c.bf16 %v73_v6, %v72_v5  ;;  %v56_v9 = vld [vmem:[%s5220_s1 + $0x100] sm:$0xff]  ;;  %v57_v10 = vld [vmem:[%s5220_s1 + $0x108] sm:$0xff]  ;;  %2714 = vmatprep.subr.bf16.mxu0 %v2713_v3  ;;  %v27_v15 = vld [vmem:[%s5220_s1 + $0x18] sm:$0xff] }
   0x5   :  { %v2747_v12 = vpack.c.bf16 %v57_v10, %v56_v9  ;;  %2716 = vmatpush3.bf16.msra.mxu0 %v2715_v7  ;;  %v2719_v17 = vpack.c.bf16 %v27_v15, %v26_v14  ;;  %v74_v18 = vld [vmem:[%s5220_s1 + $0x190] sm:$0xff]  ;;  %v75_v19 = vld [vmem:[%s5220_s1 + $0x198] sm:$0xff]  ;;  %v44_v23 = vld [vmem:[%s5220_s1 + $0xa0] sm:$0xff]  ;;  %v3496_v13 = vsub.s32 %v619_v63, %v621_v0 }
   0x6   :  { %2746 = vmatprep.subr.bf16.mxu1 %v2745_v8  ;;  %v58_v20 = vld [vmem:[%s5220_s1 + $0x110] sm:$0xff]  ;;  %v2749_v21 = vpack.c.bf16 %v75_v19, %v74_v18  ;;  %v59_v22 = vld [vmem:[%s5220_s1 + $0x118] sm:$0xff]  ;;  %v45_v24 = vld [vmem:[%s5220_s1 + $0xa8] sm:$0xff]  ;;  %2718 = vmatprep.subr.bf16.mxu0 %v2717_v16 }
   0x7   :  { %2748 = vmatpush3.bf16.msra.mxu1 %v2747_v12  ;;  %v2751_v25 = vpack.c.bf16 %v59_v22, %v58_v20  ;;  %v2721_v26 = vpack.c.bf16 %v45_v24, %v44_v23  ;;  %v28_v27 = vld [vmem:[%s5220_s1 + $0x20] sm:$0xff]  ;;  %v29_v28 = vld [vmem:[%s5220_s1 + $0x28] sm:$0xff]  ;;  %v46_v35 = vld [vmem:[%s5220_s1 + $0xb0] sm:$0xff] }
   0x8   :  { %v76_v29 = vld [vmem:[%s5220_s1 + $0x1a0] sm:$0xff]  ;;  %2750 = vmatprep.subr.bf16.mxu1 %v2749_v21  ;;  %v77_v30 = vld [vmem:[%s5220_s1 + $0x1a8] sm:$0xff]  ;;  %v2723_v33 = vpack.c.bf16 %v29_v28, %v28_v27  ;;  %v47_v36 = vld [vmem:[%s5220_s1 + $0xb8] sm:$0xff] }
   0x9   :  { %v60_v31 = vld [vmem:[%s5220_s1 + $0x120] sm:$0xff]  ;;  %v61_v32 = vld [vmem:[%s5220_s1 + $0x128] sm:$0xff]  ;;  %2720 = vmatpush3.bf16.msra.mxu0 %v2719_v17  ;;  %v2753_v34 = vpack.c.bf16 %v77_v30, %v76_v29  ;;  %v30_v37 = vld [vmem:[%s5220_s1 + $0x30] sm:$0xff]  ;;  %v2725_v39 = vpack.c.bf16 %v47_v36, %v46_v35 }
   0xa   :  { %2722 = vmatprep.subr.bf16.mxu0 %v2721_v26  ;;  %v2755_v38 = vpack.c.bf16 %v61_v32, %v60_v31  ;;  %v31_v40 = vld [vmem:[%s5220_s1 + $0x38] sm:$0xff]  ;;  %v78_v41 = vld [vmem:[%s5220_s1 + $0x1b0] sm:$0xff]  ;;  %v48_v46 = vld [vmem:[%s5220_s1 + $0xc0] sm:$0xff] }
   0xb   :  { %2752 = vmatpush3.bf16.msra.mxu1 %v2751_v25  ;;  %v79_v42 = vld [vmem:[%s5220_s1 + $0x1b8] sm:$0xff]  ;;  %v62_v44 = vld [vmem:[%s5220_s1 + $0x130] sm:$0xff]  ;;  %v49_v50 = vld [vmem:[%s5220_s1 + $0xc8] sm:$0xff]  ;;  %v2727_v51 = vpack.c.bf16 %v31_v40, %v30_v37 }
   0xc   :  { %2754 = vmatprep.subr.bf16.mxu1 %v2753_v34  ;;  %v2757_v43 = vpack.c.bf16 %v79_v42, %v78_v41  ;;  %v63_v45 = vld [vmem:[%s5220_s1 + $0x138] sm:$0xff]  ;;  %v80_v52 = vld [vmem:[%s5220_s1 + $0x1c0] sm:$0xff]  ;;  %v81_v53 = vld [vmem:[%s5220_s1 + $0x1c8] sm:$0xff]  ;;  %v2729_v55 = vpack.c.bf16 %v49_v50, %v48_v46 }
   0xd   :  { %2724 = vmatpush3.bf16.msra.mxu0 %v2723_v33  ;;  %v2759_v54 = vpack.c.bf16 %v63_v45, %v62_v44  ;;  %v32_v56 = vld [vmem:[%s5220_s1 + $0x40] sm:$0xff]  ;;  %v33_v57 = vld [vmem:[%s5220_s1 + $0x48] sm:$0xff]  ;;  %v2761_v59 = vpack.c.bf16 %v81_v53, %v80_v52  ;;  %v50_v61 = vld [vmem:[%s5220_s1 + $0xd0] sm:$0xff] }
   0xe   :  { %2726 = vmatprep.subr.bf16.mxu0 %v2725_v39  ;;  %v64_v58 = vld [vmem:[%s5220_s1 + $0x140] sm:$0xff]  ;;  %v65_v60 = vld [vmem:[%s5220_s1 + $0x148] sm:$0xff]  ;;  %v51_v62 = vld [vmem:[%s5220_s1 + $0xd8] sm:$0xff]  ;;  %v2731_v3 = vpack.c.bf16 %v33_v57, %v32_v56 }
   0xf   :  { %2756 = vmatpush3.bf16.msra.mxu1 %v2755_v38  ;;  %v82_v1 = vld [vmem:[%s5220_s1 + $0x1d0] sm:$0xff]  ;;  %v83_v2 = vld [vmem:[%s5220_s1 + $0x1d8] sm:$0xff]  ;;  %v2763_v4 = vpack.c.bf16 %v65_v60, %v64_v58  ;;  %v2733_v5 = vpack.c.bf16 %v51_v62, %v50_v61  ;;  %v52_v11 = vld [vmem:[%s5220_s1 + $0xe0] sm:$0xff] }
  0x10   :  { %2758 = vmatprep.subr.bf16.mxu1 %v2757_v43  ;;  %v34_v6 = vld [vmem:[%s5220_s1 + $0x50] sm:$0xff]  ;;  %v35_v7 = vld [vmem:[%s5220_s1 + $0x58] sm:$0xff]  ;;  %v2765_v9 = vpack.c.bf16 %v83_v2, %v82_v1  ;;  %v53_v12 = vld [vmem:[%s5220_s1 + $0xe8] sm:$0xff] }
  0x11   :  { %2728 = vmatpush3.bf16.msra.mxu0 %v2727_v51  ;;  %v66_v8 = vld [vmem:[%s5220_s1 + $0x150] sm:$0xff]  ;;  %v67_v10 = vld [vmem:[%s5220_s1 + $0x158] sm:$0xff]  ;;  %v84_v14 = vld [vmem:[%s5220_s1 + $0x1e0] sm:$0xff]  ;;  %v2735_v16 = vpack.c.bf16 %v35_v7, %v34_v6  ;;  %v2737_v19 = vpack.c.bf16 %v53_v12, %v52_v11 }
  0x12   :  { %2730 = vmatprep.subr.bf16.mxu0 %v2729_v55  ;;  %v85_v15 = vld [vmem:[%s5220_s1 + $0x1e8] sm:$0xff]  ;;  %v36_v17 = vld [vmem:[%s5220_s1 + $0x60] sm:$0xff]  ;;  %v2767_v18 = vpack.c.bf16 %v67_v10, %v66_v8  ;;  %v54_v25 = vld [vmem:[%s5220_s1 + $0xf0] sm:$0xff] }
  0x13   :  { %2760 = vmatpush3.bf16.msra.mxu1 %v2759_v54  ;;  %v37_v20 = vld [vmem:[%s5220_s1 + $0x68] sm:$0xff]  ;;  %v68_v21 = vld [vmem:[%s5220_s1 + $0x160] sm:$0xff]  ;;  %v2769_v23 = vpack.c.bf16 %v85_v15, %v84_v14  ;;  %v55_v26 = vld [vmem:[%s5220_s1 + $0xf8] sm:$0xff] }
  0x14   :  { %2762 = vmatprep.subr.bf16.mxu1 %v2761_v59  ;;  %v15_v22 = vld [vmem:[%s5219_s0] sm:$0xff]  ;;  %v69_v24 = vld [vmem:[%s5220_s1 + $0x168] sm:$0xff]  ;;  %v86_v29 = vld [vmem:[%s5220_s1 + $0x1f0] sm:$0xff]  ;;  %v2739_v31 = vpack.c.bf16 %v37_v20, %v36_v17  ;;  %v2741_v35 = vpack.c.bf16 %v55_v26, %v54_v25 }
  0x15   :  { %2732 = vmatpush3.bf16.msra.mxu0 %v2731_v3  ;;  %v623_v27 = vrot.slane %v15_v22, %v3496_v13  ;;  %v616_v28 = vcombine.high %v15_v22, %v15_v22  ;;  %v87_v30 = vld [vmem:[%s5220_s1 + $0x1f8] sm:$0xff]  ;;  %v2771_v34 = vpack.c.bf16 %v69_v24, %v68_v21  ;;  %v38_v36 = vld [vmem:[%s5220_s1 + $0x70] sm:$0xff]  ;;  %v104_v41 = vld [vmem:[%s5220_s1 + $0x280] sm:$0xff] }
  0x16   :  { %2734 = vmatprep.subr.bf16.mxu0 %v2733_v5  ;;  %v39_v37 = vld [vmem:[%s5220_s1 + $0x78] sm:$0xff]  ;;  %v70_v38 = vld [vmem:[%s5220_s1 + $0x170] sm:$0xff]  ;;  %v2773_v39 = vpack.c.bf16 %v87_v30, %v86_v29  ;;  %v105_v42 = vld [vmem:[%s5220_s1 + $0x288] sm:$0xff] }
  0x17   :  { %2764 = vmatpush3.bf16.msra.mxu1 %v2763_v4  ;;  %v631_v32 = vcombine.high %v623_v27, %v623_v27  ;;  %v630_v33 = vrot.slane %v616_v28, %v3496_v13  ;;  %v71_v40 = vld [vmem:[%s5220_s1 + $0x178] sm:$0xff]  ;;  %v136_v44 = vld [vmem:[%s5220_s1 + $0x380] sm:$0xff]  ;;  %v137_v45 = vld [vmem:[%s5220_s1 + $0x388] sm:$0xff]  ;;  %v2743_v46 = vpack.c.bf16 %v39_v37, %v38_v36  ;;  %v2777_v48 = vpack.c.bf16 %v105_v42, %v104_v41 }
  0x18   :  { %2766 = vmatprep.subr.bf16.mxu1 %v2765_v9  ;;  %v2775_v47 = vpack.c.bf16 %v71_v40, %v70_v38  ;;  %v88_v49 = vld [vmem:[%s5220_s1 + $0x200] sm:$0xff]  ;;  %v89_v50 = vld [vmem:[%s5220_s1 + $0x208] sm:$0xff]  ;;  %v2809_v52 = vpack.c.bf16 %v137_v45, %v136_v44  ;;  %v106_v54 = vld [vmem:[%s5220_s1 + $0x290] sm:$0xff] }
  0x19   :  { %2736 = vmatpush3.bf16.msra.mxu0 %v2735_v16  ;;  %869 = vmatprep.mubr.f32.mxu0 %v631_v32  ;;  %v632_v43 = vcombine.high %v630_v33, %v630_v33  ;;  %v120_v51 = vld [vmem:[%s5220_s1 + $0x300] sm:$0xff]  ;;  %v121_v53 = vld [vmem:[%s5220_s1 + $0x308] sm:$0xff]  ;;  %v107_v55 = vld [vmem:[%s5220_s1 + $0x298] sm:$0xff]  ;;  %v2779_v58 = vpack.c.bf16 %v89_v50, %v88_v49 }
  0x1a   :  { %2738 = vmatprep.subr.bf16.mxu0 %v2737_v19  ;;  %v138_v56 = vld [vmem:[%s5220_s1 + $0x390] sm:$0xff]  ;;  %v139_v57 = vld [vmem:[%s5220_s1 + $0x398] sm:$0xff]  ;;  %v2811_v59 = vpack.c.bf16 %v121_v53, %v120_v51  ;;  %v2781_v60 = vpack.c.bf16 %v107_v55, %v106_v54  ;;  %v108_v2 = vld [vmem:[%s5220_s1 + $0x2a0] sm:$0xff] }
  0x1b   :  { %2768 = vmatpush3.bf16.msra.mxu1 %v2767_v18  ;;  %939 = vmatprep.mubr.f32.mxu1 %v632_v43  ;;  %v90_v61 = vld [vmem:[%s5220_s1 + $0x210] sm:$0xff]  ;;  %v91_v62 = vld [vmem:[%s5220_s1 + $0x218] sm:$0xff]  ;;  %v2813_v0 = vpack.c.bf16 %v139_v57, %v138_v56  ;;  %v109_v3 = vld [vmem:[%s5220_s1 + $0x2a8] sm:$0xff] }
  0x1c   :  { %2770 = vmatprep.subr.bf16.mxu1 %v2769_v23  ;;  %v122_v63 = vld [vmem:[%s5220_s1 + $0x310] sm:$0xff]  ;;  %v123_v1 = vld [vmem:[%s5220_s1 + $0x318] sm:$0xff]  ;;  %v140_v4 = vld [vmem:[%s5220_s1 + $0x3a0] sm:$0xff]  ;;  %v2783_v6 = vpack.c.bf16 %v91_v62, %v90_v61  ;;  %v2785_v8 = vpack.c.bf16 %v109_v3, %v108_v2 }
  0x1d   :  { %2740 = vmatpush3.bf16.msra.mxu0 %v2739_v31  ;;  %v141_v5 = vld [vmem:[%s5220_s1 + $0x3a8] sm:$0xff]  ;;  %v2815_v7 = vpack.c.bf16 %v123_v1, %v122_v63  ;;  %v92_v9 = vld [vmem:[%s5220_s1 + $0x220] sm:$0xff]  ;;  %v110_v15 = vld [vmem:[%s5220_s1 + $0x2b0] sm:$0xff] }
  0x1e   :  { %2742 = vmatprep.subr.bf16.mxu0 %v2741_v35  ;;  %v93_v10 = vld [vmem:[%s5220_s1 + $0x228] sm:$0xff]  ;;  %v124_v11 = vld [vmem:[%s5220_s1 + $0x320] sm:$0xff]  ;;  %v2817_v12 = vpack.c.bf16 %v141_v5, %v140_v4  ;;  %v111_v16 = vld [vmem:[%s5220_s1 + $0x2b8] sm:$0xff] }
  0x1f   :  { %2772 = vmatpush3.bf16.msra.mxu1 %v2771_v34  ;;  %v125_v14 = vld [vmem:[%s5220_s1 + $0x328] sm:$0xff]  ;;  %v142_v17 = vld [vmem:[%s5220_s1 + $0x3b0] sm:$0xff]  ;;  %v143_v18 = vld [vmem:[%s5220_s1 + $0x3b8] sm:$0xff]  ;;  %v2787_v19 = vpack.c.bf16 %v93_v10, %v92_v9  ;;  %v2789_v21 = vpack.c.bf16 %v111_v16, %v110_v15 }
  0x20   :  { %2774 = vmatprep.subr.bf16.mxu1 %v2773_v39  ;;  %v2819_v20 = vpack.c.bf16 %v125_v14, %v124_v11  ;;  %v94_v22 = vld [vmem:[%s5220_s1 + $0x230] sm:$0xff]  ;;  %v95_v23 = vld [vmem:[%s5220_s1 + $0x238] sm:$0xff]  ;;  %v2821_v25 = vpack.c.bf16 %v143_v18, %v142_v17  ;;  %v113_v28 = vld [vmem:[%s5220_s1 + $0x2c8] sm:$0xff] }
  0x21   :  { %2744 = vmatpush3.bf16.msra.mxu0 %v2743_v46  ;;  %v126_v24 = vld [vmem:[%s5220_s1 + $0x330] sm:$0xff]  ;;  %v127_v26 = vld [vmem:[%s5220_s1 + $0x338] sm:$0xff]  ;;  %v144_v29 = vld [vmem:[%s5220_s1 + $0x3c0] sm:$0xff]  ;;  %v2791_v32 = vpack.c.bf16 %v95_v23, %v94_v22 }
  0x22   :  { %2778 = vmatprep.subr.bf16.mxu0 %v2777_v48  ;;  %v145_v30 = vld [vmem:[%s5220_s1 + $0x3c8] sm:$0xff]  ;;  %v2823_v35 = vpack.c.bf16 %v127_v26, %v126_v24  ;;  %v96_v37 = vld [vmem:[%s5220_s1 + $0x240] sm:$0xff]  ;;  %v114_v42 = vld [vmem:[%s5220_s1 + $0x2d0] sm:$0xff] }
  0x23   :  { %2776 = vmatpush3.bf16.msra.mxu1 %v2775_v47  ;;  %v16_v31 = vld [vmem:[%s5219_s0 + $0x8] sm:$0xff]  ;;  %v128_v39 = vld [vmem:[%s5220_s1 + $0x340] sm:$0xff]  ;;  %v2825_v40 = vpack.c.bf16 %v145_v30, %v144_v29  ;;  %v115_v43 = vld [vmem:[%s5220_s1 + $0x2d8] sm:$0xff] }
  0x24   :  { %2810 = vmatprep.subr.bf16.mxu1 %v2809_v52  ;;  %870 = vmatmul.mubr.f32.vlgmr.msra.gmra.mrb[0].mxu0 %v623_v27  ;;  %v112_v27 = vld [vmem:[%s5220_s1 + $0x2c0] sm:$0xff]  ;;  %v633_v34 = vcombine.high %v16_v31, %v16_v31  ;;  %v97_v38 = vld [vmem:[%s5220_s1 + $0x248] sm:$0xff]  ;;  %v146_v46 = vld [vmem:[%s5220_s1 + $0x3d0] sm:$0xff]  ;;  %v2797_v51 = vpack.c.bf16 %v115_v43, %v114_v42 }
  0x25   :  { %2780 = vmatpush3.bf16.msra.mxu0 %v2779_v58  ;;  %v2793_v36 = vpack.c.bf16 %v113_v28, %v112_v27  ;;  %v129_v41 = vld [vmem:[%s5220_s1 + $0x348] sm:$0xff]  ;;  %v147_v47 = vld [vmem:[%s5220_s1 + $0x3d8] sm:$0xff]  ;;  %v2795_v48 = vpack.c.bf16 %v97_v38, %v96_v37  ;;  %v98_v52 = vld [vmem:[%s5220_s1 + $0x250] sm:$0xff] }
  0x26   :  { %940 = vmatmul.mubr.f32.vlgmr.msra.gmra.mrb[0].mxu1 %v630_v33  ;;  %2782 = vmatprep.subr.bf16.mxu0 %v2781_v60  ;;  %v3657_v33 = vrot.slane %v16_v31, %v3496_v13  ;;  %v3680_v45 = vrot.slane %v633_v34, %v3496_v13  ;;  %v2827_v50 = vpack.c.bf16 %v129_v41, %v128_v39  ;;  %v99_v53 = vld [vmem:[%s5220_s1 + $0x258] sm:$0xff]  ;;  %v130_v54 = vld [vmem:[%s5220_s1 + $0x350] sm:$0xff]  ;;  %v116_v57 = vld [vmem:[%s5220_s1 + $0x2e0] sm:$0xff] }
  0x27   :  { %2812 = vmatpush3.bf16.msra.mxu1 %v2811_v59  ;;  %v2829_v55 = vpack.c.bf16 %v147_v47, %v146_v46  ;;  %v131_v56 = vld [vmem:[%s5220_s1 + $0x358] sm:$0xff]  ;;  %v117_v58 = vld [vmem:[%s5220_s1 + $0x2e8] sm:$0xff]  ;;  %v148_v59 = vld [vmem:[%s5220_s1 + $0x3e0] sm:$0xff]  ;;  %v2799_v61 = vpack.c.bf16 %v99_v53, %v98_v52 }
  0x28   :  { %2814 = vmatprep.subr.bf16.mxu1 %v2813_v0  ;;  %v648_v44 = vcombine.high %v3657_v33, %v3657_v33  ;;  %v649_v49 = vcombine.high %v3680_v45, %v3680_v45  ;;  %v149_v60 = vld [vmem:[%s5220_s1 + $0x3e8] sm:$0xff]  ;;  %v2831_v62 = vpack.c.bf16 %v131_v56, %v130_v54  ;;  %v2801_v63 = vpack.c.bf16 %v117_v58, %v116_v57  ;;  %v100_v0 = vld [vmem:[%s5220_s1 + $0x260] sm:$0xff]  ;;  %v118_v5 = vld [vmem:[%s5220_s1 + $0x2f0] sm:$0xff] }
  0x29   :  { %2784 = vmatpush3.bf16.msra.mxu0 %v2783_v6  ;;  %v101_v1 = vld [vmem:[%s5220_s1 + $0x268] sm:$0xff]  ;;  %v132_v2 = vld [vmem:[%s5220_s1 + $0x360] sm:$0xff]  ;;  %v2833_v3 = vpack.c.bf16 %v149_v60, %v148_v59  ;;  %v119_v6 = vld [vmem:[%s5220_s1 + $0x2f8] sm:$0xff] }
  0x2a   :  { %2786 = vmatprep.subr.bf16.mxu0 %v2785_v8  ;;  %1009 = vmatprep.mubr.f32.mxu0 %v648_v44  ;;  %v133_v4 = vld [vmem:[%s5220_s1 + $0x368] sm:$0xff]  ;;  %v151_v8 = vld [vmem:[%s5220_s1 + $0x3f8] sm:$0xff]  ;;  %v2803_v9 = vpack.c.bf16 %v101_v1, %v100_v0  ;;  %v2805_v11 = vpack.c.bf16 %v119_v6, %v118_v5  ;;  %v134_v15 = vld [vmem:[%s5220_s1 + $0x370] sm:$0xff] }
  0x2b   :  { %2816 = vmatpush3.bf16.msra.mxu1 %v2815_v7  ;;  %1079 = vmatprep.mubr.f32.mxu1 %v649_v49  ;;  %v150_v7 = vld [vmem:[%s5220_s1 + $0x3f0] sm:$0xff]  ;;  %v2835_v10 = vpack.c.bf16 %v133_v4, %v132_v2  ;;  %v103_v14 = vld [vmem:[%s5220_s1 + $0x278] sm:$0xff]  ;;  %v168_v18 = vld [vmem:[%s5220_s1 + $0x480] sm:$0xff] }
  0x2c   :  { %2818 = vmatprep.subr.bf16.mxu1 %v2817_v12  ;;  %v102_v12 = vld [vmem:[%s5220_s1 + $0x270] sm:$0xff]  ;;  %v2837_v16 = vpack.c.bf16 %v151_v8, %v150_v7  ;;  %v135_v17 = vld [vmem:[%s5220_s1 + $0x378] sm:$0xff]  ;;  %v152_v23 = vld [vmem:[%s5220_s1 + $0x400] sm:$0xff] }
  0x2d   :  { %2788 = vmatpush3.bf16.msra.mxu0 %v2787_v19  ;;  %v169_v19 = vld [vmem:[%s5220_s1 + $0x488] sm:$0xff]  ;;  %v2807_v22 = vpack.c.bf16 %v103_v14, %v102_v12  ;;  %v2839_v24 = vpack.c.bf16 %v135_v17, %v134_v15  ;;  %v184_v27 = vld [vmem:[%s5220_s1 + $0x500] sm:$0xff]  ;;  %v170_v30 = vld [vmem:[%s5220_s1 + $0x490] sm:$0xff] }
  0x2e   :  { %2790 = vmatprep.subr.bf16.mxu0 %v2789_v21  ;;  %v201_v21 = vld [vmem:[%s5220_s1 + $0x588] sm:$0xff]  ;;  %v171_v31 = vld [vmem:[%s5220_s1 + $0x498] sm:$0xff]  ;;  %v17_v37 = vld [vmem:[%s5219_s0 + $0x10] sm:$0xff] }
  0x2f   :  { %2820 = vmatpush3.bf16.msra.mxu1 %v2819_v20  ;;  %v200_v20 = vld [vmem:[%s5220_s1 + $0x580] sm:$0xff]  ;;  %v153_v26 = vld [vmem:[%s5220_s1 + $0x408] sm:$0xff]  ;;  %v203_v34 = vld [vmem:[%s5220_s1 + $0x598] sm:$0xff]  ;;  %v2845_v38 = vpack.c.bf16 %v171_v31, %v170_v30  ;;  %v3799_v42 = vrot.slane %v17_v37, %v3496_v13  ;;  %v650_v43 = vcombine.high %v17_v37, %v17_v37 }
  0x30   :  { %2822 = vmatprep.subr.bf16.mxu1 %v2821_v25  ;;  %v2841_v25 = vpack.c.bf16 %v169_v19, %v168_v18  ;;  %v185_v28 = vld [vmem:[%s5220_s1 + $0x508] sm:$0xff]  ;;  %v2873_v29 = vpack.c.bf16 %v201_v21, %v200_v20  ;;  %v154_v39 = vld [vmem:[%s5220_s1 + $0x410] sm:$0xff]  ;;  %v187_v46 = vld [vmem:[%s5220_s1 + $0x518] sm:$0xff] }
  0x31   :  { %2792 = vmatpush3.bf16.msra.mxu0 %v2791_v32  ;;  %v202_v32 = vld [vmem:[%s5220_s1 + $0x590] sm:$0xff]  ;;  %v172_v47 = vld [vmem:[%s5220_s1 + $0x4a0] sm:$0xff]  ;;  %v3820_v52 = vrot.slane %v650_v43, %v3496_v13  ;;  %v157_v56 = vld [vmem:[%s5220_s1 + $0x428] sm:$0xff] }
  0x32   :  { %2794 = vmatprep.subr.bf16.mxu0 %v2793_v36  ;;  %v2875_v36 = vpack.c.bf16 %v185_v28, %v184_v27  ;;  %v186_v41 = vld [vmem:[%s5220_s1 + $0x510] sm:$0xff]  ;;  %v2877_v44 = vpack.c.bf16 %v203_v34, %v202_v32  ;;  %v204_v49 = vld [vmem:[%s5220_s1 + $0x5a0] sm:$0xff]  ;;  %v189_v59 = vld [vmem:[%s5220_s1 + $0x528] sm:$0xff] }
  0x33   :  { %2824 = vmatpush3.bf16.msra.mxu1 %v2823_v35  ;;  %v2843_v35 = vpack.c.bf16 %v153_v26, %v152_v23  ;;  %v188_v57 = vld [vmem:[%s5220_s1 + $0x520] sm:$0xff]  ;;  %v174_v60 = vld [vmem:[%s5220_s1 + $0x4b0] sm:$0xff]  ;;  %v159_v4 = vld [vmem:[%s5220_s1 + $0x438] sm:$0xff] }
  0x34   :  { %2826 = vmatprep.subr.bf16.mxu1 %v2825_v40  ;;  %v155_v40 = vld [vmem:[%s5220_s1 + $0x418] sm:$0xff]  ;;  %v2883_v1 = vpack.c.bf16 %v189_v59, %v188_v57  ;;  %v190_v5 = vld [vmem:[%s5220_s1 + $0x530] sm:$0xff]  ;;  %v176_v8 = vld [vmem:[%s5220_s1 + $0x4c0] sm:$0xff] }
  0x35   :  { %2796 = vmatpush3.bf16.msra.mxu0 %v2795_v48  ;;  %v173_v48 = vld [vmem:[%s5220_s1 + $0x4a8] sm:$0xff]  ;;  %v2847_v53 = vpack.c.bf16 %v155_v40, %v154_v39  ;;  %v191_v7 = vld [vmem:[%s5220_s1 + $0x538] sm:$0xff]  ;;  %v192_v18 = vld [vmem:[%s5220_s1 + $0x540] sm:$0xff] }
  0x36   :  { %2798 = vmatprep.subr.bf16.mxu0 %v2797_v51  ;;  %v665_v51 = vcombine.high %v3799_v42, %v3799_v42  ;;  %v2849_v54 = vpack.c.bf16 %v173_v48, %v172_v47  ;;  %v2887_v14 = vpack.c.bf16 %v191_v7, %v190_v5  ;;  %v161_v17 = vld [vmem:[%s5220_s1 + $0x448] sm:$0xff]  ;;  %v178_v21 = vld [vmem:[%s5220_s1 + $0x4d0] sm:$0xff]  ;;  %v195_v32 = vld [vmem:[%s5220_s1 + $0x558] sm:$0xff] }
  0x37   :  { %2828 = vmatpush3.bf16.msra.mxu1 %v2827_v50  ;;  %v205_v50 = vld [vmem:[%s5220_s1 + $0x5a8] sm:$0xff]  ;;  %v210_v23 = vld [vmem:[%s5220_s1 + $0x5d0] sm:$0xff]  ;;  %v180_v34 = vld [vmem:[%s5220_s1 + $0x4e0] sm:$0xff] }
  0x38   :  { %2830 = vmatprep.subr.bf16.mxu1 %v2829_v55  ;;  %v156_v55 = vld [vmem:[%s5220_s1 + $0x420] sm:$0xff]  ;;  %v2881_v58 = vpack.c.bf16 %v205_v50, %v204_v49  ;;  %v193_v20 = vld [vmem:[%s5220_s1 + $0x548] sm:$0xff]  ;;  %v162_v28 = vld [vmem:[%s5220_s1 + $0x450] sm:$0xff] }
  0x39   :  { %2800 = vmatpush3.bf16.msra.mxu0 %v2799_v61  ;;  %v175_v61 = vld [vmem:[%s5220_s1 + $0x4b8] sm:$0xff]  ;;  %v2851_v0 = vpack.c.bf16 %v157_v56, %v156_v55  ;;  %v2891_v26 = vpack.c.bf16 %v193_v20, %v192_v18  ;;  %v194_v30 = vld [vmem:[%s5220_s1 + $0x550] sm:$0xff]  ;;  %v213_v37 = vld [vmem:[%s5220_s1 + $0x5e8] sm:$0xff] }
  0x3a   :  { %2802 = vmatprep.subr.bf16.mxu0 %v2801_v63  ;;  %v207_v63 = vld [vmem:[%s5220_s1 + $0x5b8] sm:$0xff]  ;;  %v2853_v2 = vpack.c.bf16 %v175_v61, %v174_v60  ;;  %v2895_v39 = vpack.c.bf16 %v195_v32, %v194_v30  ;;  %v165_v43 = vld [vmem:[%s5220_s1 + $0x468] sm:$0xff]  ;;  %v182_v48 = vld [vmem:[%s5220_s1 + $0x4f0] sm:$0xff] }
  0x3b   :  { %2832 = vmatpush3.bf16.msra.mxu1 %v2831_v62  ;;  %v206_v62 = vld [vmem:[%s5220_s1 + $0x5b0] sm:$0xff]  ;;  %v197_v47 = vld [vmem:[%s5220_s1 + $0x568] sm:$0xff]  ;;  %v183_v49 = vld [vmem:[%s5220_s1 + $0x4f8] sm:$0xff] }
  0x3c   :  { %2834 = vmatprep.subr.bf16.mxu1 %v2833_v3  ;;  %v158_v3 = vld [vmem:[%s5220_s1 + $0x430] sm:$0xff]  ;;  %v2885_v6 = vpack.c.bf16 %v207_v63, %v206_v62  ;;  %v2869_v55 = vpack.c.bf16 %v183_v49, %v182_v48  ;;  %v167_v57 = vld [vmem:[%s5220_s1 + $0x478] sm:$0xff]  ;;  %v232_v60 = vld [vmem:[%s5220_s1 + $0x680] sm:$0xff] }
  0x3d   :  { %2804 = vmatpush3.bf16.msra.mxu0 %v2803_v9  ;;  %v177_v9 = vld [vmem:[%s5220_s1 + $0x4c8] sm:$0xff]  ;;  %v2855_v12 = vpack.c.bf16 %v159_v4, %v158_v3  ;;  %v214_v50 = vld [vmem:[%s5220_s1 + $0x5f0] sm:$0xff]  ;;  %v199_v59 = vld [vmem:[%s5220_s1 + $0x578] sm:$0xff] }
  0x3e   :  { %2806 = vmatprep.subr.bf16.mxu0 %v2805_v11  ;;  %v209_v11 = vld [vmem:[%s5220_s1 + $0x5c8] sm:$0xff]  ;;  %v2857_v15 = vpack.c.bf16 %v177_v9, %v176_v8  ;;  %v166_v56 = vld [vmem:[%s5220_s1 + $0x470] sm:$0xff]  ;;  %v264_v62 = vld [vmem:[%s5220_s1 + $0x780] sm:$0xff] }
  0x3f   :  { %2836 = vmatpush3.bf16.msra.mxu1 %v2835_v10  ;;  %v208_v10 = vld [vmem:[%s5220_s1 + $0x5c0] sm:$0xff]  ;;  %v233_v61 = vld [vmem:[%s5220_s1 + $0x688] sm:$0xff]  ;;  %v234_v9 = vld [vmem:[%s5220_s1 + $0x690] sm:$0xff] }
  0x40   :  { %2838 = vmatprep.subr.bf16.mxu1 %v2837_v16  ;;  %v160_v16 = vld [vmem:[%s5220_s1 + $0x440] sm:$0xff]  ;;  %v2889_v19 = vpack.c.bf16 %v209_v11, %v208_v10  ;;  %v265_v63 = vld [vmem:[%s5220_s1 + $0x788] sm:$0xff]  ;;  %v2905_v3 = vpack.c.bf16 %v233_v61, %v232_v60  ;;  %v235_v10 = vld [vmem:[%s5220_s1 + $0x698] sm:$0xff] }
  0x41   :  { %2808 = vmatpush3.bf16.msra.mxu0 %v2807_v22  ;;  %v179_v22 = vld [vmem:[%s5220_s1 + $0x4d8] sm:$0xff]  ;;  %v216_v4 = vld [vmem:[%s5220_s1 + $0x600] sm:$0xff]  ;;  %v217_v5 = vld [vmem:[%s5220_s1 + $0x608] sm:$0xff]  ;;  %v2937_v7 = vpack.c.bf16 %v265_v63, %v264_v62  ;;  %v2909_v18 = vpack.c.bf16 %v235_v10, %v234_v9 }
  0x42   :  { %2842 = vmatprep.subr.bf16.mxu0 %v2841_v25  ;;  %v2859_v25 = vpack.c.bf16 %v161_v17, %v160_v16  ;;  %v2861_v27 = vpack.c.bf16 %v179_v22, %v178_v21  ;;  %v249_v8 = vld [vmem:[%s5220_s1 + $0x708] sm:$0xff]  ;;  %v2907_v16 = vpack.c.bf16 %v217_v5, %v216_v4  ;;  %v219_v20 = vld [vmem:[%s5220_s1 + $0x618] sm:$0xff]  ;;  %v250_v21 = vld [vmem:[%s5220_s1 + $0x710] sm:$0xff] }
  0x43   :  { %2840 = vmatpush3.bf16.msra.mxu1 %v2839_v24  ;;  %v211_v24 = vld [vmem:[%s5220_s1 + $0x5d8] sm:$0xff]  ;;  %v254_v48 = vld [vmem:[%s5220_s1 + $0x730] sm:$0xff]  ;;  %v257_v61 = vld [vmem:[%s5220_s1 + $0x748] sm:$0xff] }
  0x44   :  { %2874 = vmatprep.subr.bf16.mxu1 %v2873_v29  ;;  %1010 = vmatmul.mubr.f32.vlgmr.msra.gmra.mrb[2].mxu0 %v3657_v33  ;;  %v2879_v33 = vpack.c.bf16 %v187_v46, %v186_v41  ;;  %v163_v29 = vld [vmem:[%s5220_s1 + $0x458] sm:$0xff]  ;;  %v2893_v31 = vpack.c.bf16 %v211_v24, %v210_v23  ;;  %v164_v41 = vld [vmem:[%s5220_s1 + $0x460] sm:$0xff]  ;;  %v242_v62 = vld [vmem:[%s5220_s1 + $0x6d0] sm:$0xff] }
  0x45   :  { %2844 = vmatpush3.bf16.msra.mxu0 %v2843_v35  ;;  %1149 = vmatprep.mubr.f32.mxu0 %v665_v51  ;;  %v181_v35 = vld [vmem:[%s5220_s1 + $0x4e8] sm:$0xff]  ;;  %v215_v51 = vld [vmem:[%s5220_s1 + $0x5f8] sm:$0xff]  ;;  %v236_v24 = vld [vmem:[%s5220_s1 + $0x6a0] sm:$0xff] }
  0x46   :  { %1080 = vmatmul.mubr.f32.vlgmr.msra.gmra.mrb[2].mxu1 %v3680_v45  ;;  %2846 = vmatprep.subr.bf16.mxu0 %v2845_v38  ;;  %v666_v45 = vcombine.high %v3820_v52, %v3820_v52  ;;  %v2863_v38 = vpack.c.bf16 %v163_v29, %v162_v28  ;;  %v2865_v40 = vpack.c.bf16 %v181_v35, %v180_v34  ;;  %v251_v23 = vld [vmem:[%s5220_s1 + $0x718] sm:$0xff]  ;;  %v269_v28 = vld [vmem:[%s5220_s1 + $0x7a8] sm:$0xff]  ;;  %v252_v35 = vld [vmem:[%s5220_s1 + $0x720] sm:$0xff] }
  0x47   :  { %2876 = vmatpush3.bf16.msra.mxu1 %v2875_v36  ;;  %v212_v36 = vld [vmem:[%s5220_s1 + $0x5e0] sm:$0xff]  ;;  %v221_v34 = vld [vmem:[%s5220_s1 + $0x628] sm:$0xff]  ;;  %v243_v63 = vld [vmem:[%s5220_s1 + $0x6d8] sm:$0xff] }
  0x48   :  { %2878 = vmatprep.subr.bf16.mxu1 %v2877_v44  ;;  %1219 = vmatprep.mubr.f32.mxu1 %v666_v45  ;;  %v196_v44 = vld [vmem:[%s5220_s1 + $0x560] sm:$0xff]  ;;  %v2897_v46 = vpack.c.bf16 %v213_v37, %v212_v36  ;;  %v198_v45 = vld [vmem:[%s5220_s1 + $0x570] sm:$0xff]  ;;  %v2925_v4 = vpack.c.bf16 %v243_v63, %v242_v62  ;;  %v259_v9 = vld [vmem:[%s5220_s1 + $0x758] sm:$0xff] }
  0x49   :  { %2848 = vmatpush3.bf16.msra.mxu0 %v2847_v53  ;;  %v2867_v53 = vpack.c.bf16 %v165_v43, %v164_v41  ;;  %v238_v37 = vld [vmem:[%s5220_s1 + $0x6b0] sm:$0xff]  ;;  %v244_v10 = vld [vmem:[%s5220_s1 + $0x6e0] sm:$0xff] }
  0x4a   :  { %2850 = vmatprep.subr.bf16.mxu0 %v2849_v54  ;;  %v2899_v54 = vpack.c.bf16 %v197_v47, %v196_v44  ;;  %v223_v47 = vld [vmem:[%s5220_s1 + $0x638] sm:$0xff]  ;;  %v226_v5 = vld [vmem:[%s5220_s1 + $0x650] sm:$0xff] }
  0x4b   :  { %2880 = vmatpush3.bf16.msra.mxu1 %v2879_v33  ;;  %v18_v33 = vld [vmem:[%s5219_s0 + $0x18] sm:$0xff]  ;;  %v314_v62 = vld [vmem:[%s5220_s1 + $0x910] sm:$0xff] }
  0x4c   :  { %2882 = vmatprep.subr.bf16.mxu1 %v2881_v58  ;;  %v2901_v58 = vpack.c.bf16 %v215_v51, %v214_v50  ;;  %v3991_v11 = vrot.slane %v18_v33, %v3496_v13  ;;  %v255_v50 = vld [vmem:[%s5220_s1 + $0x738] sm:$0xff]  ;;  %v240_v51 = vld [vmem:[%s5220_s1 + $0x6c0] sm:$0xff] }
  0x4d   :  { %2852 = vmatpush3.bf16.msra.mxu0 %v2851_v0  ;;  %v667_v0 = vcombine.high %v18_v33, %v18_v33  ;;  %v272_v33 = vld [vmem:[%s5220_s1 + $0x7c0] sm:$0xff] }
  0x4e   :  { %2854 = vmatprep.subr.bf16.mxu0 %v2853_v2  ;;  %v2903_v2 = vpack.c.bf16 %v199_v59, %v198_v45  ;;  %v224_v45 = vld [vmem:[%s5220_s1 + $0x640] sm:$0xff] }
  0x4f   :  { %2884 = vmatpush3.bf16.msra.mxu1 %v2883_v1  ;;  %v2871_v1 = vpack.c.bf16 %v167_v57, %v166_v56  ;;  %v2951_v56 = vpack.c.bf16 %v255_v50, %v254_v48  ;;  %v256_v59 = vld [vmem:[%s5220_s1 + $0x740] sm:$0xff]  ;;  %v281_v48 = vld [vmem:[%s5220_s1 + $0x808] sm:$0xff] }
  0x50   :  { %2886 = vmatprep.subr.bf16.mxu1 %v2885_v6  ;;  %v248_v6 = vld [vmem:[%s5220_s1 + $0x700] sm:$0xff] }
  0x51   :  { %2856 = vmatpush3.bf16.msra.mxu0 %v2855_v12  ;;  %v266_v12 = vld [vmem:[%s5220_s1 + $0x790] sm:$0xff]  ;;  %v2939_v17 = vpack.c.bf16 %v249_v8, %v248_v6  ;;  %v227_v6 = vld [vmem:[%s5220_s1 + $0x658] sm:$0xff] }
  0x52   :  { %2858 = vmatprep.subr.bf16.mxu0 %v2857_v15  ;;  %v4000_v15 = vrot.slane %v667_v0, %v3496_v13  ;;  %v274_v0 = vld [vmem:[%s5220_s1 + $0x7d0] sm:$0xff] }
  0x53   :  { %2888 = vmatpush3.bf16.msra.mxu1 %v2887_v14  ;;  %v267_v14 = vld [vmem:[%s5220_s1 + $0x798] sm:$0xff] }
  0x54   :  { %2890 = vmatprep.subr.bf16.mxu1 %v2889_v19  ;;  %v218_v19 = vld [vmem:[%s5220_s1 + $0x610] sm:$0xff]  ;;  %v2941_v22 = vpack.c.bf16 %v267_v14, %v266_v12  ;;  %v683_v29 = vcombine.high %v4000_v15, %v4000_v15  ;;  %v245_v12 = vld [vmem:[%s5220_s1 + $0x6e8] sm:$0xff]  ;;  %v276_v14 = vld [vmem:[%s5220_s1 + $0x7e0] sm:$0xff] }
  0x55   :  { %2860 = vmatpush3.bf16.msra.mxu0 %v2859_v25  ;;  %v237_v25 = vld [vmem:[%s5220_s1 + $0x6a8] sm:$0xff]  ;;  %v2911_v30 = vpack.c.bf16 %v219_v20, %v218_v19  ;;  %v2929_v19 = vpack.c.bf16 %v245_v12, %v244_v10  ;;  %v228_v20 = vld [vmem:[%s5220_s1 + $0x660] sm:$0xff] }
  0x56   :  { %2862 = vmatprep.subr.bf16.mxu0 %v2861_v27  ;;  %v268_v27 = vld [vmem:[%s5220_s1 + $0x7a0] sm:$0xff]  ;;  %v2913_v32 = vpack.c.bf16 %v237_v25, %v236_v24  ;;  %v261_v24 = vld [vmem:[%s5220_s1 + $0x768] sm:$0xff]  ;;  %v246_v25 = vld [vmem:[%s5220_s1 + $0x6f0] sm:$0xff] }
  0x57   :  { %2892 = vmatpush3.bf16.msra.mxu1 %v2891_v26  ;;  %v682_v26 = vcombine.high %v3991_v11, %v3991_v11  ;;  %v2945_v36 = vpack.c.bf16 %v269_v28, %v268_v27  ;;  %v278_v27 = vld [vmem:[%s5220_s1 + $0x7f0] sm:$0xff]  ;;  %v279_v28 = vld [vmem:[%s5220_s1 + $0x7f8] sm:$0xff]  ;;  %v285_v10 = vld [vmem:[%s5220_s1 + $0x828] sm:$0xff] }
  0x58   :  { %2894 = vmatprep.subr.bf16.mxu1 %v2893_v31  ;;  %v2943_v31 = vpack.c.bf16 %v251_v23, %v250_v21  ;;  %v229_v21 = vld [vmem:[%s5220_s1 + $0x668] sm:$0xff]  ;;  %v316_v12 = vld [vmem:[%s5220_s1 + $0x920] sm:$0xff] }
  0x59   :  { %2864 = vmatpush3.bf16.msra.mxu0 %v2863_v38  ;;  %v239_v38 = vld [vmem:[%s5220_s1 + $0x6b8] sm:$0xff] }
  0x5a   :  { %2866 = vmatprep.subr.bf16.mxu0 %v2865_v40  ;;  %v271_v40 = vld [vmem:[%s5220_s1 + $0x7b8] sm:$0xff]  ;;  %v2917_v44 = vpack.c.bf16 %v239_v38, %v238_v37  ;;  %v296_v37 = vld [vmem:[%s5220_s1 + $0x880] sm:$0xff]  ;;  %v297_v38 = vld [vmem:[%s5220_s1 + $0x888] sm:$0xff] }
  0x5b   :  { %2896 = vmatpush3.bf16.msra.mxu1 %v2895_v39  ;;  %v270_v39 = vld [vmem:[%s5220_s1 + $0x7b0] sm:$0xff] }
  0x5c   :  { %2898 = vmatprep.subr.bf16.mxu1 %v2897_v46  ;;  %v222_v46 = vld [vmem:[%s5220_s1 + $0x630] sm:$0xff]  ;;  %v2949_v49 = vpack.c.bf16 %v271_v40, %v270_v39  ;;  %v328_v39 = vld [vmem:[%s5220_s1 + $0x980] sm:$0xff]  ;;  %v329_v40 = vld [vmem:[%s5220_s1 + $0x988] sm:$0xff] }
  0x5d   :  { %2868 = vmatpush3.bf16.msra.mxu0 %v2867_v53  ;;  %v241_v53 = vld [vmem:[%s5220_s1 + $0x6c8] sm:$0xff]  ;;  %v3001_v50 = vpack.c.bf16 %v329_v40, %v328_v39  ;;  %v306_v39 = vld [vmem:[%s5220_s1 + $0x8d0] sm:$0xff]  ;;  %v307_v40 = vld [vmem:[%s5220_s1 + $0x8d8] sm:$0xff] }
  0x5e   :  { %2870 = vmatprep.subr.bf16.mxu0 %v2869_v55  ;;  %v2919_v55 = vpack.c.bf16 %v223_v47, %v222_v46  ;;  %v2921_v57 = vpack.c.bf16 %v241_v53, %v240_v51  ;;  %v2969_v46 = vpack.c.bf16 %v297_v38, %v296_v37  ;;  %v280_v47 = vld [vmem:[%s5220_s1 + $0x800] sm:$0xff]  ;;  %v313_v51 = vld [vmem:[%s5220_s1 + $0x908] sm:$0xff]  ;;  %v298_v53 = vld [vmem:[%s5220_s1 + $0x890] sm:$0xff] }
  0x5f   :  { %2900 = vmatpush3.bf16.msra.mxu1 %v2899_v54  ;;  %v273_v54 = vld [vmem:[%s5220_s1 + $0x7c8] sm:$0xff] }
  0x60   :  { %2902 = vmatprep.subr.bf16.mxu1 %v2901_v58  ;;  %v225_v58 = vld [vmem:[%s5220_s1 + $0x648] sm:$0xff]  ;;  %v2953_v60 = vpack.c.bf16 %v273_v54, %v272_v33  ;;  %v299_v33 = vld [vmem:[%s5220_s1 + $0x898] sm:$0xff] }
  0x61   :  { %2872 = vmatpush3.bf16.msra.mxu0 %v2871_v1  ;;  %v275_v1 = vld [vmem:[%s5220_s1 + $0x7d8] sm:$0xff]  ;;  %v321_v38 = vld [vmem:[%s5220_s1 + $0x948] sm:$0xff] }
  0x62   :  { %2906 = vmatprep.subr.bf16.mxu0 %v2905_v3  ;;  %v2955_v3 = vpack.c.bf16 %v257_v61, %v256_v59  ;;  %v2957_v8 = vpack.c.bf16 %v275_v1, %v274_v0  ;;  %v2973_v59 = vpack.c.bf16 %v299_v33, %v298_v53  ;;  %v283_v61 = vld [vmem:[%s5220_s1 + $0x818] sm:$0xff]  ;;  %v300_v1 = vld [vmem:[%s5220_s1 + $0x8a0] sm:$0xff] }
  0x63   :  { %2904 = vmatpush3.bf16.msra.mxu1 %v2903_v2  ;;  %v2923_v2 = vpack.c.bf16 %v225_v58, %v224_v45  ;;  %v2971_v45 = vpack.c.bf16 %v281_v48, %v280_v47  ;;  %v315_v0 = vld [vmem:[%s5220_s1 + $0x918] sm:$0xff]  ;;  %v2989_v47 = vpack.c.bf16 %v307_v40, %v306_v39  ;;  %v290_v48 = vld [vmem:[%s5220_s1 + $0x850] sm:$0xff]  ;;  %v308_v33 = vld [vmem:[%s5220_s1 + $0x8e0] sm:$0xff] }
  0x64   :  { %2938 = vmatprep.subr.bf16.mxu1 %v2937_v7  ;;  %1150 = vmatmul.mubr.f32.vlgmr.msra.gmra.mrb[4].mxu0 %v3799_v42  ;;  %v220_v42 = vld [vmem:[%s5220_s1 + $0x620] sm:$0xff]  ;;  %v258_v7 = vld [vmem:[%s5220_s1 + $0x750] sm:$0xff]  ;;  %v323_v53 = vld [vmem:[%s5220_s1 + $0x958] sm:$0xff] }
  0x65   :  { %2908 = vmatpush3.bf16.msra.mxu0 %v2907_v16  ;;  %1289 = vmatprep.mubr.f32.mxu0 %v682_v26  ;;  %v2915_v41 = vpack.c.bf16 %v221_v34, %v220_v42  ;;  %v277_v16 = vld [vmem:[%s5220_s1 + $0x7e8] sm:$0xff]  ;;  %v247_v26 = vld [vmem:[%s5220_s1 + $0x6f8] sm:$0xff]  ;;  %v230_v42 = vld [vmem:[%s5220_s1 + $0x670] sm:$0xff] }
  0x66   :  { %1220 = vmatmul.mubr.f32.vlgmr.msra.gmra.mrb[4].mxu1 %v3820_v52  ;;  %2910 = vmatprep.subr.bf16.mxu0 %v2909_v18  ;;  %v253_v52 = vld [vmem:[%s5220_s1 + $0x728] sm:$0xff]  ;;  %v2959_v18 = vpack.c.bf16 %v259_v9, %v258_v7  ;;  %v2961_v23 = vpack.c.bf16 %v277_v16, %v276_v14  ;;  %v231_v34 = vld [vmem:[%s5220_s1 + $0x678] sm:$0xff]  ;;  %v302_v16 = vld [vmem:[%s5220_s1 + $0x8b0] sm:$0xff] }
  0x67   :  { %2940 = vmatpush3.bf16.msra.mxu1 %v2939_v17  ;;  %1359 = vmatprep.mubr.f32.mxu1 %v683_v29  ;;  %v2947_v43 = vpack.c.bf16 %v253_v52, %v252_v35  ;;  %v2927_v17 = vpack.c.bf16 %v227_v6, %v226_v5  ;;  %v2931_v29 = vpack.c.bf16 %v229_v21, %v228_v20  ;;  %v262_v35 = vld [vmem:[%s5220_s1 + $0x770] sm:$0xff]  ;;  %v263_v52 = vld [vmem:[%s5220_s1 + $0x778] sm:$0xff]  ;;  %v333_v5 = vld [vmem:[%s5220_s1 + $0x9a8] sm:$0xff] }
  0x68   :  { %2942 = vmatprep.subr.bf16.mxu1 %v2941_v22  ;;  %v260_v22 = vld [vmem:[%s5220_s1 + $0x760] sm:$0xff]  ;;  %v378_v39 = vld [vmem:[%s5220_s1 + $0xb10] sm:$0xff] }
  0x69   :  { %2912 = vmatpush3.bf16.msra.mxu0 %v2911_v30  ;;  %v19_v30 = vld [vmem:[%s5219_s0 + $0x20] sm:$0xff] }
  0x6a   :  { %2914 = vmatprep.subr.bf16.mxu0 %v2913_v32  ;;  %v2933_v32 = vpack.c.bf16 %v247_v26, %v246_v25  ;;  %v4198_v54 = vrot.slane %v19_v30, %v3496_v13  ;;  %v318_v25 = vld [vmem:[%s5220_s1 + $0x930] sm:$0xff] }
  0x6b   :  { %2944 = vmatpush3.bf16.msra.mxu1 %v2943_v31  ;;  %v2963_v31 = vpack.c.bf16 %v261_v24, %v260_v22  ;;  %v287_v24 = vld [vmem:[%s5220_s1 + $0x838] sm:$0xff] }
  0x6c   :  { %2946 = vmatprep.subr.bf16.mxu1 %v2945_v36  ;;  %v2965_v36 = vpack.c.bf16 %v279_v28, %v278_v27  ;;  %v319_v27 = vld [vmem:[%s5220_s1 + $0x938] sm:$0xff]  ;;  %v304_v28 = vld [vmem:[%s5220_s1 + $0x8c0] sm:$0xff] }
  0x6d   :  { %2916 = vmatpush3.bf16.msra.mxu0 %v2915_v41  ;;  %v684_v41 = vcombine.high %v19_v30, %v19_v30  ;;  %v336_v30 = vld [vmem:[%s5220_s1 + $0x9c0] sm:$0xff] }
  0x6e   :  { %2918 = vmatprep.subr.bf16.mxu0 %v2917_v44  ;;  %v2967_v44 = vpack.c.bf16 %v263_v52, %v262_v35  ;;  %v288_v35 = vld [vmem:[%s5220_s1 + $0x840] sm:$0xff] }
  0x6f   :  { %2948 = vmatpush3.bf16.msra.mxu1 %v2947_v43  ;;  %v2935_v43 = vpack.c.bf16 %v231_v34, %v230_v42  ;;  %v3015_v42 = vpack.c.bf16 %v319_v27, %v318_v25  ;;  %v320_v52 = vld [vmem:[%s5220_s1 + $0x940] sm:$0xff]  ;;  %v345_v25 = vld [vmem:[%s5220_s1 + $0xa08] sm:$0xff] }
  0x70   :  { %2950 = vmatprep.subr.bf16.mxu1 %v2949_v49  ;;  %v312_v49 = vld [vmem:[%s5220_s1 + $0x900] sm:$0xff] }
  0x71   :  { %2920 = vmatpush3.bf16.msra.mxu0 %v2919_v55  ;;  %v330_v55 = vld [vmem:[%s5220_s1 + $0x990] sm:$0xff]  ;;  %v3003_v58 = vpack.c.bf16 %v313_v51, %v312_v49  ;;  %v291_v49 = vld [vmem:[%s5220_s1 + $0x858] sm:$0xff] }
  0x72   :  { %2922 = vmatprep.subr.bf16.mxu0 %v2921_v57  ;;  %v4207_v57 = vrot.slane %v684_v41, %v3496_v13  ;;  %v338_v41 = vld [vmem:[%s5220_s1 + $0x9d0] sm:$0xff] }
  0x73   :  { %2952 = vmatpush3.bf16.msra.mxu1 %v2951_v56  ;;  %v331_v56 = vld [vmem:[%s5220_s1 + $0x998] sm:$0xff] }
  0x74   :  { %2954 = vmatprep.subr.bf16.mxu1 %v2953_v60  ;;  %v282_v60 = vld [vmem:[%s5220_s1 + $0x810] sm:$0xff]  ;;  %v3005_v63 = vpack.c.bf16 %v331_v56, %v330_v55  ;;  %v700_v6 = vcombine.high %v4207_v57, %v4207_v57  ;;  %v309_v55 = vld [vmem:[%s5220_s1 + $0x8e8] sm:$0xff]  ;;  %v340_v56 = vld [vmem:[%s5220_s1 + $0x9e0] sm:$0xff] }
  0x75   :  { %2924 = vmatpush3.bf16.msra.mxu0 %v2923_v2  ;;  %v301_v2 = vld [vmem:[%s5220_s1 + $0x8a8] sm:$0xff]  ;;  %v2975_v7 = vpack.c.bf16 %v283_v61, %v282_v60  ;;  %v2993_v60 = vpack.c.bf16 %v309_v55, %v308_v33  ;;  %v292_v61 = vld [vmem:[%s5220_s1 + $0x860] sm:$0xff] }
  0x76   :  { %2926 = vmatprep.subr.bf16.mxu0 %v2925_v4  ;;  %v332_v4 = vld [vmem:[%s5220_s1 + $0x9a0] sm:$0xff]  ;;  %v2977_v9 = vpack.c.bf16 %v301_v2, %v300_v1  ;;  %v325_v1 = vld [vmem:[%s5220_s1 + $0x968] sm:$0xff]  ;;  %v310_v2 = vld [vmem:[%s5220_s1 + $0x8f0] sm:$0xff] }
  0x77   :  { %2956 = vmatpush3.bf16.msra.mxu1 %v2955_v3  ;;  %v699_v3 = vcombine.high %v4198_v54, %v4198_v54  ;;  %v3009_v14 = vpack.c.bf16 %v333_v5, %v332_v4  ;;  %v342_v4 = vld [vmem:[%s5220_s1 + $0x9f0] sm:$0xff]  ;;  %v343_v5 = vld [vmem:[%s5220_s1 + $0x9f8] sm:$0xff]  ;;  %v349_v33 = vld [vmem:[%s5220_s1 + $0xa28] sm:$0xff] }
  0x78   :  { %2958 = vmatprep.subr.bf16.mxu1 %v2957_v8  ;;  %v3007_v8 = vpack.c.bf16 %v315_v0, %v314_v62  ;;  %v293_v62 = vld [vmem:[%s5220_s1 + $0x868] sm:$0xff]  ;;  %v380_v55 = vld [vmem:[%s5220_s1 + $0xb20] sm:$0xff] }
  0x79   :  { %2928 = vmatpush3.bf16.msra.mxu0 %v2927_v17  ;;  %v303_v17 = vld [vmem:[%s5220_s1 + $0x8b8] sm:$0xff] }
  0x7a   :  { %2930 = vmatprep.subr.bf16.mxu0 %v2929_v19  ;;  %v335_v19 = vld [vmem:[%s5220_s1 + $0x9b8] sm:$0xff]  ;;  %v2981_v22 = vpack.c.bf16 %v303_v17, %v302_v16  ;;  %v360_v16 = vld [vmem:[%s5220_s1 + $0xa80] sm:$0xff]  ;;  %v361_v17 = vld [vmem:[%s5220_s1 + $0xa88] sm:$0xff] }
  0x7b   :  { %2960 = vmatpush3.bf16.msra.mxu1 %v2959_v18  ;;  %v334_v18 = vld [vmem:[%s5220_s1 + $0x9b0] sm:$0xff] }
  0x7c   :  { %2962 = vmatprep.subr.bf16.mxu1 %v2961_v23  ;;  %v286_v23 = vld [vmem:[%s5220_s1 + $0x830] sm:$0xff]  ;;  %v3013_v26 = vpack.c.bf16 %v335_v19, %v334_v18  ;;  %v392_v18 = vld [vmem:[%s5220_s1 + $0xb80] sm:$0xff]  ;;  %v393_v19 = vld [vmem:[%s5220_s1 + $0xb88] sm:$0xff] }
  0x7d   :  { %2932 = vmatpush3.bf16.msra.mxu0 %v2931_v29  ;;  %v305_v29 = vld [vmem:[%s5220_s1 + $0x8c8] sm:$0xff]  ;;  %v3065_v27 = vpack.c.bf16 %v393_v19, %v392_v18  ;;  %v370_v18 = vld [vmem:[%s5220_s1 + $0xad0] sm:$0xff]  ;;  %v371_v19 = vld [vmem:[%s5220_s1 + $0xad8] sm:$0xff] }
  0x7e   :  { %2934 = vmatprep.subr.bf16.mxu0 %v2933_v32  ;;  %v2983_v32 = vpack.c.bf16 %v287_v24, %v286_v23  ;;  %v2985_v34 = vpack.c.bf16 %v305_v29, %v304_v28  ;;  %v3033_v23 = vpack.c.bf16 %v361_v17, %v360_v16  ;;  %v344_v24 = vld [vmem:[%s5220_s1 + $0xa00] sm:$0xff]  ;;  %v377_v28 = vld [vmem:[%s5220_s1 + $0xb08] sm:$0xff]  ;;  %v362_v29 = vld [vmem:[%s5220_s1 + $0xa90] sm:$0xff] }
  0x7f   :  { %2964 = vmatpush3.bf16.msra.mxu1 %v2963_v31  ;;  %v337_v31 = vld [vmem:[%s5220_s1 + $0x9c8] sm:$0xff] }
  0x80   :  { %2966 = vmatprep.subr.bf16.mxu1 %v2965_v36  ;;  %v289_v36 = vld [vmem:[%s5220_s1 + $0x848] sm:$0xff]  ;;  %v3017_v37 = vpack.c.bf16 %v337_v31, %v336_v30  ;;  %v363_v30 = vld [vmem:[%s5220_s1 + $0xa98] sm:$0xff] }
  0x81   :  { %2936 = vmatpush3.bf16.msra.mxu0 %v2935_v43  ;;  %v339_v43 = vld [vmem:[%s5220_s1 + $0x9d8] sm:$0xff]  ;;  %v385_v17 = vld [vmem:[%s5220_s1 + $0xb48] sm:$0xff] }
  0x82   :  { %2970 = vmatprep.subr.bf16.mxu0 %v2969_v46  ;;  %v3019_v46 = vpack.c.bf16 %v321_v38, %v320_v52  ;;  %v3021_v51 = vpack.c.bf16 %v339_v43, %v338_v41  ;;  %v3037_v52 = vpack.c.bf16 %v363_v30, %v362_v29  ;;  %v347_v38 = vld [vmem:[%s5220_s1 + $0xa18] sm:$0xff]  ;;  %v364_v43 = vld [vmem:[%s5220_s1 + $0xaa0] sm:$0xff] }
  0x83   :  { %2968 = vmatpush3.bf16.msra.mxu1 %v2967_v44  ;;  %v2987_v44 = vpack.c.bf16 %v289_v36, %v288_v35  ;;  %v3035_v35 = vpack.c.bf16 %v345_v25, %v344_v24  ;;  %v379_v41 = vld [vmem:[%s5220_s1 + $0xb18] sm:$0xff]  ;;  %v3053_v24 = vpack.c.bf16 %v371_v19, %v370_v18  ;;  %v354_v25 = vld [vmem:[%s5220_s1 + $0xa50] sm:$0xff]  ;;  %v372_v30 = vld [vmem:[%s5220_s1 + $0xae0] sm:$0xff] }
  0x84   :  { %3002 = vmatprep.subr.bf16.mxu1 %v3001_v50  ;;  %1290 = vmatmul.mubr.f32.vlgmr.msra.gmra.mrb[6].mxu0 %v3991_v11  ;;  %v284_v11 = vld [vmem:[%s5220_s1 + $0x820] sm:$0xff]  ;;  %v322_v50 = vld [vmem:[%s5220_s1 + $0x950] sm:$0xff]  ;;  %v387_v29 = vld [vmem:[%s5220_s1 + $0xb58] sm:$0xff] }
  0x85   :  { %2972 = vmatpush3.bf16.msra.mxu0 %v2971_v45  ;;  %1429 = vmatprep.mubr.f32.mxu0 %v699_v3  ;;  %v2979_v20 = vpack.c.bf16 %v285_v10, %v284_v11  ;;  %v341_v45 = vld [vmem:[%s5220_s1 + $0x9e8] sm:$0xff]  ;;  %v311_v3 = vld [vmem:[%s5220_s1 + $0x8f8] sm:$0xff]  ;;  %v294_v11 = vld [vmem:[%s5220_s1 + $0x870] sm:$0xff] }
  0x86   :  { %1360 = vmatmul.mubr.f32.vlgmr.msra.gmra.mrb[6].mxu1 %v4000_v15  ;;  %2974 = vmatprep.subr.bf16.mxu0 %v2973_v59  ;;  %v317_v15 = vld [vmem:[%s5220_s1 + $0x928] sm:$0xff]  ;;  %v3023_v59 = vpack.c.bf16 %v323_v53, %v322_v50  ;;  %v3025_v0 = vpack.c.bf16 %v341_v45, %v340_v56  ;;  %v295_v10 = vld [vmem:[%s5220_s1 + $0x878] sm:$0xff]  ;;  %v366_v45 = vld [vmem:[%s5220_s1 + $0xab0] sm:$0xff] }
  0x87   :  { %3004 = vmatpush3.bf16.msra.mxu1 %v3003_v58  ;;  %1499 = vmatprep.mubr.f32.mxu1 %v700_v6  ;;  %v3011_v21 = vpack.c.bf16 %v317_v15, %v316_v12  ;;  %v2991_v58 = vpack.c.bf16 %v291_v49, %v290_v48  ;;  %v2995_v6 = vpack.c.bf16 %v293_v62, %v292_v61  ;;  %v326_v12 = vld [vmem:[%s5220_s1 + $0x970] sm:$0xff]  ;;  %v327_v15 = vld [vmem:[%s5220_s1 + $0x978] sm:$0xff]  ;;  %v397_v48 = vld [vmem:[%s5220_s1 + $0xba8] sm:$0xff] }
  0x88   :  { %3006 = vmatprep.subr.bf16.mxu1 %v3005_v63  ;;  %v324_v63 = vld [vmem:[%s5220_s1 + $0x960] sm:$0xff]  ;;  %v442_v18 = vld [vmem:[%s5220_s1 + $0xd10] sm:$0xff] }
  0x89   :  { %2976 = vmatpush3.bf16.msra.mxu0 %v2975_v7  ;;  %v20_v7 = vld [vmem:[%s5219_s0 + $0x28] sm:$0xff] }
  0x8a   :  { %2978 = vmatprep.subr.bf16.mxu0 %v2977_v9  ;;  %v2997_v9 = vpack.c.bf16 %v311_v3, %v310_v2  ;;  %v4405_v31 = vrot.slane %v20_v7, %v3496_v13  ;;  %v382_v2 = vld [vmem:[%s5220_s1 + $0xb30] sm:$0xff] }
  0x8b   :  { %3008 = vmatpush3.bf16.msra.mxu1 %v3007_v8  ;;  %v3027_v8 = vpack.c.bf16 %v325_v1, %v324_v63  ;;  %v351_v1 = vld [vmem:[%s5220_s1 + $0xa38] sm:$0xff] }
  0x8c   :  { %3010 = vmatprep.subr.bf16.mxu1 %v3009_v14  ;;  %v3029_v14 = vpack.c.bf16 %v343_v5, %v342_v4  ;;  %v383_v4 = vld [vmem:[%s5220_s1 + $0xb38] sm:$0xff]  ;;  %v368_v5 = vld [vmem:[%s5220_s1 + $0xac0] sm:$0xff] }
  0x8d   :  { %2980 = vmatpush3.bf16.msra.mxu0 %v2979_v20  ;;  %v701_v20 = vcombine.high %v20_v7, %v20_v7  ;;  %v400_v7 = vld [vmem:[%s5220_s1 + $0xbc0] sm:$0xff] }
  0x8e   :  { %2982 = vmatprep.subr.bf16.mxu0 %v2981_v22  ;;  %v3031_v22 = vpack.c.bf16 %v327_v15, %v326_v12  ;;  %v352_v12 = vld [vmem:[%s5220_s1 + $0xa40] sm:$0xff] }
  0x8f   :  { %3012 = vmatpush3.bf16.msra.mxu1 %v3011_v21  ;;  %v2999_v21 = vpack.c.bf16 %v295_v10, %v294_v11  ;;  %v3079_v11 = vpack.c.bf16 %v383_v4, %v382_v2  ;;  %v384_v15 = vld [vmem:[%s5220_s1 + $0xb40] sm:$0xff]  ;;  %v409_v2 = vld [vmem:[%s5220_s1 + $0xc08] sm:$0xff] }
  0x90   :  { %3014 = vmatprep.subr.bf16.mxu1 %v3013_v26  ;;  %v376_v26 = vld [vmem:[%s5220_s1 + $0xb00] sm:$0xff] }
  0x91   :  { %2984 = vmatpush3.bf16.msra.mxu0 %v2983_v32  ;;  %v394_v32 = vld [vmem:[%s5220_s1 + $0xb90] sm:$0xff]  ;;  %v3067_v36 = vpack.c.bf16 %v377_v28, %v376_v26  ;;  %v355_v26 = vld [vmem:[%s5220_s1 + $0xa58] sm:$0xff] }
  0x92   :  { %2986 = vmatprep.subr.bf16.mxu0 %v2985_v34  ;;  %v4414_v34 = vrot.slane %v701_v20, %v3496_v13  ;;  %v402_v20 = vld [vmem:[%s5220_s1 + $0xbd0] sm:$0xff] }
  0x93   :  { %3016 = vmatpush3.bf16.msra.mxu1 %v3015_v42  ;;  %v395_v42 = vld [vmem:[%s5220_s1 + $0xb98] sm:$0xff] }
  0x94   :  { %3018 = vmatprep.subr.bf16.mxu1 %v3017_v37  ;;  %v346_v37 = vld [vmem:[%s5220_s1 + $0xa10] sm:$0xff]  ;;  %v3069_v40 = vpack.c.bf16 %v395_v42, %v394_v32  ;;  %v717_v49 = vcombine.high %v4414_v34, %v4414_v34  ;;  %v373_v32 = vld [vmem:[%s5220_s1 + $0xae8] sm:$0xff]  ;;  %v404_v42 = vld [vmem:[%s5220_s1 + $0xbe0] sm:$0xff] }
  0x95   :  { %2988 = vmatpush3.bf16.msra.mxu0 %v2987_v44  ;;  %v365_v44 = vld [vmem:[%s5220_s1 + $0xaa8] sm:$0xff]  ;;  %v3039_v50 = vpack.c.bf16 %v347_v38, %v346_v37  ;;  %v3057_v37 = vpack.c.bf16 %v373_v32, %v372_v30  ;;  %v356_v38 = vld [vmem:[%s5220_s1 + $0xa60] sm:$0xff] }
  0x96   :  { %2990 = vmatprep.subr.bf16.mxu0 %v2989_v47  ;;  %v396_v47 = vld [vmem:[%s5220_s1 + $0xba0] sm:$0xff]  ;;  %v3041_v53 = vpack.c.bf16 %v365_v44, %v364_v43  ;;  %v389_v43 = vld [vmem:[%s5220_s1 + $0xb68] sm:$0xff]  ;;  %v374_v44 = vld [vmem:[%s5220_s1 + $0xaf0] sm:$0xff] }
  0x97   :  { %3020 = vmatpush3.bf16.msra.mxu1 %v3019_v46  ;;  %v716_v46 = vcombine.high %v4405_v31, %v4405_v31  ;;  %v3073_v56 = vpack.c.bf16 %v397_v48, %v396_v47  ;;  %v406_v47 = vld [vmem:[%s5220_s1 + $0xbf0] sm:$0xff]  ;;  %v407_v48 = vld [vmem:[%s5220_s1 + $0xbf8] sm:$0xff] }
  0x98   :  { %3022 = vmatprep.subr.bf16.mxu1 %v3021_v51  ;;  %v3071_v51 = vpack.c.bf16 %v379_v41, %v378_v39  ;;  %v357_v39 = vld [vmem:[%s5220_s1 + $0xa68] sm:$0xff] }
  0x99   :  { %2992 = vmatpush3.bf16.msra.mxu0 %v2991_v58  ;;  %v367_v58 = vld [vmem:[%s5220_s1 + $0xab8] sm:$0xff] }
  0x9a   :  { %2994 = vmatprep.subr.bf16.mxu0 %v2993_v60  ;;  %v399_v60 = vld [vmem:[%s5220_s1 + $0xbb8] sm:$0xff]  ;;  %v3045_v63 = vpack.c.bf16 %v367_v58, %v366_v45  ;;  %v424_v45 = vld [vmem:[%s5220_s1 + $0xc80] sm:$0xff]  ;;  %v425_v58 = vld [vmem:[%s5220_s1 + $0xc88] sm:$0xff] }
  0x9b   :  { %3024 = vmatpush3.bf16.msra.mxu1 %v3023_v59  ;;  %v398_v59 = vld [vmem:[%s5220_s1 + $0xbb0] sm:$0xff] }
  0x9c   :  { %3026 = vmatprep.subr.bf16.mxu1 %v3025_v0  ;;  %v350_v0 = vld [vmem:[%s5220_s1 + $0xa30] sm:$0xff]  ;;  %v3077_v3 = vpack.c.bf16 %v399_v60, %v398_v59  ;;  %v456_v59 = vld [vmem:[%s5220_s1 + $0xd80] sm:$0xff]  ;;  %v457_v60 = vld [vmem:[%s5220_s1 + $0xd88] sm:$0xff] }
  0x9d   :  { %2996 = vmatpush3.bf16.msra.mxu0 %v2995_v6  ;;  %v369_v6 = vld [vmem:[%s5220_s1 + $0xac8] sm:$0xff]  ;;  %v3129_v4 = vpack.c.bf16 %v457_v60, %v456_v59 }
  0x9e   :  { %2998 = vmatprep.subr.bf16.mxu0 %v2997_v9  ;;  %v3047_v9 = vpack.c.bf16 %v351_v1, %v350_v0  ;;  %v3049_v10 = vpack.c.bf16 %v369_v6, %v368_v5  ;;  %v3097_v0 = vpack.c.bf16 %v425_v58, %v424_v45  ;;  %v408_v1 = vld [vmem:[%s5220_s1 + $0xc00] sm:$0xff]  ;;  %v441_v5 = vld [vmem:[%s5220_s1 + $0xd08] sm:$0xff]  ;;  %v426_v6 = vld [vmem:[%s5220_s1 + $0xc90] sm:$0xff] }
  0x9f   :  { %3028 = vmatpush3.bf16.msra.mxu1 %v3027_v8  ;;  %v401_v8 = vld [vmem:[%s5220_s1 + $0xbc8] sm:$0xff] }
  0xa0   :  { %3030 = vmatprep.subr.bf16.mxu1 %v3029_v14  ;;  %v353_v14 = vld [vmem:[%s5220_s1 + $0xa48] sm:$0xff]  ;;  %v3081_v16 = vpack.c.bf16 %v401_v8, %v400_v7  ;;  %v427_v7 = vld [vmem:[%s5220_s1 + $0xc98] sm:$0xff] }
  0xa1   :  { %3000 = vmatpush3.bf16.msra.mxu0 %v2999_v21  ;;  %v403_v21 = vld [vmem:[%s5220_s1 + $0xbd8] sm:$0xff] }
  0xa2   :  { %3034 = vmatprep.subr.bf16.mxu0 %v3033_v23  ;;  %v3083_v23 = vpack.c.bf16 %v385_v17, %v384_v15  ;;  %v3085_v28 = vpack.c.bf16 %v403_v21, %v402_v20  ;;  %v3101_v15 = vpack.c.bf16 %v427_v7, %v426_v6  ;;  %v411_v17 = vld [vmem:[%s5220_s1 + $0xc18] sm:$0xff]  ;;  %v428_v21 = vld [vmem:[%s5220_s1 + $0xca0] sm:$0xff] }
  0xa3   :  { %3032 = vmatpush3.bf16.msra.mxu1 %v3031_v22  ;;  %v3051_v22 = vpack.c.bf16 %v353_v14, %v352_v12  ;;  %v3099_v12 = vpack.c.bf16 %v409_v2, %v408_v1  ;;  %v443_v20 = vld [vmem:[%s5220_s1 + $0xd18] sm:$0xff] }
  0xa4   :  { %3066 = vmatprep.subr.bf16.mxu1 %v3065_v27  ;;  %1430 = vmatmul.mubr.f32.vlgmr.msra.gmra.mrb[8].mxu0 %v4198_v54  ;;  %v348_v54 = vld [vmem:[%s5220_s1 + $0xa20] sm:$0xff]  ;;  %v386_v27 = vld [vmem:[%s5220_s1 + $0xb50] sm:$0xff] }
  0xa5   :  { %3036 = vmatpush3.bf16.msra.mxu0 %v3035_v35  ;;  %1569 = vmatprep.mubr.f32.mxu0 %v716_v46  ;;  %v3043_v61 = vpack.c.bf16 %v349_v33, %v348_v54  ;;  %v405_v35 = vld [vmem:[%s5220_s1 + $0xbe8] sm:$0xff]  ;;  %v375_v46 = vld [vmem:[%s5220_s1 + $0xaf8] sm:$0xff]  ;;  %v358_v54 = vld [vmem:[%s5220_s1 + $0xa70] sm:$0xff] }
  0xa6   :  { %1500 = vmatmul.mubr.f32.vlgmr.msra.gmra.mrb[8].mxu1 %v4207_v57  ;;  %3038 = vmatprep.subr.bf16.mxu0 %v3037_v52  ;;  %v381_v57 = vld [vmem:[%s5220_s1 + $0xb28] sm:$0xff]  ;;  %v3087_v52 = vpack.c.bf16 %v387_v29, %v386_v27  ;;  %v3089_v41 = vpack.c.bf16 %v405_v35, %v404_v42  ;;  %v359_v33 = vld [vmem:[%s5220_s1 + $0xa78] sm:$0xff] }
  0xa7   :  { %3068 = vmatpush3.bf16.msra.mxu1 %v3067_v36  ;;  %1639 = vmatprep.mubr.f32.mxu1 %v717_v49  ;;  %v3075_v62 = vpack.c.bf16 %v381_v57, %v380_v55  ;;  %v3055_v36 = vpack.c.bf16 %v355_v26, %v354_v25  ;;  %v3059_v49 = vpack.c.bf16 %v357_v39, %v356_v38  ;;  %v390_v55 = vld [vmem:[%s5220_s1 + $0xb70] sm:$0xff]  ;;  %v391_v57 = vld [vmem:[%s5220_s1 + $0xb78] sm:$0xff]  ;;  %v461_v25 = vld [vmem:[%s5220_s1 + $0xda8] sm:$0xff] }
  0xa8   :  { %3070 = vmatprep.subr.bf16.mxu1 %v3069_v40  ;;  %v388_v40 = vld [vmem:[%s5220_s1 + $0xb60] sm:$0xff] }
  0xa9   :  { %3040 = vmatpush3.bf16.msra.mxu0 %v3039_v50  ;;  %v21_v50 = vld [vmem:[%s5219_s0 + $0x30] sm:$0xff] }
  0xaa   :  { %3042 = vmatprep.subr.bf16.mxu0 %v3041_v53  ;;  %v3061_v53 = vpack.c.bf16 %v375_v46, %v374_v44  ;;  %v4612_v8 = vrot.slane %v21_v50, %v3496_v13 }
  0xab   :  { %3072 = vmatpush3.bf16.msra.mxu1 %v3071_v51  ;;  %v3091_v51 = vpack.c.bf16 %v389_v43, %v388_v40 }
  0xac   :  { %3074 = vmatprep.subr.bf16.mxu1 %v3073_v56  ;;  %v3093_v56 = vpack.c.bf16 %v407_v48, %v406_v47 }
  0xad   :  { %3044 = vmatpush3.bf16.msra.mxu0 %v3043_v61  ;;  %v718_v61 = vcombine.high %v21_v50, %v21_v50 }
  0xae   :  { %3046 = vmatprep.subr.bf16.mxu0 %v3045_v63  ;;  %v3095_v63 = vpack.c.bf16 %v391_v57, %v390_v55 }
  0xaf   :  { %3076 = vmatpush3.bf16.msra.mxu1 %v3075_v62  ;;  %v3063_v62 = vpack.c.bf16 %v359_v33, %v358_v54 }
  0xb0   :  { %3078 = vmatprep.subr.bf16.mxu1 %v3077_v3  ;;  %v440_v3 = vld [vmem:[%s5220_s1 + $0xd00] sm:$0xff] }
  0xb1   :  { %3048 = vmatpush3.bf16.msra.mxu0 %v3047_v9  ;;  %v458_v9 = vld [vmem:[%s5220_s1 + $0xd90] sm:$0xff]  ;;  %v3131_v14 = vpack.c.bf16 %v441_v5, %v440_v3 }
  0xb2   :  { %3050 = vmatprep.subr.bf16.mxu0 %v3049_v10  ;;  %v4621_v10 = vrot.slane %v718_v61, %v3496_v13 }
  0xb3   :  { %3080 = vmatpush3.bf16.msra.mxu1 %v3079_v11  ;;  %v459_v11 = vld [vmem:[%s5220_s1 + $0xd98] sm:$0xff] }
  0xb4   :  { %3082 = vmatprep.subr.bf16.mxu1 %v3081_v16  ;;  %v410_v16 = vld [vmem:[%s5220_s1 + $0xc10] sm:$0xff]  ;;  %v3133_v19 = vpack.c.bf16 %v459_v11, %v458_v9  ;;  %v734_v26 = vcombine.high %v4621_v10, %v4621_v10 }
  0xb5   :  { %3052 = vmatpush3.bf16.msra.mxu0 %v3051_v22  ;;  %v429_v22 = vld [vmem:[%s5220_s1 + $0xca8] sm:$0xff] }
  0xb6   :  { %3054 = vmatprep.subr.bf16.mxu0 %v3053_v24  ;;  %v460_v24 = vld [vmem:[%s5220_s1 + $0xda0] sm:$0xff] }
  0xb7   :  { %3084 = vmatpush3.bf16.msra.mxu1 %v3083_v23  ;;  %v733_v23 = vcombine.high %v4612_v8, %v4612_v8 }
  0xb8   :  { %3086 = vmatprep.subr.bf16.mxu1 %v3085_v28 }
  0xb9   :  { %3056 = vmatpush3.bf16.msra.mxu0 %v3055_v36 }
  0xba   :  { %3058 = vmatprep.subr.bf16.mxu0 %v3057_v37 }
  0xbb   :  { %3088 = vmatpush3.bf16.msra.mxu1 %v3087_v52 }
  0xbc   :  { %3090 = vmatprep.subr.bf16.mxu1 %v3089_v41 }
  0xbd   :  { %3060 = vmatpush3.bf16.msra.mxu0 %v3059_v49 }
  0xbe   :  { %3062 = vmatprep.subr.bf16.mxu0 %v3061_v53 }
  0xbf   :  { %3092 = vmatpush3.bf16.msra.mxu1 %v3091_v51 }
  0xc0   :  { %3094 = vmatprep.subr.bf16.mxu1 %v3093_v56 }
  0xc1   :  { %3064 = vmatpush3.bf16.msra.mxu0 %v3063_v62 }
  0xc2   :  { %3098 = vmatprep.subr.bf16.mxu0 %v3097_v0 }
  0xc3   :  { %3096 = vmatpush3.bf16.msra.mxu1 %v3095_v63 }
  0xc4   :  { %3130 = vmatprep.subr.bf16.mxu1 %v3129_v4  ;;  %1570 = vmatmul.mubr.f32.vlgmr.msra.gmra.mrb[10].mxu0 %v4405_v31 }
  0xc5   :  { %8 = vsyncpa [#allocation3], 0  ;;  %3100 = vmatpush3.bf16.msra.mxu0 %v3099_v12  ;;  %v3103_v27 = vpack.c.bf16 %v411_v17, %v410_v16  ;;  %v3135_v28 = vpack.c.bf16 %v443_v20, %v442_v18  ;;  %v3105_v31 = vpack.c.bf16 %v429_v22, %v428_v21  ;;  %v412_v29 = vld [vmem:[%s5220_s1 + $0xc20] sm:$0xff]  ;;  %v413_v30 = vld [vmem:[%s5220_s1 + $0xc28] sm:$0xff]  ;;  %v3137_v42 = vpack.c.bf16 %v461_v25, %v460_v24 }
  0xc6   :  { %1640 = vmatmul.mubr.f32.vlgmr.msra.gmra.mrb[10].mxu1 %v4414_v34  ;;  %3102 = vmatprep.subr.bf16.mxu0 %v3101_v15  ;;  %v444_v32 = vld [vmem:[%s5220_s1 + $0xd20] sm:$0xff]  ;;  %v445_v34 = vld [vmem:[%s5220_s1 + $0xd28] sm:$0xff]  ;;  %v430_v35 = vld [vmem:[%s5220_s1 + $0xcb0] sm:$0xff]  ;;  %v3107_v38 = vpack.c.bf16 %v413_v30, %v412_v29  ;;  %vm2066_vm0 = vcmask 517120  }
  0xc7   :  { %3132 = vmatpush3.bf16.msra.mxu1 %v3131_v14  ;;  %v431_v36 = vld [vmem:[%s5220_s1 + $0xcb8] sm:$0xff]  ;;  %1709 = vmatprep.mubr.f32.mxu0 %v733_v23  ;;  %v462_v52 = vld [vmem:[%s5220_s1 + $0xdb0] sm:$0xff]  ;;  %v3139_v39 = vpack.c.bf16 %v445_v34, %v444_v32  ;;  %v432_v48 = vld [vmem:[%s5220_s1 + $0xcc0] sm:$0xff] }
  0xc8   :  { %3134 = vmatprep.subr.bf16.mxu1 %v3133_v19  ;;  %v463_v37 = vld [vmem:[%s5220_s1 + $0xdb8] sm:$0xff]  ;;  %1779 = vmatprep.mubr.f32.mxu1 %v734_v26  ;;  %v3109_v40 = vpack.c.bf16 %v431_v36, %v430_v35  ;;  %v414_v41 = vld [vmem:[%s5220_s1 + $0xc30] sm:$0xff]  ;;  %v433_v49 = vld [vmem:[%s5220_s1 + $0xcc8] sm:$0xff] }
  0xc9   :  { %3104 = vmatpush3.bf16.msra.mxu0 %v3103_v27  ;;  %v415_v43 = vld [vmem:[%s5220_s1 + $0xc38] sm:$0xff]  ;;  %v446_v44 = vld [vmem:[%s5220_s1 + $0xd30] sm:$0xff]  ;;  %v3141_v46 = vpack.c.bf16 %v463_v37, %v462_v52  ;;  %v464_v50 = vld [vmem:[%s5220_s1 + $0xdc0] sm:$0xff]  ;;  %v3113_v33 = vpack.c.bf16 %v433_v49, %v432_v48 }
  0xca   :  { %3106 = vmatprep.subr.bf16.mxu0 %v3105_v31  ;;  %v447_v47 = vld [vmem:[%s5220_s1 + $0xd38] sm:$0xff]  ;;  %v465_v51 = vld [vmem:[%s5220_s1 + $0xdc8] sm:$0xff]  ;;  %v3111_v53 = vpack.c.bf16 %v415_v43, %v414_v41  ;;  %v416_v55 = vld [vmem:[%s5220_s1 + $0xc40] sm:$0xff] }
  0xcb   :  { %3136 = vmatpush3.bf16.msra.mxu1 %v3135_v28  ;;  %v3143_v54 = vpack.c.bf16 %v447_v47, %v446_v44  ;;  %v417_v56 = vld [vmem:[%s5220_s1 + $0xc48] sm:$0xff]  ;;  %v448_v57 = vld [vmem:[%s5220_s1 + $0xd40] sm:$0xff]  ;;  %v3145_v45 = vpack.c.bf16 %v465_v51, %v464_v50  ;;  %v434_v59 = vld [vmem:[%s5220_s1 + $0xcd0] sm:$0xff] }
  0xcc   :  { %3138 = vmatprep.subr.bf16.mxu1 %v3137_v42  ;;  %v449_v58 = vld [vmem:[%s5220_s1 + $0xd48] sm:$0xff]  ;;  %v435_v60 = vld [vmem:[%s5220_s1 + $0xcd8] sm:$0xff]  ;;  %v466_v61 = vld [vmem:[%s5220_s1 + $0xdd0] sm:$0xff]  ;;  %v3115_v63 = vpack.c.bf16 %v417_v56, %v416_v55 }
  0xcd   :  { %3108 = vmatpush3.bf16.msra.mxu0 %v3107_v38  ;;  %v467_v62 = vld [vmem:[%s5220_s1 + $0xdd8] sm:$0xff]  ;;  %v3147_v0 = vpack.c.bf16 %v449_v58, %v448_v57  ;;  %v3117_v1 = vpack.c.bf16 %v435_v60, %v434_v59  ;;  %v418_v2 = vld [vmem:[%s5220_s1 + $0xc50] sm:$0xff]  ;;  %v436_v7 = vld [vmem:[%s5220_s1 + $0xce0] sm:$0xff] }
  0xce   :  { %3110 = vmatprep.subr.bf16.mxu0 %v3109_v40  ;;  %v419_v3 = vld [vmem:[%s5220_s1 + $0xc58] sm:$0xff]  ;;  %v450_v4 = vld [vmem:[%s5220_s1 + $0xd50] sm:$0xff]  ;;  %v3149_v5 = vpack.c.bf16 %v467_v62, %v466_v61  ;;  %v437_v9 = vld [vmem:[%s5220_s1 + $0xce8] sm:$0xff] }
  0xcf   :  { %3140 = vmatpush3.bf16.msra.mxu1 %v3139_v39  ;;  %v451_v6 = vld [vmem:[%s5220_s1 + $0xd58] sm:$0xff]  ;;  %v468_v11 = vld [vmem:[%s5220_s1 + $0xde0] sm:$0xff]  ;;  %v469_v12 = vld [vmem:[%s5220_s1 + $0xde8] sm:$0xff]  ;;  %v3119_v14 = vpack.c.bf16 %v419_v3, %v418_v2  ;;  %v3121_v16 = vpack.c.bf16 %v437_v9, %v436_v7 }
  0xd0   :  { %3142 = vmatprep.subr.bf16.mxu1 %v3141_v46  ;;  %v3151_v15 = vpack.c.bf16 %v451_v6, %v450_v4  ;;  %v420_v17 = vld [vmem:[%s5220_s1 + $0xc60] sm:$0xff]  ;;  %v421_v18 = vld [vmem:[%s5220_s1 + $0xc68] sm:$0xff]  ;;  %v3153_v20 = vpack.c.bf16 %v469_v12, %v468_v11  ;;  %v438_v22 = vld [vmem:[%s5220_s1 + $0xcf0] sm:$0xff] }
  0xd1   :  { %3112 = vmatpush3.bf16.msra.mxu0 %v3111_v53  ;;  %v452_v19 = vld [vmem:[%s5220_s1 + $0xd60] sm:$0xff]  ;;  %v453_v21 = vld [vmem:[%s5220_s1 + $0xd68] sm:$0xff]  ;;  %v439_v23 = vld [vmem:[%s5220_s1 + $0xcf8] sm:$0xff]  ;;  %v3123_v26 = vpack.c.bf16 %v421_v18, %v420_v17 }
  0xd2   :  { %3114 = vmatprep.subr.bf16.mxu0 %v3113_v33  ;;  %v470_v24 = vld [vmem:[%s5220_s1 + $0xdf0] sm:$0xff]  ;;  %v471_v25 = vld [vmem:[%s5220_s1 + $0xdf8] sm:$0xff]  ;;  %v3155_v28 = vpack.c.bf16 %v453_v21, %v452_v19  ;;  %v3125_v31 = vpack.c.bf16 %v439_v23, %v438_v22  ;;  %v488_v35 = vld [vmem:[%s5220_s1 + $0xe80] sm:$0xff] }
  0xd3   :  { %3144 = vmatpush3.bf16.msra.mxu1 %v3143_v54  ;;  %v22_v27 = vld [vmem:[%s5219_s0 + $0x38] sm:$0xff]  ;;  %v422_v29 = vld [vmem:[%s5220_s1 + $0xc70] sm:$0xff]  ;;  %v3157_v42 = vpack.c.bf16 %v471_v25, %v470_v24  ;;  %v489_v36 = vld [vmem:[%s5220_s1 + $0xe88] sm:$0xff] }
  0xd4   :  { %3146 = vmatprep.subr.bf16.mxu1 %v3145_v45  ;;  %v423_v30 = vld [vmem:[%s5220_s1 + $0xc78] sm:$0xff]  ;;  %v454_v32 = vld [vmem:[%s5220_s1 + $0xd70] sm:$0xff]  ;;  %v520_v52 = vld [vmem:[%s5220_s1 + $0xf80] sm:$0xff]  ;;  %v735_v38 = vcombine.high %v22_v27, %v22_v27  ;;  %v3161_v41 = vpack.c.bf16 %v489_v36, %v488_v35  ;;  %v4819_v51 = vrot.slane %v22_v27, %v3496_v13 }
  0xd5   :  { %3116 = vmatpush3.bf16.msra.mxu0 %v3115_v63  ;;  %v455_v34 = vld [vmem:[%s5220_s1 + $0xd78] sm:$0xff]  ;;  %v521_v37 = vld [vmem:[%s5220_s1 + $0xf88] sm:$0xff]  ;;  %v3127_v39 = vpack.c.bf16 %v423_v30, %v422_v29  ;;  %v472_v43 = vld [vmem:[%s5220_s1 + $0xe00] sm:$0xff] }
  0xd6   :  { %3118 = vmatprep.subr.bf16.mxu0 %v3117_v1  ;;  %v3159_v40 = vpack.c.bf16 %v455_v34, %v454_v32  ;;  %v473_v44 = vld [vmem:[%s5220_s1 + $0xe08] sm:$0xff]  ;;  %v504_v46 = vld [vmem:[%s5220_s1 + $0xf00] sm:$0xff]  ;;  %v3193_v47 = vpack.c.bf16 %v521_v37, %v520_v52  ;;  %v490_v49 = vld [vmem:[%s5220_s1 + $0xe90] sm:$0xff]  ;;  %v4828_v33 = vrot.slane %v735_v38, %v3496_v13 }
  0xd7   :  { %3148 = vmatpush3.bf16.msra.mxu1 %v3147_v0  ;;  %v505_v48 = vld [vmem:[%s5220_s1 + $0xf08] sm:$0xff]  ;;  %v491_v50 = vld [vmem:[%s5220_s1 + $0xe98] sm:$0xff]  ;;  %v522_v53 = vld [vmem:[%s5220_s1 + $0xf90] sm:$0xff]  ;;  %v3163_v55 = vpack.c.bf16 %v473_v44, %v472_v43  ;;  %v750_v0 = vcombine.high %v4819_v51, %v4819_v51 }
  0xd8   :  { %3150 = vmatprep.subr.bf16.mxu1 %v3149_v5  ;;  %v523_v54 = vld [vmem:[%s5220_s1 + $0xf98] sm:$0xff]  ;;  %v3195_v56 = vpack.c.bf16 %v505_v48, %v504_v46  ;;  %v3165_v57 = vpack.c.bf16 %v491_v50, %v490_v49  ;;  %v474_v45 = vld [vmem:[%s5220_s1 + $0xe10] sm:$0xff]  ;;  %v492_v62 = vld [vmem:[%s5220_s1 + $0xea0] sm:$0xff]  ;;  %v751_v3 = vcombine.high %v4828_v33, %v4828_v33 }
  0xd9   :  { %3120 = vmatpush3.bf16.msra.mxu0 %v3119_v14  ;;  %v475_v58 = vld [vmem:[%s5220_s1 + $0xe18] sm:$0xff]  ;;  %v506_v59 = vld [vmem:[%s5220_s1 + $0xf10] sm:$0xff]  ;;  %v3197_v60 = vpack.c.bf16 %v523_v54, %v522_v53  ;;  %v493_v63 = vld [vmem:[%s5220_s1 + $0xea8] sm:$0xff] }
  0xda   :  { %3122 = vmatprep.subr.bf16.mxu0 %v3121_v16  ;;  %v507_v61 = vld [vmem:[%s5220_s1 + $0xf18] sm:$0xff]  ;;  %v524_v1 = vld [vmem:[%s5220_s1 + $0xfa0] sm:$0xff]  ;;  %v525_v2 = vld [vmem:[%s5220_s1 + $0xfa8] sm:$0xff]  ;;  %v3167_v4 = vpack.c.bf16 %v475_v58, %v474_v45  ;;  %v3169_v6 = vpack.c.bf16 %v493_v63, %v492_v62 }
  0xdb   :  { %3152 = vmatpush3.bf16.msra.mxu1 %v3151_v15  ;;  %v3199_v5 = vpack.c.bf16 %v507_v61, %v506_v59  ;;  %v477_v7 = vld [vmem:[%s5220_s1 + $0xe28] sm:$0xff]  ;;  %v508_v9 = vld [vmem:[%s5220_s1 + $0xf20] sm:$0xff]  ;;  %v3201_v11 = vpack.c.bf16 %v525_v2, %v524_v1  ;;  %v494_v12 = vld [vmem:[%s5220_s1 + $0xeb0] sm:$0xff] }
  0xdc   :  { %3154 = vmatprep.subr.bf16.mxu1 %v3153_v20  ;;  %v495_v14 = vld [vmem:[%s5220_s1 + $0xeb8] sm:$0xff]  ;;  %v526_v15 = vld [vmem:[%s5220_s1 + $0xfb0] sm:$0xff]  ;;  %v496_v25 = vld [vmem:[%s5220_s1 + $0xec0] sm:$0xff] }
  0xdd   :  { %3124 = vmatpush3.bf16.msra.mxu0 %v3123_v26  ;;  %v527_v16 = vld [vmem:[%s5220_s1 + $0xfb8] sm:$0xff]  ;;  %v3173_v19 = vpack.c.bf16 %v495_v14, %v494_v12  ;;  %v478_v20 = vld [vmem:[%s5220_s1 + $0xe30] sm:$0xff]  ;;  %v497_v26 = vld [vmem:[%s5220_s1 + $0xec8] sm:$0xff] }
  0xde   :  { %3126 = vmatprep.subr.bf16.mxu0 %v3125_v31  ;;  %v479_v21 = vld [vmem:[%s5220_s1 + $0xe38] sm:$0xff]  ;;  %v510_v22 = vld [vmem:[%s5220_s1 + $0xf30] sm:$0xff]  ;;  %v3205_v23 = vpack.c.bf16 %v527_v16, %v526_v15  ;;  %v528_v27 = vld [vmem:[%s5220_s1 + $0xfc0] sm:$0xff]  ;;  %v3177_v30 = vpack.c.bf16 %v497_v26, %v496_v25 }
  0xdf   :  { %3156 = vmatpush3.bf16.msra.mxu1 %v3155_v28  ;;  %v511_v24 = vld [vmem:[%s5220_s1 + $0xf38] sm:$0xff]  ;;  %v529_v28 = vld [vmem:[%s5220_s1 + $0xfc8] sm:$0xff]  ;;  %v3175_v31 = vpack.c.bf16 %v479_v21, %v478_v20  ;;  %v480_v32 = vld [vmem:[%s5220_s1 + $0xe40] sm:$0xff] }
  0xe0   :  { %3158 = vmatprep.subr.bf16.mxu1 %v3157_v42  ;;  %v3207_v29 = vpack.c.bf16 %v511_v24, %v510_v22  ;;  %v481_v42 = vld [vmem:[%s5220_s1 + $0xe48] sm:$0xff]  ;;  %v512_v34 = vld [vmem:[%s5220_s1 + $0xf40] sm:$0xff]  ;;  %v3209_v35 = vpack.c.bf16 %v529_v28, %v528_v27  ;;  %v498_v52 = vld [vmem:[%s5220_s1 + $0xed0] sm:$0xff] }
  0xe1   :  { %3128 = vmatpush3.bf16.msra.mxu0 %v3127_v39  ;;  %v513_v36 = vld [vmem:[%s5220_s1 + $0xf48] sm:$0xff]  ;;  %v499_v37 = vld [vmem:[%s5220_s1 + $0xed8] sm:$0xff]  ;;  %v530_v38 = vld [vmem:[%s5220_s1 + $0xfd0] sm:$0xff] }
  0xe2   :  { %3162 = vmatprep.subr.bf16.mxu0 %v3161_v41  ;;  %v531_v39 = vld [vmem:[%s5220_s1 + $0xfd8] sm:$0xff]  ;;  %v3211_v41 = vpack.c.bf16 %v513_v36, %v512_v34  ;;  %v3181_v43 = vpack.c.bf16 %v499_v37, %v498_v52  ;;  %v482_v44 = vld [vmem:[%s5220_s1 + $0xe50] sm:$0xff]  ;;  %v500_v50 = vld [vmem:[%s5220_s1 + $0xee0] sm:$0xff] }
  0xe3   :  { %3160 = vmatpush3.bf16.msra.mxu1 %v3159_v40  ;;  %v3179_v40 = vpack.c.bf16 %v481_v42, %v480_v32  ;;  %v483_v46 = vld [vmem:[%s5220_s1 + $0xe58] sm:$0xff]  ;;  %v3213_v48 = vpack.c.bf16 %v531_v39, %v530_v38  ;;  %v501_v53 = vld [vmem:[%s5220_s1 + $0xee8] sm:$0xff]  ;;  %v532_v54 = vld [vmem:[%s5220_s1 + $0xfe0] sm:$0xff] }
  0xe4   :  { %3194 = vmatprep.subr.bf16.mxu1 %v3193_v47  ;;  %1710 = vmatmul.mubr.f32.vlgmr.msra.gmra.mrb[12].mxu0 %v4612_v8  ;;  %v476_v8 = vld [vmem:[%s5220_s1 + $0xe20] sm:$0xff]  ;;  %v514_v47 = vld [vmem:[%s5220_s1 + $0xf50] sm:$0xff]  ;;  %v515_v49 = vld [vmem:[%s5220_s1 + $0xf58] sm:$0xff]  ;;  %v3185_v45 = vpack.c.bf16 %v501_v53, %v500_v50 }
  0xe5   :  { %3164 = vmatpush3.bf16.msra.mxu0 %v3163_v55  ;;  %1849 = vmatprep.mubr.f32.mxu0 %v750_v0  ;;  %v3171_v17 = vpack.c.bf16 %v477_v7, %v476_v8  ;;  %v533_v55 = vld [vmem:[%s5220_s1 + $0xfe8] sm:$0xff]  ;;  %v484_v58 = vld [vmem:[%s5220_s1 + $0xe60] sm:$0xff]  ;;  %v502_v0 = vld [vmem:[%s5220_s1 + $0xef0] sm:$0xff] }
  0xe6   :  { %1780 = vmatmul.mubr.f32.vlgmr.msra.gmra.mrb[12].mxu1 %v4621_v10  ;;  %3166 = vmatprep.subr.bf16.mxu0 %v3165_v57  ;;  %v509_v10 = vld [vmem:[%s5220_s1 + $0xf28] sm:$0xff]  ;;  %v3215_v57 = vpack.c.bf16 %v515_v49, %v514_v47  ;;  %v3217_v62 = vpack.c.bf16 %v533_v55, %v532_v54  ;;  %v503_v1 = vld [vmem:[%s5220_s1 + $0xef8] sm:$0xff]  ;;  %v2082_v2 = vld [vmem:[%s5221_s2] ss:$0 sm:$0xff] }
  0xe7   :  { %3196 = vmatpush3.bf16.msra.mxu1 %v3195_v56  ;;  %1919 = vmatprep.mubr.f32.mxu1 %v751_v3  ;;  %v3203_v18 = vpack.c.bf16 %v509_v10, %v508_v9  ;;  %v3183_v56 = vpack.c.bf16 %v483_v46, %v482_v44  ;;  %v485_v59 = vld [vmem:[%s5220_s1 + $0xe68] sm:$0xff]  ;;  %v3189_v14 = vpack.c.bf16 %v503_v1, %v502_v0  ;;  %v486_v15 = vld [vmem:[%s5220_s1 + $0xe70] sm:$0xff]  ;;  %v487_v16 = vld [vmem:[%s5220_s1 + $0xe78] sm:$0xff] }
  0xe8   :  { %3198 = vmatprep.subr.bf16.mxu1 %v3197_v60  ;;  %v516_v60 = vld [vmem:[%s5220_s1 + $0xf60] sm:$0xff]  ;;  %v517_v63 = vld [vmem:[%s5220_s1 + $0xf68] sm:$0xff]  ;;  %v3187_v9 = vpack.c.bf16 %v485_v59, %v484_v58  ;;  %v519_v20 = vld [vmem:[%s5220_s1 + $0xf78] sm:$0xff]  ;;  %v3191_v27 = vpack.c.bf16 %v487_v16, %v486_v15 }
  0xe9   :  { %3168 = vmatpush3.bf16.msra.mxu0 %v3167_v4  ;;  %v3219_v12 = vpack.c.bf16 %v517_v63, %v516_v60  ;;  %v552_v21 = vld [vmem:[%s5220_s1 + $0x1080] sm:$0xff]  ;;  %v553_v22 = vld [vmem:[%s5220_s1 + $0x1088] sm:$0xff]  ;;  %v555_v36 = vld [vmem:[%s5220_s1 + $0x1098] sm:$0xff] }
  0xea   :  { %3170 = vmatprep.subr.bf16.mxu0 %v3169_v6  ;;  %v535_v6 = vld [vmem:[%s5220_s1 + $0xff8] sm:$0xff]  ;;  %v585_v24 = vld [vmem:[%s5220_s1 + $0x1188] sm:$0xff]  ;;  %v568_v32 = vld [vmem:[%s5220_s1 + $0x1100] sm:$0xff] }
  0xeb   :  { %3200 = vmatpush3.bf16.msra.mxu1 %v3199_v5  ;;  %v534_v5 = vld [vmem:[%s5220_s1 + $0xff0] sm:$0xff]  ;;  %v569_v34 = vld [vmem:[%s5220_s1 + $0x1108] sm:$0xff]  ;;  %v587_v38 = vld [vmem:[%s5220_s1 + $0x1198] sm:$0xff] }
  0xec   :  { %3202 = vmatprep.subr.bf16.mxu1 %v3201_v11  ;;  %v23_v11 = vld [vmem:[%s5219_s0 + $0x40] sm:$0xff]  ;;  %v586_v37 = vld [vmem:[%s5220_s1 + $0x1190] sm:$0xff]  ;;  %v539_v46 = vld [vmem:[%s5220_s1 + $0x1018] sm:$0xff] }
  0xed   :  { %3172 = vmatpush3.bf16.msra.mxu0 %v3171_v17  ;;  %v518_v17 = vld [vmem:[%s5220_s1 + $0xf70] sm:$0xff]  ;;  %v752_v25 = vcombine.high %v23_v11, %v23_v11  ;;  %v5031_v52 = vrot.slane %v23_v11, %v3496_v13  ;;  %v556_v49 = vld [vmem:[%s5220_s1 + $0x10a0] sm:$0xff]  ;;  %v557_v50 = vld [vmem:[%s5220_s1 + $0x10a8] sm:$0xff] }
  0xee   :  { %3174 = vmatprep.subr.bf16.mxu0 %v3173_v19  ;;  %v3221_v19 = vpack.c.bf16 %v535_v6, %v534_v5  ;;  %v3223_v28 = vpack.c.bf16 %v519_v20, %v518_v17  ;;  %v538_v44 = vld [vmem:[%s5220_s1 + $0x1010] sm:$0xff]  ;;  %v588_v54 = vld [vmem:[%s5220_s1 + $0x11a0] sm:$0xff]  ;;  %v589_v55 = vld [vmem:[%s5220_s1 + $0x11a8] sm:$0xff]  ;;  %v3233_v58 = vpack.c.bf16 %v557_v50, %v556_v49 }
  0xef   :  { %3204 = vmatpush3.bf16.msra.mxu1 %v3203_v18  ;;  %v5040_v39 = vrot.slane %v752_v25, %v3496_v13  ;;  %v570_v47 = vld [vmem:[%s5220_s1 + $0x1110] sm:$0xff]  ;;  %v3261_v13 = vpack.c.bf16 %v587_v38, %v586_v37  ;;  %v767_v53 = vcombine.high %v5031_v52, %v5031_v52  ;;  %v541_v59 = vld [vmem:[%s5220_s1 + $0x1028] sm:$0xff]  ;;  %v572_v60 = vld [vmem:[%s5220_s1 + $0x1120] sm:$0xff] }
  0xf0   :  { %3206 = vmatprep.subr.bf16.mxu1 %v3205_v23  ;;  %v584_v23 = vld [vmem:[%s5220_s1 + $0x1180] sm:$0xff]  ;;  %v559_v63 = vld [vmem:[%s5220_s1 + $0x10b8] sm:$0xff]  ;;  %v590_v0 = vld [vmem:[%s5220_s1 + $0x11b0] sm:$0xff] }
  0xf1   :  { %3176 = vmatpush3.bf16.msra.mxu0 %v3175_v31  ;;  %v3225_v31 = vpack.c.bf16 %v553_v22, %v552_v21  ;;  %v3257_v42 = vpack.c.bf16 %v585_v24, %v584_v23  ;;  %v591_v1 = vld [vmem:[%s5220_s1 + $0x11b8] sm:$0xff]  ;;  %v542_v5 = vld [vmem:[%s5220_s1 + $0x1030] sm:$0xff]  ;;  %v560_v11 = vld [vmem:[%s5220_s1 + $0x10c0] sm:$0xff] }
  0xf2   :  { %3178 = vmatprep.subr.bf16.mxu0 %v3177_v30  ;;  %v537_v30 = vld [vmem:[%s5220_s1 + $0x1008] sm:$0xff]  ;;  %v543_v6 = vld [vmem:[%s5220_s1 + $0x1038] sm:$0xff]  ;;  %v576_v20 = vld [vmem:[%s5220_s1 + $0x1140] sm:$0xff] }
  0xf3   :  { %3208 = vmatpush3.bf16.msra.mxu1 %v3207_v29  ;;  %v536_v29 = vld [vmem:[%s5220_s1 + $0x1000] sm:$0xff]  ;;  %v3239_v15 = vpack.c.bf16 %v543_v6, %v542_v5  ;;  %v577_v22 = vld [vmem:[%s5220_s1 + $0x1148] sm:$0xff]  ;;  %v562_v23 = vld [vmem:[%s5220_s1 + $0x10d0] sm:$0xff] }
  0xf4   :  { %3210 = vmatprep.subr.bf16.mxu1 %v3209_v35  ;;  %v554_v35 = vld [vmem:[%s5220_s1 + $0x1090] sm:$0xff]  ;;  %v563_v24 = vld [vmem:[%s5220_s1 + $0x10d8] sm:$0xff]  ;;  %v565_v37 = vld [vmem:[%s5220_s1 + $0x10e8] sm:$0xff] }
  0xf5   :  { %3180 = vmatpush3.bf16.msra.mxu0 %v3179_v40  ;;  %v3227_v40 = vpack.c.bf16 %v537_v30, %v536_v29  ;;  %v594_v25 = vld [vmem:[%s5220_s1 + $0x11d0] sm:$0xff]  ;;  %v3245_v29 = vpack.c.bf16 %v563_v24, %v562_v23  ;;  %v596_v38 = vld [vmem:[%s5220_s1 + $0x11e0] sm:$0xff]  ;;  %v581_v50 = vld [vmem:[%s5220_s1 + $0x1168] sm:$0xff] }
  0xf6   :  { %3182 = vmatprep.subr.bf16.mxu0 %v3181_v43  ;;  %v3229_v43 = vpack.c.bf16 %v555_v36, %v554_v35  ;;  %v546_v30 = vld [vmem:[%s5220_s1 + $0x1050] sm:$0xff]  ;;  %v579_v35 = vld [vmem:[%s5220_s1 + $0x1158] sm:$0xff]  ;;  %v564_v36 = vld [vmem:[%s5220_s1 + $0x10e0] sm:$0xff] }
  0xf7   :  { %3212 = vmatpush3.bf16.msra.mxu1 %v3211_v41  ;;  %v2115_v61 = vpop.f32.mrb[0].mxu0  ;;  %v3259_v41 = vpack.c.bf16 %v569_v34, %v568_v32  ;;  %v547_v32 = vld [vmem:[%s5220_s1 + $0x1058] sm:$0xff] }
  0xf8   :  { %3214 = vmatprep.subr.bf16.mxu1 %v3213_v48  ;;  %v2116_v3 = vpop.f32.mrb[1].mxu0  ;;  %v571_v48 = vld [vmem:[%s5220_s1 + $0x1118] sm:$0xff] }
  0xf9   :  { %v2150_v4 = vpop.f32.mrb[0].mxu1  ;;  %v2117_v8 = vadd.f32 %v2116_v3, %v2115_v61  ;;  %3184 = vmatpush3.bf16.msra.mxu0 %v3183_v56  ;;  %v768_v56 = vcombine.high %v5040_v39, %v5040_v39  ;;  %v3265_v61 = vpack.c.bf16 %v589_v55, %v588_v54  ;;  %v567_v54 = vld [vmem:[%s5220_s1 + $0x10f8] sm:$0xff] }
  0xfa   :  { %v2151_v7 = vpop.f32.mrb[1].mxu1  ;;  %3186 = vmatprep.subr.bf16.mxu0 %v3185_v45  ;;  %v3263_v45 = vpack.c.bf16 %v571_v48, %v570_v47  ;;  %v549_v47 = vld [vmem:[%s5220_s1 + $0x1068] sm:$0xff] }
  0xfb   :  { %v2152_v10 = vadd.f32 %v2151_v7, %v2150_v4  ;;  %3216 = vmatpush3.bf16.msra.mxu1 %v3215_v57  ;;  %v872_v18 = vadd.f32 %v2117_v8, %v2082_v2  ;;  %v3231_v57 = vpack.c.bf16 %v539_v46, %v538_v44  ;;  %v574_v8 = vld [vmem:[%s5220_s1 + $0x1130] sm:$0xff]  ;;  %v3269_v7 = vpack.c.bf16 %v591_v1, %v590_v0  ;;  %v548_v46 = vld [vmem:[%s5220_s1 + $0x1060] sm:$0xff] }
  0xfc   :  { %3218 = vmatprep.subr.bf16.mxu1 %v3217_v62  ;;  %v558_v62 = vld [vmem:[%s5220_s1 + $0x10b0] sm:$0xff]  ;;  %v3249_v44 = vpack.c.bf16 %v565_v37, %v564_v36 }
  0xfd   :  { %v5010_v26 = vadd.f32 %v2152_v10, %v872_v18  ;;  %3188 = vmatpush3.bf16.msra.mxu0 %v3187_v9  ;;  %v3237_v4 = vpack.c.bf16 %v559_v63, %v558_v62  ;;  %v575_v9 = vld [vmem:[%s5220_s1 + $0x1138] sm:$0xff]  ;;  %v561_v10 = vld [vmem:[%s5220_s1 + $0x10c8] sm:$0xff]  ;;  %v544_v18 = vld [vmem:[%s5220_s1 + $0x1040] sm:$0xff] }
  0xfe   :  { %3190 = vmatprep.subr.bf16.mxu0 %v3189_v14  ;;  %v593_v14 = vld [vmem:[%s5220_s1 + $0x11c8] sm:$0xff]  ;;  %v3271_v16 = vpack.c.bf16 %v575_v9, %v574_v8  ;;  %v3241_v17 = vpack.c.bf16 %v561_v10, %v560_v11  ;;  %v550_v62 = vld [vmem:[%s5220_s1 + $0x1070] sm:$0xff]  ;;  %v551_v63 = vld [vmem:[%s5220_s1 + $0x1078] sm:$0xff] }
  0xff   :  { %3220 = vmatpush3.bf16.msra.mxu1 %v3219_v12  ;;  %v592_v12 = vld [vmem:[%s5220_s1 + $0x11c0] sm:$0xff]  ;;  %v3255_v5 = vpack.c.bf16 %v551_v63, %v550_v62 }
 0x100   :  { %3222 = vmatprep.subr.bf16.mxu1 %v3221_v19  ;;  %v545_v19 = vld [vmem:[%s5220_s1 + $0x1048] sm:$0xff]  ;;  %v3273_v21 = vpack.c.bf16 %v593_v14, %v592_v12 }
 0x101   :  { %3192 = vmatpush3.bf16.msra.mxu0 %v3191_v27  ;;  %v595_v27 = vld [vmem:[%s5220_s1 + $0x11d8] sm:$0xff] }
 0x102   :  { %3226 = vmatprep.subr.bf16.mxu0 %v3225_v31  ;;  %v3275_v31 = vpack.c.bf16 %v577_v22, %v576_v20  ;;  %v3277_v34 = vpack.c.bf16 %v595_v27, %v594_v25 }
 0x103   :  { %3224 = vmatpush3.bf16.msra.mxu1 %v3223_v28  ;;  %v3243_v28 = vpack.c.bf16 %v545_v19, %v544_v18 }
 0x104   :  { %3258 = vmatprep.subr.bf16.mxu1 %v3257_v42  ;;  %1850 = vmatmul.mubr.f32.vlgmr.msra.gmra.mrb[14].mxu0 %v4819_v51  ;;  %v540_v51 = vld [vmem:[%s5220_s1 + $0x1020] sm:$0xff]  ;;  %v578_v42 = vld [vmem:[%s5220_s1 + $0x1150] sm:$0xff] }
 0x105   :  { %3228 = vmatpush3.bf16.msra.mxu0 %v3227_v40  ;;  %1989 = vmatprep.mubr.f32.mxu0 %v767_v53  ;;  %v3235_v2 = vpack.c.bf16 %v541_v59, %v540_v51  ;;  %v597_v40 = vld [vmem:[%s5220_s1 + $0x11e8] sm:$0xff]  ;;  %v566_v53 = vld [vmem:[%s5220_s1 + $0x10f0] sm:$0xff]  ;;  %v3251_v59 = vpack.c.bf16 %v549_v47, %v548_v46 }
 0x106   :  { %1920 = vmatmul.mubr.f32.vlgmr.msra.gmra.mrb[14].mxu1 %v4828_v33  ;;  %3230 = vmatprep.subr.bf16.mxu0 %v3229_v43  ;;  %v573_v33 = vld [vmem:[%s5220_s1 + $0x1128] sm:$0xff]  ;;  %v3279_v43 = vpack.c.bf16 %v579_v35, %v578_v42  ;;  %v3281_v49 = vpack.c.bf16 %v597_v40, %v596_v38 }
 0x107   :  { %3260 = vmatpush3.bf16.msra.mxu1 %v3259_v41  ;;  %2059 = vmatprep.mubr.f32.mxu1 %v768_v56  ;;  %v3267_v3 = vpack.c.bf16 %v573_v33, %v572_v60  ;;  %v3247_v41 = vpack.c.bf16 %v547_v32, %v546_v30  ;;  %v3253_v33 = vpack.c.bf16 %v567_v54, %v566_v53 }
 0x108   :  { %3262 = vmatprep.subr.bf16.mxu1 %v3261_v13  ;;  %v580_v13 = vld [vmem:[%s5220_s1 + $0x1160] sm:$0xff] }
 0x109   :  { %3232 = vmatpush3.bf16.msra.mxu0 %v3231_v57  ;;  %v598_v57 = vld [vmem:[%s5220_s1 + $0x11f0] sm:$0xff] }
 0x10a   :  { %3234 = vmatprep.subr.bf16.mxu0 %v3233_v58 }
 0x10b   :  { %3264 = vmatpush3.bf16.msra.mxu1 %v3263_v45  ;;  %v599_v45 = vld [vmem:[%s5220_s1 + $0x11f8] sm:$0xff] }
 0x10c   :  { %3266 = vmatprep.subr.bf16.mxu1 %v3265_v61  ;;  %v3283_v61 = vpack.c.bf16 %v581_v50, %v580_v13  ;;  %v3285_v1 = vpack.c.bf16 %v599_v45, %v598_v57 }
 0x10d   :  { %3236 = vmatpush3.bf16.msra.mxu0 %v3235_v2  ;;  %v582_v2 = vld [vmem:[%s5220_s1 + $0x1170] sm:$0xff] }
 0x10e   :  { %3238 = vmatprep.subr.bf16.mxu0 %v3237_v4 }
 0x10f   :  { %3268 = vmatpush3.bf16.msra.mxu1 %v3267_v3  ;;  %v583_v3 = vld [vmem:[%s5220_s1 + $0x1178] sm:$0xff]  ;;  %s3325_s1 = smov [#allocation2]  }
 0x110   :  { %3270 = vmatprep.subr.bf16.mxu1 %v3269_v7  ;;  %v3287_v6 = vpack.c.bf16 %v583_v3, %v582_v2  ;;  %s2074_s13 = sshll.u32 %s3325_s1, 4  ;;  %s2075_s13 = int_to_ptr.vmem [resolvable:$true] %s2074_s13 }
 0x111   :  { %3240 = vmatpush3.bf16.msra.mxu0 %v3239_v15  ;;  %s3300_s14 = scalar_lea.vmem %s2075_s13, 32  ;;  %p3305_p1 = scmp.lt.s32.totalorder %s2075_s13, %s2075_s13 }
 0x112   :  { %3242 = vmatprep.subr.bf16.mxu0 %v3241_v17  ;;  %p3301_p0 = scmp.ne.s32.totalorder %s2075_s13, %s3300_s14  ;;  %p3306_p2 = scmp.lt.s32.totalorder %s3300_s14, %s3300_s14 }
 0x113   :  { %3272 = vmatpush3.bf16.msra.mxu1 %v3271_v16 }
 0x114   :  { %3274 = vmatprep.subr.bf16.mxu1 %v3273_v21  ;;  %p3307_p3 = por %p3306_p2, %p3305_p1 }
 0x115   :  { %3244 = vmatpush3.bf16.msra.mxu0 %v3243_v28 }
 0x116   :  { %3246 = vmatprep.subr.bf16.mxu0 %v3245_v29  ;;  %p3308_p4 = pnand %p3307_p3, %p3301_p0 }
 0x117   :  { %3276 = vmatpush3.bf16.msra.mxu1 %v3275_v31  ;;  %v2185_v48 = vpop.f32.mrb[2].mxu0 }
 0x118   :  { %3278 = vmatprep.subr.bf16.mxu1 %v3277_v34  ;;  %v2186_v55 = vpop.f32.mrb[3].mxu0 }
 0x119   :  { %v2220_v56 = vpop.f32.mrb[2].mxu1  ;;  %v2187_v58 = vadd.f32 %v2186_v55, %v2185_v48  ;;  %3248 = vmatpush3.bf16.msra.mxu0 %v3247_v41 }
 0x11a   :  { %v2221_v51 = vpop.f32.mrb[3].mxu1  ;;  %3250 = vmatprep.subr.bf16.mxu0 %v3249_v44 }
 0x11b   :  { %v2222_v60 = vadd.f32 %v2221_v51, %v2220_v56  ;;  %3280 = vmatpush3.bf16.msra.mxu1 %v3279_v43  ;;  %v1012_v0 = vadd.f32 %v2187_v58, %v5010_v26 }
 0x11c   :  { %3282 = vmatprep.subr.bf16.mxu1 %v3281_v49 }
 0x11d   :  { %v1082_v4 = vadd.f32 %v2222_v60, %v1012_v0  ;;  %3252 = vmatpush3.bf16.msra.mxu0 %v3251_v59 }
 0x11e   :  { %3254 = vmatprep.subr.bf16.mxu0 %v3253_v33 }
 0x11f   :  { %3284 = vmatpush3.bf16.msra.mxu1 %v3283_v61 }
 0x120   :  { %3286 = vmatprep.subr.bf16.mxu1 %v3285_v1 }
 0x121   :  { %3256 = vmatpush3.bf16.msra.mxu0 %v3255_v5 }
 0x123   :  { %3288 = vmatpush3.bf16.msra.mxu1 %v3287_v6 }
 0x124   :  { %1990 = vmatmul.mubr.f32.vlgmr.msra.gmra.mrb[16].mxu0 %v5031_v52 }
 0x126   :  { %2060 = vmatmul.mubr.f32.vlgmr.msra.gmra.mrb[16].mxu1 %v5040_v39 }
 0x137   :  { %v2255_v26 = vpop.f32.mrb[4].mxu0 }
 0x138   :  { %v2256_v8 = vpop.f32.mrb[5].mxu0 }
 0x139   :  { %v2290_v7 = vpop.f32.mrb[4].mxu1  ;;  %v2257_v9 = vadd.f32 %v2256_v8, %v2255_v26 }
 0x13a   :  { %v2291_v11 = vpop.f32.mrb[5].mxu1 }
 0x13b   :  { %v2292_v10 = vadd.f32 %v2291_v11, %v2290_v7  ;;  %v1152_v12 = vadd.f32 %v2257_v9, %v1082_v4 }
 0x13d   :  { %v1222_v14 = vadd.f32 %v2292_v10, %v1152_v12 }
 0x157   :  { %v2325_v15 = vpop.f32.mrb[6].mxu0 }
 0x158   :  { %v2326_v16 = vpop.f32.mrb[7].mxu0 }
 0x159   :  { %v2360_v17 = vpop.f32.mrb[6].mxu1  ;;  %v2327_v18 = vadd.f32 %v2326_v16, %v2325_v15 }
 0x15a   :  { %v2361_v19 = vpop.f32.mrb[7].mxu1 }
 0x15b   :  { %v2362_v20 = vadd.f32 %v2361_v19, %v2360_v17  ;;  %v1292_v21 = vadd.f32 %v2327_v18, %v1222_v14 }
 0x15d   :  { %v1362_v22 = vadd.f32 %v2362_v20, %v1292_v21 }
 0x177   :  { %v2395_v23 = vpop.f32.mrb[8].mxu0 }
 0x178   :  { %v2396_v52 = vpop.f32.mrb[9].mxu0 }
 0x179   :  { %v2430_v24 = vpop.f32.mrb[8].mxu1  ;;  %v2397_v39 = vadd.f32 %v2396_v52, %v2395_v23 }
 0x17a   :  { %v2431_v25 = vpop.f32.mrb[9].mxu1 }
 0x17b   :  { %v2432_v27 = vadd.f32 %v2431_v25, %v2430_v24  ;;  %v1432_v28 = vadd.f32 %v2397_v39, %v1362_v22 }
 0x17d   :  { %v1502_v31 = vadd.f32 %v2432_v27, %v1432_v28 }
 0x197   :  { %v2465_v29 = vpop.f32.mrb[10].mxu0 }
 0x198   :  { %v2466_v30 = vpop.f32.mrb[11].mxu0 }
 0x199   :  { %v2500_v32 = vpop.f32.mrb[10].mxu1  ;;  %v2467_v42 = vadd.f32 %v2466_v30, %v2465_v29 }
 0x19a   :  { %v2501_v34 = vpop.f32.mrb[11].mxu1 }
 0x19b   :  { %v2502_v35 = vadd.f32 %v2501_v34, %v2500_v32  ;;  %v1572_v36 = vadd.f32 %v2467_v42, %v1502_v31 }
 0x19d   :  { %v1642_v37 = vadd.f32 %v2502_v35, %v1572_v36 }
 0x1b7   :  { %v2535_v38 = vpop.f32.mrb[12].mxu0 }
 0x1b8   :  { %v2536_v40 = vpop.f32.mrb[13].mxu0 }
 0x1b9   :  { %v2570_v41 = vpop.f32.mrb[12].mxu1  ;;  %v2537_v43 = vadd.f32 %v2536_v40, %v2535_v38 }
 0x1ba   :  { %v2571_v44 = vpop.f32.mrb[13].mxu1 }
 0x1bb   :  { %v2572_v46 = vadd.f32 %v2571_v44, %v2570_v41  ;;  %v1712_v47 = vadd.f32 %v2537_v43, %v1642_v37 }
 0x1bd   :  { %v1782_v13 = vadd.f32 %v2572_v46, %v1712_v47 }
 0x1d7   :  { %v2605_v48 = vpop.f32.mrb[14].mxu0 }
 0x1d8   :  { %v2606_v49 = vpop.f32.mrb[15].mxu0 }
 0x1d9   :  { %v2640_v50 = vpop.f32.mrb[14].mxu1  ;;  %v2607_v53 = vadd.f32 %v2606_v49, %v2605_v48 }
 0x1da   :  { %v2641_v54 = vpop.f32.mrb[15].mxu1 }
 0x1db   :  { %v2642_v55 = vadd.f32 %v2641_v54, %v2640_v50  ;;  %v1852_v56 = vadd.f32 %v2607_v53, %v1782_v13 }
 0x1dd   :  { %v1922_v57 = vadd.f32 %v2642_v55, %v1852_v56 }
 0x1f7   :  { %v2675_v45 = vpop.f32.mrb[16].mxu0 }
 0x1f8   :  { %v2676_v58 = vpop.f32.mrb[17].mxu0 }
 0x1f9   :  { %v2710_v51 = vpop.f32.mrb[16].mxu1  ;;  %v2677_v59 = vadd.f32 %v2676_v58, %v2675_v45 }
 0x1fa   :  { %v2711_v60 = vpop.f32.mrb[17].mxu1 }
 0x1fb   :  { %v2712_v61 = vadd.f32 %v2711_v60, %v2710_v51  ;;  %v1992_v33 = vadd.f32 %v2677_v59, %v1922_v57 }
 0x1fd   :  { %v2062_v62 = vadd.f32 %v2712_v61, %v1992_v33 }
 0x1ff   :  { %v2065_v63 = vmax.f32 %v2062_v62, 0.0 }
 0x201   :  { %2067 = vst.msk [vmem:[#allocation2] sm:$0x3] %vm2066_vm0, %v2065_v63 }
 0x202   :  { %3311 = shalt.err (!%p3308_p4)
}
 0x203   :  { %s3312_s17 = scalar_lea.hbm %s5222_s3, 32 }
 0x204   :  { %p3313_p5 = scmp.ne.s32.totalorder %s5222_s3, %s3312_s17  ;;  %p3316_p6 = scmp.lt.u32.totalorder %s3312_s17, %s5222_s3 }
 0x206   :  { %p3318_p7 = pnand %p3316_p6, %p3313_p5 }
 0x208   :  { %3321 = shalt.err (!%p3318_p7)
}
 0x209   :  { %2077 = dma.vmem_to_hbm [thread:$0]  %s2075_s13, 32, %s5222_s3, [#allocation3]  }
 0x20a   :  { %3322 = dma.done.wait [#allocation3], 32  }
 0x20b   :  { %3323 = vsyncadd [#allocation3], 4294967264 }
 0x20c   :  { %2081 = vsyncpa [#allocation3], 1 }

// kernel: cifar_encoder_v1_forward.2
= control target key start
LH: loop header
LB: loop body
LE: loop exit
PB: predicated region body
PF: predicated region fallthrough
CT: control target
= control target key end

     0   :  { %10 = vsyncpa [#allocation4], 0  ;;  %s18292_s0 = inlined_call_operand.vmem [shape: f32[2,1024,75], index: 0, kind: input, shape index: {}]   ;;  %s18293_s1 = inlined_call_operand.vmem [shape: f32[75,30], index: 1, kind: input, shape index: {}]   ;;  %s18294_s2 = inlined_call_operand.hbm [shape: f32[1,30], index: 2, kind: input, shape index: {}]   ;;  %s18295_s3 = inlined_call_operand.hbm [shape: f32[25,30,72], index: 3, kind: input, shape index: {}]   ;;  %s18296_s4 = inlined_call_operand.hbm [shape: f32[1,72], index: 4, kind: input, shape index: {}]   ;;  %s18297_s5 = inlined_call_operand.vmem [shape: f32[2,64,72], index: 5, kind: output, shape index: {}]  }
   0x1   :  { %11 = vsyncpa [#allocation6], 0  ;;  %s15077_s18 = smov 0  }
   0x2 LB: > { %s15040_s19 = smov [#allocation5]   ;;  %s15083_s21 = sadd.s32 4294967295, %s15038_s18   ;;  %s15038_s18 = sphi %s15077_s18, %s17_s18  }
   0x3   : > { %s184_s20 = sshll.u32 %s15040_s19, 4  ;;  %p10014_p0 = scmp.ge.s32.totalorder %s15038_s18, 1  ;;  %s15092_s20 = int_to_ptr.vmem [resolvable:$true] %s184_s20 }
   0x4   : > { %p158_p1 = scmp.lt.s32.totalorder %s15038_s18, 3  ;;  %p14831_p2 = scmp.eq.s32.totalorder %s15083_s21, 0 }
   0x5   : > { %s15041_s23 = smov [#allocation3]   ;;  %s15042_s26 = smov [#allocation7]  }
   0x6   : > { %p15088_p3 = pnand %p10014_p0, %p158_p1  ;;  %s174_s24 = sshll.u32 %s15041_s23, 4  ;;  %s15102_s24 = int_to_ptr.vmem [resolvable:$true] %s174_s24 }
   0x7   : > { %s198_s27 = sshll.u32 %s15042_s26, 4  ;;  %s14940_s30 = scalar_lea.hbm %s18295_s3, 12800  ;;  %s15104_s27 = int_to_ptr.vmem [resolvable:$true] %s198_s27 }
   0x8   : > { %p14821_p4 = pneg %p15088_p3  ;;  %p14941_p6 = scmp.ne.s32.totalorder %s18295_s3, %s14940_s30 }
   0x9   : > { %p14947_p10 = scmp.lt.u32.totalorder %s14940_s30, %s18295_s3 }
   0xa   : > { %p15098_p5 = pnand %p14831_p2, %p14821_p4 }
   0xc   : > { %p15114_p7 = pneg %p15098_p5 }
   0xe   : > { %p14943_p8 = pnand %p15114_p7, %p14941_p6 }
  0x10   : > { %p14944_p9 = pneg %p14943_p8 }
  0x12   : > { %p14949_p11 = pnand %p14947_p10, %p14944_p9 }
  0x14   : > { %14952 = shalt.err (!%p14949_p11)
}
  0x15   : > { %s14953_s11 = scalar_lea.vmem %s15092_s20, 12800  ;;  %p14961_p1 = scmp.lt.s32.totalorder %s15092_s20, %s15092_s20 }
  0x16   : > { %p14954_p12 = scmp.ne.s32.totalorder %s15092_s20, %s14953_s11  ;;  %p14962_p4 = scmp.lt.s32.totalorder %s14953_s11, %s14953_s11 }
  0x18   : > { %p14956_p13 = pnand %p14954_p12, %p15114_p7  ;;  %p14963_p6 = por %p14962_p4, %p14961_p1 }
  0x1a   : > { %p14957_p0 = pneg %p14956_p13 }
  0x1c   : > { %p14964_p8 = pnand %p14963_p6, %p14957_p0 }
  0x1e   : > { %14967 = shalt.err (!%p14964_p8)
}
  0x1f   : > { %s15043_s12 = smov 128   ;;  %s15044_s13 = smov 8  }
  0x20   : > { %14827 = dma.hbm_to_vmem [thread:$0]  (!%p15098_p5), %s18295_s3, 12800, %s15092_s20, [#allocation6], %s15043_s12, %s15043_s12, %s15044_s13  }
  0x21   : > { %s14968_s19 = scalar_lea.hbm %s18294_s2, 16 }
  0x22   : > { %p14969_p9 = scmp.ne.s32.totalorder %s18294_s2, %s14968_s19  ;;  %p14975_p12 = scmp.lt.u32.totalorder %s14968_s19, %s18294_s2 }
  0x24   : > { %p14971_p10 = pnand %p14969_p9, %p15114_p7 }
  0x26   : > { %p14972_p11 = pneg %p14971_p10 }
  0x28   : > { %p14977_p13 = pnand %p14975_p12, %p14972_p11 }
  0x2a   : > { %14980 = shalt.err (!%p14977_p13)
}
  0x2b   : > { %s14981_s20 = scalar_lea.vmem %s15102_s24, 16  ;;  %s14988_s30 = scalar_lea.vmem %s15102_s24, 32 }
  0x2c   : > { %p14982_p0 = scmp.ne.s32.totalorder %s15102_s24, %s14981_s20  ;;  %p14989_p6 = scmp.lt.s32.totalorder %s15102_s24, %s15102_s24 }
  0x2d   : > { %p14990_p8 = scmp.lt.s32.totalorder %s14988_s30, %s14981_s20 }
  0x2e   : > { %p14984_p1 = pnand %p14982_p0, %p15114_p7 }
  0x2f   : > { %p14991_p9 = por %p14990_p8, %p14989_p6 }
  0x30   : > { %p14985_p4 = pneg %p14984_p1 }
  0x32   : > { %p14992_p10 = pnand %p14991_p9, %p14985_p4 }
  0x34   : > { %14995 = shalt.err (!%p14992_p10)
}
  0x35   : > { %14824 = dma.hbm_to_vmem [thread:$0]  (!%p15098_p5), %s18294_s2, 16, %s15102_s24, [#allocation4]  }
  0x36   : > { %s14996_s11 = scalar_lea.hbm %s18296_s4, 16 }
  0x37   : > { %p14997_p11 = scmp.ne.s32.totalorder %s18296_s4, %s14996_s11  ;;  %p15003_p0 = scmp.lt.u32.totalorder %s14996_s11, %s18296_s4 }
  0x39   : > { %p14999_p12 = pnand %p14997_p11, %p15114_p7 }
  0x3b   : > { %p15000_p13 = pneg %p14999_p12 }
  0x3d   : > { %p15005_p1 = pnand %p15003_p0, %p15000_p13 }
  0x3f   : > { %15008 = shalt.err (!%p15005_p1)
}
  0x40   : > { %s15009_s24 = scalar_lea.vmem %s15104_s27, 16  ;;  %s15016_s16 = scalar_lea.vmem %s15104_s27, 32 }
  0x41   : > { %p15010_p4 = scmp.ne.s32.totalorder %s15104_s27, %s15009_s24  ;;  %p15017_p9 = scmp.lt.s32.totalorder %s15104_s27, %s15104_s27 }
  0x42   : > { %p15018_p10 = scmp.lt.s32.totalorder %s15016_s16, %s15009_s24 }
  0x43   : > { %p15012_p6 = pnand %p15010_p4, %p15114_p7 }
  0x44   : > { %p15019_p11 = por %p15018_p10, %p15017_p9 }
  0x45   : > { %p15013_p8 = pneg %p15012_p6 }
  0x47   : > { %p15020_p12 = pnand %p15019_p11, %p15013_p8 }
  0x49   : > { %15023 = shalt.err (!%p15020_p12)
}
  0x4a   : > { %14830 = dma.hbm_to_vmem [thread:$0]  (!%p15098_p5), %s18296_s4, 16, %s15104_s27, [#allocation6]  }
  0x4b   : > { %219 = sbr.rel (%p15088_p3) target bundleno = 1710 (0x6ae), region = 40 }
  0x52   : > { %15029 = dma.done.wait (%p14831_p2), [#allocation4], 16  }
  0x53   : > { %15031 = vsyncadd (%p14831_p2), [#allocation4], 4294967280 }
  0x54   : > { %15033 = dma.done.wait (%p14831_p2), [#allocation6], 12816  }
  0x55   : > { %15035 = vsyncadd (%p14831_p2), [#allocation6], 4294954480  ;;  %p255_p7 = scmp.lt.s32.totalorder %s15083_s21, 1  ;;  %v649_v0 = vld [vmem:[%s18293_s1] sm:$0xff]  ;;  %v650_v1 = vld [vmem:[%s18293_s1 + $0x8] sm:$0xff]  ;;  %vm666_vm0 = vcmask 613376  }
  0x56   : > { %v651_v2 = vld [vmem:[%s18293_s1 + $0x10] sm:$0xff]  ;;  %v13765_v3 = vpack.c.bf16 %v650_v1, %v649_v0  ;;  %v652_v4 = vld [vmem:[%s18293_s1 + $0x18] sm:$0xff]  ;;  %v653_v6 = vld [vmem:[%s18293_s1 + $0x20] sm:$0xff]  ;;  %vm1051_vm1 = vcmask 1042432   ;;  %vm15045_vm2 = vmmov 1   ;;  %vm1984_vm4 = vcmask 244736  }
  0x57   : > { %s18390_s21 = smov (!%p255_p7, %s15083_s21), 1  ;;  %v13769_v5 = vpack.c.bf16 %v652_v4, %v651_v2  ;;  %v654_v7 = vld [vmem:[%s18293_s1 + $0x28] sm:$0xff]  ;;  %v655_v11 = vld [vmem:[%s18293_s1 + $0x30] sm:$0xff]  ;;  %v656_v12 = vld [vmem:[%s18293_s1 + $0x38] sm:$0xff]  ;;  %vm1986_vm5 = vcmask 238592   ;;  %vm2258_vm6 = vcmask 1045504  }
  0x58   : > { %s11113_s22 = sshll.u32 %s18390_s21, 10  ;;  %13766 = vmatprep.subr.bf16.mxu0 %v13765_v3  ;;  %v13773_v10 = vpack.c.bf16 %v654_v7, %v653_v6  ;;  %v13777_v14 = vpack.c.bf16 %v656_v12, %v655_v11  ;;  %v657_v15 = vld [vmem:[%s18293_s1 + $0x40] sm:$0xff]  ;;  %v658_v16 = vld [vmem:[%s18293_s1 + $0x48] sm:$0x7]  ;;  %vm13782_vm3 = vmpackc.low %vm1051_vm1, %vm15045_vm2  ;;  %s11114_s25 = sshll.u32 %s18390_s21, 6  ;;  %vm9917_vm8 = vcmask 588800  }
  0x59   : > { %s15210_s30 = scalar_lea.vmem %s18292_s0, %s11113_s22  ;;  %13768 = vmatpush3.bf16.msra.mxu0 %v13765_v3  ;;  %v13781_v18 = vpack.c.bf16 %v658_v16, %v657_v15  ;;  %vm15813_vm7 = vmpackc.low %vm2258_vm6, %vm15045_vm2  ;;  %s18252_s8 = scalar_lea.vmem %s18297_s5, %s11114_s25 }
  0x5a   : > { %v265_v8 = vld [vmem:[%s15210_s30] sm:$0xff]  ;;  %13770 = vmatprep.subr.bf16.mxu0 %v13769_v5  ;;  %v266_v17 = vld [vmem:[%s15210_s30 + $0x8] sm:$0xff]  ;;  %v267_v19 = vld [vmem:[%s15210_s30 + $0x10] sm:$0xff] }
  0x5b   : > { %v10027_v9 = vadd.f32 -0.5, %v265_v8  ;;  %v10028_v20 = vadd.f32 -0.5, %v266_v17  ;;  %v10029_v21 = vadd.f32 -0.5, %v267_v19  ;;  %v268_v22 = vld [vmem:[%s15210_s30 + $0x18] sm:$0xff]  ;;  %v269_v23 = vld [vmem:[%s15210_s30 + $0x20] sm:$0xff]  ;;  %v270_v28 = vld [vmem:[%s15210_s30 + $0x28] sm:$0xff] }
  0x5c   : > { %v10030_v25 = vadd.f32 -0.5, %v268_v22  ;;  %v10031_v27 = vadd.f32 -0.5, %v269_v23  ;;  %v271_v29 = vld [vmem:[%s15210_s30 + $0x30] sm:$0xff]  ;;  %v10032_v31 = vadd.f32 -0.5, %v270_v28  ;;  %v272_v34 = vld [vmem:[%s15210_s30 + $0x38] sm:$0xff]  ;;  %v273_v35 = vld [vmem:[%s15210_s30 + $0x40] sm:$0xff] }
  0x5d   : > { %v521_v13 = vmul.f32 2.0, %v10027_v9  ;;  %13772 = vmatpush3.bf16.msra.mxu0 %v13769_v5  ;;  %v522_v24 = vmul.f32 2.0, %v10028_v20  ;;  %v523_v26 = vmul.f32 2.0, %v10029_v21  ;;  %v10033_v33 = vadd.f32 -0.5, %v271_v29  ;;  %v274_v40 = vld [vmem:[%s15210_s30 + $0x48] sm:$0xff]  ;;  %v275_v41 = vld [vmem:[%s15210_s30 + $0x50] sm:$0xff] }
  0x5e   : > { %13774 = vmatprep.subr.bf16.mxu0 %v13773_v10  ;;  %v524_v30 = vmul.f32 2.0, %v10030_v25  ;;  %v525_v32 = vmul.f32 2.0, %v10031_v27  ;;  %v526_v36 = vmul.f32 2.0, %v10032_v31  ;;  %v10034_v37 = vadd.f32 -0.5, %v272_v34  ;;  %v276_v46 = vld [vmem:[%s15210_s30 + $0x58] sm:$0xff]  ;;  %v277_v47 = vld [vmem:[%s15210_s30 + $0x60] sm:$0xff] }
  0x5f   : > { %12173 = vmatprep.mubr.msk.f32.mxu0 %vm666_vm0, %v521_v13  ;;  %v527_v38 = vmul.f32 2.0, %v10033_v33  ;;  %v10035_v39 = vadd.f32 -0.5, %v273_v35  ;;  %v10036_v43 = vadd.f32 -0.5, %v274_v40  ;;  %v10037_v45 = vadd.f32 -0.5, %v275_v41  ;;  %v278_v52 = vld [vmem:[%s15210_s30 + $0x68] sm:$0xff]  ;;  %v279_v53 = vld [vmem:[%s15210_s30 + $0x70] sm:$0xff] }
  0x60   : > { %v528_v42 = vmul.f32 2.0, %v10034_v37  ;;  %v10038_v49 = vadd.f32 -0.5, %v276_v46  ;;  %v10039_v51 = vadd.f32 -0.5, %v277_v47  ;;  %v10040_v55 = vadd.f32 -0.5, %v278_v52  ;;  %v280_v58 = vld [vmem:[%s15210_s30 + $0x78] sm:$0xff]  ;;  %v281_v59 = vld [vmem:[%s15210_s30 + $0x80] sm:$0xff] }
  0x61   : > { %13776 = vmatpush3.bf16.msra.mxu0 %v13773_v10  ;;  %v529_v44 = vmul.f32 2.0, %v10035_v39  ;;  %v530_v48 = vmul.f32 2.0, %v10036_v43  ;;  %v531_v50 = vmul.f32 2.0, %v10037_v45  ;;  %v10041_v57 = vadd.f32 -0.5, %v279_v53  ;;  %v282_v0 = vld [vmem:[%s15210_s30 + $0x88] sm:$0xff]  ;;  %v283_v1 = vld [vmem:[%s15210_s30 + $0x90] sm:$0xff] }
  0x62   : > { %13778 = vmatprep.subr.bf16.mxu0 %v13777_v14  ;;  %v532_v54 = vmul.f32 2.0, %v10038_v49  ;;  %v533_v56 = vmul.f32 2.0, %v10039_v51  ;;  %v534_v60 = vmul.f32 2.0, %v10040_v55  ;;  %v10042_v61 = vadd.f32 -0.5, %v280_v58  ;;  %v284_v6 = vld [vmem:[%s15210_s30 + $0x98] sm:$0xff]  ;;  %v285_v7 = vld [vmem:[%s15210_s30 + $0xa0] sm:$0xff] }
  0x63   : > { %v535_v62 = vmul.f32 2.0, %v10041_v57  ;;  %v10043_v63 = vadd.f32 -0.5, %v281_v59  ;;  %v10044_v3 = vadd.f32 -0.5, %v282_v0  ;;  %v10045_v5 = vadd.f32 -0.5, %v283_v1  ;;  %v286_v12 = vld [vmem:[%s15210_s30 + $0xa8] sm:$0xff]  ;;  %v287_v13 = vld [vmem:[%s15210_s30 + $0xb0] sm:$0xff] }
  0x64   : > { %v536_v2 = vmul.f32 2.0, %v10042_v61  ;;  %v10046_v9 = vadd.f32 -0.5, %v284_v6  ;;  %v10047_v11 = vadd.f32 -0.5, %v285_v7  ;;  %v10048_v15 = vadd.f32 -0.5, %v286_v12  ;;  %v289_v19 = vld [vmem:[%s15210_s30 + $0xc0] sm:$0xff]  ;;  %v291_v25 = vld [vmem:[%s15210_s30 + $0xd0] sm:$0xff] }
  0x65   : > { %13780 = vmatpush3.bf16.msra.mxu0 %v13777_v14  ;;  %v537_v4 = vmul.f32 2.0, %v10043_v63  ;;  %v538_v8 = vmul.f32 2.0, %v10044_v3  ;;  %v539_v10 = vmul.f32 2.0, %v10045_v5  ;;  %v10049_v17 = vadd.f32 -0.5, %v287_v13  ;;  %v293_v31 = vld [vmem:[%s15210_s30 + $0xe0] sm:$0xff]  ;;  %v295_v37 = vld [vmem:[%s15210_s30 + $0xf0] sm:$0xff] }
  0x66   : > { %13783 = vmatprep.subr.msk.bf16.mxu0 %vm13782_vm3, %v13781_v18  ;;  %v540_v14 = vmul.f32 2.0, %v10046_v9  ;;  %v541_v16 = vmul.f32 2.0, %v10047_v11  ;;  %v542_v20 = vmul.f32 2.0, %v10048_v15  ;;  %v10051_v23 = vadd.f32 -0.5, %v289_v19  ;;  %v297_v43 = vld [vmem:[%s15210_s30 + $0x100] sm:$0xff]  ;;  %v299_v49 = vld [vmem:[%s15210_s30 + $0x110] sm:$0xff] }
  0x67   : > { %v543_v22 = vmul.f32 2.0, %v10049_v17  ;;  %v10053_v29 = vadd.f32 -0.5, %v291_v25  ;;  %v10055_v35 = vadd.f32 -0.5, %v293_v31  ;;  %v10057_v41 = vadd.f32 -0.5, %v295_v37  ;;  %v301_v55 = vld [vmem:[%s15210_s30 + $0x120] sm:$0xff]  ;;  %v303_v61 = vld [vmem:[%s15210_s30 + $0x130] sm:$0xff] }
  0x68   : > { %v545_v28 = vmul.f32 2.0, %v10051_v23  ;;  %v10059_v47 = vadd.f32 -0.5, %v297_v43  ;;  %v10061_v53 = vadd.f32 -0.5, %v299_v49  ;;  %v10063_v59 = vadd.f32 -0.5, %v301_v55  ;;  %v305_v3 = vld [vmem:[%s15210_s30 + $0x140] sm:$0xff]  ;;  %v307_v9 = vld [vmem:[%s15210_s30 + $0x150] sm:$0xff] }
  0x69   : > { %13786 = vmatpush3.bf16.msk.msra.mxu0 %vm13782_vm3, %v13781_v18  ;;  %v288_v18 = vld [vmem:[%s15210_s30 + $0xb8] sm:$0xff]  ;;  %v547_v34 = vmul.f32 2.0, %v10053_v29  ;;  %v549_v40 = vmul.f32 2.0, %v10055_v35  ;;  %v551_v46 = vmul.f32 2.0, %v10057_v41  ;;  %v10065_v1 = vadd.f32 -0.5, %v303_v61  ;;  %v309_v15 = vld [vmem:[%s15210_s30 + $0x160] sm:$0xff] }
  0x6a   : > { %v10050_v21 = vadd.f32 -0.5, %v288_v18  ;;  %v553_v52 = vmul.f32 2.0, %v10059_v47  ;;  %v555_v58 = vmul.f32 2.0, %v10061_v53  ;;  %v557_v0 = vmul.f32 2.0, %v10063_v59 }
  0x6b   : > { %v559_v6 = vmul.f32 2.0, %v10065_v1  ;;  %v10067_v7 = vadd.f32 -0.5, %v305_v3  ;;  %v10069_v13 = vadd.f32 -0.5, %v307_v9  ;;  %v10071_v19 = vadd.f32 -0.5, %v309_v15 }
  0x6c   : > { %12174 = vmatmul.mubr.msk.f32.vlgmr.msra.gmra.mrb[0].mxu0 %vm666_vm0, %v522_v24  ;;  %v290_v24 = vld [vmem:[%s15210_s30 + $0xc8] sm:$0xff] }
  0x6d   : > { %12176 = vmatprep.mubr.msk.f32.mxu0 %vm666_vm0, %v523_v26  ;;  %v544_v26 = vmul.f32 2.0, %v10050_v21  ;;  %v10052_v27 = vadd.f32 -0.5, %v290_v24  ;;  %v561_v12 = vmul.f32 2.0, %v10067_v7  ;;  %v563_v18 = vmul.f32 2.0, %v10069_v13  ;;  %v311_v21 = vld [vmem:[%s15210_s30 + $0x170] sm:$0xff] }
  0x6e   : > { %v565_v24 = vmul.f32 2.0, %v10071_v19  ;;  %v10073_v25 = vadd.f32 -0.5, %v311_v21 }
  0x70   : > { %12177 = vmatmul.mubr.msk.f32.gmra.mrb[2].mxu0 %vm666_vm0, %v524_v30  ;;  %v292_v30 = vld [vmem:[%s15210_s30 + $0xd8] sm:$0xff] }
  0x71   : > { %12179 = vmatprep.mubr.msk.f32.mxu0 %vm666_vm0, %v525_v32  ;;  %v546_v32 = vmul.f32 2.0, %v10052_v27  ;;  %v10054_v33 = vadd.f32 -0.5, %v292_v30  ;;  %v313_v27 = vld [vmem:[%s15210_s30 + $0x180] sm:$0xff]  ;;  %v567_v30 = vmul.f32 2.0, %v10073_v25 }
  0x72   : > { %v10075_v31 = vadd.f32 -0.5, %v313_v27 }
  0x74   : > { %12180 = vmatmul.mubr.msk.f32.gmra.mrb[4].mxu0 %vm666_vm0, %v526_v36  ;;  %v294_v36 = vld [vmem:[%s15210_s30 + $0xe8] sm:$0xff] }
  0x75   : > { %12182 = vmatprep.mubr.msk.f32.mxu0 %vm666_vm0, %v527_v38  ;;  %v548_v38 = vmul.f32 2.0, %v10054_v33  ;;  %v10056_v39 = vadd.f32 -0.5, %v294_v36  ;;  %v315_v33 = vld [vmem:[%s15210_s30 + $0x190] sm:$0xff]  ;;  %v569_v36 = vmul.f32 2.0, %v10075_v31 }
  0x76   : > { %v10077_v37 = vadd.f32 -0.5, %v315_v33 }
  0x78   : > { %12183 = vmatmul.mubr.msk.f32.gmra.mrb[6].mxu0 %vm666_vm0, %v528_v42  ;;  %v296_v42 = vld [vmem:[%s15210_s30 + $0xf8] sm:$0xff] }
  0x79   : > { %12185 = vmatprep.mubr.msk.f32.mxu0 %vm666_vm0, %v529_v44  ;;  %v550_v44 = vmul.f32 2.0, %v10056_v39  ;;  %v10058_v45 = vadd.f32 -0.5, %v296_v42  ;;  %v317_v39 = vld [vmem:[%s15210_s30 + $0x1a0] sm:$0xff]  ;;  %v571_v42 = vmul.f32 2.0, %v10077_v37 }
  0x7a   : > { %v10079_v43 = vadd.f32 -0.5, %v317_v39 }
  0x7c   : > { %12186 = vmatmul.mubr.msk.f32.gmra.mrb[8].mxu0 %vm666_vm0, %v530_v48  ;;  %v298_v48 = vld [vmem:[%s15210_s30 + $0x108] sm:$0xff] }
  0x7d   : > { %12188 = vmatprep.mubr.msk.f32.mxu0 %vm666_vm0, %v531_v50  ;;  %v552_v50 = vmul.f32 2.0, %v10058_v45  ;;  %v10060_v51 = vadd.f32 -0.5, %v298_v48  ;;  %v319_v45 = vld [vmem:[%s15210_s30 + $0x1b0] sm:$0xff]  ;;  %v573_v48 = vmul.f32 2.0, %v10079_v43 }
  0x7e   : > { %v10081_v49 = vadd.f32 -0.5, %v319_v45 }
  0x80   : > { %12189 = vmatmul.mubr.msk.f32.gmra.mrb[10].mxu0 %vm666_vm0, %v532_v54  ;;  %v300_v54 = vld [vmem:[%s15210_s30 + $0x118] sm:$0xff] }
  0x81   : > { %12191 = vmatprep.mubr.msk.f32.mxu0 %vm666_vm0, %v533_v56  ;;  %v554_v56 = vmul.f32 2.0, %v10060_v51  ;;  %v10062_v57 = vadd.f32 -0.5, %v300_v54  ;;  %v321_v51 = vld [vmem:[%s15210_s30 + $0x1c0] sm:$0xff]  ;;  %v575_v54 = vmul.f32 2.0, %v10081_v49 }
  0x82   : > { %v10083_v55 = vadd.f32 -0.5, %v321_v51 }
  0x84   : > { %12192 = vmatmul.mubr.msk.f32.gmra.mrb[12].mxu0 %vm666_vm0, %v534_v60  ;;  %v302_v60 = vld [vmem:[%s15210_s30 + $0x128] sm:$0xff] }
  0x85   : > { %12194 = vmatprep.mubr.msk.f32.mxu0 %vm666_vm0, %v535_v62  ;;  %v556_v62 = vmul.f32 2.0, %v10062_v57  ;;  %v10064_v63 = vadd.f32 -0.5, %v302_v60  ;;  %v323_v57 = vld [vmem:[%s15210_s30 + $0x1d0] sm:$0xff]  ;;  %v577_v60 = vmul.f32 2.0, %v10083_v55 }
  0x86   : > { %v10085_v61 = vadd.f32 -0.5, %v323_v57 }
  0x88   : > { %12195 = vmatmul.mubr.msk.f32.gmra.mrb[14].mxu0 %vm666_vm0, %v536_v2  ;;  %v304_v2 = vld [vmem:[%s15210_s30 + $0x138] sm:$0xff] }
  0x89   : > { %12197 = vmatprep.mubr.msk.f32.mxu0 %vm666_vm0, %v537_v4  ;;  %v558_v4 = vmul.f32 2.0, %v10064_v63  ;;  %v10066_v5 = vadd.f32 -0.5, %v304_v2  ;;  %v325_v63 = vld [vmem:[%s15210_s30 + $0x1e0] sm:$0xff]  ;;  %v579_v2 = vmul.f32 2.0, %v10085_v61 }
  0x8a   : > { %v10087_v3 = vadd.f32 -0.5, %v325_v63 }
  0x8c   : > { %12198 = vmatmul.mubr.msk.f32.gmra.mrb[16].mxu0 %vm666_vm0, %v538_v8  ;;  %v306_v8 = vld [vmem:[%s15210_s30 + $0x148] sm:$0xff] }
  0x8d   : > { %12200 = vmatprep.mubr.msk.f32.mxu0 %vm666_vm0, %v539_v10  ;;  %v560_v10 = vmul.f32 2.0, %v10066_v5  ;;  %v10068_v11 = vadd.f32 -0.5, %v306_v8  ;;  %v327_v5 = vld [vmem:[%s15210_s30 + $0x1f0] sm:$0xff]  ;;  %v581_v8 = vmul.f32 2.0, %v10087_v3 }
  0x8e   : > { %v10089_v9 = vadd.f32 -0.5, %v327_v5 }
  0x90   : > { %12201 = vmatmul.mubr.msk.f32.gmra.mrb[18].mxu0 %vm666_vm0, %v540_v14  ;;  %v308_v14 = vld [vmem:[%s15210_s30 + $0x158] sm:$0xff] }
  0x91   : > { %12203 = vmatprep.mubr.msk.f32.mxu0 %vm666_vm0, %v541_v16  ;;  %v562_v16 = vmul.f32 2.0, %v10068_v11  ;;  %v10070_v17 = vadd.f32 -0.5, %v308_v14  ;;  %v329_v11 = vld [vmem:[%s15210_s30 + $0x200] sm:$0xff]  ;;  %v583_v14 = vmul.f32 2.0, %v10089_v9 }
  0x92   : > { %v10091_v15 = vadd.f32 -0.5, %v329_v11 }
  0x94   : > { %12204 = vmatmul.mubr.msk.f32.gmra.mrb[20].mxu0 %vm666_vm0, %v542_v20  ;;  %v310_v20 = vld [vmem:[%s15210_s30 + $0x168] sm:$0xff] }
  0x95   : > { %12206 = vmatprep.mubr.msk.f32.mxu0 %vm666_vm0, %v543_v22  ;;  %v564_v22 = vmul.f32 2.0, %v10070_v17  ;;  %v10072_v23 = vadd.f32 -0.5, %v310_v20  ;;  %v331_v17 = vld [vmem:[%s15210_s30 + $0x210] sm:$0xff]  ;;  %v585_v20 = vmul.f32 2.0, %v10091_v15 }
  0x96   : > { %v10093_v21 = vadd.f32 -0.5, %v331_v17 }
  0x98   : > { %12207 = vmatmul.mubr.msk.f32.gmra.mrb[22].mxu0 %vm666_vm0, %v544_v26  ;;  %v312_v26 = vld [vmem:[%s15210_s30 + $0x178] sm:$0xff] }
  0x99   : > { %12209 = vmatprep.mubr.msk.f32.mxu0 %vm666_vm0, %v545_v28  ;;  %v566_v28 = vmul.f32 2.0, %v10072_v23  ;;  %v10074_v29 = vadd.f32 -0.5, %v312_v26  ;;  %v333_v23 = vld [vmem:[%s15210_s30 + $0x220] sm:$0xff]  ;;  %v587_v26 = vmul.f32 2.0, %v10093_v21 }
  0x9a   : > { %v10095_v27 = vadd.f32 -0.5, %v333_v23 }
  0x9c   : > { %12210 = vmatmul.mubr.msk.f32.gmra.mrb[24].mxu0 %vm666_vm0, %v546_v32  ;;  %v314_v32 = vld [vmem:[%s15210_s30 + $0x188] sm:$0xff] }
  0x9d   : > { %12212 = vmatprep.mubr.msk.f32.mxu0 %vm666_vm0, %v547_v34  ;;  %v568_v34 = vmul.f32 2.0, %v10074_v29  ;;  %v10076_v35 = vadd.f32 -0.5, %v314_v32  ;;  %v335_v29 = vld [vmem:[%s15210_s30 + $0x230] sm:$0xff]  ;;  %v589_v32 = vmul.f32 2.0, %v10095_v27 }
  0x9e   : > { %v10097_v33 = vadd.f32 -0.5, %v335_v29 }
  0xa0   : > { %12213 = vmatmul.mubr.msk.f32.gmra.mrb[26].mxu0 %vm666_vm0, %v548_v38  ;;  %v316_v38 = vld [vmem:[%s15210_s30 + $0x198] sm:$0xff] }
  0xa1   : > { %12215 = vmatprep.mubr.msk.f32.mxu0 %vm666_vm0, %v549_v40  ;;  %v570_v40 = vmul.f32 2.0, %v10076_v35  ;;  %v10078_v41 = vadd.f32 -0.5, %v316_v38  ;;  %v337_v35 = vld [vmem:[%s15210_s30 + $0x240] sm:$0xff]  ;;  %v591_v38 = vmul.f32 2.0, %v10097_v33 }
  0xa2   : > { %v10099_v39 = vadd.f32 -0.5, %v337_v35 }
  0xa4   : > { %12216 = vmatmul.mubr.msk.f32.gmra.mrb[28].mxu0 %vm666_vm0, %v550_v44  ;;  %v318_v44 = vld [vmem:[%s15210_s30 + $0x1a8] sm:$0xff] }
  0xa5   : > { %12218 = vmatprep.mubr.msk.f32.mxu0 %vm666_vm0, %v551_v46  ;;  %v572_v46 = vmul.f32 2.0, %v10078_v41  ;;  %v10080_v47 = vadd.f32 -0.5, %v318_v44  ;;  %v339_v41 = vld [vmem:[%s15210_s30 + $0x250] sm:$0xff]  ;;  %v593_v44 = vmul.f32 2.0, %v10099_v39 }
  0xa6   : > { %v10101_v45 = vadd.f32 -0.5, %v339_v41 }
  0xa8   : > { %12219 = vmatmul.mubr.msk.f32.gmra.mrb[30].mxu0 %vm666_vm0, %v552_v50  ;;  %v320_v50 = vld [vmem:[%s15210_s30 + $0x1b8] sm:$0xff] }
  0xa9   : > { %12221 = vmatprep.mubr.msk.f32.mxu0 %vm666_vm0, %v553_v52  ;;  %v574_v52 = vmul.f32 2.0, %v10080_v47  ;;  %v10082_v53 = vadd.f32 -0.5, %v320_v50  ;;  %v341_v47 = vld [vmem:[%s15210_s30 + $0x260] sm:$0xff]  ;;  %v595_v50 = vmul.f32 2.0, %v10101_v45 }
  0xaa   : > { %v10103_v51 = vadd.f32 -0.5, %v341_v47 }
  0xac   : > { %12222 = vmatmul.mubr.msk.f32.gmra.mrb[32].mxu0 %vm666_vm0, %v554_v56  ;;  %v322_v56 = vld [vmem:[%s15210_s30 + $0x1c8] sm:$0xff] }
  0xad   : > { %12224 = vmatprep.mubr.msk.f32.mxu0 %vm666_vm0, %v555_v58  ;;  %v576_v58 = vmul.f32 2.0, %v10082_v53  ;;  %v10084_v59 = vadd.f32 -0.5, %v322_v56  ;;  %v343_v53 = vld [vmem:[%s15210_s30 + $0x270] sm:$0xff]  ;;  %v597_v56 = vmul.f32 2.0, %v10103_v51 }
  0xae   : > { %v10105_v57 = vadd.f32 -0.5, %v343_v53 }
  0xb0   : > { %12225 = vmatmul.mubr.msk.f32.gmra.mrb[34].mxu0 %vm666_vm0, %v556_v62  ;;  %v324_v62 = vld [vmem:[%s15210_s30 + $0x1d8] sm:$0xff] }
  0xb1   : > { %12227 = vmatprep.mubr.msk.f32.mxu0 %vm666_vm0, %v557_v0  ;;  %v578_v0 = vmul.f32 2.0, %v10084_v59  ;;  %v10086_v1 = vadd.f32 -0.5, %v324_v62  ;;  %v345_v59 = vld [vmem:[%s15210_s30 + $0x280] sm:$0xff]  ;;  %v599_v62 = vmul.f32 2.0, %v10105_v57 }
  0xb2   : > { %v10107_v63 = vadd.f32 -0.5, %v345_v59 }
  0xb4   : > { %12228 = vmatmul.mubr.msk.f32.gmra.mrb[36].mxu0 %vm666_vm0, %v558_v4  ;;  %v326_v4 = vld [vmem:[%s15210_s30 + $0x1e8] sm:$0xff] }
  0xb5   : > { %12230 = vmatprep.mubr.msk.f32.mxu0 %vm666_vm0, %v559_v6  ;;  %v580_v6 = vmul.f32 2.0, %v10086_v1  ;;  %v10088_v7 = vadd.f32 -0.5, %v326_v4  ;;  %v347_v1 = vld [vmem:[%s15210_s30 + $0x290] sm:$0xff]  ;;  %v601_v4 = vmul.f32 2.0, %v10107_v63 }
  0xb6   : > { %v10109_v5 = vadd.f32 -0.5, %v347_v1 }
  0xb8   : > { %12231 = vmatmul.mubr.msk.f32.gmra.mrb[38].mxu0 %vm666_vm0, %v560_v10  ;;  %v328_v10 = vld [vmem:[%s15210_s30 + $0x1f8] sm:$0xff] }
  0xb9   : > { %12233 = vmatprep.mubr.msk.f32.mxu0 %vm666_vm0, %v561_v12  ;;  %v582_v12 = vmul.f32 2.0, %v10088_v7  ;;  %v10090_v13 = vadd.f32 -0.5, %v328_v10  ;;  %v349_v7 = vld [vmem:[%s15210_s30 + $0x2a0] sm:$0xff]  ;;  %v603_v10 = vmul.f32 2.0, %v10109_v5 }
  0xba   : > { %v10111_v11 = vadd.f32 -0.5, %v349_v7 }
  0xbc   : > { %12234 = vmatmul.mubr.msk.f32.gmra.mrb[40].mxu0 %vm666_vm0, %v562_v16  ;;  %v330_v16 = vld [vmem:[%s15210_s30 + $0x208] sm:$0xff] }
  0xbd   : > { %12236 = vmatprep.mubr.msk.f32.mxu0 %vm666_vm0, %v563_v18  ;;  %v584_v18 = vmul.f32 2.0, %v10090_v13  ;;  %v10092_v19 = vadd.f32 -0.5, %v330_v16  ;;  %v351_v13 = vld [vmem:[%s15210_s30 + $0x2b0] sm:$0xff]  ;;  %v605_v16 = vmul.f32 2.0, %v10111_v11 }
  0xbe   : > { %v10113_v17 = vadd.f32 -0.5, %v351_v13 }
  0xc0   : > { %12237 = vmatmul.mubr.msk.f32.gmra.mrb[42].mxu0 %vm666_vm0, %v564_v22  ;;  %v332_v22 = vld [vmem:[%s15210_s30 + $0x218] sm:$0xff] }
  0xc1   : > { %12239 = vmatprep.mubr.msk.f32.mxu0 %vm666_vm0, %v565_v24  ;;  %v586_v24 = vmul.f32 2.0, %v10092_v19  ;;  %v10094_v25 = vadd.f32 -0.5, %v332_v22  ;;  %v353_v19 = vld [vmem:[%s15210_s30 + $0x2c0] sm:$0xff]  ;;  %v607_v22 = vmul.f32 2.0, %v10113_v17 }
  0xc2   : > { %v10115_v23 = vadd.f32 -0.5, %v353_v19 }
  0xc4   : > { %12240 = vmatmul.mubr.msk.f32.gmra.mrb[44].mxu0 %vm666_vm0, %v566_v28  ;;  %v334_v28 = vld [vmem:[%s15210_s30 + $0x228] sm:$0xff] }
  0xc5   : > { %12242 = vmatprep.mubr.msk.f32.mxu0 %vm666_vm0, %v567_v30  ;;  %v588_v30 = vmul.f32 2.0, %v10094_v25  ;;  %v10096_v31 = vadd.f32 -0.5, %v334_v28  ;;  %v355_v25 = vld [vmem:[%s15210_s30 + $0x2d0] sm:$0xff]  ;;  %v609_v28 = vmul.f32 2.0, %v10115_v23 }
  0xc6   : > { %v10117_v29 = vadd.f32 -0.5, %v355_v25 }
  0xc8   : > { %12243 = vmatmul.mubr.msk.f32.gmra.mrb[46].mxu0 %vm666_vm0, %v568_v34  ;;  %v336_v34 = vld [vmem:[%s15210_s30 + $0x238] sm:$0xff] }
  0xc9   : > { %12245 = vmatprep.mubr.msk.f32.mxu0 %vm666_vm0, %v569_v36  ;;  %v590_v36 = vmul.f32 2.0, %v10096_v31  ;;  %v10098_v37 = vadd.f32 -0.5, %v336_v34  ;;  %v357_v31 = vld [vmem:[%s15210_s30 + $0x2e0] sm:$0xff]  ;;  %v611_v34 = vmul.f32 2.0, %v10117_v29 }
  0xca   : > { %v10119_v35 = vadd.f32 -0.5, %v357_v31 }
  0xcc   : > { %12246 = vmatmul.mubr.msk.f32.gmra.mrb[48].mxu0 %vm666_vm0, %v570_v40  ;;  %v338_v40 = vld [vmem:[%s15210_s30 + $0x248] sm:$0xff] }
  0xcd   : > { %12248 = vmatprep.mubr.msk.f32.mxu0 %vm666_vm0, %v571_v42  ;;  %v592_v42 = vmul.f32 2.0, %v10098_v37  ;;  %v10100_v43 = vadd.f32 -0.5, %v338_v40  ;;  %v359_v37 = vld [vmem:[%s15210_s30 + $0x2f0] sm:$0xff]  ;;  %v613_v40 = vmul.f32 2.0, %v10119_v35 }
  0xce   : > { %v10121_v41 = vadd.f32 -0.5, %v359_v37  ;;  %v379_v35 = vld [vmem:[%s15210_s30 + $0x390] sm:$0xff] }
  0xd0   : > { %12249 = vmatmul.mubr.msk.f32.gmra.mrb[50].mxu0 %vm666_vm0, %v572_v46  ;;  %v340_v46 = vld [vmem:[%s15210_s30 + $0x258] sm:$0xff] }
  0xd1   : > { %12251 = vmatprep.mubr.msk.f32.mxu0 %vm666_vm0, %v573_v48  ;;  %v594_v48 = vmul.f32 2.0, %v10100_v43  ;;  %v10102_v49 = vadd.f32 -0.5, %v340_v46  ;;  %v361_v43 = vld [vmem:[%s15210_s30 + $0x300] sm:$0xff]  ;;  %v615_v46 = vmul.f32 2.0, %v10121_v41  ;;  %v10141_v41 = vadd.f32 -0.5, %v379_v35 }
  0xd2   : > { %v10123_v47 = vadd.f32 -0.5, %v361_v43  ;;  %v381_v43 = vld [vmem:[%s15210_s30 + $0x3a0] sm:$0xff] }
  0xd4   : > { %12252 = vmatmul.mubr.msk.f32.gmra.mrb[52].mxu0 %vm666_vm0, %v574_v52  ;;  %v342_v52 = vld [vmem:[%s15210_s30 + $0x268] sm:$0xff] }
  0xd5   : > { %12254 = vmatprep.mubr.msk.f32.mxu0 %vm666_vm0, %v575_v54  ;;  %v596_v54 = vmul.f32 2.0, %v10102_v49  ;;  %v10104_v55 = vadd.f32 -0.5, %v342_v52  ;;  %v363_v49 = vld [vmem:[%s15210_s30 + $0x310] sm:$0xff]  ;;  %v617_v52 = vmul.f32 2.0, %v10123_v47 }
  0xd6   : > { %v10125_v53 = vadd.f32 -0.5, %v363_v49  ;;  %v10143_v49 = vadd.f32 -0.5, %v381_v43 }
  0xd8   : > { %12255 = vmatmul.mubr.msk.f32.gmra.mrb[54].mxu0 %vm666_vm0, %v576_v58  ;;  %v344_v58 = vld [vmem:[%s15210_s30 + $0x278] sm:$0xff] }
  0xd9   : > { %12257 = vmatprep.mubr.msk.f32.mxu0 %vm666_vm0, %v577_v60  ;;  %v598_v60 = vmul.f32 2.0, %v10104_v55  ;;  %v10106_v61 = vadd.f32 -0.5, %v344_v58  ;;  %v365_v55 = vld [vmem:[%s15210_s30 + $0x320] sm:$0xff]  ;;  %v619_v58 = vmul.f32 2.0, %v10125_v53 }
  0xda   : > { %v10127_v59 = vadd.f32 -0.5, %v365_v55 }
  0xdc   : > { %12258 = vmatmul.mubr.msk.f32.gmra.mrb[56].mxu0 %vm666_vm0, %v578_v0  ;;  %v346_v0 = vld [vmem:[%s15210_s30 + $0x288] sm:$0xff] }
  0xdd   : > { %12260 = vmatprep.mubr.msk.f32.mxu0 %vm666_vm0, %v579_v2  ;;  %v600_v2 = vmul.f32 2.0, %v10106_v61  ;;  %v10108_v3 = vadd.f32 -0.5, %v346_v0  ;;  %v367_v61 = vld [vmem:[%s15210_s30 + $0x330] sm:$0xff]  ;;  %v621_v0 = vmul.f32 2.0, %v10127_v59  ;;  %v385_v59 = vld [vmem:[%s15210_s30 + $0x3c0] sm:$0xff] }
  0xde   : > { %v10129_v1 = vadd.f32 -0.5, %v367_v61 }
  0xe0   : > { %12261 = vmatmul.mubr.msk.f32.gmra.mrb[58].mxu0 %vm666_vm0, %v580_v6  ;;  %v348_v6 = vld [vmem:[%s15210_s30 + $0x298] sm:$0xff] }
  0xe1   : > { %12263 = vmatprep.mubr.msk.f32.mxu0 %vm666_vm0, %v581_v8  ;;  %v602_v8 = vmul.f32 2.0, %v10108_v3  ;;  %v10110_v9 = vadd.f32 -0.5, %v348_v6  ;;  %v369_v3 = vld [vmem:[%s15210_s30 + $0x340] sm:$0xff]  ;;  %v623_v6 = vmul.f32 2.0, %v10129_v1  ;;  %v10147_v1 = vadd.f32 -0.5, %v385_v59 }
  0xe2   : > { %v10131_v7 = vadd.f32 -0.5, %v369_v3  ;;  %v387_v3 = vld [vmem:[%s15210_s30 + $0x3d0] sm:$0xff] }
  0xe4   : > { %12264 = vmatmul.mubr.msk.f32.gmra.mrb[60].mxu0 %vm666_vm0, %v582_v12  ;;  %v350_v12 = vld [vmem:[%s15210_s30 + $0x2a8] sm:$0xff] }
  0xe5   : > { %12266 = vmatprep.mubr.msk.f32.mxu0 %vm666_vm0, %v583_v14  ;;  %v604_v14 = vmul.f32 2.0, %v10110_v9  ;;  %v10112_v15 = vadd.f32 -0.5, %v350_v12  ;;  %v371_v9 = vld [vmem:[%s15210_s30 + $0x350] sm:$0xff]  ;;  %v625_v12 = vmul.f32 2.0, %v10131_v7 }
  0xe6   : > { %v10133_v13 = vadd.f32 -0.5, %v371_v9  ;;  %v10149_v9 = vadd.f32 -0.5, %v387_v3 }
  0xe8   : > { %12267 = vmatmul.mubr.msk.f32.gmra.mrb[62].mxu0 %vm666_vm0, %v584_v18  ;;  %v352_v18 = vld [vmem:[%s15210_s30 + $0x2b8] sm:$0xff] }
  0xe9   : > { %12269 = vmatprep.mubr.msk.f32.mxu0 %vm666_vm0, %v585_v20  ;;  %v606_v20 = vmul.f32 2.0, %v10112_v15  ;;  %v10114_v21 = vadd.f32 -0.5, %v352_v18  ;;  %v373_v15 = vld [vmem:[%s15210_s30 + $0x360] sm:$0xff]  ;;  %v627_v18 = vmul.f32 2.0, %v10133_v13 }
  0xea   : > { %v10135_v19 = vadd.f32 -0.5, %v373_v15 }
  0xec   : > { %12270 = vmatmul.mubr.msk.f32.gmra.mrb[64].mxu0 %vm666_vm0, %v586_v24  ;;  %v354_v24 = vld [vmem:[%s15210_s30 + $0x2c8] sm:$0xff] }
  0xed   : > { %12272 = vmatprep.mubr.msk.f32.mxu0 %vm666_vm0, %v587_v26  ;;  %v608_v26 = vmul.f32 2.0, %v10114_v21  ;;  %v10116_v27 = vadd.f32 -0.5, %v354_v24  ;;  %v375_v21 = vld [vmem:[%s15210_s30 + $0x370] sm:$0xff]  ;;  %v629_v24 = vmul.f32 2.0, %v10135_v19 }
  0xee   : > { %v10137_v25 = vadd.f32 -0.5, %v375_v21  ;;  %v391_v19 = vld [vmem:[%s15210_s30 + $0x3f0] sm:$0xff] }
  0xf0   : > { %12273 = vmatmul.mubr.msk.f32.gmra.mrb[66].mxu0 %vm666_vm0, %v588_v30  ;;  %v356_v30 = vld [vmem:[%s15210_s30 + $0x2d8] sm:$0xff] }
  0xf1   : > { %12275 = vmatprep.mubr.msk.f32.mxu0 %vm666_vm0, %v589_v32  ;;  %v610_v32 = vmul.f32 2.0, %v10116_v27  ;;  %v10118_v33 = vadd.f32 -0.5, %v356_v30  ;;  %v377_v27 = vld [vmem:[%s15210_s30 + $0x380] sm:$0xff] }
  0xf4   : > { %12276 = vmatmul.mubr.msk.f32.gmra.mrb[68].mxu0 %vm666_vm0, %v590_v36  ;;  %v358_v36 = vld [vmem:[%s15210_s30 + $0x2e8] sm:$0xff] }
  0xf5   : > { %12278 = vmatprep.mubr.msk.f32.mxu0 %vm666_vm0, %v591_v38  ;;  %v612_v38 = vmul.f32 2.0, %v10118_v33  ;;  %v10120_v39 = vadd.f32 -0.5, %v358_v36  ;;  %v10139_v33 = vadd.f32 -0.5, %v377_v27 }
  0xf8   : > { %12279 = vmatmul.mubr.msk.f32.gmra.mrb[70].mxu0 %vm666_vm0, %v592_v42  ;;  %v360_v42 = vld [vmem:[%s15210_s30 + $0x2f8] sm:$0xff] }
  0xf9   : > { %12281 = vmatprep.mubr.msk.f32.mxu0 %vm666_vm0, %v593_v44  ;;  %v614_v44 = vmul.f32 2.0, %v10120_v39  ;;  %v10122_v45 = vadd.f32 -0.5, %v360_v42  ;;  %v380_v42 = vld [vmem:[%s15210_s30 + $0x398] sm:$0xff] }
  0xfa   : > { %v10142_v47 = vadd.f32 -0.5, %v380_v42 }
  0xfc   : > { %12282 = vmatmul.mubr.msk.f32.gmra.mrb[72].mxu0 %vm666_vm0, %v594_v48  ;;  %v362_v48 = vld [vmem:[%s15210_s30 + $0x308] sm:$0xff] }
  0xfd   : > { %12284 = vmatprep.mubr.msk.f32.mxu0 %vm666_vm0, %v595_v50  ;;  %v616_v50 = vmul.f32 2.0, %v10122_v45  ;;  %v10124_v51 = vadd.f32 -0.5, %v362_v48  ;;  %v635_v48 = vmul.f32 2.0, %v10141_v41 }
 0x100   : > { %12285 = vmatmul.mubr.msk.f32.gmra.mrb[74].mxu0 %vm666_vm0, %v596_v54  ;;  %v364_v54 = vld [vmem:[%s15210_s30 + $0x318] sm:$0xff] }
 0x101   : > { %12287 = vmatprep.mubr.msk.f32.mxu0 %vm666_vm0, %v597_v56  ;;  %v618_v56 = vmul.f32 2.0, %v10124_v51  ;;  %v10126_v57 = vadd.f32 -0.5, %v364_v54  ;;  %v383_v51 = vld [vmem:[%s15210_s30 + $0x3b0] sm:$0xff]  ;;  %v636_v54 = vmul.f32 2.0, %v10142_v47 }
 0x104   : > { %12288 = vmatmul.mubr.msk.f32.gmra.mrb[76].mxu0 %vm666_vm0, %v598_v60  ;;  %v366_v60 = vld [vmem:[%s15210_s30 + $0x328] sm:$0xff] }
 0x105   : > { %12290 = vmatprep.mubr.msk.f32.mxu0 %vm666_vm0, %v599_v62  ;;  %v620_v62 = vmul.f32 2.0, %v10126_v57  ;;  %v10128_v63 = vadd.f32 -0.5, %v366_v60  ;;  %v10145_v57 = vadd.f32 -0.5, %v383_v51  ;;  %v15550_v51 = vld [vmem:[#allocation3] ss:$0 sm:$0xff] }
 0x108   : > { %12291 = vmatmul.mubr.msk.f32.gmra.mrb[78].mxu0 %vm666_vm0, %v600_v2  ;;  %v368_v2 = vld [vmem:[%s15210_s30 + $0x338] sm:$0xff] }
 0x109   : > { %12293 = vmatprep.mubr.msk.f32.mxu0 %vm666_vm0, %v601_v4  ;;  %v622_v4 = vmul.f32 2.0, %v10128_v63  ;;  %v10130_v5 = vadd.f32 -0.5, %v368_v2  ;;  %v386_v2 = vld [vmem:[%s15210_s30 + $0x3c8] sm:$0xff] }
 0x10a   : > { %v10148_v7 = vadd.f32 -0.5, %v386_v2 }
 0x10c   : > { %12294 = vmatmul.mubr.msk.f32.gmra.mrb[80].mxu0 %vm666_vm0, %v602_v8  ;;  %v370_v8 = vld [vmem:[%s15210_s30 + $0x348] sm:$0xff] }
 0x10d   : > { %12296 = vmatprep.mubr.msk.f32.mxu0 %vm666_vm0, %v603_v10  ;;  %v624_v10 = vmul.f32 2.0, %v10130_v5  ;;  %v10132_v11 = vadd.f32 -0.5, %v370_v8  ;;  %v641_v8 = vmul.f32 2.0, %v10147_v1 }
 0x110   : > { %12297 = vmatmul.mubr.msk.f32.gmra.mrb[82].mxu0 %vm666_vm0, %v604_v14  ;;  %v372_v14 = vld [vmem:[%s15210_s30 + $0x358] sm:$0xff] }
 0x111   : > { %12299 = vmatprep.mubr.msk.f32.mxu0 %vm666_vm0, %v605_v16  ;;  %v626_v16 = vmul.f32 2.0, %v10132_v11  ;;  %v10134_v17 = vadd.f32 -0.5, %v372_v14  ;;  %v389_v11 = vld [vmem:[%s15210_s30 + $0x3e0] sm:$0xff]  ;;  %v642_v14 = vmul.f32 2.0, %v10148_v7 }
 0x114   : > { %12300 = vmatmul.mubr.msk.f32.gmra.mrb[84].mxu0 %vm666_vm0, %v606_v20  ;;  %v374_v20 = vld [vmem:[%s15210_s30 + $0x368] sm:$0xff] }
 0x115   : > { %12302 = vmatprep.mubr.msk.f32.mxu0 %vm666_vm0, %v607_v22  ;;  %v628_v22 = vmul.f32 2.0, %v10134_v17  ;;  %v10136_v23 = vadd.f32 -0.5, %v374_v20  ;;  %v10151_v17 = vadd.f32 -0.5, %v389_v11 }
 0x117   : > { %v630_v30 = vmul.f32 2.0, %v10136_v23 }
 0x118   : > { %12303 = vmatmul.mubr.msk.f32.gmra.mrb[86].mxu0 %vm666_vm0, %v608_v26  ;;  %v376_v26 = vld [vmem:[%s15210_s30 + $0x378] sm:$0xff] }
 0x119   : > { %12305 = vmatprep.mubr.msk.f32.mxu0 %vm666_vm0, %v609_v28  ;;  %v10138_v31 = vadd.f32 -0.5, %v376_v26  ;;  %v392_v26 = vld [vmem:[%s15210_s30 + $0x3f8] sm:$0xff] }
 0x11c   : > { %12306 = vmatmul.mubr.msk.f32.gmra.mrb[88].mxu0 %vm666_vm0, %v610_v32  ;;  %v631_v32 = vmul.f32 2.0, %v10137_v25  ;;  %v10153_v25 = vadd.f32 -0.5, %v391_v19 }
 0x11d   : > { %12308 = vmatprep.mubr.msk.f32.mxu0 %vm666_vm0, %v611_v34  ;;  %v378_v34 = vld [vmem:[%s15210_s30 + $0x388] sm:$0xff] }
 0x11e   : > { %v10140_v39 = vadd.f32 -0.5, %v378_v34 }
 0x120   : > { %12309 = vmatmul.mubr.msk.f32.gmra.mrb[90].mxu0 %vm666_vm0, %v612_v38  ;;  %v632_v38 = vmul.f32 2.0, %v10138_v31 }
 0x121   : > { %12311 = vmatprep.mubr.msk.f32.mxu0 %vm666_vm0, %v613_v40  ;;  %v633_v40 = vmul.f32 2.0, %v10139_v33  ;;  %v647_v33 = vmul.f32 2.0, %v10153_v25 }
 0x124   : > { %12312 = vmatmul.mubr.msk.f32.gmra.mrb[92].mxu0 %vm666_vm0, %v614_v44 }
 0x125   : > { %12314 = vmatprep.mubr.msk.f32.mxu0 %vm666_vm0, %v615_v46  ;;  %v634_v46 = vmul.f32 2.0, %v10140_v39 }
 0x128   : > { %12315 = vmatmul.mubr.msk.f32.gmra.mrb[94].mxu0 %vm666_vm0, %v616_v50  ;;  %v382_v50 = vld [vmem:[%s15210_s30 + $0x3a8] sm:$0xff] }
 0x129   : > { %12317 = vmatprep.mubr.msk.f32.mxu0 %vm666_vm0, %v617_v52  ;;  %v10144_v55 = vadd.f32 -0.5, %v382_v50 }
 0x12c   : > { %12318 = vmatmul.mubr.msk.f32.gmra.mrb[96].mxu0 %vm666_vm0, %v618_v56  ;;  %v637_v56 = vmul.f32 2.0, %v10143_v49 }
 0x12d   : > { %12320 = vmatprep.mubr.msk.f32.mxu0 %vm666_vm0, %v619_v58  ;;  %v384_v58 = vld [vmem:[%s15210_s30 + $0x3b8] sm:$0xff] }
 0x12e   : > { %v10146_v63 = vadd.f32 -0.5, %v384_v58 }
 0x130   : > { %12321 = vmatmul.mubr.msk.f32.gmra.mrb[98].mxu0 %vm666_vm0, %v620_v62  ;;  %v638_v62 = vmul.f32 2.0, %v10144_v55 }
 0x131   : > { %12323 = vmatprep.mubr.msk.f32.mxu0 %vm666_vm0, %v621_v0  ;;  %v639_v0 = vmul.f32 2.0, %v10145_v57 }
 0x134   : > { %12324 = vmatmul.mubr.msk.f32.gmra.mrb[100].mxu0 %vm666_vm0, %v622_v4 }
 0x135   : > { %12326 = vmatprep.mubr.msk.f32.mxu0 %vm666_vm0, %v623_v6  ;;  %v640_v6 = vmul.f32 2.0, %v10146_v63 }
 0x138   : > { %12327 = vmatmul.mubr.msk.f32.gmra.mrb[102].mxu0 %vm666_vm0, %v624_v10  ;;  %v388_v10 = vld [vmem:[%s15210_s30 + $0x3d8] sm:$0xff] }
 0x139   : > { %12329 = vmatprep.mubr.msk.f32.mxu0 %vm666_vm0, %v625_v12  ;;  %v10150_v15 = vadd.f32 -0.5, %v388_v10 }
 0x13c   : > { %12330 = vmatmul.mubr.msk.f32.gmra.mrb[104].mxu0 %vm666_vm0, %v626_v16  ;;  %v643_v16 = vmul.f32 2.0, %v10149_v9 }
 0x13d   : > { %12332 = vmatprep.mubr.msk.f32.mxu0 %vm666_vm0, %v627_v18  ;;  %v390_v18 = vld [vmem:[%s15210_s30 + $0x3e8] sm:$0xff] }
 0x13e   : > { %v10152_v23 = vadd.f32 -0.5, %v390_v18 }
 0x13f   : > { %v15454_v28 = vpop.f32.mrb[0].mxu0 }
 0x140   : > { %v15456_v29 = vpop.f32.mrb[1].mxu0  ;;  %12333 = vmatmul.mubr.msk.f32.gmra.mrb[106].mxu0 %vm666_vm0, %v628_v22  ;;  %v644_v22 = vmul.f32 2.0, %v10150_v15  ;;  %v646_v31 = vmul.f32 2.0, %v10152_v23 }
 0x141   : > { %12335 = vmatprep.mubr.msk.f32.mxu0 %vm666_vm0, %v629_v24  ;;  %v645_v24 = vmul.f32 2.0, %v10151_v17  ;;  %v1122_v57 = vadd.f32 %v15550_v51, %v15456_v29 }
 0x143   : > { %v15462_v36 = vpop.f32.mrb[2].mxu0  ;;  %v1760_v3 = vmax.f32 %v1122_v57, 0.0 }
 0x144   : > { %v15464_v37 = vpop.f32.mrb[3].mxu0  ;;  %12336 = vmatmul.mubr.msk.f32.gmra.mrb[108].mxu0 %vm666_vm0, %v630_v30  ;;  %v15563_v63 = vadd.f32 %v15462_v36, %v15550_v51 }
 0x145   : > { %12338 = vmatprep.mubr.msk.f32.mxu0 %vm666_vm0, %v631_v32  ;;  %v10154_v32 = vadd.f32 -0.5, %v392_v26 }
 0x146   : > { %v1763_v36 = vmax.f32 %v15563_v63, 0.0 }
 0x147   : > { %v15470_v44 = vpop.f32.mrb[4].mxu0 }
 0x148   : > { %v15472_v45 = vpop.f32.mrb[5].mxu0  ;;  %12339 = vmatmul.mubr.msk.f32.gmra.mrb[110].mxu0 %vm666_vm0, %v632_v38  ;;  %v648_v38 = vmul.f32 2.0, %v10154_v32  ;;  %v15578_v10 = vadd.f32 %v15470_v44, %v15550_v51  ;;  %v15046_v44 = vmov 0.0  }
 0x149   : > { %12341 = vmatprep.mubr.msk.f32.mxu0 %vm666_vm0, %v633_v40  ;;  %1990 = vst.msk [vmem:[#allocation2 + $0x20] sm:$0xff] %vm1984_vm4, %v15046_v44  ;;  %1985 = vst.msk [vmem:[#allocation2] sm:$0xff] %vm1984_vm4, %v15046_v44 }
 0x14a   : > { %1991 = vst.msk [vmem:[#allocation2 + $0x28] sm:$0x3] %vm1986_vm5, %v15046_v44  ;;  %1987 = vst.msk [vmem:[#allocation2 + $0x8] sm:$0x3] %vm1986_vm5, %v15046_v44  ;;  %v1765_v25 = vmax.f32 %v15578_v10, 0.0 }
 0x14b   : > { %v15478_v52 = vpop.f32.mrb[6].mxu0  ;;  %1988 = vst.msk [vmem:[#allocation2 + $0x10] sm:$0xff] %vm1984_vm4, %v15046_v44  ;;  %1992 = vst.msk [vmem:[#allocation2 + $0x30] sm:$0xff] %vm1984_vm4, %v15046_v44 }
 0x14c   : > { %v15480_v53 = vpop.f32.mrb[7].mxu0  ;;  %12342 = vmatmul.mubr.msk.f32.gmra.mrb[112].mxu0 %vm666_vm0, %v634_v46  ;;  %1989 = vst.msk [vmem:[#allocation2 + $0x18] sm:$0x3] %vm1986_vm5, %v15046_v44  ;;  %1993 = vst.msk [vmem:[#allocation2 + $0x38] sm:$0x3] %vm1986_vm5, %v15046_v44  ;;  %v1157_v26 = vadd.f32 %v15478_v52, %v15550_v51 }
 0x14d   : > { %12344 = vmatprep.mubr.msk.f32.mxu0 %vm666_vm0, %v635_v48  ;;  %1994 = vst.msk [vmem:[#allocation2 + $0x40] sm:$0xff] %vm1984_vm4, %v15046_v44  ;;  %1996 = vst.msk [vmem:[#allocation2 + $0x50] sm:$0xff] %vm1984_vm4, %v15046_v44 }
 0x14e   : > { %1995 = vst.msk [vmem:[#allocation2 + $0x48] sm:$0x3] %vm1986_vm5, %v15046_v44  ;;  %1997 = vst.msk [vmem:[#allocation2 + $0x58] sm:$0x3] %vm1986_vm5, %v15046_v44 }
 0x14f   : > { %v15486_v60 = vpop.f32.mrb[8].mxu0  ;;  %1998 = vst.msk [vmem:[#allocation2 + $0x60] sm:$0xff] %vm1984_vm4, %v15046_v44  ;;  %2000 = vst.msk [vmem:[#allocation2 + $0x70] sm:$0xff] %vm1984_vm4, %v15046_v44 }
 0x150   : > { %v15488_v61 = vpop.f32.mrb[9].mxu0  ;;  %12345 = vmatmul.mubr.msk.f32.gmra.mrb[114].mxu0 %vm666_vm0, %v636_v54  ;;  %1999 = vst.msk [vmem:[#allocation2 + $0x68] sm:$0x3] %vm1986_vm5, %v15046_v44  ;;  %2001 = vst.msk [vmem:[#allocation2 + $0x78] sm:$0x3] %vm1986_vm5, %v15046_v44  ;;  %v1167_v52 = vadd.f32 %v15486_v60, %v15550_v51 }
 0x151   : > { %12347 = vmatprep.mubr.msk.f32.mxu0 %vm666_vm0, %v637_v56  ;;  %v1127_v56 = vadd.f32 %v15454_v28, %v15550_v51  ;;  %2002 = vst.msk [vmem:[#allocation2 + $0x80] sm:$0xff] %vm1984_vm4, %v15046_v44  ;;  %2004 = vst.msk [vmem:[#allocation2 + $0x90] sm:$0xff] %vm1984_vm4, %v15046_v44 }
 0x152   : > { %2003 = vst.msk [vmem:[#allocation2 + $0x88] sm:$0x3] %vm1986_vm5, %v15046_v44  ;;  %2005 = vst.msk [vmem:[#allocation2 + $0x98] sm:$0x3] %vm1986_vm5, %v15046_v44  ;;  %v1769_v10 = vmax.f32 %v1167_v52, 0.0 }
 0x153   : > { %v15494_v4 = vpop.f32.mrb[10].mxu0  ;;  %v1761_v1 = vmax.f32 %v1127_v56, 0.0  ;;  %2006 = vst.msk [vmem:[#allocation2 + $0xa0] sm:$0xff] %vm1984_vm4, %v15046_v44  ;;  %2008 = vst.msk [vmem:[#allocation2 + $0xb0] sm:$0xff] %vm1984_vm4, %v15046_v44 }
 0x154   : > { %v15496_v5 = vpop.f32.mrb[11].mxu0  ;;  %12348 = vmatmul.mubr.msk.f32.gmra.mrb[116].mxu0 %vm666_vm0, %v638_v62  ;;  %2007 = vst.msk [vmem:[#allocation2 + $0xa8] sm:$0x3] %vm1986_vm5, %v15046_v44  ;;  %2009 = vst.msk [vmem:[#allocation2 + $0xb8] sm:$0x3] %vm1986_vm5, %v15046_v44  ;;  %v1177_v60 = vadd.f32 %v15494_v4, %v15550_v51 }
 0x155   : > { %12350 = vmatprep.mubr.msk.f32.mxu0 %vm666_vm0, %v639_v0  ;;  %2010 = vst.msk [vmem:[#allocation2 + $0xc0] sm:$0xff] %vm1984_vm4, %v15046_v44  ;;  %2012 = vst.msk [vmem:[#allocation2 + $0xd0] sm:$0xff] %vm1984_vm4, %v15046_v44 }
 0x156   : > { %2011 = vst.msk [vmem:[#allocation2 + $0xc8] sm:$0x3] %vm1986_vm5, %v15046_v44  ;;  %2013 = vst.msk [vmem:[#allocation2 + $0xd8] sm:$0x3] %vm1986_vm5, %v15046_v44 }
 0x157   : > { %v15502_v12 = vpop.f32.mrb[12].mxu0  ;;  %2014 = vst.msk [vmem:[#allocation2 + $0xe0] sm:$0xff] %vm1984_vm4, %v15046_v44  ;;  %2016 = vst.msk [vmem:[#allocation2 + $0xf0] sm:$0xff] %vm1984_vm4, %v15046_v44 }
 0x158   : > { %v15504_v13 = vpop.f32.mrb[13].mxu0  ;;  %12351 = vmatmul.mubr.msk.f32.gmra.mrb[118].mxu0 %vm666_vm0, %v640_v6  ;;  %v15568_v6 = vadd.f32 %v15550_v51, %v15464_v37  ;;  %2015 = vst.msk [vmem:[#allocation2 + $0xe8] sm:$0x3] %vm1986_vm5, %v15046_v44  ;;  %2017 = vst.msk [vmem:[#allocation2 + $0xf8] sm:$0x3] %vm1986_vm5, %v15046_v44  ;;  %v1187_v4 = vadd.f32 %v15502_v12, %v15550_v51 }
 0x159   : > { %12353 = vmatprep.mubr.msk.f32.mxu0 %vm666_vm0, %v641_v8  ;;  %2018 = vst.msk [vmem:[#allocation2 + $0x100] sm:$0xff] %vm1984_vm4, %v15046_v44  ;;  %2020 = vst.msk [vmem:[#allocation2 + $0x110] sm:$0xff] %vm1984_vm4, %v15046_v44 }
 0x15a   : > { %v1762_v15 = vmax.f32 %v15568_v6, 0.0  ;;  %2019 = vst.msk [vmem:[#allocation2 + $0x108] sm:$0x3] %vm1986_vm5, %v15046_v44  ;;  %2021 = vst.msk [vmem:[#allocation2 + $0x118] sm:$0x3] %vm1986_vm5, %v15046_v44 }
 0x15b   : > { %v15510_v20 = vpop.f32.mrb[14].mxu0  ;;  %2022 = vst.msk [vmem:[#allocation2 + $0x120] sm:$0xff] %vm1984_vm4, %v15046_v44  ;;  %2024 = vst.msk [vmem:[#allocation2 + $0x130] sm:$0xff] %vm1984_vm4, %v15046_v44 }
 0x15c   : > { %v15512_v21 = vpop.f32.mrb[15].mxu0  ;;  %12354 = vmatmul.mubr.msk.f32.gmra.mrb[120].mxu0 %vm666_vm0, %v642_v14  ;;  %2023 = vst.msk [vmem:[#allocation2 + $0x128] sm:$0x3] %vm1986_vm5, %v15046_v44  ;;  %2025 = vst.msk [vmem:[#allocation2 + $0x138] sm:$0x3] %vm1986_vm5, %v15046_v44 }
 0x15d   : > { %12356 = vmatprep.mubr.msk.f32.mxu0 %vm666_vm0, %v643_v16  ;;  %v15589_v16 = vadd.f32 %v15550_v51, %v15472_v45  ;;  %2026 = vst.msk [vmem:[#allocation2 + $0x140] sm:$0xff] %vm1984_vm4, %v15046_v44  ;;  %2028 = vst.msk [vmem:[#allocation2 + $0x150] sm:$0xff] %vm1984_vm4, %v15046_v44 }
 0x15e   : > { %2027 = vst.msk [vmem:[#allocation2 + $0x148] sm:$0x3] %vm1986_vm5, %v15046_v44  ;;  %2029 = vst.msk [vmem:[#allocation2 + $0x158] sm:$0x3] %vm1986_vm5, %v15046_v44 }
 0x15f   : > { %v15517_v27 = vpop.f32.mrb[16].mxu0  ;;  %2030 = vst.msk [vmem:[#allocation2 + $0x160] sm:$0xff] %vm1984_vm4, %v15046_v44  ;;  %2032 = vst.msk [vmem:[#allocation2 + $0x170] sm:$0xff] %vm1984_vm4, %v15046_v44  ;;  %v1764_v32 = vmax.f32 %v15589_v16, 0.0 }
 0x160   : > { %v15519_v30 = vpop.f32.mrb[17].mxu0  ;;  %12357 = vmatmul.mubr.msk.f32.gmra.mrb[122].mxu0 %vm666_vm0, %v644_v22  ;;  %2031 = vst.msk [vmem:[#allocation2 + $0x168] sm:$0x3] %vm1986_vm5, %v15046_v44  ;;  %2033 = vst.msk [vmem:[#allocation2 + $0x178] sm:$0x3] %vm1986_vm5, %v15046_v44 }
 0x161   : > { %12359 = vmatprep.mubr.msk.f32.mxu0 %vm666_vm0, %v645_v24  ;;  %2034 = vst.msk [vmem:[#allocation2 + $0x180] sm:$0xff] %vm1984_vm4, %v15046_v44  ;;  %2036 = vst.msk [vmem:[#allocation2 + $0x190] sm:$0xff] %vm1984_vm4, %v15046_v44 }
 0x162   : > { %2035 = vst.msk [vmem:[#allocation2 + $0x188] sm:$0x3] %vm1986_vm5, %v15046_v44  ;;  %2037 = vst.msk [vmem:[#allocation2 + $0x198] sm:$0x3] %vm1986_vm5, %v15046_v44 }
 0x163   : > { %v15523_v34 = vpop.f32.mrb[18].mxu0  ;;  %2038 = vst.msk [vmem:[#allocation2 + $0x1a0] sm:$0xff] %vm1984_vm4, %v15046_v44  ;;  %2040 = vst.msk [vmem:[#allocation2 + $0x1b0] sm:$0xff] %vm1984_vm4, %v15046_v44 }
 0x164   : > { %v15525_v35 = vpop.f32.mrb[19].mxu0  ;;  %12360 = vmatmul.mubr.msk.f32.gmra.mrb[124].mxu0 %vm666_vm0, %v646_v31  ;;  %2039 = vst.msk [vmem:[#allocation2 + $0x1a8] sm:$0x3] %vm1986_vm5, %v15046_v44  ;;  %2041 = vst.msk [vmem:[#allocation2 + $0x1b8] sm:$0x3] %vm1986_vm5, %v15046_v44 }
 0x165   : > { %12362 = vmatprep.mubr.msk.f32.mxu0 %vm666_vm0, %v647_v33  ;;  %2042 = vst.msk [vmem:[#allocation2 + $0x1c0] sm:$0xff] %vm1984_vm4, %v15046_v44  ;;  %2044 = vst.msk [vmem:[#allocation2 + $0x1d0] sm:$0xff] %vm1984_vm4, %v15046_v44  ;;  %v1152_v33 = vadd.f32 %v15550_v51, %v15480_v53  ;;  %v1162_v53 = vadd.f32 %v15550_v51, %v15488_v61  ;;  %v1172_v61 = vadd.f32 %v15550_v51, %v15496_v5 }
 0x166   : > { %2043 = vst.msk [vmem:[#allocation2 + $0x1c8] sm:$0x3] %vm1986_vm5, %v15046_v44  ;;  %2045 = vst.msk [vmem:[#allocation2 + $0x1d8] sm:$0x3] %vm1986_vm5, %v15046_v44 }
 0x167   : > { %v15529_v39 = vpop.f32.mrb[20].mxu0  ;;  %2046 = vst.msk [vmem:[#allocation2 + $0x1e0] sm:$0xff] %vm1984_vm4, %v15046_v44  ;;  %2048 = vst.msk [vmem:[#allocation2 + $0x1f0] sm:$0xff] %vm1984_vm4, %v15046_v44  ;;  %v1770_v5 = vmax.f32 %v1172_v61, 0.0 }
 0x168   : > { %v15531_v40 = vpop.f32.mrb[21].mxu0  ;;  %12363 = vmatmul.mubr.msk.f32.gmra.mrb[126].mxu0 %vm666_vm0, %v648_v38  ;;  %2047 = vst.msk [vmem:[#allocation2 + $0x1e8] sm:$0x3] %vm1986_vm5, %v15046_v44  ;;  %2049 = vst.msk [vmem:[#allocation2 + $0x1f8] sm:$0x3] %vm1986_vm5, %v15046_v44 }
 0x169   : > { %2050 = vst.msk [vmem:[#allocation2 + $0x200] sm:$0xff] %vm1984_vm4, %v15046_v44  ;;  %2052 = vst.msk [vmem:[#allocation2 + $0x210] sm:$0xff] %vm1984_vm4, %v15046_v44 }
 0x16a   : > { %2051 = vst.msk [vmem:[#allocation2 + $0x208] sm:$0x3] %vm1986_vm5, %v15046_v44  ;;  %2053 = vst.msk [vmem:[#allocation2 + $0x218] sm:$0x3] %vm1986_vm5, %v15046_v44 }
 0x16b   : > { %v15534_v41 = vpop.f32.mrb[22].mxu0  ;;  %2054 = vst.msk [vmem:[#allocation2 + $0x220] sm:$0xff] %vm1984_vm4, %v15046_v44  ;;  %2056 = vst.msk [vmem:[#allocation2 + $0x230] sm:$0xff] %vm1984_vm4, %v15046_v44 }
 0x16c   : > { %v15536_v42 = vpop.f32.mrb[23].mxu0  ;;  %2055 = vst.msk [vmem:[#allocation2 + $0x228] sm:$0x3] %vm1986_vm5, %v15046_v44  ;;  %2057 = vst.msk [vmem:[#allocation2 + $0x238] sm:$0x3] %vm1986_vm5, %v15046_v44 }
 0x16d   : > { %2058 = vst.msk [vmem:[#allocation2 + $0x240] sm:$0xff] %vm1984_vm4, %v15046_v44  ;;  %2060 = vst.msk [vmem:[#allocation2 + $0x250] sm:$0xff] %vm1984_vm4, %v15046_v44 }
 0x16e   : > { %2059 = vst.msk [vmem:[#allocation2 + $0x248] sm:$0x3] %vm1986_vm5, %v15046_v44  ;;  %2061 = vst.msk [vmem:[#allocation2 + $0x258] sm:$0x3] %vm1986_vm5, %v15046_v44 }
 0x16f   : > { %v15538_v43 = vpop.f32.mrb[24].mxu0  ;;  %2062 = vst.msk [vmem:[#allocation2 + $0x260] sm:$0xff] %vm1984_vm4, %v15046_v44  ;;  %2064 = vst.msk [vmem:[#allocation2 + $0x270] sm:$0xff] %vm1984_vm4, %v15046_v44 }
 0x170   : > { %v15540_v46 = vpop.f32.mrb[25].mxu0  ;;  %2063 = vst.msk [vmem:[#allocation2 + $0x268] sm:$0x3] %vm1986_vm5, %v15046_v44  ;;  %2065 = vst.msk [vmem:[#allocation2 + $0x278] sm:$0x3] %vm1986_vm5, %v15046_v44 }
 0x173   : > { %v15542_v47 = vpop.f32.mrb[26].mxu0 }
 0x174   : > { %v15544_v48 = vpop.f32.mrb[27].mxu0 }
 0x177   : > { %v15546_v49 = vpop.f32.mrb[28].mxu0 }
 0x178   : > { %v15548_v50 = vpop.f32.mrb[29].mxu0 }
 0x17b   : > { %v15552_v54 = vpop.f32.mrb[30].mxu0 }
 0x17c   : > { %v15554_v55 = vpop.f32.mrb[31].mxu0 }
 0x17f   : > { %v12223_v58 = vpop.f32.mrb[32].mxu0 }
 0x180   : > { %v1287_v59 = vadd.f32 %v12223_v58, %v15550_v51  ;;  %v1281_v62 = vpop.f32.mrb[33].mxu0 }
 0x181   : > { %v1282_v0 = vadd.f32 %v15550_v51, %v1281_v62 }
 0x182   : > { %v1793_v2 = vmax.f32 %v1287_v59, 0.0 }
 0x183   : > { %v1792_v28 = vmax.f32 %v1282_v0, 0.0  ;;  %v12226_v7 = vpop.f32.mrb[34].mxu0  ;;  %v1767_v0 = vmax.f32 %v1157_v26, 0.0  ;;  %v2158_v26 = vld [vmem:[#allocation5 + $0x20] sm:$0xff] }
 0x184   : > { %v15570_v29 = vmax.f32 %v1761_v1, %v1793_v2  ;;  %v15573_v8 = vadd.f32 %v12226_v7, %v15550_v51  ;;  %v1291_v9 = vpop.f32.mrb[35].mxu0  ;;  %v1766_v2 = vmax.f32 %v1152_v33, 0.0 }
 0x185   : > { %v15580_v11 = vmax.f32 %v1760_v3, %v1792_v28  ;;  %v15583_v14 = vadd.f32 %v15550_v51, %v1291_v9 }
 0x186   : > { %v1795_v37 = vmax.f32 %v15573_v8, 0.0 }
 0x187   : > { %v1794_v17 = vmax.f32 %v15583_v14, 0.0  ;;  %v15592_v18 = vpop.f32.mrb[36].mxu0 }
 0x188   : > { %v15758_v45 = vmax.f32 %v1763_v36, %v1795_v37  ;;  %v1307_v19 = vadd.f32 %v15592_v18, %v15550_v51  ;;  %v1301_v22 = vpop.f32.mrb[37].mxu0  ;;  %v1768_v37 = vmax.f32 %v1162_v53, 0.0  ;;  %v2160_v53 = vld [vmem:[#allocation5 + $0x30] sm:$0xff] }
 0x189   : > { %v15766_v23 = vmax.f32 %v1762_v15, %v1794_v17  ;;  %v1302_v24 = vadd.f32 %v15550_v51, %v1301_v22 }
 0x18a   : > { %v1797_v31 = vmax.f32 %v1307_v19, 0.0 }
 0x18b   : > { %v1796_v38 = vmax.f32 %v1302_v24, 0.0  ;;  %v12232_v56 = vpop.f32.mrb[38].mxu0  ;;  %v1771_v24 = vmax.f32 %v1177_v60, 0.0 }
 0x18c   : > { %v15775_v57 = vmax.f32 %v1765_v25, %v1797_v31  ;;  %v1317_v58 = vadd.f32 %v12232_v56, %v15550_v51  ;;  %v1311_v59 = vpop.f32.mrb[39].mxu0  ;;  %v2159_v31 = vld [vmem:[#allocation5 + $0x28] sm:$0xff] }
 0x18d   : > { %v15778_v62 = vmax.f32 %v1764_v32, %v1796_v38  ;;  %v1312_v63 = vadd.f32 %v15550_v51, %v1311_v59  ;;  %v1182_v32 = vadd.f32 %v15550_v51, %v15504_v13  ;;  %v13787_v56 = vpack.c.bf16 %v2159_v31, %v2158_v26  ;;  %v5285_v26 = vld [vmem:[#allocation5 + $0x148] sm:$0xff] }
 0x18e   : > { %v1799_v1 = vmax.f32 %v1317_v58, 0.0  ;;  %v1773_v13 = vmax.f32 %v1187_v4, 0.0  ;;  %v2111_v4 = vld [vmem:[#allocation2 + $0xa0] sm:$0xff] }
 0x18f   : > { %v1798_v3 = vmax.f32 %v1312_v63, 0.0  ;;  %v12235_v6 = vpop.f32.mrb[40].mxu0  ;;  %13788 = vmatprep.subr.bf16.mxu0 %v13787_v56  ;;  %12373 = vmatprep.mubr.msk.f32.mxu0 %vm1984_vm4, %v2111_v4  ;;  %v1237_v4 = vadd.f32 %v15534_v41, %v15550_v51  ;;  %v1247_v41 = vadd.f32 %v15538_v43, %v15550_v51  ;;  %v1257_v43 = vadd.f32 %v15542_v47, %v15550_v51 }
 0x190   : > { %v15785_v28 = vmax.f32 %v1767_v0, %v1799_v1  ;;  %v1327_v7 = vadd.f32 %v12235_v6, %v15550_v51  ;;  %v1321_v8 = vpop.f32.mrb[41].mxu0  ;;  %v1197_v1 = vadd.f32 %v15510_v20, %v15550_v51  ;;  %13790 = vmatpush3.bf16.msra.mxu0 %v13787_v56  ;;  %v1772_v6 = vmax.f32 %v1182_v32, 0.0 }
 0x191   : > { %v15788_v9 = vmax.f32 %v1766_v2, %v1798_v3  ;;  %v1322_v36 = vadd.f32 %v15550_v51, %v1321_v8  ;;  %v2161_v3 = vld [vmem:[#allocation5 + $0x38] sm:$0x3f] }
 0x192   : > { %v1801_v14 = vmax.f32 %v1327_v7, 0.0  ;;  %v1192_v7 = vadd.f32 %v15550_v51, %v15512_v21 }
 0x193   : > { %v1800_v15 = vmax.f32 %v1322_v36, 0.0  ;;  %v12238_v16 = vpop.f32.mrb[42].mxu0 }
 0x194   : > { %v15795_v17 = vmax.f32 %v1769_v10, %v1801_v14  ;;  %v1337_v18 = vadd.f32 %v12238_v16, %v15550_v51  ;;  %v1331_v44 = vpop.f32.mrb[43].mxu0  ;;  %v13791_v10 = vpack.c.bf16 %v2161_v3, %v2160_v53  ;;  %v1207_v16 = vadd.f32 %v15517_v27, %v15550_v51  ;;  %v5287_v53 = vld [vmem:[#allocation5 + $0x158] sm:$0x3f] }
 0x195   : > { %v15798_v19 = vmax.f32 %v1768_v37, %v1800_v15  ;;  %v1332_v22 = vadd.f32 %v15550_v51, %v1331_v44  ;;  %v1775_v15 = vmax.f32 %v1197_v1, 0.0  ;;  %v1202_v44 = vadd.f32 %v15550_v51, %v15519_v30 }
 0x196   : > { %v1803_v25 = vmax.f32 %v1337_v18, 0.0  ;;  %13793 = vmatprep.subr.msk.bf16.mxu0 %vm15813_vm7, %v13791_v10  ;;  %v1774_v18 = vmax.f32 %v1192_v7, 0.0  ;;  %v1777_v56 = vmax.f32 %v1207_v16, 0.0  ;;  %v1217_v30 = vadd.f32 %v15523_v34, %v15550_v51 }
 0x197   : > { %v1802_v33 = vmax.f32 %v1332_v22, 0.0  ;;  %v12241_v38 = vpop.f32.mrb[44].mxu0  ;;  %13796 = vmatpush3.bf16.msk.msra.mxu0 %vm15813_vm7, %v13791_v10 }
 0x198   : > { %v15805_v58 = vmax.f32 %v1771_v24, %v1803_v25  ;;  %v1347_v59 = vadd.f32 %v12241_v38, %v15550_v51  ;;  %v1341_v63 = vpop.f32.mrb[45].mxu0  ;;  %v5284_v25 = vld [vmem:[#allocation5 + $0x140] sm:$0xff]  ;;  %v1779_v10 = vmax.f32 %v1217_v30, 0.0 }
 0x199   : > { %v15808_v0 = vmax.f32 %v1770_v5, %v1802_v33  ;;  %v1342_v52 = vadd.f32 %v15550_v51, %v1341_v63  ;;  %v15839_v27 = vpack.c.bf16 %v5285_v26, %v5284_v25  ;;  %v1776_v63 = vmax.f32 %v1202_v44, 0.0 }
 0x19a   : > { %v1805_v2 = vmax.f32 %v1347_v59, 0.0  ;;  %v1232_v26 = vadd.f32 %v15550_v51, %v15536_v42  ;;  %v1242_v42 = vadd.f32 %v15550_v51, %v15540_v46 }
 0x19b   : > { %v1804_v8 = vmax.f32 %v1342_v52, 0.0  ;;  %v12244_v36 = vpop.f32.mrb[46].mxu0  ;;  %18323 = vst [vmem:[#allocation10_spill] sm:$0xff] %v15839_v27  ;;  %14037 = vmatprep.subr.bf16.mxu1 %v15839_v27  ;;  %v1212_v52 = vadd.f32 %v15550_v51, %v15525_v35  ;;  %v1227_v35 = vadd.f32 %v15529_v39, %v15550_v51 }
 0x19c   : > { %v15821_v60 = vmax.f32 %v1773_v13, %v1805_v2  ;;  %v1357_v14 = vadd.f32 %v12244_v36, %v15550_v51  ;;  %v1351_v37 = vpop.f32.mrb[47].mxu0  ;;  %14039 = vmatpush3.bf16.msra.mxu1 %v15839_v27  ;;  %v5286_v2 = vld [vmem:[#allocation5 + $0x150] sm:$0xff]  ;;  %v1784_v46 = vmax.f32 %v1242_v42, 0.0 }
 0x19d   : > { %v15824_v61 = vmax.f32 %v1772_v6, %v1804_v8  ;;  %v1352_v20 = vadd.f32 %v15550_v51, %v1351_v37  ;;  %v15853_v8 = vpack.c.bf16 %v5287_v53, %v5286_v2  ;;  %v1778_v37 = vmax.f32 %v1212_v52, 0.0 }
 0x19e   : > { %v1807_v21 = vmax.f32 %v1357_v14, 0.0  ;;  %v1783_v52 = vmax.f32 %v1237_v4, 0.0 }
 0x19f   : > { %v1806_v22 = vmax.f32 %v1352_v20, 0.0  ;;  %v12247_v24 = vpop.f32.mrb[48].mxu0  ;;  %18324 = vst [vmem:[#allocation11_spill] sm:$0xff] %v15853_v8  ;;  %14038 = vmatprep.subr.msk.bf16.mxu1 %vm15813_vm7, %v15853_v8  ;;  %v1222_v20 = vadd.f32 %v15550_v51, %v15531_v40 }
 0x1a0   : > { %v15835_v31 = vmax.f32 %v1775_v15, %v1807_v21  ;;  %v1367_v5 = vadd.f32 %v12247_v24, %v15550_v51  ;;  %v1361_v32 = vpop.f32.mrb[49].mxu0  ;;  %14040 = vmatpush3.bf16.msk.msra.mxu1 %vm15813_vm7, %v15853_v8  ;;  %v1781_v24 = vmax.f32 %v1227_v35, 0.0 }
 0x1a1   : > { %v15841_v33 = vmax.f32 %v1774_v18, %v1806_v22  ;;  %v1362_v38 = vadd.f32 %v15550_v51, %v1361_v32  ;;  %v1780_v25 = vmax.f32 %v1222_v20, 0.0  ;;  %v1785_v20 = vmax.f32 %v1247_v41, 0.0 }
 0x1a2   : > { %v1809_v59 = vmax.f32 %v1367_v5, 0.0 }
 0x1a3   : > { %v1808_v13 = vmax.f32 %v1362_v38, 0.0  ;;  %v12250_v1 = vpop.f32.mrb[50].mxu0 }
 0x1a4   : > { %v15850_v3 = vmax.f32 %v1777_v56, %v1809_v59  ;;  %v1377_v6 = vadd.f32 %v12250_v1, %v15550_v51  ;;  %v1371_v7 = vpop.f32.mrb[51].mxu0  ;;  %v1782_v1 = vmax.f32 %v1232_v26, 0.0  ;;  %v1787_v26 = vmax.f32 %v1257_v43, 0.0 }
 0x1a5   : > { %v15855_v34 = vmax.f32 %v1776_v63, %v1808_v13  ;;  %v1372_v36 = vadd.f32 %v15550_v51, %v1371_v7 }
 0x1a6   : > { %v1811_v14 = vmax.f32 %v1377_v6, 0.0 }
 0x1a7   : > { %v1810_v15 = vmax.f32 %v1372_v36, 0.0  ;;  %v12253_v16 = vpop.f32.mrb[52].mxu0 }
 0x1a8   : > { %v15868_v21 = vmax.f32 %v1779_v10, %v1811_v14  ;;  %v1387_v18 = vadd.f32 %v12253_v16, %v15550_v51  ;;  %v1381_v39 = vpop.f32.mrb[53].mxu0  ;;  %v5605_v14 = vld [vmem:[#allocation5 + $0x160] sm:$0xff] }
 0x1a9   : > { %v15871_v44 = vmax.f32 %v1778_v37, %v1810_v15  ;;  %v1382_v22 = vadd.f32 %v15550_v51, %v1381_v39  ;;  %v5606_v37 = vld [vmem:[#allocation5 + $0x168] sm:$0xff] }
 0x1aa   : > { %v1813_v40 = vmax.f32 %v1387_v18, 0.0  ;;  %v15896_v16 = vpack.c.bf16 %v5606_v37, %v5605_v14  ;;  %v1252_v18 = vadd.f32 %v15550_v51, %v15544_v48  ;;  %v1262_v48 = vadd.f32 %v15550_v51, %v15548_v50 }
 0x1ab   : > { %v1812_v5 = vmax.f32 %v1382_v22, 0.0  ;;  %v12256_v32 = vpop.f32.mrb[54].mxu0  ;;  %v1272_v50 = vadd.f32 %v15550_v51, %v15554_v55 }
 0x1ac   : > { %v15878_v38 = vmax.f32 %v1781_v24, %v1813_v40  ;;  %v1397_v56 = vadd.f32 %v12256_v32, %v15550_v51  ;;  %v1391_v30 = vpop.f32.mrb[55].mxu0  ;;  %18329 = vst [vmem:[#allocation16_spill] sm:$0xff] %v15896_v16  ;;  %13898 = vmatprep.subr.bf16.mxu1 %v15896_v16 }
 0x1ad   : > { %v15881_v59 = vmax.f32 %v1780_v25, %v1812_v5  ;;  %v1392_v63 = vadd.f32 %v15550_v51, %v1391_v30  ;;  %v1267_v5 = vadd.f32 %v15546_v49, %v15550_v51  ;;  %v1277_v49 = vadd.f32 %v15552_v54, %v15550_v51 }
 0x1ae   : > { %18325 = vst [vmem:[#allocation12_spill] sm:$0xff] %v15878_v38  ;;  %v1815_v13 = vmax.f32 %v1397_v56, 0.0  ;;  %v1786_v56 = vmax.f32 %v1252_v18, 0.0 }
 0x1af   : > { %18326 = vst [vmem:[#allocation13_spill] sm:$0xff] %v15881_v59  ;;  %v1814_v2 = vmax.f32 %v1392_v63, 0.0  ;;  %v12259_v53 = vpop.f32.mrb[56].mxu0 }
 0x1b0   : > { %v15888_v6 = vmax.f32 %v1783_v52, %v1815_v13  ;;  %v1407_v7 = vadd.f32 %v12259_v53, %v15550_v51  ;;  %v1401_v36 = vpop.f32.mrb[57].mxu0 }
 0x1b1   : > { %v15891_v10 = vmax.f32 %v1782_v1, %v1814_v2  ;;  %v1402_v35 = vadd.f32 %v15550_v51, %v1401_v36  ;;  %v1789_v2 = vmax.f32 %v1267_v5, 0.0 }
 0x1b2   : > { %18327 = vst [vmem:[#allocation14_spill] sm:$0xff] %v15888_v6  ;;  %v1817_v15 = vmax.f32 %v1407_v7, 0.0  ;;  %v1788_v7 = vmax.f32 %v1262_v48, 0.0 }
 0x1b3   : > { %18328 = vst [vmem:[#allocation15_spill] sm:$0xff] %v15891_v10  ;;  %v1816_v39 = vmax.f32 %v1402_v35, 0.0  ;;  %v12262_v22 = vpop.f32.mrb[58].mxu0 }
 0x1b4   : > { %v15900_v24 = vmax.f32 %v1785_v20, %v1817_v15  ;;  %v1417_v4 = vadd.f32 %v12262_v22, %v15550_v51  ;;  %v1411_v40 = vpop.f32.mrb[59].mxu0 }
 0x1b5   : > { %v15904_v25 = vmax.f32 %v1784_v46, %v1816_v39  ;;  %v1412_v47 = vadd.f32 %v15550_v51, %v1411_v40  ;;  %v1791_v46 = vmax.f32 %v1277_v49, 0.0  ;;  %v1790_v39 = vmax.f32 %v1272_v50, 0.0 }
 0x1b6   : > { %18330 = vst [vmem:[#allocation17_spill] sm:$0xff] %v15900_v24  ;;  %v1819_v32 = vmax.f32 %v1417_v4, 0.0 }
 0x1b7   : > { %18331 = vst [vmem:[#allocation18_spill] sm:$0xff] %v15904_v25  ;;  %v1818_v30 = vmax.f32 %v1412_v47, 0.0  ;;  %v12265_v63 = vpop.f32.mrb[60].mxu0 }
 0x1b8   : > { %v15911_v52 = vmax.f32 %v1787_v26, %v1819_v32  ;;  %v1427_v41 = vadd.f32 %v12265_v63, %v15550_v51  ;;  %v1421_v13 = vpop.f32.mrb[61].mxu0 }
 0x1b9   : > { %v15914_v1 = vmax.f32 %v1786_v56, %v1818_v30  ;;  %v1422_v42 = vadd.f32 %v15550_v51, %v1421_v13 }
 0x1ba   : > { %18332 = vst [vmem:[#allocation19_spill] sm:$0xff] %v15911_v52  ;;  %v1821_v53 = vmax.f32 %v1427_v41, 0.0 }
 0x1bb   : > { %18333 = vst [vmem:[#allocation20_spill] sm:$0xff] %v15914_v1  ;;  %v1820_v36 = vmax.f32 %v1422_v42, 0.0  ;;  %v12268_v35 = vpop.f32.mrb[62].mxu0  ;;  %v2137_v42 = vld [vmem:[#allocation5] sm:$0xff] }
 0x1bc   : > { %v15921_v14 = vmax.f32 %v1789_v2, %v1821_v53  ;;  %v1437_v37 = vadd.f32 %v12268_v35, %v15550_v51  ;;  %v1431_v20 = vpop.f32.mrb[63].mxu0  ;;  %v2138_v2 = vld [vmem:[#allocation5 + $0x8] sm:$0xff] }
 0x1bd   : > { %v15924_v43 = vmax.f32 %v1788_v7, %v1820_v36  ;;  %v1432_v15 = vadd.f32 %v15550_v51, %v1431_v20  ;;  %v15945_v53 = vpack.c.bf16 %v2138_v2, %v2137_v42 }
 0x1be   : > { %18334 = vst [vmem:[#allocation21_spill] sm:$0xff] %v15921_v14  ;;  %v1823_v18 = vmax.f32 %v1437_v37, 0.0 }
 0x1bf   : > { %18335 = vst [vmem:[#allocation22_spill] sm:$0xff] %v15924_v43  ;;  %v1822_v54 = vmax.f32 %v1432_v15, 0.0  ;;  %v12271_v22 = vpop.f32.mrb[64].mxu0  ;;  %13798 = vmatprep.subr.bf16.mxu0 %v15945_v53 }
 0x1c0   : > { %v15927_v4 = vmax.f32 %v1791_v46, %v1823_v18  ;;  %v1441_v40 = vpop.f32.mrb[65].mxu0  ;;  %v1447_v1 = vadd.f32 %v12271_v22, %v15550_v51 }
 0x1c1   : > { %v15929_v55 = vmax.f32 %v1790_v39, %v1822_v54  ;;  %v1442_v52 = vadd.f32 %v15550_v51, %v1441_v40 }
 0x1c2   : > { %18336 = vst [vmem:[#allocation23_spill] sm:$0xff] %v15927_v4 }
 0x1c3   : > { %18337 = vst [vmem:[#allocation24_spill] sm:$0xff] %v15929_v55  ;;  %v12274_v47 = vpop.f32.mrb[66].mxu0  ;;  %v1824_v59 = vmax.f32 %v1442_v52, 0.0 }
 0x1c4   : > { %v1451_v26 = vpop.f32.mrb[67].mxu0 }
 0x1c7   : > { %v12277_v5 = vpop.f32.mrb[68].mxu0 }
 0x1c8   : > { %v1461_v32 = vpop.f32.mrb[69].mxu0  ;;  %v1467_v16 = vadd.f32 %v12277_v5, %v15550_v51 }
 0x1cb   : > { %v15931_v56 = vpop.f32.mrb[70].mxu0 }
 0x1cc   : > { %v15933_v48 = vpop.f32.mrb[71].mxu0 }
 0x1cd   : > { %v1472_v5 = vadd.f32 %v15550_v51, %v15933_v48 }
 0x1cf   : > { %v15935_v30 = vpop.f32.mrb[72].mxu0 }
 0x1d0   : > { %v15937_v63 = vpop.f32.mrb[73].mxu0 }
 0x1d3   : > { %v15939_v41 = vpop.f32.mrb[74].mxu0 }
 0x1d4   : > { %v15941_v13 = vpop.f32.mrb[75].mxu0 }
 0x1d7   : > { %v15943_v49 = vpop.f32.mrb[76].mxu0 }
 0x1d8   : > { %v15947_v7 = vpop.f32.mrb[77].mxu0 }
 0x1db   : > { %v15950_v50 = vpop.f32.mrb[78].mxu0 }
 0x1dc   : > { %v15952_v36 = vpop.f32.mrb[79].mxu0 }
 0x1df   : > { %v15954_v35 = vpop.f32.mrb[80].mxu0 }
 0x1e0   : > { %v15956_v37 = vpop.f32.mrb[81].mxu0 }
 0x1e3   : > { %v15958_v20 = vpop.f32.mrb[82].mxu0 }
 0x1e4   : > { %v15960_v15 = vpop.f32.mrb[83].mxu0 }
 0x1e7   : > { %v15962_v46 = vpop.f32.mrb[84].mxu0 }
 0x1e8   : > { %v15964_v18 = vpop.f32.mrb[85].mxu0 }
 0x1eb   : > { %v15966_v39 = vpop.f32.mrb[86].mxu0 }
 0x1ec   : > { %v15968_v54 = vpop.f32.mrb[87].mxu0 }
 0x1ef   : > { %v15970_v42 = vpop.f32.mrb[88].mxu0 }
 0x1f0   : > { %18338 = vst [vmem:[#allocation25_spill] sm:$0xff] %v15970_v42  ;;  %v15972_v2 = vpop.f32.mrb[89].mxu0 }
 0x1f1   : > { %18339 = vst [vmem:[#allocation26_spill] sm:$0xff] %v15972_v2 }
 0x1f3   : > { %v15974_v8 = vpop.f32.mrb[90].mxu0 }
 0x1f4   : > { %18340 = vst [vmem:[#allocation27_spill] sm:$0xff] %v15974_v8  ;;  %v15976_v27 = vpop.f32.mrb[91].mxu0  ;;  %v1825_v8 = vmax.f32 %v1447_v1, 0.0 }
 0x1f5   : > { %18341 = vst [vmem:[#allocation28_spill] sm:$0xff] %v15976_v27  ;;  %v1457_v27 = vadd.f32 %v12274_v47, %v15550_v51 }
 0x1f7   : > { %v15978_v55 = vpop.f32.mrb[92].mxu0 }
 0x1f8   : > { %18342 = vst [vmem:[#allocation29_spill] sm:$0xff] %v15978_v55  ;;  %v15980_v4 = vpop.f32.mrb[93].mxu0 }
 0x1f9   : > { %18343 = vst [vmem:[#allocation30_spill] sm:$0xff] %v15980_v4  ;;  %v1452_v4 = vadd.f32 %v15550_v51, %v1451_v26 }
 0x1fb   : > { %v15982_v43 = vpop.f32.mrb[94].mxu0  ;;  %v1826_v47 = vmax.f32 %v1452_v4, 0.0 }
 0x1fc   : > { %18344 = vst [vmem:[#allocation31_spill] sm:$0xff] %v15982_v43  ;;  %v15984_v14 = vpop.f32.mrb[95].mxu0 }
 0x1fd   : > { %18345 = vst [vmem:[#allocation32_spill] sm:$0xff] %v15984_v14 }
 0x1ff   : > { %v12319_v25 = vpop.f32.mrb[96].mxu0 }
 0x200   : > { %v1607_v24 = vadd.f32 %v12319_v25, %v15550_v51  ;;  %v1601_v10 = vpop.f32.mrb[97].mxu0  ;;  %v1827_v25 = vmax.f32 %v1457_v27, 0.0 }
 0x201   : > { %v1602_v6 = vadd.f32 %v15550_v51, %v1601_v10 }
 0x202   : > { %v1857_v55 = vmax.f32 %v1607_v24, 0.0  ;;  %v1462_v24 = vadd.f32 %v15550_v51, %v1461_v32 }
 0x203   : > { %v1856_v43 = vmax.f32 %v1602_v6, 0.0  ;;  %v12322_v2 = vpop.f32.mrb[98].mxu0 }
 0x204   : > { %v1921_v14 = vmax.f32 %v1825_v8, %v1857_v55  ;;  %v1617_v22 = vadd.f32 %v12322_v2, %v15550_v51  ;;  %v1611_v38 = vpop.f32.mrb[99].mxu0  ;;  %v1828_v55 = vmax.f32 %v1462_v24, 0.0 }
 0x205   : > { %v1920_v40 = vmax.f32 %v1824_v59, %v1856_v43  ;;  %v1612_v42 = vadd.f32 %v15550_v51, %v1611_v38 }
 0x206   : > { %v1953_v10 = vmax.f32 %v15570_v29, %v1921_v14  ;;  %v1859_v1 = vmax.f32 %v1617_v22, 0.0  ;;  %v1829_v29 = vmax.f32 %v1467_v16, 0.0  ;;  %v1477_v14 = vadd.f32 %v15931_v56, %v15550_v51 }
 0x207   : > { %v1952_v52 = vmax.f32 %v15580_v11, %v1920_v40  ;;  %v1858_v6 = vmax.f32 %v1612_v42, 0.0  ;;  %v12325_v26 = vpop.f32.mrb[100].mxu0 }
 0x208   : > { %2068 = vst.msk [vmem:[#allocation2 + $0x21] sm:$0xff] %vm1984_vm4, %v1953_v10  ;;  %v1923_v8 = vmax.f32 %v1827_v25, %v1859_v1  ;;  %v1627_v59 = vadd.f32 %v12325_v26, %v15550_v51  ;;  %v1621_v43 = vpop.f32.mrb[101].mxu0  ;;  %v1831_v25 = vmax.f32 %v1477_v14, 0.0  ;;  %v1487_v10 = vadd.f32 %v15935_v30, %v15550_v51 }
 0x209   : > { %2067 = vst.msk [vmem:[#allocation2 + $0x11] sm:$0xff] %vm1984_vm4, %v1952_v52  ;;  %v1922_v27 = vmax.f32 %v1826_v47, %v1858_v6  ;;  %v1622_v38 = vadd.f32 %v15550_v51, %v1621_v43  ;;  %v1830_v1 = vmax.f32 %v1472_v5, 0.0  ;;  %v1482_v47 = vadd.f32 %v15550_v51, %v15937_v63 }
 0x20a   : > { %v1955_v4 = vmax.f32 %v15758_v45, %v1923_v8  ;;  %v1861_v11 = vmax.f32 %v1627_v59, 0.0  ;;  %v1833_v43 = vmax.f32 %v1487_v10, 0.0 }
 0x20b   : > { %v1954_v32 = vmax.f32 %v15766_v23, %v1922_v27  ;;  %v1860_v42 = vmax.f32 %v1622_v38, 0.0  ;;  %v12328_v2 = vpop.f32.mrb[102].mxu0  ;;  %v1497_v27 = vadd.f32 %v15939_v41, %v15550_v51  ;;  %v1832_v38 = vmax.f32 %v1482_v47, 0.0 }
 0x20c   : > { %2070 = vst.msk [vmem:[#allocation2 + $0x41] sm:$0xff] %vm1984_vm4, %v1955_v4  ;;  %v1925_v22 = vmax.f32 %v1829_v29, %v1861_v11  ;;  %v1637_v40 = vadd.f32 %v12328_v2, %v15550_v51  ;;  %v1631_v16 = vpop.f32.mrb[103].mxu0  ;;  %v1492_v29 = vadd.f32 %v15550_v51, %v15941_v13  ;;  %v1507_v2 = vadd.f32 %v15943_v49, %v15550_v51 }
 0x20d   : > { %2069 = vst.msk [vmem:[#allocation2 + $0x31] sm:$0xff] %vm1984_vm4, %v1954_v32  ;;  %v1924_v56 = vmax.f32 %v1828_v55, %v1860_v42  ;;  %v1632_v45 = vadd.f32 %v15550_v51, %v1631_v16  ;;  %v1835_v42 = vmax.f32 %v1497_v27, 0.0 }
 0x20e   : > { %v1957_v48 = vmax.f32 %v15775_v57, %v1925_v22  ;;  %v1863_v23 = vmax.f32 %v1637_v40, 0.0  ;;  %v1834_v22 = vmax.f32 %v1492_v29, 0.0  ;;  %v1502_v40 = vadd.f32 %v15550_v51, %v15947_v7 }
 0x20f   : > { %v1956_v24 = vmax.f32 %v15778_v62, %v1924_v56  ;;  %v1862_v52 = vmax.f32 %v1632_v45, 0.0  ;;  %v12331_v6 = vpop.f32.mrb[104].mxu0 }
 0x210   : > { %2072 = vst.msk [vmem:[#allocation2 + $0x61] sm:$0xff] %vm1984_vm4, %v1957_v48  ;;  %v1927_v26 = vmax.f32 %v1831_v25, %v1863_v23  ;;  %v1647_v8 = vadd.f32 %v12331_v6, %v15550_v51  ;;  %v1641_v59 = vpop.f32.mrb[105].mxu0  ;;  %v1837_v23 = vmax.f32 %v1507_v2, 0.0  ;;  %v1836_v47 = vmax.f32 %v1502_v40, 0.0 }
 0x211   : > { %2071 = vst.msk [vmem:[#allocation2 + $0x51] sm:$0xff] %vm1984_vm4, %v1956_v24  ;;  %v1926_v30 = vmax.f32 %v1830_v1, %v1862_v52  ;;  %v1642_v57 = vadd.f32 %v15550_v51, %v1641_v59  ;;  %v1517_v1 = vadd.f32 %v15950_v50, %v15550_v51  ;;  %v1512_v24 = vadd.f32 %v15550_v51, %v15952_v36 }
 0x212   : > { %v1959_v63 = vmax.f32 %v15785_v28, %v1927_v26  ;;  %v1865_v62 = vmax.f32 %v1647_v8, 0.0  ;;  %v1532_v40 = vadd.f32 %v15550_v51, %v15960_v15 }
 0x213   : > { %v1958_v14 = vmax.f32 %v15788_v9, %v1926_v30  ;;  %v1864_v4 = vmax.f32 %v1642_v57, 0.0  ;;  %v12334_v11 = vpop.f32.mrb[106].mxu0  ;;  %v2139_v57 = vld [vmem:[#allocation5 + $0x10] sm:$0xff]  ;;  %v1839_v27 = vmax.f32 %v1517_v1, 0.0  ;;  %v1547_v1 = vadd.f32 %v15962_v46, %v15550_v51 }
 0x214   : > { %2074 = vst.msk [vmem:[#allocation2 + $0x81] sm:$0xff] %vm1984_vm4, %v1959_v63  ;;  %v1929_v55 = vmax.f32 %v1833_v43, %v1865_v62  ;;  %v1657_v5 = vadd.f32 %v12334_v11, %v15550_v51  ;;  %v1651_v32 = vpop.f32.mrb[107].mxu0  ;;  %v2140_v43 = vld [vmem:[#allocation5 + $0x18] sm:$0x3f] }
 0x215   : > { %2073 = vst.msk [vmem:[#allocation2 + $0x71] sm:$0xff] %vm1984_vm4, %v1958_v14  ;;  %v1928_v41 = vmax.f32 %v1832_v38, %v1864_v4  ;;  %v1652_v28 = vadd.f32 %v15550_v51, %v1651_v32  ;;  %v1838_v38 = vmax.f32 %v1512_v24, 0.0  ;;  %v13801_v11 = vpack.c.bf16 %v2140_v43, %v2139_v57  ;;  %v16098_v24 = vld [vmem:[#allocation3] ss:$0 sm:$0xff]  ;;  %v5902_v43 = vld [vmem:[#allocation5 + $0x180] sm:$0xff] }
 0x216   : > { %v1961_v13 = vmax.f32 %v15795_v17, %v1929_v55  ;;  %v1867_v9 = vmax.f32 %v1657_v5, 0.0 }
 0x217   : > { %v1960_v16 = vmax.f32 %v15798_v19, %v1928_v41  ;;  %v1866_v56 = vmax.f32 %v1652_v28, 0.0  ;;  %v12337_v45 = vpop.f32.mrb[108].mxu0  ;;  %v2780_v41 = vld [vmem:[#allocation5 + $0x40] sm:$0xff]  ;;  %v2781_v28 = vld [vmem:[#allocation5 + $0x48] sm:$0xff] }
 0x218   : > { %2077 = vst.msk [vmem:[#allocation2 + $0xc1] sm:$0xff] %vm1984_vm4, %v1961_v13  ;;  %v1931_v25 = vmax.f32 %v1835_v42, %v1867_v9  ;;  %v1667_v10 = vadd.f32 %v12337_v45, %v15550_v51  ;;  %v1661_v48 = vpop.f32.mrb[109].mxu0  ;;  %v1537_v13 = vadd.f32 %v15958_v20, %v15550_v51 }
 0x219   : > { %2076 = vst.msk [vmem:[#allocation2 + $0xb1] sm:$0xff] %vm1984_vm4, %v1960_v16  ;;  %v1930_v49 = vmax.f32 %v1834_v22, %v1866_v56  ;;  %v1662_v17 = vadd.f32 %v15550_v51, %v1661_v48 }
 0x21a   : > { %v1963_v7 = vmax.f32 %v15805_v58, %v1931_v25  ;;  %v1869_v19 = vmax.f32 %v1667_v10, 0.0  ;;  %v1527_v58 = vadd.f32 %v15954_v35, %v15550_v51  ;;  %v16079_v25 = vpack.c.bf16 %v2781_v28, %v2780_v41 }
 0x21b   : > { %v1962_v52 = vmax.f32 %v15808_v0, %v1930_v49  ;;  %v1868_v6 = vmax.f32 %v1662_v17, 0.0  ;;  %v12340_v26 = vpop.f32.mrb[110].mxu0  ;;  %v1522_v0 = vadd.f32 %v15550_v51, %v15956_v37  ;;  %v5607_v49 = vld [vmem:[#allocation5 + $0x170] sm:$0xff]  ;;  %v5608_v17 = vld [vmem:[#allocation5 + $0x178] sm:$0x3f] }
 0x21c   : > { %2079 = vst.msk [vmem:[#allocation2 + $0xe1] sm:$0xff] %vm1984_vm4, %v1963_v7  ;;  %v1933_v8 = vmax.f32 %v1837_v23, %v1869_v19  ;;  %v1677_v59 = vadd.f32 %v12340_v26, %v15550_v51  ;;  %v1671_v30 = vpop.f32.mrb[111].mxu0  ;;  %v1841_v37 = vmax.f32 %v1527_v58, 0.0  ;;  %v1843_v23 = vmax.f32 %v1537_v13, 0.0  ;;  %v5903_v58 = vld [vmem:[#allocation5 + $0x188] sm:$0xff] }
 0x21d   : > { %2078 = vst.msk [vmem:[#allocation2 + $0xd1] sm:$0xff] %vm1984_vm4, %v1962_v52  ;;  %v1932_v50 = vmax.f32 %v1836_v47, %v1868_v6  ;;  %v1672_v36 = vadd.f32 %v15550_v51, %v1671_v30  ;;  %v1840_v2 = vmax.f32 %v1522_v0, 0.0  ;;  %v1842_v47 = vmax.f32 %v1532_v40, 0.0 }
 0x21e   : > { %v1965_v63 = vmax.f32 %v15821_v60, %v1933_v8  ;;  %v1871_v62 = vmax.f32 %v1677_v59, 0.0  ;;  %v1542_v52 = vadd.f32 %v16098_v24, %v15964_v18  ;;  %v13901_v30 = vpack.c.bf16 %v5608_v17, %v5607_v49 }
 0x21f   : > { %v1964_v29 = vmax.f32 %v15824_v61, %v1932_v50  ;;  %v1870_v14 = vmax.f32 %v1672_v36, 0.0  ;;  %v12343_v4 = vpop.f32.mrb[112].mxu0  ;;  %v16066_v61 = vld [vmem:[#allocation2 + $0xc0] sm:$0xff]  ;;  %v1845_v50 = vmax.f32 %v1547_v1, 0.0  ;;  %v1557_v36 = vadd.f32 %v16098_v24, %v15966_v39 }
 0x220   : > { %2081 = vst.msk [vmem:[#allocation2 + $0x101] sm:$0xff] %vm1984_vm4, %v1965_v63  ;;  %v1935_v35 = vmax.f32 %v1839_v27, %v1871_v62  ;;  %v1687_v55 = vadd.f32 %v12343_v4, %v15550_v51  ;;  %v1681_v5 = vpop.f32.mrb[113].mxu0  ;;  %v16060_v32 = vld [vmem:[#allocation2 + $0xb0] sm:$0xff]  ;;  %v1844_v63 = vmax.f32 %v1542_v52, 0.0  ;;  %v1552_v62 = vadd.f32 %v16098_v24, %v15968_v54  ;;  %v16127_v39 = vld [vmem:[#allocation2 + $0x1] sm:$0xff] }
 0x221   : > { %2080 = vst.msk [vmem:[#allocation2 + $0xf1] sm:$0xff] %vm1984_vm4, %v1964_v29  ;;  %v1934_v60 = vmax.f32 %v1838_v38, %v1870_v14  ;;  %v1682_v42 = vadd.f32 %v15550_v51, %v1681_v5  ;;  %12374 = vmatmul.mubr.msk.f32.vlgmr.msra.gmra.mrb[128].mxu0 %vm1984_vm4, %v16060_v32  ;;  %v18346_v14 = vld [vmem:[#allocation16_spill] sm:$0xff]  ;;  %v16135_v54 = vpack.c.bf16 %v5903_v58, %v5902_v43  ;;  %v1847_v28 = vmax.f32 %v1557_v36, 0.0  ;;  %v16170_v1 = vld [vmem:[#allocation2 + $0x21] sm:$0xff] }
 0x222   : > { %v1967_v9 = vmax.f32 %v15835_v31, %v1935_v35  ;;  %v1873_v22 = vmax.f32 %v1687_v55, 0.0  ;;  %12376 = vmatprep.mubr.msk.f32.mxu0 %vm1984_vm4, %v16066_v61  ;;  %13800 = vmatpush3.bf16.msra.mxu0 %v15945_v53 }
 0x223   : > { %v1966_v16 = vmax.f32 %v15841_v33, %v1934_v60  ;;  %v1872_v56 = vmax.f32 %v1682_v42, 0.0  ;;  %v12346_v45 = vpop.f32.mrb[114].mxu0  ;;  %13803 = vmatprep.subr.msk.bf16.mxu0 %vm15813_vm7, %v13801_v11  ;;  %v16089_v15 = vld [vmem:[#allocation2 + $0xe0] sm:$0xff]  ;;  %v18348_v42 = vld [vmem:[#allocation12_spill] sm:$0xff] }
 0x224   : > { %2083 = vst.msk [vmem:[#allocation2 + $0x121] sm:$0xff] %vm1984_vm4, %v1967_v9  ;;  %v1937_v31 = vmax.f32 %v1841_v37, %v1873_v22  ;;  %v1697_v20 = vadd.f32 %v12346_v45, %v15550_v51  ;;  %v1691_v10 = vpop.f32.mrb[115].mxu0  ;;  %v16083_v48 = vld [vmem:[#allocation2 + $0xd0] sm:$0xff]  ;;  %v18347_v37 = vld [vmem:[#allocation25_spill] sm:$0xff]  ;;  %v1846_v9 = vmax.f32 %v1552_v62, 0.0  ;;  %v18349_v22 = vld [vmem:[#allocation26_spill] sm:$0xff] }
 0x225   : > { %2082 = vst.msk [vmem:[#allocation2 + $0x111] sm:$0xff] %vm1984_vm4, %v1966_v16  ;;  %v1936_v53 = vmax.f32 %v1840_v2, %v1872_v56  ;;  %v1692_v33 = vadd.f32 %v15550_v51, %v1691_v10  ;;  %12377 = vmatmul.mubr.msk.f32.gmra.mrb[130].mxu0 %vm1984_vm4, %v16083_v48  ;;  %v1567_v60 = vadd.f32 %v16098_v24, %v18347_v37  ;;  %v18350_v16 = vld [vmem:[#allocation13_spill] sm:$0xff] }
 0x226   : > { %v1969_v7 = vmax.f32 %v15850_v3, %v1937_v31  ;;  %v1875_v19 = vmax.f32 %v1697_v20, 0.0  ;;  %12379 = vmatprep.mubr.msk.f32.mxu0 %vm1984_vm4, %v16089_v15  ;;  %13806 = vmatpush3.bf16.msk.msra.mxu0 %vm15813_vm7, %v13801_v11  ;;  %v1562_v40 = vadd.f32 %v16098_v24, %v18349_v22 }
 0x227   : > { %v1968_v6 = vmax.f32 %v15855_v34, %v1936_v53  ;;  %v1874_v26 = vmax.f32 %v1692_v33, 0.0  ;;  %v12349_v8 = vpop.f32.mrb[116].mxu0  ;;  %13808 = vmatprep.subr.bf16.mxu0 %v16079_v25  ;;  %v16114_v34 = vld [vmem:[#allocation2 + $0x100] sm:$0xff]  ;;  %v16159_v33 = vld [vmem:[#allocation2 + $0x11] sm:$0xff] }
 0x228   : > { %2086 = vst.msk [vmem:[#allocation2 + $0x161] sm:$0xff] %vm1984_vm4, %v1969_v7  ;;  %v1939_v51 = vmax.f32 %v1843_v23, %v1875_v19  ;;  %v1707_v3 = vadd.f32 %v16098_v24, %v12349_v8  ;;  %v1701_v46 = vpop.f32.mrb[117].mxu0  ;;  %v16106_v59 = vld [vmem:[#allocation2 + $0xf0] sm:$0xff]  ;;  %v1849_v19 = vmax.f32 %v1567_v60, 0.0  ;;  %v18358_v60 = vld [vmem:[#allocation18_spill] sm:$0xff] }
 0x229   : > { %2085 = vst.msk [vmem:[#allocation2 + $0x151] sm:$0xff] %vm1984_vm4, %v1968_v6  ;;  %v1938_v57 = vmax.f32 %v1842_v47, %v1874_v26  ;;  %v1702_v18 = vadd.f32 %v16098_v24, %v1701_v46  ;;  %12380 = vmatmul.mubr.msk.f32.gmra.mrb[132].mxu0 %vm1984_vm4, %v16106_v59  ;;  %12951 = vmatprep.mubr.msk.f32.mxu1 %vm1984_vm4, %v16106_v59  ;;  %v18351_v47 = vld [vmem:[#allocation27_spill] sm:$0xff]  ;;  %v18352_v6 = vld [vmem:[#allocation14_spill] sm:$0xff] }
 0x22a   : > { %v1971_v27 = vmax.f32 %v15868_v21, %v1939_v51  ;;  %v1877_v0 = vmax.f32 %v1707_v3, 0.0  ;;  %12382 = vmatprep.mubr.msk.f32.mxu0 %vm1984_vm4, %v16114_v34  ;;  %12952 = vmatmul.mubr.msk.f32.vlgmr.msra.gmra.mrb[0].mxu1 %vm1984_vm4, %v16114_v34  ;;  %v1577_v52 = vadd.f32 %v16098_v24, %v18351_v47  ;;  %v1848_v51 = vmax.f32 %v1562_v40, 0.0  ;;  %v18353_v3 = vld [vmem:[#allocation28_spill] sm:$0xff] }
 0x22b   : > { %v1970_v38 = vmax.f32 %v15871_v44, %v1938_v57  ;;  %v1876_v29 = vmax.f32 %v1702_v18, 0.0  ;;  %13900 = vmatpush3.bf16.msra.mxu1 %v18346_v14  ;;  %v12352_v4 = vpop.f32.mrb[118].mxu0  ;;  %v16143_v41 = vld [vmem:[#allocation2 + $0x120] sm:$0xff]  ;;  %v1572_v46 = vadd.f32 %v16098_v24, %v18353_v3 }
 0x22c   : > { %2088 = vst.msk [vmem:[#allocation2 + $0x181] sm:$0xff] %vm1984_vm4, %v1971_v27  ;;  %v1941_v21 = vmax.f32 %v1845_v50, %v1877_v0  ;;  %v1717_v11 = vadd.f32 %v16098_v24, %v12352_v4  ;;  %v1711_v35 = vpop.f32.mrb[119].mxu0  ;;  %v16131_v55 = vld [vmem:[#allocation2 + $0x110] sm:$0xff]  ;;  %13903 = vmatprep.subr.msk.bf16.mxu1 %vm15813_vm7, %v13901_v30  ;;  %v1851_v14 = vmax.f32 %v1577_v52, 0.0  ;;  %v18355_v4 = vld [vmem:[#allocation29_spill] sm:$0xff] }
 0x22d   : > { %2087 = vst.msk [vmem:[#allocation2 + $0x171] sm:$0xff] %vm1984_vm4, %v1970_v38  ;;  %v1940_v44 = vmax.f32 %v1844_v63, %v1876_v29  ;;  %v1712_v5 = vadd.f32 %v16098_v24, %v1711_v35  ;;  %12383 = vmatmul.mubr.msk.f32.gmra.mrb[134].mxu0 %vm1984_vm4, %v16131_v55  ;;  %12954 = vmatprep.mubr.msk.f32.mxu1 %vm1984_vm4, %v16131_v55  ;;  %v16186_v27 = vld [vmem:[#allocation2 + $0x31] sm:$0xff]  ;;  %v16196_v38 = vld [vmem:[#allocation2 + $0x41] sm:$0xff] }
 0x22e   : > { %v1973_v2 = vmax.f32 %v18348_v42, %v1941_v21  ;;  %v1879_v13 = vmax.f32 %v1717_v11, 0.0  ;;  %12955 = vmatmul.mubr.msk.f32.gmra.mrb[2].mxu1 %vm1984_vm4, %v16143_v41  ;;  %12385 = vmatprep.mubr.msk.f32.mxu0 %vm1984_vm4, %v16127_v39  ;;  %v1587_v21 = vadd.f32 %v16098_v24, %v18355_v4  ;;  %v18356_v11 = vld [vmem:[#allocation17_spill] sm:$0xff] }
 0x22f   : > { %v1972_v56 = vmax.f32 %v18350_v16, %v1940_v44  ;;  %v1878_v45 = vmax.f32 %v1712_v5, 0.0  ;;  %v12355_v31 = vpop.f32.mrb[120].mxu0  ;;  %13906 = vmatpush3.bf16.msk.msra.mxu1 %vm15813_vm7, %v13901_v30  ;;  %v16172_v7 = vld [vmem:[#allocation2 + $0x160] sm:$0xff]  ;;  %v18354_v30 = vld [vmem:[#allocation15_spill] sm:$0xff]  ;;  %v1850_v5 = vmax.f32 %v1572_v46, 0.0 }
 0x230   : > { %2090 = vst.msk [vmem:[#allocation2 + $0x1a1] sm:$0xff] %vm1984_vm4, %v1973_v2  ;;  %v1943_v20 = vmax.f32 %v1847_v28, %v1879_v13  ;;  %v1727_v10 = vadd.f32 %v16098_v24, %v12355_v31  ;;  %v1721_v53 = vpop.f32.mrb[121].mxu0  ;;  %v16161_v49 = vld [vmem:[#allocation2 + $0x150] sm:$0xff]  ;;  %13908 = vmatprep.subr.bf16.mxu1 %v16135_v54  ;;  %v18357_v28 = vld [vmem:[#allocation30_spill] sm:$0xff] }
 0x231   : > { %2089 = vst.msk [vmem:[#allocation2 + $0x191] sm:$0xff] %vm1984_vm4, %v1972_v56  ;;  %v1942_v17 = vmax.f32 %v1846_v9, %v1878_v45  ;;  %v1722_v23 = vadd.f32 %v16098_v24, %v1721_v53  ;;  %12386 = vmatmul.mubr.msk.f32.gmra.mrb[136].mxu0 %vm1984_vm4, %v16159_v33  ;;  %12957 = vmatprep.mubr.msk.f32.mxu1 %vm1984_vm4, %v16161_v49  ;;  %v16212_v16 = vld [vmem:[#allocation2 + $0x51] sm:$0xff]  ;;  %v1853_v53 = vmax.f32 %v1587_v21, 0.0  ;;  %v18363_v21 = vld [vmem:[#allocation21_spill] sm:$0xff] }
 0x232   : > { %v1975_v26 = vmax.f32 %v18352_v6, %v1943_v20  ;;  %v1881_v8 = vmax.f32 %v1727_v10, 0.0  ;;  %12388 = vmatprep.mubr.msk.f32.mxu0 %vm1984_vm4, %v16170_v1  ;;  %12958 = vmatmul.mubr.msk.f32.gmra.mrb[4].mxu1 %vm1984_vm4, %v16172_v7  ;;  %v1582_v37 = vadd.f32 %v16098_v24, %v18357_v28  ;;  %v16222_v20 = vld [vmem:[#allocation2 + $0x61] sm:$0xff] }
 0x233   : > { %v1974_v57 = vmax.f32 %v18354_v30, %v1942_v17  ;;  %v1880_v18 = vmax.f32 %v1722_v23, 0.0  ;;  %v12358_v43 = vpop.f32.mrb[122].mxu0  ;;  %v16198_v29 = vld [vmem:[#allocation2 + $0x180] sm:$0xff]  ;;  %v18359_v17 = vld [vmem:[#allocation31_spill] sm:$0xff] }
 0x234   : > { %2092 = vst.msk [vmem:[#allocation2 + $0x1c1] sm:$0xff] %vm1984_vm4, %v1975_v26  ;;  %v1945_v58 = vmax.f32 %v1849_v19, %v1881_v8  ;;  %v1737_v50 = vadd.f32 %v16098_v24, %v12358_v43  ;;  %v1731_v36 = vpop.f32.mrb[123].mxu0  ;;  %v16188_v0 = vld [vmem:[#allocation2 + $0x170] sm:$0xff]  ;;  %v1597_v23 = vadd.f32 %v16098_v24, %v18359_v17  ;;  %v1852_v6 = vmax.f32 %v1582_v37, 0.0 }
 0x235   : > { %2091 = vst.msk [vmem:[#allocation2 + $0x1b1] sm:$0xff] %vm1984_vm4, %v1974_v57  ;;  %v1944_v63 = vmax.f32 %v1848_v51, %v1880_v18  ;;  %v1732_v62 = vadd.f32 %v16098_v24, %v1731_v36  ;;  %12389 = vmatmul.mubr.msk.f32.gmra.mrb[138].mxu0 %vm1984_vm4, %v16186_v27  ;;  %12960 = vmatprep.mubr.msk.f32.mxu1 %vm1984_vm4, %v16188_v0  ;;  %v18360_v19 = vld [vmem:[#allocation19_spill] sm:$0xff]  ;;  %v18361_v26 = vld [vmem:[#allocation32_spill] sm:$0xff]  ;;  %v16236_v57 = vld [vmem:[#allocation2 + $0x1e0] sm:$0xff] }
 0x236   : > { %v1977_v35 = vmax.f32 %v18356_v11, %v1945_v58  ;;  %v1883_v44 = vmax.f32 %v1737_v50, 0.0  ;;  %12391 = vmatprep.mubr.msk.f32.mxu0 %vm1984_vm4, %v16196_v38  ;;  %12961 = vmatmul.mubr.msk.f32.gmra.mrb[6].mxu1 %vm1984_vm4, %v16198_v29  ;;  %v1592_v8 = vadd.f32 %v16098_v24, %v18361_v26  ;;  %v18362_v51 = vld [vmem:[#allocation20_spill] sm:$0xff]  ;;  %v1855_v4 = vmax.f32 %v1597_v23, 0.0  ;;  %v16300_v23 = vld [vmem:[#allocation2 + $0x141] sm:$0xff] }
 0x237   : > { %v1976_v42 = vmax.f32 %v18358_v60, %v1944_v63  ;;  %v1882_v2 = vmax.f32 %v1732_v62, 0.0  ;;  %v12361_v13 = vpop.f32.mrb[124].mxu0  ;;  %v16224_v10 = vld [vmem:[#allocation2 + $0x1a0] sm:$0xff]  ;;  %v16240_v50 = vld [vmem:[#allocation2 + $0x71] sm:$0xff] }
 0x238   : > { %2095 = vst.msk [vmem:[#allocation2 + $0x201] sm:$0xff] %vm1984_vm4, %v1977_v35  ;;  %v1947_v9 = vmax.f32 %v1851_v14, %v1883_v44  ;;  %v1747_v22 = vadd.f32 %v16098_v24, %v12361_v13  ;;  %v1741_v40 = vpop.f32.mrb[125].mxu0  ;;  %v16214_v56 = vld [vmem:[#allocation2 + $0x190] sm:$0xff]  ;;  %v1854_v44 = vmax.f32 %v1592_v8, 0.0 }
 0x239   : > { %2094 = vst.msk [vmem:[#allocation2 + $0x1f1] sm:$0xff] %vm1984_vm4, %v1976_v42  ;;  %v1946_v45 = vmax.f32 %v1850_v5, %v1882_v2  ;;  %v1742_v31 = vadd.f32 %v16098_v24, %v1741_v40  ;;  %12392 = vmatmul.mubr.msk.f32.gmra.mrb[140].mxu0 %vm1984_vm4, %v16212_v16  ;;  %12963 = vmatprep.mubr.msk.f32.mxu1 %vm1984_vm4, %v16214_v56  ;;  %v18365_v13 = vld [vmem:[#allocation23_spill] sm:$0xff] }
 0x23a   : > { %v1979_v47 = vmax.f32 %v18360_v19, %v1947_v9  ;;  %v1885_v52 = vmax.f32 %v1747_v22, 0.0  ;;  %12394 = vmatprep.mubr.msk.f32.mxu0 %vm1984_vm4, %v16222_v20  ;;  %12964 = vmatmul.mubr.msk.f32.gmra.mrb[8].mxu1 %vm1984_vm4, %v16224_v10  ;;  %v18366_v22 = vld [vmem:[#allocation24_spill] sm:$0xff] }
 0x23b   : > { %v1978_v3 = vmax.f32 %v18362_v51, %v1946_v45  ;;  %v1884_v46 = vmax.f32 %v1742_v31, 0.0  ;;  %v12364_v30 = vpop.f32.mrb[126].mxu0  ;;  %v16250_v14 = vld [vmem:[#allocation2 + $0x1c0] sm:$0xff]  ;;  %v16316_v26 = vld [vmem:[#allocation2 + $0x151] sm:$0xff] }
 0x23c   : > { %2097 = vst.msk [vmem:[#allocation2 + $0x221] sm:$0xff] %vm1984_vm4, %v1979_v47  ;;  %v1949_v18 = vmax.f32 %v1853_v53, %v1885_v52  ;;  %v1757_v43 = vadd.f32 %v16098_v24, %v12364_v30  ;;  %v1751_v58 = vpop.f32.mrb[127].mxu0  ;;  %v16242_v36 = vld [vmem:[#allocation2 + $0x1b0] sm:$0xff]  ;;  %v16320_v51 = vld [vmem:[#allocation2 + $0x161] sm:$0xff] }
 0x23d   : > { %2096 = vst.msk [vmem:[#allocation2 + $0x211] sm:$0xff] %vm1984_vm4, %v1978_v3  ;;  %v1948_v63 = vmax.f32 %v1852_v6, %v1884_v46  ;;  %v1752_v62 = vadd.f32 %v16098_v24, %v1751_v58  ;;  %12395 = vmatmul.mubr.msk.f32.gmra.mrb[142].mxu0 %vm1984_vm4, %v16240_v50  ;;  %12966 = vmatprep.mubr.msk.f32.mxu1 %vm1984_vm4, %v16242_v36  ;;  %v18364_v24 = vld [vmem:[#allocation22_spill] sm:$0xff]  ;;  %v5904_v52 = vld [vmem:[#allocation5 + $0x190] sm:$0xff]  ;;  %v5905_v6 = vld [vmem:[#allocation5 + $0x198] sm:$0x3f] }
 0x23e   : > { %v1981_v11 = vmax.f32 %v18363_v21, %v1949_v18  ;;  %v1887_v35 = vmax.f32 %v1757_v43, 0.0  ;;  %12967 = vmatmul.mubr.msk.f32.gmra.mrb[10].mxu1 %vm1984_vm4, %v16250_v14  ;;  %12397 = vmatprep.mubr.msk.f32.mxu0 %vm1984_vm4, %v16236_v57  ;;  %v13911_v8 = vpack.c.bf16 %v5905_v6, %v5904_v52  ;;  %v6199_v3 = vld [vmem:[#allocation5 + $0x1a0] sm:$0xff]  ;;  %v6200_v46 = vld [vmem:[#allocation5 + $0x1a8] sm:$0xff]  ;;  %v2783_v21 = vld [vmem:[#allocation5 + $0x58] sm:$0x3f] }
 0x23f   : > { %v1980_v5 = vmax.f32 %v18364_v24, %v1948_v63  ;;  %v1886_v28 = vmax.f32 %v1752_v62, 0.0  ;;  %v16266_v2 = vld [vmem:[#allocation2 + $0x200] sm:$0xff]  ;;  %v16329_v30 = vld [vmem:[#allocation2 + $0x171] sm:$0xff]  ;;  %v16333_v18 = vpack.c.bf16 %v6200_v46, %v6199_v3 }
 0x240   : > { %2099 = vst.msk [vmem:[#allocation2 + $0x241] sm:$0xff] %vm1984_vm4, %v1981_v11  ;;  %v1951_v37 = vmax.f32 %v1855_v4, %v1887_v35  ;;  %v16259_v60 = vld [vmem:[#allocation2 + $0x1f0] sm:$0xff]  ;;  %v16337_v43 = vld [vmem:[#allocation2 + $0x181] sm:$0xff] }
 0x241   : > { %2098 = vst.msk [vmem:[#allocation2 + $0x231] sm:$0xff] %vm1984_vm4, %v1980_v5  ;;  %v1950_v42 = vmax.f32 %v1854_v44, %v1886_v28  ;;  %12398 = vmatmul.mubr.msk.f32.gmra.mrb[144].mxu0 %vm1984_vm4, %v16259_v60  ;;  %12969 = vmatprep.mubr.msk.f32.mxu1 %vm1984_vm4, %v16259_v60  ;;  %v16352_v58 = vld [vmem:[#allocation2 + $0x1a1] sm:$0xff]  ;;  %v16360_v62 = vld [vmem:[#allocation2 + $0x1b1] sm:$0xff] }
 0x242   : > { %v1983_v9 = vmax.f32 %v18365_v13, %v1951_v37  ;;  %12400 = vmatprep.mubr.msk.f32.mxu0 %vm1984_vm4, %v16266_v2  ;;  %12970 = vmatmul.mubr.msk.f32.gmra.mrb[12].mxu1 %vm1984_vm4, %v16266_v2  ;;  %v2102_v63 = vld [vmem:[#allocation2] sm:$0xff]  ;;  %v2782_v4 = vld [vmem:[#allocation5 + $0x50] sm:$0xff]  ;;  %v3110_v5 = vld [vmem:[#allocation5 + $0x68] sm:$0xff] }
 0x243   : > { %v1982_v40 = vmax.f32 %v18366_v22, %v1950_v42  ;;  %v16282_v31 = vld [vmem:[#allocation2 + $0x220] sm:$0xff]  ;;  %v16369_v11 = vld [vmem:[#allocation2 + $0x10] sm:$0xff]  ;;  %v13811_v35 = vpack.c.bf16 %v2783_v21, %v2782_v4 }
 0x244   : > { %2101 = vst.msk [vmem:[#allocation2 + $0x261] sm:$0xff] %vm1984_vm4, %v1983_v9  ;;  %v16275_v45 = vld [vmem:[#allocation2 + $0x210] sm:$0xff]  ;;  %v16373_v44 = vld [vmem:[#allocation2 + $0x20] sm:$0xff] }
 0x245   : > { %2100 = vst.msk [vmem:[#allocation2 + $0x251] sm:$0xff] %vm1984_vm4, %v1982_v40  ;;  %12401 = vmatmul.mubr.msk.f32.gmra.mrb[146].mxu0 %vm1984_vm4, %v16275_v45  ;;  %12972 = vmatprep.mubr.msk.f32.mxu1 %vm1984_vm4, %v16275_v45  ;;  %v3109_v24 = vld [vmem:[#allocation5 + $0x60] sm:$0xff]  ;;  %v16413_v13 = vld [vmem:[#allocation2 + $0x70] sm:$0xff] }
 0x246   : > { %12403 = vmatprep.mubr.msk.f32.mxu0 %vm1984_vm4, %v16282_v31  ;;  %12973 = vmatmul.mubr.msk.f32.gmra.mrb[14].mxu1 %vm1984_vm4, %v16282_v31  ;;  %v16386_v28 = vpack.c.bf16 %v3110_v5, %v3109_v24  ;;  %v16390_v37 = vld [vmem:[#allocation2 + $0x40] sm:$0xff]  ;;  %v3439_v6 = vld [vmem:[#allocation5 + $0x88] sm:$0xff]  ;;  %v3441_v24 = vld [vmem:[#allocation5 + $0x98] sm:$0x3f] }
 0x247   : > { %v16294_v17 = vld [vmem:[#allocation2 + $0x240] sm:$0xff]  ;;  %v6804_v21 = vld [vmem:[#allocation5 + $0x1e8] sm:$0xff]  ;;  %v16708_v5 = vld [vmem:[#allocation2 + $0x12] sm:$0xff] }
 0x248   : > { %v16288_v53 = vld [vmem:[#allocation2 + $0x230] sm:$0xff]  ;;  %v16405_v42 = vld [vmem:[#allocation2 + $0x60] sm:$0xff] }
 0x249   : > { %12404 = vmatmul.mubr.msk.f32.gmra.mrb[148].mxu0 %vm1984_vm4, %v16288_v53  ;;  %12975 = vmatprep.mubr.msk.f32.mxu1 %vm1984_vm4, %v16288_v53  ;;  %v16417_v9 = vld [vmem:[#allocation2 + $0x81] sm:$0xff] }
 0x24a   : > { %12406 = vmatprep.mubr.msk.f32.mxu0 %vm1984_vm4, %v16294_v17  ;;  %12976 = vmatmul.mubr.msk.f32.gmra.mrb[16].mxu1 %vm1984_vm4, %v16294_v17  ;;  %v14853_v22 = vld [vmem:[#allocation2 + $0xa0] sm:$0xff] }
 0x24b   : > { %v16308_v47 = vld [vmem:[#allocation2 + $0x260] sm:$0xff] }
 0x24c   : > { %v16302_v19 = vld [vmem:[#allocation2 + $0x250] sm:$0xff]  ;;  %v16536_v40 = vld [vmem:[#allocation2 + $0xc1] sm:$0xff] }
 0x24d   : > { %12407 = vmatmul.mubr.msk.f32.gmra.mrb[150].mxu0 %vm1984_vm4, %v16302_v19  ;;  %12978 = vmatprep.mubr.msk.f32.mxu1 %vm1984_vm4, %v16302_v19  ;;  %v3438_v52 = vld [vmem:[#allocation5 + $0x80] sm:$0xff] }
 0x24e   : > { %12979 = vmatmul.mubr.msk.f32.gmra.mrb[18].mxu1 %vm1984_vm4, %v16308_v47  ;;  %12409 = vmatprep.mubr.msk.f32.mxu0 %vm1984_vm4, %v16300_v23  ;;  %v16578_v3 = vld [vmem:[#allocation2 + $0xa1] sm:$0xff] }
 0x24f   : > { %12989 = vmatprep.mubr.msk.f32.mxu1 %vm1984_vm4, %v16060_v32  ;;  %v16582_v46 = vld [vmem:[#allocation2 + $0x121] sm:$0xff] }
 0x250   : > { %v6803_v4 = vld [vmem:[#allocation5 + $0x1e0] sm:$0xff] }
 0x251   : > { %12410 = vmatmul.mubr.msk.f32.gmra.mrb[152].mxu0 %vm1984_vm4, %v16316_v26 }
 0x252   : > { %12412 = vmatprep.mubr.msk.f32.mxu0 %vm1984_vm4, %v16320_v51  ;;  %12990 = vmatmul.mubr.msk.f32.vlgmr.msra.gmra.mrb[20].mxu1 %vm1984_vm4, %v16066_v61 }
 0x253   : > { %13910 = vmatpush3.bf16.msra.mxu1 %v16135_v54  ;;  %12992 = vmatprep.mubr.msk.f32.mxu1 %vm1984_vm4, %v16083_v48  ;;  %v16347_v54 = vld [vmem:[#allocation2 + $0x191] sm:$0xff] }
 0x254   : > { %13913 = vmatprep.subr.msk.bf16.mxu1 %vm15813_vm7, %v13911_v8 }
 0x255   : > { %12413 = vmatmul.mubr.msk.f32.gmra.mrb[154].mxu0 %vm1984_vm4, %v16329_v30 }
 0x256   : > { %12415 = vmatprep.mubr.msk.f32.mxu0 %vm1984_vm4, %v16337_v43  ;;  %12993 = vmatmul.mubr.msk.f32.gmra.mrb[22].mxu1 %vm1984_vm4, %v16089_v15 }
 0x257   : > { %12995 = vmatprep.mubr.msk.f32.mxu1 %vm1984_vm4, %v16106_v59  ;;  %13916 = vmatpush3.bf16.msk.msra.mxu1 %vm15813_vm7, %v13911_v8  ;;  %v16542_v8 = vld [vmem:[#allocation2 + $0xd1] sm:$0xff] }
 0x258   : > { %13918 = vmatprep.subr.bf16.mxu1 %v16333_v18 }
 0x259   : > { %12416 = vmatmul.mubr.msk.f32.gmra.mrb[156].mxu0 %vm1984_vm4, %v16347_v54 }
 0x25a   : > { %12418 = vmatprep.mubr.msk.f32.mxu0 %vm1984_vm4, %v16352_v58  ;;  %12996 = vmatmul.mubr.msk.f32.gmra.mrb[24].mxu1 %vm1984_vm4, %v16114_v34 }
 0x25b   : > { %12998 = vmatprep.mubr.msk.f32.mxu1 %vm1984_vm4, %v16131_v55 }
 0x25d   : > { %12419 = vmatmul.mubr.msk.f32.gmra.mrb[158].mxu0 %vm1984_vm4, %v16360_v62 }
 0x25e   : > { %12999 = vmatmul.mubr.msk.f32.gmra.mrb[26].mxu1 %vm1984_vm4, %v16143_v41  ;;  %12429 = vmatprep.mubr.msk.f32.mxu0 %vm1984_vm4, %v2102_v63  ;;  %v16382_v41 = vld [vmem:[#allocation2 + $0x30] sm:$0xff]  ;;  %v6499_v63 = vld [vmem:[#allocation5 + $0x1d8] sm:$0x3f] }
 0x25f   : > { %13001 = vmatprep.mubr.msk.f32.mxu1 %vm1984_vm4, %v16159_v33 }
 0x261   : > { %12430 = vmatmul.mubr.msk.f32.vlgmr.msra.gmra.mrb[128].mxu0 %vm1984_vm4, %v16369_v11 }
 0x262   : > { %12432 = vmatprep.mubr.msk.f32.mxu0 %vm1984_vm4, %v16373_v44  ;;  %13002 = vmatmul.mubr.msk.f32.gmra.mrb[28].mxu1 %vm1984_vm4, %v16170_v1 }
 0x263   : > { %13004 = vmatprep.mubr.msk.f32.mxu1 %vm1984_vm4, %v16186_v27  ;;  %13810 = vmatpush3.bf16.msra.mxu0 %v16079_v25  ;;  %v16400_v25 = vld [vmem:[#allocation2 + $0x50] sm:$0xff] }
 0x264   : > { %13813 = vmatprep.subr.msk.bf16.mxu0 %vm15813_vm7, %v13811_v35 }
 0x265   : > { %12433 = vmatmul.mubr.msk.f32.gmra.mrb[130].mxu0 %vm1984_vm4, %v16382_v41 }
 0x266   : > { %12435 = vmatprep.mubr.msk.f32.mxu0 %vm1984_vm4, %v16390_v37  ;;  %13005 = vmatmul.mubr.msk.f32.gmra.mrb[30].mxu1 %vm1984_vm4, %v16196_v38 }
 0x267   : > { %13007 = vmatprep.mubr.msk.f32.mxu1 %vm1984_vm4, %v16212_v16  ;;  %13816 = vmatpush3.bf16.msk.msra.mxu0 %vm15813_vm7, %v13811_v35  ;;  %v3440_v35 = vld [vmem:[#allocation5 + $0x90] sm:$0xff] }
 0x268   : > { %13818 = vmatprep.subr.bf16.mxu0 %v16386_v28 }
 0x269   : > { %12436 = vmatmul.mubr.msk.f32.gmra.mrb[132].mxu0 %vm1984_vm4, %v16400_v25 }
 0x26a   : > { %12438 = vmatprep.mubr.msk.f32.mxu0 %vm1984_vm4, %v16405_v42  ;;  %13008 = vmatmul.mubr.msk.f32.gmra.mrb[0].mxu1 %vm1984_vm4, %v16222_v20 }
 0x26b   : > { %13010 = vmatprep.mubr.msk.f32.mxu1 %vm1984_vm4, %v16240_v50 }
 0x26d   : > { %12439 = vmatmul.mubr.msk.f32.gmra.mrb[134].mxu0 %vm1984_vm4, %v16413_v13 }
 0x26e   : > { %13011 = vmatmul.mubr.msk.f32.gmra.mrb[2].mxu1 %vm1984_vm4, %v16417_v9  ;;  %12441 = vmatprep.mubr.msk.f32.mxu0 %vm1984_vm4, %v14853_v22  ;;  %v3767_v22 = vld [vmem:[#allocation5 + $0xa0] sm:$0xff] }
 0x26f   : > { %13013 = vmatprep.mubr.msk.f32.mxu1 %vm1984_vm4, %v16259_v60 }
 0x271   : > { %12442 = vmatmul.mubr.msk.f32.gmra.mrb[136].mxu0 %vm1984_vm4, %v16060_v32  ;;  %v16448_v32 = vld [vmem:[#allocation2 + $0x140] sm:$0xff] }
 0x272   : > { %12444 = vmatprep.mubr.msk.f32.mxu0 %vm1984_vm4, %v16066_v61  ;;  %13014 = vmatmul.mubr.msk.f32.gmra.mrb[4].mxu1 %vm1984_vm4, %v16266_v2  ;;  %v16484_v61 = vld [vmem:[#allocation2 + $0x1c1] sm:$0xff] }
 0x273   : > { %13016 = vmatprep.mubr.msk.f32.mxu1 %vm1984_vm4, %v16275_v45 }
 0x275   : > { %12445 = vmatmul.mubr.msk.f32.gmra.mrb[138].mxu0 %vm1984_vm4, %v16083_v48  ;;  %v6201_v48 = vld [vmem:[#allocation5 + $0x1b0] sm:$0xff] }
 0x276   : > { %12447 = vmatprep.mubr.msk.f32.mxu0 %vm1984_vm4, %v16089_v15  ;;  %13017 = vmatmul.mubr.msk.f32.gmra.mrb[6].mxu1 %vm1984_vm4, %v16282_v31  ;;  %v6202_v15 = vld [vmem:[#allocation5 + $0x1b8] sm:$0x3f] }
 0x277   : > { %13019 = vmatprep.mubr.msk.f32.mxu1 %vm1984_vm4, %v16288_v53 }
 0x279   : > { %12448 = vmatmul.mubr.msk.f32.gmra.mrb[140].mxu0 %vm1984_vm4, %v16106_v59  ;;  %v13921_v59 = vpack.c.bf16 %v6202_v15, %v6201_v48  ;;  %v3768_v48 = vld [vmem:[#allocation5 + $0xa8] sm:$0xff]  ;;  %v16722_v15 = vld [vmem:[#allocation2 + $0x32] sm:$0xff] }
 0x27a   : > { %12450 = vmatprep.mubr.msk.f32.mxu0 %vm1984_vm4, %v16114_v34  ;;  %13020 = vmatmul.mubr.msk.f32.gmra.mrb[8].mxu1 %vm1984_vm4, %v16294_v17  ;;  %v6496_v34 = vld [vmem:[#allocation5 + $0x1c0] sm:$0xff] }
 0x27b   : > { %13022 = vmatprep.mubr.msk.f32.mxu1 %vm1984_vm4, %v16302_v19 }
 0x27d   : > { %12451 = vmatmul.mubr.msk.f32.gmra.mrb[142].mxu0 %vm1984_vm4, %v16131_v55  ;;  %v6497_v55 = vld [vmem:[#allocation5 + $0x1c8] sm:$0xff] }
 0x27e   : > { %13023 = vmatmul.mubr.msk.f32.gmra.mrb[10].mxu1 %vm1984_vm4, %v16308_v47  ;;  %12453 = vmatprep.mubr.msk.f32.mxu0 %vm1984_vm4, %v16448_v32 }
 0x27f   : > { %13025 = vmatprep.mubr.msk.f32.mxu1 %vm1984_vm4, %v16316_v26 }
 0x281   : > { %12454 = vmatmul.mubr.msk.f32.gmra.mrb[144].mxu0 %vm1984_vm4, %v16161_v49  ;;  %v16503_v49 = vpack.c.bf16 %v6497_v55, %v6496_v34  ;;  %v16733_v34 = vld [vmem:[#allocation2 + $0x42] sm:$0xff]  ;;  %v16739_v55 = vld [vmem:[#allocation2 + $0x52] sm:$0xff] }
 0x282   : > { %12456 = vmatprep.mubr.msk.f32.mxu0 %vm1984_vm4, %v16172_v7  ;;  %13026 = vmatmul.mubr.msk.f32.gmra.mrb[12].mxu1 %vm1984_vm4, %v16320_v51  ;;  %v3111_v7 = vld [vmem:[#allocation5 + $0x70] sm:$0xff] }
 0x283   : > { %13028 = vmatprep.mubr.msk.f32.mxu1 %vm1984_vm4, %v16329_v30 }
 0x285   : > { %12457 = vmatmul.mubr.msk.f32.gmra.mrb[146].mxu0 %vm1984_vm4, %v16188_v0  ;;  %v3112_v0 = vld [vmem:[#allocation5 + $0x78] sm:$0x3f] }
 0x286   : > { %12459 = vmatprep.mubr.msk.f32.mxu0 %vm1984_vm4, %v16198_v29  ;;  %13029 = vmatmul.mubr.msk.f32.gmra.mrb[14].mxu1 %vm1984_vm4, %v16337_v43  ;;  %v16528_v29 = vld [vmem:[#allocation2 + $0xb1] sm:$0xff] }
 0x287   : > { %13031 = vmatprep.mubr.msk.f32.mxu1 %vm1984_vm4, %v16347_v54 }
 0x289   : > { %12460 = vmatmul.mubr.msk.f32.gmra.mrb[148].mxu0 %vm1984_vm4, %v16214_v56 }
 0x28a   : > { %12462 = vmatprep.mubr.msk.f32.mxu0 %vm1984_vm4, %v16224_v10  ;;  %13032 = vmatmul.mubr.msk.f32.gmra.mrb[16].mxu1 %vm1984_vm4, %v16352_v58 }
 0x28b   : > { %13034 = vmatprep.mubr.msk.f32.mxu1 %vm1984_vm4, %v16360_v62 }
 0x28d   : > { %12463 = vmatmul.mubr.msk.f32.gmra.mrb[150].mxu0 %vm1984_vm4, %v16242_v36 }
 0x28e   : > { %13035 = vmatmul.mubr.msk.f32.gmra.mrb[18].mxu1 %vm1984_vm4, %v16484_v61  ;;  %12465 = vmatprep.mubr.msk.f32.mxu0 %vm1984_vm4, %v16236_v57  ;;  %v13821_v57 = vpack.c.bf16 %v3112_v0, %v3111_v7  ;;  %v16754_v7 = vld [vmem:[#allocation2 + $0x72] sm:$0xff]  ;;  %v16758_v0 = vld [vmem:[#allocation2 + $0x2] sm:$0xff] }
 0x28f   : > { %13045 = vmatprep.mubr.msk.f32.mxu1 %vm1984_vm4, %v16159_v33 }
 0x291   : > { %12466 = vmatmul.mubr.msk.f32.gmra.mrb[152].mxu0 %vm1984_vm4, %v16259_v60 }
 0x292   : > { %12468 = vmatprep.mubr.msk.f32.mxu0 %vm1984_vm4, %v16266_v2  ;;  %13046 = vmatmul.mubr.msk.f32.vlgmr.msra.gmra.mrb[20].mxu1 %vm1984_vm4, %v16170_v1 }
 0x293   : > { %13920 = vmatpush3.bf16.msra.mxu1 %v16333_v18  ;;  %13048 = vmatprep.mubr.msk.f32.mxu1 %vm1984_vm4, %v16186_v27  ;;  %v16660_v18 = vld [vmem:[#allocation2 + $0x1e1] sm:$0xff] }
 0x294   : > { %13923 = vmatprep.subr.msk.bf16.mxu1 %vm15813_vm7, %v13921_v59 }
 0x295   : > { %12469 = vmatmul.mubr.msk.f32.gmra.mrb[154].mxu0 %vm1984_vm4, %v16275_v45 }
 0x296   : > { %12471 = vmatprep.mubr.msk.f32.mxu0 %vm1984_vm4, %v16282_v31  ;;  %13049 = vmatmul.mubr.msk.f32.gmra.mrb[22].mxu1 %vm1984_vm4, %v16196_v38 }
 0x297   : > { %13051 = vmatprep.mubr.msk.f32.mxu1 %vm1984_vm4, %v16212_v16  ;;  %13926 = vmatpush3.bf16.msk.msra.mxu1 %vm15813_vm7, %v13921_v59  ;;  %v16729_v59 = vpack.c.bf16 %v3768_v48, %v3767_v22  ;;  %v4089_v22 = vld [vmem:[#allocation5 + $0xc8] sm:$0xff]  ;;  %v4972_v48 = vld [vmem:[#allocation2 + $0xd2] sm:$0xff] }
 0x298   : > { %13928 = vmatprep.subr.bf16.mxu1 %v16503_v49 }
 0x299   : > { %12472 = vmatmul.mubr.msk.f32.gmra.mrb[156].mxu0 %vm1984_vm4, %v16288_v53 }
 0x29a   : > { %12474 = vmatprep.mubr.msk.f32.mxu0 %vm1984_vm4, %v16294_v17  ;;  %13052 = vmatmul.mubr.msk.f32.gmra.mrb[24].mxu1 %vm1984_vm4, %v16222_v20 }
 0x29b   : > { %13054 = vmatprep.mubr.msk.f32.mxu1 %vm1984_vm4, %v16240_v50 }
 0x29d   : > { %12475 = vmatmul.mubr.msk.f32.gmra.mrb[158].mxu0 %vm1984_vm4, %v16302_v19 }
 0x29e   : > { %13055 = vmatmul.mubr.msk.f32.gmra.mrb[26].mxu1 %vm1984_vm4, %v16417_v9  ;;  %12485 = vmatprep.mubr.msk.f32.mxu0 %vm1984_vm4, %v16127_v39  ;;  %v16549_v39 = vpack.c.bf16 %v3439_v6, %v3438_v52  ;;  %v16716_v9 = vld [vmem:[#allocation2 + $0x22] sm:$0xff]  ;;  %v16812_v52 = vld [vmem:[#allocation2 + $0x172] sm:$0xff] }
 0x29f   : > { %13057 = vmatprep.mubr.msk.f32.mxu1 %vm1984_vm4, %v16528_v29  ;;  %v16818_v6 = vld [vmem:[#allocation2 + $0x182] sm:$0xff] }
 0x2a1   : > { %12486 = vmatmul.mubr.msk.f32.vlgmr.msra.gmra.mrb[128].mxu0 %vm1984_vm4, %v16159_v33  ;;  %v16553_v33 = vld [vmem:[#allocation2 + $0xe1] sm:$0xff] }
 0x2a2   : > { %12488 = vmatprep.mubr.msk.f32.mxu0 %vm1984_vm4, %v16170_v1  ;;  %13058 = vmatmul.mubr.msk.f32.gmra.mrb[28].mxu1 %vm1984_vm4, %v16536_v40  ;;  %v16559_v1 = vld [vmem:[#allocation2 + $0xf1] sm:$0xff] }
 0x2a3   : > { %13060 = vmatprep.mubr.msk.f32.mxu1 %vm1984_vm4, %v16542_v8  ;;  %13820 = vmatpush3.bf16.msra.mxu0 %v16386_v28  ;;  %v13831_v28 = vpack.c.bf16 %v3441_v24, %v3440_v35  ;;  %v4971_v24 = vld [vmem:[#allocation2 + $0xc2] sm:$0xff] }
 0x2a4   : > { %13823 = vmatprep.subr.msk.bf16.mxu0 %vm15813_vm7, %v13821_v57 }
 0x2a5   : > { %12489 = vmatmul.mubr.msk.f32.gmra.mrb[130].mxu0 %vm1984_vm4, %v16186_v27  ;;  %v16568_v27 = vld [vmem:[#allocation2 + $0x101] sm:$0xff] }
 0x2a6   : > { %12491 = vmatprep.mubr.msk.f32.mxu0 %vm1984_vm4, %v16196_v38  ;;  %13061 = vmatmul.mubr.msk.f32.gmra.mrb[30].mxu1 %vm1984_vm4, %v16553_v33  ;;  %v16574_v38 = vld [vmem:[#allocation2 + $0x111] sm:$0xff] }
 0x2a7   : > { %13063 = vmatprep.mubr.msk.f32.mxu1 %vm1984_vm4, %v16559_v1  ;;  %13826 = vmatpush3.bf16.msk.msra.mxu0 %vm15813_vm7, %v13821_v57  ;;  %v16798_v57 = vld [vmem:[#allocation2 + $0x152] sm:$0xff] }
 0x2a8   : > { %13828 = vmatprep.subr.bf16.mxu0 %v16549_v39 }
 0x2a9   : > { %12492 = vmatmul.mubr.msk.f32.gmra.mrb[132].mxu0 %vm1984_vm4, %v16212_v16  ;;  %v16618_v16 = vld [vmem:[#allocation2 + $0x1f1] sm:$0xff] }
 0x2aa   : > { %12494 = vmatprep.mubr.msk.f32.mxu0 %vm1984_vm4, %v16222_v20  ;;  %13064 = vmatmul.mubr.msk.f32.gmra.mrb[0].mxu1 %vm1984_vm4, %v16568_v27  ;;  %v16626_v20 = vld [vmem:[#allocation2 + $0x201] sm:$0xff] }
 0x2ab   : > { %13066 = vmatprep.mubr.msk.f32.mxu1 %vm1984_vm4, %v16574_v38 }
 0x2ad   : > { %12495 = vmatmul.mubr.msk.f32.gmra.mrb[134].mxu0 %vm1984_vm4, %v16240_v50  ;;  %v16632_v50 = vld [vmem:[#allocation2 + $0x211] sm:$0xff] }
 0x2ae   : > { %13067 = vmatmul.mubr.msk.f32.gmra.mrb[2].mxu1 %vm1984_vm4, %v16582_v46  ;;  %12497 = vmatprep.mubr.msk.f32.mxu0 %vm1984_vm4, %v16578_v3 }
 0x2af   : > { %13069 = vmatprep.mubr.msk.f32.mxu1 %vm1984_vm4, %v16316_v26 }
 0x2b1   : > { %12498 = vmatmul.mubr.msk.f32.gmra.mrb[136].mxu0 %vm1984_vm4, %v16528_v29 }
 0x2b2   : > { %12500 = vmatprep.mubr.msk.f32.mxu0 %vm1984_vm4, %v16536_v40  ;;  %13070 = vmatmul.mubr.msk.f32.gmra.mrb[4].mxu1 %vm1984_vm4, %v16320_v51 }
 0x2b3   : > { %13072 = vmatprep.mubr.msk.f32.mxu1 %vm1984_vm4, %v16329_v30 }
 0x2b5   : > { %12501 = vmatmul.mubr.msk.f32.gmra.mrb[138].mxu0 %vm1984_vm4, %v16542_v8 }
 0x2b6   : > { %12503 = vmatprep.mubr.msk.f32.mxu0 %vm1984_vm4, %v16553_v33  ;;  %13073 = vmatmul.mubr.msk.f32.gmra.mrb[6].mxu1 %vm1984_vm4, %v16337_v43 }
 0x2b7   : > { %13075 = vmatprep.mubr.msk.f32.mxu1 %vm1984_vm4, %v16347_v54 }
 0x2b9   : > { %12504 = vmatmul.mubr.msk.f32.gmra.mrb[140].mxu0 %vm1984_vm4, %v16559_v1 }
 0x2ba   : > { %12506 = vmatprep.mubr.msk.f32.mxu0 %vm1984_vm4, %v16568_v27  ;;  %13076 = vmatmul.mubr.msk.f32.gmra.mrb[8].mxu1 %vm1984_vm4, %v16352_v58 }
 0x2bb   : > { %13078 = vmatprep.mubr.msk.f32.mxu1 %vm1984_vm4, %v16360_v62 }
 0x2bd   : > { %12507 = vmatmul.mubr.msk.f32.gmra.mrb[142].mxu0 %vm1984_vm4, %v16574_v38 }
 0x2be   : > { %13079 = vmatmul.mubr.msk.f32.gmra.mrb[10].mxu1 %vm1984_vm4, %v16484_v61  ;;  %12509 = vmatprep.mubr.msk.f32.mxu0 %vm1984_vm4, %v16300_v23  ;;  %v16638_v23 = vld [vmem:[#allocation2 + $0x221] sm:$0xff] }
 0x2bf   : > { %13081 = vmatprep.mubr.msk.f32.mxu1 %vm1984_vm4, %v16618_v16 }
 0x2c1   : > { %12510 = vmatmul.mubr.msk.f32.gmra.mrb[144].mxu0 %vm1984_vm4, %v16316_v26  ;;  %v16644_v26 = vld [vmem:[#allocation2 + $0x231] sm:$0xff] }
 0x2c2   : > { %12512 = vmatprep.mubr.msk.f32.mxu0 %vm1984_vm4, %v16320_v51  ;;  %13082 = vmatmul.mubr.msk.f32.gmra.mrb[12].mxu1 %vm1984_vm4, %v16626_v20  ;;  %v16650_v51 = vld [vmem:[#allocation2 + $0x241] sm:$0xff] }
 0x2c3   : > { %13084 = vmatprep.mubr.msk.f32.mxu1 %vm1984_vm4, %v16632_v50 }
 0x2c5   : > { %12513 = vmatmul.mubr.msk.f32.gmra.mrb[146].mxu0 %vm1984_vm4, %v16329_v30  ;;  %v16656_v30 = vld [vmem:[#allocation2 + $0x251] sm:$0xff] }
 0x2c6   : > { %12515 = vmatprep.mubr.msk.f32.mxu0 %vm1984_vm4, %v16337_v43  ;;  %13085 = vmatmul.mubr.msk.f32.gmra.mrb[14].mxu1 %vm1984_vm4, %v16638_v23  ;;  %v16664_v43 = vld [vmem:[#allocation2 + $0x261] sm:$0xff] }
 0x2c7   : > { %13087 = vmatprep.mubr.msk.f32.mxu1 %vm1984_vm4, %v16644_v26 }
 0x2c9   : > { %12516 = vmatmul.mubr.msk.f32.gmra.mrb[148].mxu0 %vm1984_vm4, %v16347_v54  ;;  %v6498_v54 = vld [vmem:[#allocation5 + $0x1d0] sm:$0xff] }
 0x2ca   : > { %12518 = vmatprep.mubr.msk.f32.mxu0 %vm1984_vm4, %v16352_v58  ;;  %13088 = vmatmul.mubr.msk.f32.gmra.mrb[16].mxu1 %vm1984_vm4, %v16650_v51  ;;  %v13931_v58 = vpack.c.bf16 %v6499_v63, %v6498_v54  ;;  %v7124_v54 = vld [vmem:[#allocation5 + $0x200] sm:$0xff]  ;;  %v7125_v63 = vld [vmem:[#allocation5 + $0x208] sm:$0xff] }
 0x2cb   : > { %13090 = vmatprep.mubr.msk.f32.mxu1 %vm1984_vm4, %v16656_v30 }
 0x2cd   : > { %12519 = vmatmul.mubr.msk.f32.gmra.mrb[150].mxu0 %vm1984_vm4, %v16360_v62  ;;  %v16683_v62 = vpack.c.bf16 %v6804_v21, %v6803_v4  ;;  %v3769_v4 = vld [vmem:[#allocation5 + $0xb0] sm:$0xff]  ;;  %v3770_v21 = vld [vmem:[#allocation5 + $0xb8] sm:$0x3f] }
 0x2ce   : > { %13091 = vmatmul.mubr.msk.f32.gmra.mrb[18].mxu1 %vm1984_vm4, %v16664_v43  ;;  %12521 = vmatprep.mubr.msk.f32.mxu0 %vm1984_vm4, %v16660_v18  ;;  %v13841_v35 = vpack.c.bf16 %v3770_v21, %v3769_v4  ;;  %v16990_v4 = vld [vmem:[#allocation2 + $0x262] sm:$0xff]  ;;  %v7126_v21 = vld [vmem:[#allocation5 + $0x210] sm:$0xff] }
 0x2cf   : > { %13101 = vmatprep.mubr.msk.f32.mxu1 %vm1984_vm4, %v16528_v29 }
 0x2d1   : > { %12522 = vmatmul.mubr.msk.f32.gmra.mrb[152].mxu0 %vm1984_vm4, %v16618_v16 }
 0x2d2   : > { %12524 = vmatprep.mubr.msk.f32.mxu0 %vm1984_vm4, %v16626_v20  ;;  %13102 = vmatmul.mubr.msk.f32.vlgmr.msra.gmra.mrb[20].mxu1 %vm1984_vm4, %v16536_v40 }
 0x2d3   : > { %13930 = vmatpush3.bf16.msra.mxu1 %v16503_v49  ;;  %13104 = vmatprep.mubr.msk.f32.mxu1 %vm1984_vm4, %v16542_v8  ;;  %v16748_v49 = vld [vmem:[#allocation2 + $0x62] sm:$0xff] }
 0x2d4   : > { %13933 = vmatprep.subr.msk.bf16.mxu1 %vm15813_vm7, %v13931_v58 }
 0x2d5   : > { %12525 = vmatmul.mubr.msk.f32.gmra.mrb[154].mxu0 %vm1984_vm4, %v16632_v50 }
 0x2d6   : > { %12527 = vmatprep.mubr.msk.f32.mxu0 %vm1984_vm4, %v16638_v23  ;;  %13105 = vmatmul.mubr.msk.f32.gmra.mrb[22].mxu1 %vm1984_vm4, %v16553_v33 }
 0x2d7   : > { %13107 = vmatprep.mubr.msk.f32.mxu1 %vm1984_vm4, %v16559_v1  ;;  %13936 = vmatpush3.bf16.msk.msra.mxu1 %vm15813_vm7, %v13931_v58  ;;  %v16863_v58 = vpack.c.bf16 %v7125_v63, %v7124_v54  ;;  %v16982_v54 = vld [vmem:[#allocation2 + $0x252] sm:$0xff]  ;;  %v16986_v63 = vld [vmem:[#allocation2 + $0x1e2] sm:$0xff] }
 0x2d8   : > { %13938 = vmatprep.subr.bf16.mxu1 %v16683_v62 }
 0x2d9   : > { %12528 = vmatmul.mubr.msk.f32.gmra.mrb[156].mxu0 %vm1984_vm4, %v16644_v26 }
 0x2da   : > { %12530 = vmatprep.mubr.msk.f32.mxu0 %vm1984_vm4, %v16650_v51  ;;  %13108 = vmatmul.mubr.msk.f32.gmra.mrb[24].mxu1 %vm1984_vm4, %v16568_v27 }
 0x2db   : > { %13110 = vmatprep.mubr.msk.f32.mxu1 %vm1984_vm4, %v16574_v38 }
 0x2dd   : > { %12531 = vmatmul.mubr.msk.f32.gmra.mrb[158].mxu0 %vm1984_vm4, %v16656_v30 }
 0x2de   : > { %13111 = vmatmul.mubr.msk.f32.gmra.mrb[26].mxu1 %vm1984_vm4, %v16582_v46  ;;  %12541 = vmatprep.mubr.msk.f32.mxu0 %vm1984_vm4, %v16578_v3  ;;  %v6806_v3 = vld [vmem:[#allocation5 + $0x1f8] sm:$0x3f] }
 0x2df   : > { %13113 = vmatprep.mubr.msk.f32.mxu1 %vm1984_vm4, %v16708_v5 }
 0x2e1   : > { %12542 = vmatmul.mubr.msk.f32.vlgmr.msra.gmra.mrb[128].mxu0 %vm1984_vm4, %v16528_v29  ;;  %v16762_v29 = vld [vmem:[#allocation2 + $0x82] sm:$0xff] }
 0x2e2   : > { %12544 = vmatprep.mubr.msk.f32.mxu0 %vm1984_vm4, %v16536_v40  ;;  %13114 = vmatmul.mubr.msk.f32.gmra.mrb[28].mxu1 %vm1984_vm4, %v16716_v9  ;;  %v16806_v40 = vld [vmem:[#allocation2 + $0x162] sm:$0xff] }
 0x2e3   : > { %13116 = vmatprep.mubr.msk.f32.mxu1 %vm1984_vm4, %v16722_v15  ;;  %13830 = vmatpush3.bf16.msra.mxu0 %v16549_v39  ;;  %v16830_v39 = vld [vmem:[#allocation2 + $0x1a2] sm:$0xff] }
 0x2e4   : > { %13833 = vmatprep.subr.msk.bf16.mxu0 %vm15813_vm7, %v13831_v28 }
 0x2e5   : > { %12545 = vmatmul.mubr.msk.f32.gmra.mrb[130].mxu0 %vm1984_vm4, %v16542_v8  ;;  %v16824_v8 = vld [vmem:[#allocation2 + $0x192] sm:$0xff] }
 0x2e6   : > { %12547 = vmatprep.mubr.msk.f32.mxu0 %vm1984_vm4, %v16553_v33  ;;  %13117 = vmatmul.mubr.msk.f32.gmra.mrb[30].mxu1 %vm1984_vm4, %v16733_v34  ;;  %v16836_v33 = vld [vmem:[#allocation2 + $0x1b2] sm:$0xff] }
 0x2e7   : > { %13119 = vmatprep.mubr.msk.f32.mxu1 %vm1984_vm4, %v16739_v55  ;;  %13836 = vmatpush3.bf16.msk.msra.mxu0 %vm15813_vm7, %v13831_v28  ;;  %v4088_v28 = vld [vmem:[#allocation5 + $0xc0] sm:$0xff] }
 0x2e8   : > { %13838 = vmatprep.subr.bf16.mxu0 %v16729_v59 }
 0x2e9   : > { %12548 = vmatmul.mubr.msk.f32.gmra.mrb[132].mxu0 %vm1984_vm4, %v16559_v1  ;;  %v16840_v1 = vld [vmem:[#allocation2 + $0x142] sm:$0xff] }
 0x2ea   : > { %12550 = vmatprep.mubr.msk.f32.mxu0 %vm1984_vm4, %v16568_v27  ;;  %13120 = vmatmul.mubr.msk.f32.gmra.mrb[0].mxu1 %vm1984_vm4, %v16748_v49  ;;  %v16844_v27 = vld [vmem:[#allocation2 + $0x1c2] sm:$0xff] }
 0x2eb   : > { %13122 = vmatprep.mubr.msk.f32.mxu1 %vm1984_vm4, %v16754_v7 }
 0x2ed   : > { %12551 = vmatmul.mubr.msk.f32.gmra.mrb[134].mxu0 %vm1984_vm4, %v16574_v38  ;;  %v6805_v38 = vld [vmem:[#allocation5 + $0x1f0] sm:$0xff] }
 0x2ee   : > { %13123 = vmatmul.mubr.msk.f32.gmra.mrb[2].mxu1 %vm1984_vm4, %v16762_v29  ;;  %12553 = vmatprep.mubr.msk.f32.mxu0 %vm1984_vm4, %v16758_v0  ;;  %v13941_v46 = vpack.c.bf16 %v6806_v3, %v6805_v38  ;;  %v16964_v38 = vld [vmem:[#allocation2 + $0x222] sm:$0xff]  ;;  %v16970_v3 = vld [vmem:[#allocation2 + $0x232] sm:$0xff] }
 0x2ef   : > { %13125 = vmatprep.mubr.msk.f32.mxu1 %vm1984_vm4, %v16618_v16 }
 0x2f1   : > { %12554 = vmatmul.mubr.msk.f32.gmra.mrb[136].mxu0 %vm1984_vm4, %v16708_v5 }
 0x2f2   : > { %12556 = vmatprep.mubr.msk.f32.mxu0 %vm1984_vm4, %v16716_v9  ;;  %13126 = vmatmul.mubr.msk.f32.gmra.mrb[4].mxu1 %vm1984_vm4, %v16626_v20 }
 0x2f3   : > { %13128 = vmatprep.mubr.msk.f32.mxu1 %vm1984_vm4, %v16632_v50 }
 0x2f5   : > { %12557 = vmatmul.mubr.msk.f32.gmra.mrb[138].mxu0 %vm1984_vm4, %v16722_v15 }
 0x2f6   : > { %12559 = vmatprep.mubr.msk.f32.mxu0 %vm1984_vm4, %v16733_v34  ;;  %13129 = vmatmul.mubr.msk.f32.gmra.mrb[6].mxu1 %vm1984_vm4, %v16638_v23 }
 0x2f7   : > { %13131 = vmatprep.mubr.msk.f32.mxu1 %vm1984_vm4, %v16644_v26 }
 0x2f9   : > { %12560 = vmatmul.mubr.msk.f32.gmra.mrb[140].mxu0 %vm1984_vm4, %v16739_v55 }
 0x2fa   : > { %12562 = vmatprep.mubr.msk.f32.mxu0 %vm1984_vm4, %v16748_v49  ;;  %13132 = vmatmul.mubr.msk.f32.gmra.mrb[8].mxu1 %vm1984_vm4, %v16650_v51 }
 0x2fb   : > { %13134 = vmatprep.mubr.msk.f32.mxu1 %vm1984_vm4, %v16656_v30 }
 0x2fd   : > { %12563 = vmatmul.mubr.msk.f32.gmra.mrb[142].mxu0 %vm1984_vm4, %v16754_v7 }
 0x2fe   : > { %13135 = vmatmul.mubr.msk.f32.gmra.mrb[10].mxu1 %vm1984_vm4, %v16664_v43  ;;  %12565 = vmatprep.mubr.msk.f32.mxu0 %vm1984_vm4, %v16660_v18 }
 0x2ff   : > { %13137 = vmatprep.mubr.msk.f32.mxu1 %vm1984_vm4, %v16798_v57 }
 0x301   : > { %12566 = vmatmul.mubr.msk.f32.gmra.mrb[144].mxu0 %vm1984_vm4, %v16618_v16 }
 0x302   : > { %12568 = vmatprep.mubr.msk.f32.mxu0 %vm1984_vm4, %v16626_v20  ;;  %13138 = vmatmul.mubr.msk.f32.gmra.mrb[12].mxu1 %vm1984_vm4, %v16806_v40 }
 0x303   : > { %13140 = vmatprep.mubr.msk.f32.mxu1 %vm1984_vm4, %v16812_v52 }
 0x305   : > { %12569 = vmatmul.mubr.msk.f32.gmra.mrb[146].mxu0 %vm1984_vm4, %v16632_v50 }
 0x306   : > { %12571 = vmatprep.mubr.msk.f32.mxu0 %vm1984_vm4, %v16638_v23  ;;  %13141 = vmatmul.mubr.msk.f32.gmra.mrb[14].mxu1 %vm1984_vm4, %v16818_v6 }
 0x307   : > { %13143 = vmatprep.mubr.msk.f32.mxu1 %vm1984_vm4, %v16824_v8 }
 0x309   : > { %12572 = vmatmul.mubr.msk.f32.gmra.mrb[148].mxu0 %vm1984_vm4, %v16644_v26 }
 0x30a   : > { %12574 = vmatprep.mubr.msk.f32.mxu0 %vm1984_vm4, %v16650_v51  ;;  %13144 = vmatmul.mubr.msk.f32.gmra.mrb[16].mxu1 %vm1984_vm4, %v16830_v39 }
 0x30b   : > { %13146 = vmatprep.mubr.msk.f32.mxu1 %vm1984_vm4, %v16836_v33 }
 0x30d   : > { %12575 = vmatmul.mubr.msk.f32.gmra.mrb[150].mxu0 %vm1984_vm4, %v16656_v30 }
 0x30e   : > { %13147 = vmatmul.mubr.msk.f32.gmra.mrb[18].mxu1 %vm1984_vm4, %v16844_v27  ;;  %12577 = vmatprep.mubr.msk.f32.mxu0 %vm1984_vm4, %v16840_v1 }
 0x30f   : > { %13157 = vmatprep.mubr.msk.f32.mxu1 %vm1984_vm4, %v16708_v5 }
 0x311   : > { %12578 = vmatmul.mubr.msk.f32.gmra.mrb[152].mxu0 %vm1984_vm4, %v16798_v57 }
 0x312   : > { %12580 = vmatprep.mubr.msk.f32.mxu0 %vm1984_vm4, %v16806_v40  ;;  %13158 = vmatmul.mubr.msk.f32.vlgmr.msra.gmra.mrb[20].mxu1 %vm1984_vm4, %v16716_v9 }
 0x313   : > { %13940 = vmatpush3.bf16.msra.mxu1 %v16683_v62  ;;  %13160 = vmatprep.mubr.msk.f32.mxu1 %vm1984_vm4, %v16722_v15  ;;  %v4970_v62 = vld [vmem:[#allocation2 + $0xb2] sm:$0xff] }
 0x314   : > { %13943 = vmatprep.subr.msk.bf16.mxu1 %vm15813_vm7, %v13941_v46 }
 0x315   : > { %12581 = vmatmul.mubr.msk.f32.gmra.mrb[154].mxu0 %vm1984_vm4, %v16812_v52 }
 0x316   : > { %12583 = vmatprep.mubr.msk.f32.mxu0 %vm1984_vm4, %v16818_v6  ;;  %13161 = vmatmul.mubr.msk.f32.gmra.mrb[22].mxu1 %vm1984_vm4, %v16733_v34 }
 0x317   : > { %13163 = vmatprep.mubr.msk.f32.mxu1 %vm1984_vm4, %v16739_v55  ;;  %13946 = vmatpush3.bf16.msk.msra.mxu1 %vm15813_vm7, %v13941_v46  ;;  %v16976_v46 = vld [vmem:[#allocation2 + $0x242] sm:$0xff] }
 0x318   : > { %13948 = vmatprep.subr.bf16.mxu1 %v16863_v58 }
 0x319   : > { %12584 = vmatmul.mubr.msk.f32.gmra.mrb[156].mxu0 %vm1984_vm4, %v16824_v8 }
 0x31a   : > { %12586 = vmatprep.mubr.msk.f32.mxu0 %vm1984_vm4, %v16830_v39  ;;  %13164 = vmatmul.mubr.msk.f32.gmra.mrb[24].mxu1 %vm1984_vm4, %v16748_v49 }
 0x31b   : > { %13166 = vmatprep.mubr.msk.f32.mxu1 %vm1984_vm4, %v16754_v7 }
 0x31d   : > { %12587 = vmatmul.mubr.msk.f32.gmra.mrb[158].mxu0 %vm1984_vm4, %v16836_v33 }
 0x31e   : > { %13167 = vmatmul.mubr.msk.f32.gmra.mrb[26].mxu1 %vm1984_vm4, %v16762_v29  ;;  %12597 = vmatprep.mubr.msk.f32.mxu0 %vm1984_vm4, %v16758_v0  ;;  %v16900_v0 = vpack.c.bf16 %v4089_v22, %v4088_v28  ;;  %v4977_v29 = vld [vmem:[#allocation2 + $0x122] sm:$0xff]  ;;  %v7422_v22 = vld [vmem:[#allocation5 + $0x228] sm:$0xff] }
 0x31f   : > { %13169 = vmatprep.mubr.msk.f32.mxu1 %vm1984_vm4, %v4970_v62  ;;  %v7421_v28 = vld [vmem:[#allocation5 + $0x220] sm:$0xff] }
 0x321   : > { %12598 = vmatmul.mubr.msk.f32.vlgmr.msra.gmra.mrb[128].mxu0 %vm1984_vm4, %v16708_v5  ;;  %v4973_v5 = vld [vmem:[#allocation2 + $0xe2] sm:$0xff] }
 0x322   : > { %12600 = vmatprep.mubr.msk.f32.mxu0 %vm1984_vm4, %v16716_v9  ;;  %13170 = vmatmul.mubr.msk.f32.gmra.mrb[28].mxu1 %vm1984_vm4, %v4971_v24  ;;  %v4974_v9 = vld [vmem:[#allocation2 + $0xf2] sm:$0xff] }
 0x323   : > { %13172 = vmatprep.mubr.msk.f32.mxu1 %vm1984_vm4, %v4972_v48  ;;  %13840 = vmatpush3.bf16.msra.mxu0 %v16729_v59  ;;  %v4975_v59 = vld [vmem:[#allocation2 + $0x102] sm:$0xff] }
 0x324   : > { %13843 = vmatprep.subr.msk.bf16.mxu0 %vm15813_vm7, %v13841_v35 }
 0x325   : > { %12601 = vmatmul.mubr.msk.f32.gmra.mrb[130].mxu0 %vm1984_vm4, %v16722_v15  ;;  %v4976_v15 = vld [vmem:[#allocation2 + $0x112] sm:$0xff] }
 0x326   : > { %12603 = vmatprep.mubr.msk.f32.mxu0 %vm1984_vm4, %v16733_v34  ;;  %13173 = vmatmul.mubr.msk.f32.gmra.mrb[30].mxu1 %vm1984_vm4, %v4973_v5  ;;  %v3421_v34 = vld [vmem:[#allocation2 + $0xa2] sm:$0xff] }
 0x327   : > { %13175 = vmatprep.mubr.msk.f32.mxu1 %vm1984_vm4, %v4974_v9  ;;  %13846 = vmatpush3.bf16.msk.msra.mxu0 %vm15813_vm7, %v13841_v35  ;;  %v14854_v35 = vld [vmem:[#allocation2 + $0x150] sm:$0xff] }
 0x328   : > { %13848 = vmatprep.subr.bf16.mxu0 %v16900_v0 }
 0x329   : > { %12604 = vmatmul.mubr.msk.f32.gmra.mrb[132].mxu0 %vm1984_vm4, %v16739_v55  ;;  %v16944_v55 = vld [vmem:[#allocation2 + $0x1f2] sm:$0xff] }
 0x32a   : > { %12606 = vmatprep.mubr.msk.f32.mxu0 %vm1984_vm4, %v16748_v49  ;;  %13176 = vmatmul.mubr.msk.f32.gmra.mrb[0].mxu1 %vm1984_vm4, %v4975_v59  ;;  %v16952_v49 = vld [vmem:[#allocation2 + $0x202] sm:$0xff] }
 0x32b   : > { %13178 = vmatprep.mubr.msk.f32.mxu1 %vm1984_vm4, %v4976_v15 }
 0x32d   : > { %12607 = vmatmul.mubr.msk.f32.gmra.mrb[134].mxu0 %vm1984_vm4, %v16754_v7  ;;  %v16958_v7 = vld [vmem:[#allocation2 + $0x212] sm:$0xff] }
 0x32e   : > { %13179 = vmatmul.mubr.msk.f32.gmra.mrb[2].mxu1 %vm1984_vm4, %v4977_v29  ;;  %12609 = vmatprep.mubr.msk.f32.mxu0 %vm1984_vm4, %v3421_v34  ;;  %v4386_v34 = vld [vmem:[#allocation5 + $0xe8] sm:$0xff]  ;;  %v17064_v29 = vld [vmem:[#allocation2 + $0x1e0] sm:$0xff] }
 0x32f   : > { %13181 = vmatprep.mubr.msk.f32.mxu1 %vm1984_vm4, %v16798_v57 }
 0x331   : > { %12610 = vmatmul.mubr.msk.f32.gmra.mrb[136].mxu0 %vm1984_vm4, %v4970_v62  ;;  %v7127_v62 = vld [vmem:[#allocation5 + $0x218] sm:$0x3f] }
 0x332   : > { %12612 = vmatprep.mubr.msk.f32.mxu0 %vm1984_vm4, %v4971_v24  ;;  %13182 = vmatmul.mubr.msk.f32.gmra.mrb[4].mxu1 %vm1984_vm4, %v16806_v40  ;;  %v13951_v24 = vpack.c.bf16 %v7127_v62, %v7126_v21  ;;  %v7718_v21 = vld [vmem:[#allocation5 + $0x240] sm:$0xff]  ;;  %v7719_v62 = vld [vmem:[#allocation5 + $0x248] sm:$0xff] }
 0x333   : > { %13184 = vmatprep.mubr.msk.f32.mxu1 %vm1984_vm4, %v16812_v52 }
 0x335   : > { %12613 = vmatmul.mubr.msk.f32.gmra.mrb[138].mxu0 %vm1984_vm4, %v4972_v48  ;;  %v14855_v48 = vld [vmem:[#allocation2 + $0x160] sm:$0xff] }
 0x336   : > { %12615 = vmatprep.mubr.msk.f32.mxu0 %vm1984_vm4, %v4973_v5  ;;  %13185 = vmatmul.mubr.msk.f32.gmra.mrb[6].mxu1 %vm1984_vm4, %v16818_v6  ;;  %v14856_v5 = vld [vmem:[#allocation2 + $0x170] sm:$0xff] }
 0x337   : > { %13187 = vmatprep.mubr.msk.f32.mxu1 %vm1984_vm4, %v16824_v8 }
 0x339   : > { %12616 = vmatmul.mubr.msk.f32.gmra.mrb[140].mxu0 %vm1984_vm4, %v4974_v9  ;;  %v17006_v9 = vpack.c.bf16 %v7422_v22, %v7421_v28  ;;  %v14866_v28 = vld [vmem:[#allocation2 + $0x210] sm:$0xff]  ;;  %v17168_v22 = vpack.c.bf16 %v7719_v62, %v7718_v21  ;;  %v4682_v21 = vld [vmem:[#allocation5 + $0x100] sm:$0xff] }
 0x33a   : > { %12618 = vmatprep.mubr.msk.f32.mxu0 %vm1984_vm4, %v4975_v59  ;;  %13188 = vmatmul.mubr.msk.f32.gmra.mrb[8].mxu1 %vm1984_vm4, %v16830_v39  ;;  %v14857_v59 = vld [vmem:[#allocation2 + $0x180] sm:$0xff]  ;;  %v4683_v62 = vld [vmem:[#allocation5 + $0x108] sm:$0xff] }
 0x33b   : > { %13190 = vmatprep.mubr.msk.f32.mxu1 %vm1984_vm4, %v16836_v33 }
 0x33d   : > { %12619 = vmatmul.mubr.msk.f32.gmra.mrb[142].mxu0 %vm1984_vm4, %v4976_v15 }
 0x33e   : > { %13191 = vmatmul.mubr.msk.f32.gmra.mrb[10].mxu1 %vm1984_vm4, %v16844_v27  ;;  %12621 = vmatprep.mubr.msk.f32.mxu0 %vm1984_vm4, %v16840_v1 }
 0x33f   : > { %13193 = vmatprep.mubr.msk.f32.mxu1 %vm1984_vm4, %v16944_v55 }
 0x341   : > { %12622 = vmatmul.mubr.msk.f32.gmra.mrb[144].mxu0 %vm1984_vm4, %v16798_v57 }
 0x342   : > { %12624 = vmatprep.mubr.msk.f32.mxu0 %vm1984_vm4, %v16806_v40  ;;  %13194 = vmatmul.mubr.msk.f32.gmra.mrb[12].mxu1 %vm1984_vm4, %v16952_v49 }
 0x343   : > { %13196 = vmatprep.mubr.msk.f32.mxu1 %vm1984_vm4, %v16958_v7 }
 0x345   : > { %12625 = vmatmul.mubr.msk.f32.gmra.mrb[146].mxu0 %vm1984_vm4, %v16812_v52 }
 0x346   : > { %12627 = vmatprep.mubr.msk.f32.mxu0 %vm1984_vm4, %v16818_v6  ;;  %13197 = vmatmul.mubr.msk.f32.gmra.mrb[14].mxu1 %vm1984_vm4, %v16964_v38 }
 0x347   : > { %13199 = vmatprep.mubr.msk.f32.mxu1 %vm1984_vm4, %v16970_v3 }
 0x349   : > { %12628 = vmatmul.mubr.msk.f32.gmra.mrb[148].mxu0 %vm1984_vm4, %v16824_v8 }
 0x34a   : > { %12630 = vmatprep.mubr.msk.f32.mxu0 %vm1984_vm4, %v16830_v39  ;;  %13200 = vmatmul.mubr.msk.f32.gmra.mrb[16].mxu1 %vm1984_vm4, %v16976_v46 }
 0x34b   : > { %13202 = vmatprep.mubr.msk.f32.mxu1 %vm1984_vm4, %v16982_v54 }
 0x34d   : > { %12631 = vmatmul.mubr.msk.f32.gmra.mrb[150].mxu0 %vm1984_vm4, %v16836_v33 }
 0x34e   : > { %13203 = vmatmul.mubr.msk.f32.gmra.mrb[18].mxu1 %vm1984_vm4, %v16990_v4  ;;  %12633 = vmatprep.mubr.msk.f32.mxu0 %vm1984_vm4, %v16986_v63 }
 0x34f   : > { %13213 = vmatprep.mubr.msk.f32.mxu1 %vm1984_vm4, %v14854_v35 }
 0x351   : > { %12634 = vmatmul.mubr.msk.f32.gmra.mrb[152].mxu0 %vm1984_vm4, %v16944_v55 }
 0x352   : > { %12636 = vmatprep.mubr.msk.f32.mxu0 %vm1984_vm4, %v16952_v49  ;;  %13214 = vmatmul.mubr.msk.f32.vlgmr.msra.gmra.mrb[20].mxu1 %vm1984_vm4, %v14855_v48 }
 0x353   : > { %13950 = vmatpush3.bf16.msra.mxu1 %v16863_v58  ;;  %13216 = vmatprep.mubr.msk.f32.mxu1 %vm1984_vm4, %v14856_v5  ;;  %v4091_v58 = vld [vmem:[#allocation5 + $0xd8] sm:$0x3f] }
 0x354   : > { %13953 = vmatprep.subr.msk.bf16.mxu1 %vm15813_vm7, %v13951_v24 }
 0x355   : > { %12637 = vmatmul.mubr.msk.f32.gmra.mrb[154].mxu0 %vm1984_vm4, %v16958_v7 }
 0x356   : > { %12639 = vmatprep.mubr.msk.f32.mxu0 %vm1984_vm4, %v16964_v38  ;;  %13217 = vmatmul.mubr.msk.f32.gmra.mrb[22].mxu1 %vm1984_vm4, %v14857_v59 }
 0x357   : > { %13219 = vmatprep.mubr.msk.f32.mxu1 %vm1984_vm4, %v16214_v56  ;;  %13956 = vmatpush3.bf16.msk.msra.mxu1 %vm15813_vm7, %v13951_v24  ;;  %v4090_v56 = vld [vmem:[#allocation5 + $0xd0] sm:$0xff]  ;;  %v14865_v24 = vld [vmem:[#allocation2 + $0x200] sm:$0xff] }
 0x358   : > { %13958 = vmatprep.subr.bf16.mxu1 %v17006_v9  ;;  %v13851_v15 = vpack.c.bf16 %v4091_v58, %v4090_v56  ;;  %v17183_v56 = vld [vmem:[#allocation2 + $0x100] sm:$0xff]  ;;  %v17187_v58 = vld [vmem:[#allocation2 + $0x110] sm:$0xff] }
 0x359   : > { %12640 = vmatmul.mubr.msk.f32.gmra.mrb[156].mxu0 %vm1984_vm4, %v16970_v3 }
 0x35a   : > { %12642 = vmatprep.mubr.msk.f32.mxu0 %vm1984_vm4, %v16976_v46  ;;  %13220 = vmatmul.mubr.msk.f32.gmra.mrb[24].mxu1 %vm1984_vm4, %v16224_v10  ;;  %v4385_v10 = vld [vmem:[#allocation5 + $0xe0] sm:$0xff] }
 0x35b   : > { %13222 = vmatprep.mubr.msk.f32.mxu1 %vm1984_vm4, %v16242_v36 }
 0x35d   : > { %12643 = vmatmul.mubr.msk.f32.gmra.mrb[158].mxu0 %vm1984_vm4, %v16982_v54 }
 0x35e   : > { %13223 = vmatmul.mubr.msk.f32.gmra.mrb[26].mxu1 %vm1984_vm4, %v16250_v14  ;;  %12653 = vmatprep.mubr.msk.f32.mxu0 %vm1984_vm4, %v16448_v32  ;;  %v17043_v14 = vpack.c.bf16 %v4386_v34, %v4385_v10  ;;  %v14858_v32 = vld [vmem:[#allocation2 + $0x190] sm:$0xff]  ;;  %v17193_v34 = vld [vmem:[#allocation2 + $0x120] sm:$0xff] }
 0x35f   : > { %13225 = vmatprep.mubr.msk.f32.mxu1 %vm1984_vm4, %v16259_v60  ;;  %v14874_v10 = vld [vmem:[#allocation2 + $0x250] sm:$0xff] }
 0x361   : > { %12654 = vmatmul.mubr.msk.f32.vlgmr.msra.gmra.mrb[128].mxu0 %vm1984_vm4, %v14854_v35  ;;  %v17159_v35 = vld [vmem:[#allocation2 + $0xd0] sm:$0xff] }
 0x362   : > { %12656 = vmatprep.mubr.msk.f32.mxu0 %vm1984_vm4, %v14855_v48  ;;  %13226 = vmatmul.mubr.msk.f32.gmra.mrb[28].mxu1 %vm1984_vm4, %v16266_v2  ;;  %18375 = vst [vmem:[#allocation15_spill] sm:$0xff] %v17159_v35  ;;  %v17170_v48 = vld [vmem:[#allocation2 + $0xe0] sm:$0xff] }
 0x363   : > { %13228 = vmatprep.mubr.msk.f32.mxu1 %vm1984_vm4, %v16275_v45  ;;  %13850 = vmatpush3.bf16.msra.mxu0 %v16900_v0  ;;  %v14859_v0 = vld [vmem:[#allocation2 + $0x1a0] sm:$0xff]  ;;  %18376 = vst [vmem:[#allocation29_spill] sm:$0xff] %v17170_v48 }
 0x364   : > { %13853 = vmatprep.subr.msk.bf16.mxu0 %vm15813_vm7, %v13851_v15 }
 0x365   : > { %12657 = vmatmul.mubr.msk.f32.gmra.mrb[130].mxu0 %vm1984_vm4, %v14856_v5  ;;  %v17174_v5 = vld [vmem:[#allocation2 + $0xf0] sm:$0xff] }
 0x366   : > { %12659 = vmatprep.mubr.msk.f32.mxu0 %vm1984_vm4, %v14857_v59  ;;  %13229 = vmatmul.mubr.msk.f32.gmra.mrb[30].mxu1 %vm1984_vm4, %v16282_v31  ;;  %v14869_v59 = vld [vmem:[#allocation2 + $0x220] sm:$0xff] }
 0x367   : > { %13231 = vmatprep.mubr.msk.f32.mxu1 %vm1984_vm4, %v16288_v53  ;;  %13856 = vmatpush3.bf16.msk.msra.mxu0 %vm15813_vm7, %v13851_v15  ;;  %v14873_v15 = vld [vmem:[#allocation2 + $0x240] sm:$0xff] }
 0x368   : > { %13858 = vmatprep.subr.bf16.mxu0 %v17043_v14 }
 0x369   : > { %12660 = vmatmul.mubr.msk.f32.gmra.mrb[132].mxu0 %vm1984_vm4, %v14858_v32  ;;  %v4387_v32 = vld [vmem:[#allocation5 + $0xf0] sm:$0xff] }
 0x36a   : > { %12662 = vmatprep.mubr.msk.f32.mxu0 %vm1984_vm4, %v14859_v0  ;;  %13232 = vmatmul.mubr.msk.f32.gmra.mrb[0].mxu1 %vm1984_vm4, %v16294_v17  ;;  %v4388_v0 = vld [vmem:[#allocation5 + $0xf8] sm:$0x3f] }
 0x36b   : > { %13234 = vmatprep.mubr.msk.f32.mxu1 %vm1984_vm4, %v16302_v19 }
 0x36d   : > { %12663 = vmatmul.mubr.msk.f32.gmra.mrb[134].mxu0 %vm1984_vm4, %v16242_v36  ;;  %v17092_v36 = vld [vmem:[#allocation2 + $0x80] sm:$0xff] }
 0x36e   : > { %13235 = vmatmul.mubr.msk.f32.gmra.mrb[2].mxu1 %vm1984_vm4, %v16308_v47  ;;  %12665 = vmatprep.mubr.msk.f32.mxu0 %vm1984_vm4, %v17064_v29  ;;  %v17140_v47 = vld [vmem:[#allocation2 + $0x120] sm:$0xff] }
 0x36f   : > { %13237 = vmatprep.mubr.msk.f32.mxu1 %vm1984_vm4, %v16373_v44  ;;  %18371 = vst [vmem:[#allocation13_spill] sm:$0xff] %v17140_v47 }
 0x371   : > { %12666 = vmatmul.mubr.msk.f32.gmra.mrb[136].mxu0 %vm1984_vm4, %v16259_v60  ;;  %v17096_v60 = vld [vmem:[#allocation2 + $0x90] sm:$0xff] }
 0x372   : > { %12668 = vmatprep.mubr.msk.f32.mxu0 %vm1984_vm4, %v16266_v2  ;;  %13238 = vmatmul.mubr.msk.f32.gmra.mrb[4].mxu1 %vm1984_vm4, %v16382_v41  ;;  %18367 = vst [vmem:[#allocation16_spill] sm:$0xff] %v17096_v60  ;;  %v17104_v2 = vld [vmem:[#allocation2 + $0xc0] sm:$0xff] }
 0x373   : > { %13240 = vmatprep.mubr.msk.f32.mxu1 %vm1984_vm4, %v16390_v37 }
 0x375   : > { %12669 = vmatmul.mubr.msk.f32.gmra.mrb[138].mxu0 %vm1984_vm4, %v16275_v45  ;;  %v17110_v45 = vld [vmem:[#allocation2 + $0xd0] sm:$0xff] }
 0x376   : > { %12671 = vmatprep.mubr.msk.f32.mxu0 %vm1984_vm4, %v16282_v31  ;;  %13241 = vmatmul.mubr.msk.f32.gmra.mrb[6].mxu1 %vm1984_vm4, %v16400_v25  ;;  %v17116_v31 = vld [vmem:[#allocation2 + $0xe0] sm:$0xff] }
 0x377   : > { %13243 = vmatprep.mubr.msk.f32.mxu1 %vm1984_vm4, %v16405_v42 }
 0x379   : > { %12672 = vmatmul.mubr.msk.f32.gmra.mrb[140].mxu0 %vm1984_vm4, %v16288_v53  ;;  %v17122_v53 = vld [vmem:[#allocation2 + $0xf0] sm:$0xff] }
 0x37a   : > { %12674 = vmatprep.mubr.msk.f32.mxu0 %vm1984_vm4, %v16294_v17  ;;  %13244 = vmatmul.mubr.msk.f32.gmra.mrb[8].mxu1 %vm1984_vm4, %v16413_v13  ;;  %18368 = vst [vmem:[#allocation25_spill] sm:$0xff] %v17122_v53  ;;  %v17128_v17 = vld [vmem:[#allocation2 + $0x100] sm:$0xff] }
 0x37b   : > { %13246 = vmatprep.mubr.msk.f32.mxu1 %vm1984_vm4, %v17092_v36  ;;  %18369 = vst [vmem:[#allocation12_spill] sm:$0xff] %v17128_v17 }
 0x37d   : > { %12675 = vmatmul.mubr.msk.f32.gmra.mrb[142].mxu0 %vm1984_vm4, %v16302_v19  ;;  %v17134_v19 = vld [vmem:[#allocation2 + $0x110] sm:$0xff] }
 0x37e   : > { %12677 = vmatprep.mubr.msk.f32.mxu0 %vm1984_vm4, %v16369_v11  ;;  %13247 = vmatmul.mubr.msk.f32.gmra.mrb[10].mxu1 %vm1984_vm4, %v17096_v60  ;;  %18370 = vst [vmem:[#allocation26_spill] sm:$0xff] %v17134_v19  ;;  %v17144_v11 = vld [vmem:[#allocation2 + $0x130] sm:$0xff]  ;;  %v17206_v60 = vld [vmem:[#allocation2 + $0x161] sm:$0xff] }
 0x37f   : > { %13249 = vmatprep.mubr.msk.f32.mxu1 %vm1984_vm4, %v17104_v2  ;;  %18372 = vst [vmem:[#allocation27_spill] sm:$0xff] %v17144_v11 }
 0x381   : > { %12678 = vmatmul.mubr.msk.f32.gmra.mrb[144].mxu0 %vm1984_vm4, %v16373_v44  ;;  %v7423_v44 = vld [vmem:[#allocation5 + $0x230] sm:$0xff] }
 0x382   : > { %12680 = vmatprep.mubr.msk.f32.mxu0 %vm1984_vm4, %v16382_v41  ;;  %13250 = vmatmul.mubr.msk.f32.gmra.mrb[12].mxu1 %vm1984_vm4, %v17110_v45  ;;  %v7424_v41 = vld [vmem:[#allocation5 + $0x238] sm:$0x3f] }
 0x383   : > { %13252 = vmatprep.mubr.msk.f32.mxu1 %vm1984_vm4, %v17116_v31 }
 0x385   : > { %12681 = vmatmul.mubr.msk.f32.gmra.mrb[146].mxu0 %vm1984_vm4, %v16390_v37  ;;  %v17148_v37 = vld [vmem:[#allocation2 + $0xb0] sm:$0xff] }
 0x386   : > { %12683 = vmatprep.mubr.msk.f32.mxu0 %vm1984_vm4, %v16400_v25  ;;  %13253 = vmatmul.mubr.msk.f32.gmra.mrb[14].mxu1 %vm1984_vm4, %v17122_v53  ;;  %18373 = vst [vmem:[#allocation14_spill] sm:$0xff] %v17148_v37  ;;  %v14862_v25 = vld [vmem:[#allocation2 + $0x1f0] sm:$0xff] }
 0x387   : > { %13255 = vmatprep.mubr.msk.f32.mxu1 %vm1984_vm4, %v17128_v17 }
 0x389   : > { %12684 = vmatmul.mubr.msk.f32.gmra.mrb[148].mxu0 %vm1984_vm4, %v16405_v42  ;;  %v13961_v42 = vpack.c.bf16 %v7424_v41, %v7423_v44  ;;  %v14876_v44 = vld [vmem:[#allocation2 + $0x260] sm:$0xff]  ;;  %v17200_v41 = vld [vmem:[#allocation2 + $0x151] sm:$0xff] }
 0x38a   : > { %12686 = vmatprep.mubr.msk.f32.mxu0 %vm1984_vm4, %v16413_v13  ;;  %13256 = vmatmul.mubr.msk.f32.gmra.mrb[16].mxu1 %vm1984_vm4, %v17134_v19  ;;  %v17155_v13 = vld [vmem:[#allocation2 + $0xc0] sm:$0xff] }
 0x38b   : > { %13258 = vmatprep.mubr.msk.f32.mxu1 %vm1984_vm4, %v17140_v47  ;;  %18374 = vst [vmem:[#allocation28_spill] sm:$0xff] %v17155_v13 }
 0x38d   : > { %12687 = vmatmul.mubr.msk.f32.gmra.mrb[150].mxu0 %vm1984_vm4, %v17092_v36 }
 0x38e   : > { %12689 = vmatprep.mubr.msk.f32.mxu0 %vm1984_vm4, %v17148_v37  ;;  %13259 = vmatmul.mubr.msk.f32.gmra.mrb[18].mxu1 %vm1984_vm4, %v17144_v11 }
 0x38f   : > { %13269 = vmatprep.mubr.msk.f32.mxu1 %vm1984_vm4, %v14862_v25 }
 0x391   : > { %12690 = vmatmul.mubr.msk.f32.gmra.mrb[152].mxu0 %vm1984_vm4, %v17155_v13 }
 0x392   : > { %12692 = vmatprep.mubr.msk.f32.mxu0 %vm1984_vm4, %v17159_v35  ;;  %13270 = vmatmul.mubr.msk.f32.vlgmr.msra.gmra.mrb[20].mxu1 %vm1984_vm4, %v14865_v24 }
 0x393   : > { %13960 = vmatpush3.bf16.msra.mxu1 %v17006_v9  ;;  %13272 = vmatprep.mubr.msk.f32.mxu1 %vm1984_vm4, %v14866_v28  ;;  %v14870_v9 = vld [vmem:[#allocation2 + $0x230] sm:$0xff] }
 0x394   : > { %13963 = vmatprep.subr.msk.bf16.mxu1 %vm15813_vm7, %v13961_v42 }
 0x395   : > { %12693 = vmatmul.mubr.msk.f32.gmra.mrb[154].mxu0 %vm1984_vm4, %v17170_v48 }
 0x396   : > { %12695 = vmatprep.mubr.msk.f32.mxu0 %vm1984_vm4, %v17174_v5  ;;  %13273 = vmatmul.mubr.msk.f32.gmra.mrb[22].mxu1 %vm1984_vm4, %v14869_v59 }
 0x397   : > { %13275 = vmatprep.mubr.msk.f32.mxu1 %vm1984_vm4, %v14870_v9  ;;  %13966 = vmatpush3.bf16.msk.msra.mxu1 %vm15813_vm7, %v13961_v42  ;;  %v13861_v42 = vpack.c.bf16 %v4388_v0, %v4387_v32  ;;  %v17305_v32 = vld [vmem:[#allocation2 + $0x61] sm:$0xff]  ;;  %v17311_v0 = vld [vmem:[#allocation2 + $0x71] sm:$0xff] }
 0x398   : > { %13968 = vmatprep.subr.bf16.mxu1 %v17168_v22 }
 0x399   : > { %12696 = vmatmul.mubr.msk.f32.gmra.mrb[156].mxu0 %vm1984_vm4, %v17183_v56 }
 0x39a   : > { %12698 = vmatprep.mubr.msk.f32.mxu0 %vm1984_vm4, %v17187_v58  ;;  %13276 = vmatmul.mubr.msk.f32.gmra.mrb[24].mxu1 %vm1984_vm4, %v14873_v15 }
 0x39b   : > { %13278 = vmatprep.mubr.msk.f32.mxu1 %vm1984_vm4, %v14874_v10 }
 0x39d   : > { %12699 = vmatmul.mubr.msk.f32.gmra.mrb[158].mxu0 %vm1984_vm4, %v17193_v34 }
 0x39e   : > { %13279 = vmatmul.mubr.msk.f32.gmra.mrb[26].mxu1 %vm1984_vm4, %v14876_v44  ;;  %12709 = vmatprep.mubr.msk.f32.mxu0 %vm1984_vm4, %v17064_v29  ;;  %v17210_v44 = vld [vmem:[#allocation2 + $0x171] sm:$0xff]  ;;  %v17217_v29 = vpack.c.bf16 %v4683_v62, %v4682_v21 }
 0x39f   : > { %13281 = vmatprep.mubr.msk.f32.mxu1 %vm1984_vm4, %v17200_v41  ;;  %v7720_v21 = vld [vmem:[#allocation5 + $0x250] sm:$0xff] }
 0x3a0   : > { %v17325_v62 = vld [vmem:[#allocation2 + $0x11] sm:$0xff] }
 0x3a1   : > { %12710 = vmatmul.mubr.msk.f32.vlgmr.msra.gmra.mrb[128].mxu0 %vm1984_vm4, %v14862_v25  ;;  %v17221_v25 = vld [vmem:[#allocation2 + $0x181] sm:$0xff] }
 0x3a2   : > { %12712 = vmatprep.mubr.msk.f32.mxu0 %vm1984_vm4, %v14865_v24  ;;  %13282 = vmatmul.mubr.msk.f32.gmra.mrb[28].mxu1 %vm1984_vm4, %v17206_v60  ;;  %v17225_v24 = vld [vmem:[#allocation2 + $0x191] sm:$0xff] }
 0x3a3   : > { %13284 = vmatprep.mubr.msk.f32.mxu1 %vm1984_vm4, %v17210_v44  ;;  %13860 = vmatpush3.bf16.msra.mxu0 %v17043_v14  ;;  %v17234_v14 = vld [vmem:[#allocation2 + $0x1a1] sm:$0xff] }
 0x3a4   : > { %13863 = vmatprep.subr.msk.bf16.mxu0 %vm15813_vm7, %v13861_v42 }
 0x3a5   : > { %12713 = vmatmul.mubr.msk.f32.gmra.mrb[130].mxu0 %vm1984_vm4, %v14866_v28  ;;  %v17238_v28 = vld [vmem:[#allocation2 + $0x1b1] sm:$0xff] }
 0x3a6   : > { %12715 = vmatprep.mubr.msk.f32.mxu0 %vm1984_vm4, %v14869_v59  ;;  %13285 = vmatmul.mubr.msk.f32.gmra.mrb[30].mxu1 %vm1984_vm4, %v17221_v25  ;;  %v17245_v59 = vld [vmem:[#allocation2 + $0x141] sm:$0xff] }
 0x3a7   : > { %13287 = vmatprep.mubr.msk.f32.mxu1 %vm1984_vm4, %v17225_v24  ;;  %13866 = vmatpush3.bf16.msk.msra.mxu0 %vm15813_vm7, %v13861_v42  ;;  %v17321_v42 = vld [vmem:[#allocation2 + $0x91] sm:$0xff] }
 0x3a8   : > { %13868 = vmatprep.subr.bf16.mxu0 %v17217_v29 }
 0x3a9   : > { %12716 = vmatmul.mubr.msk.f32.gmra.mrb[132].mxu0 %vm1984_vm4, %v14870_v9  ;;  %v17287_v9 = vld [vmem:[#allocation2 + $0x31] sm:$0xff] }
 0x3aa   : > { %12718 = vmatprep.mubr.msk.f32.mxu0 %vm1984_vm4, %v14873_v15  ;;  %13288 = vmatmul.mubr.msk.f32.gmra.mrb[0].mxu1 %vm1984_vm4, %v17234_v14  ;;  %v17293_v15 = vld [vmem:[#allocation2 + $0x41] sm:$0xff] }
 0x3ab   : > { %13290 = vmatprep.mubr.msk.f32.mxu1 %vm1984_vm4, %v17238_v28 }
 0x3ad   : > { %12719 = vmatmul.mubr.msk.f32.gmra.mrb[134].mxu0 %vm1984_vm4, %v14874_v10  ;;  %v17299_v10 = vld [vmem:[#allocation2 + $0x51] sm:$0xff] }
 0x3ae   : > { %13291 = vmatmul.mubr.msk.f32.gmra.mrb[2].mxu1 %vm1984_vm4, %v16484_v61  ;;  %12721 = vmatprep.mubr.msk.f32.mxu0 %vm1984_vm4, %v17245_v59  ;;  %v17281_v61 = vld [vmem:[#allocation2 + $0x21] sm:$0xff] }
 0x3af   : > { %13293 = vmatprep.mubr.msk.f32.mxu1 %vm1984_vm4, %v17104_v2 }
 0x3b1   : > { %12722 = vmatmul.mubr.msk.f32.gmra.mrb[136].mxu0 %vm1984_vm4, %v17200_v41 }
 0x3b2   : > { %12724 = vmatprep.mubr.msk.f32.mxu0 %vm1984_vm4, %v17206_v60  ;;  %13294 = vmatmul.mubr.msk.f32.gmra.mrb[4].mxu1 %vm1984_vm4, %v17110_v45 }
 0x3b3   : > { %13296 = vmatprep.mubr.msk.f32.mxu1 %vm1984_vm4, %v17116_v31 }
 0x3b5   : > { %12725 = vmatmul.mubr.msk.f32.gmra.mrb[138].mxu0 %vm1984_vm4, %v17210_v44 }
 0x3b6   : > { %12727 = vmatprep.mubr.msk.f32.mxu0 %vm1984_vm4, %v17221_v25  ;;  %13297 = vmatmul.mubr.msk.f32.gmra.mrb[6].mxu1 %vm1984_vm4, %v17122_v53  ;;  %v4980_v53 = vld [vmem:[#allocation5 + $0x128] sm:$0xff] }
 0x3b7   : > { %13299 = vmatprep.mubr.msk.f32.mxu1 %vm1984_vm4, %v17128_v17  ;;  %v4979_v17 = vld [vmem:[#allocation5 + $0x120] sm:$0xff] }
 0x3b9   : > { %12728 = vmatmul.mubr.msk.f32.gmra.mrb[140].mxu0 %vm1984_vm4, %v17225_v24 }
 0x3ba   : > { %12730 = vmatprep.mubr.msk.f32.mxu0 %vm1984_vm4, %v17234_v14  ;;  %13300 = vmatmul.mubr.msk.f32.gmra.mrb[8].mxu1 %vm1984_vm4, %v17134_v19 }
 0x3bb   : > { %13302 = vmatprep.mubr.msk.f32.mxu1 %vm1984_vm4, %v17140_v47  ;;  %v14893_v47 = vld [vmem:[#allocation2 + $0x1c1] sm:$0xff] }
 0x3bd   : > { %12731 = vmatmul.mubr.msk.f32.gmra.mrb[142].mxu0 %vm1984_vm4, %v17238_v28 }
 0x3be   : > { %12733 = vmatprep.mubr.msk.f32.mxu0 %vm1984_vm4, %v17148_v37  ;;  %13303 = vmatmul.mubr.msk.f32.gmra.mrb[10].mxu1 %vm1984_vm4, %v17144_v11  ;;  %v17354_v11 = vld [vmem:[#allocation2 + $0x51] sm:$0xff]  ;;  %v4685_v37 = vld [vmem:[#allocation5 + $0x118] sm:$0x3f] }
 0x3bf   : > { %13305 = vmatprep.mubr.msk.f32.mxu1 %vm1984_vm4, %v17281_v61 }
 0x3c1   : > { %12734 = vmatmul.mubr.msk.f32.gmra.mrb[144].mxu0 %vm1984_vm4, %v17155_v13  ;;  %v17337_v13 = vld [vmem:[#allocation2 + $0x31] sm:$0xff] }
 0x3c2   : > { %12736 = vmatprep.mubr.msk.f32.mxu0 %vm1984_vm4, %v17159_v35  ;;  %13306 = vmatmul.mubr.msk.f32.gmra.mrb[12].mxu1 %vm1984_vm4, %v17287_v9  ;;  %v8016_v35 = vld [vmem:[#allocation5 + $0x268] sm:$0xff] }
 0x3c3   : > { %13308 = vmatprep.mubr.msk.f32.mxu1 %vm1984_vm4, %v17293_v15 }
 0x3c5   : > { %12737 = vmatmul.mubr.msk.f32.gmra.mrb[146].mxu0 %vm1984_vm4, %v17170_v48  ;;  %v17333_v48 = vld [vmem:[#allocation2 + $0x21] sm:$0xff] }
 0x3c6   : > { %12739 = vmatprep.mubr.msk.f32.mxu0 %vm1984_vm4, %v17174_v5  ;;  %13309 = vmatmul.mubr.msk.f32.gmra.mrb[14].mxu1 %vm1984_vm4, %v17299_v10  ;;  %v17317_v5 = vld [vmem:[#allocation2 + $0x81] sm:$0xff] }
 0x3c7   : > { %13311 = vmatprep.mubr.msk.f32.mxu1 %vm1984_vm4, %v17305_v32 }
 0x3c9   : > { %12740 = vmatmul.mubr.msk.f32.gmra.mrb[148].mxu0 %vm1984_vm4, %v17183_v56  ;;  %v7721_v56 = vld [vmem:[#allocation5 + $0x258] sm:$0x3f] }
 0x3ca   : > { %12742 = vmatprep.mubr.msk.f32.mxu0 %vm1984_vm4, %v17187_v58  ;;  %13312 = vmatmul.mubr.msk.f32.gmra.mrb[16].mxu1 %vm1984_vm4, %v17311_v0  ;;  %v13971_v58 = vpack.c.bf16 %v7721_v56, %v7720_v21  ;;  %v17350_v56 = vld [vmem:[#allocation2 + $0x41] sm:$0xff] }
 0x3cb   : > { %13314 = vmatprep.mubr.msk.f32.mxu1 %vm1984_vm4, %v17317_v5 }
 0x3cd   : > { %12743 = vmatmul.mubr.msk.f32.gmra.mrb[150].mxu0 %vm1984_vm4, %v17193_v34  ;;  %v8015_v34 = vld [vmem:[#allocation5 + $0x260] sm:$0xff] }
 0x3ce   : > { %12745 = vmatprep.mubr.msk.f32.mxu0 %vm1984_vm4, %v17325_v62  ;;  %13315 = vmatmul.mubr.msk.f32.gmra.mrb[18].mxu1 %vm1984_vm4, %v17321_v42  ;;  %v17348_v21 = vpack.c.bf16 %v8016_v35, %v8015_v34  ;;  %v17365_v35 = vld [vmem:[#allocation2 + $0x61] sm:$0xff] }
 0x3cf   : > { %13325 = vmatprep.mubr.msk.f32.mxu1 %vm1984_vm4, %v17200_v41  ;;  %v17377_v34 = vld [vmem:[#allocation2 + $0x81] sm:$0xff] }
 0x3d1   : > { %12746 = vmatmul.mubr.msk.f32.gmra.mrb[152].mxu0 %vm1984_vm4, %v17333_v48 }
 0x3d2   : > { %12748 = vmatprep.mubr.msk.f32.mxu0 %vm1984_vm4, %v17337_v13  ;;  %13326 = vmatmul.mubr.msk.f32.vlgmr.msra.gmra.mrb[20].mxu1 %vm1984_vm4, %v17206_v60 }
 0x3d3   : > { %13970 = vmatpush3.bf16.msra.mxu1 %v17168_v22  ;;  %13328 = vmatprep.mubr.msk.f32.mxu1 %vm1984_vm4, %v17210_v44  ;;  %v17369_v22 = vld [vmem:[#allocation2 + $0x71] sm:$0xff] }
 0x3d4   : > { %13973 = vmatprep.subr.msk.bf16.mxu1 %vm15813_vm7, %v13971_v58 }
 0x3d5   : > { %12749 = vmatmul.mubr.msk.f32.gmra.mrb[154].mxu0 %vm1984_vm4, %v17350_v56 }
 0x3d6   : > { %12751 = vmatprep.mubr.msk.f32.mxu0 %vm1984_vm4, %v17354_v11  ;;  %13329 = vmatmul.mubr.msk.f32.gmra.mrb[22].mxu1 %vm1984_vm4, %v17221_v25 }
 0x3d7   : > { %13331 = vmatprep.mubr.msk.f32.mxu1 %vm1984_vm4, %v17225_v24  ;;  %13976 = vmatpush3.bf16.msk.msra.mxu1 %vm15813_vm7, %v13971_v58  ;;  %v4684_v58 = vld [vmem:[#allocation5 + $0x110] sm:$0xff] }
 0x3d8   : > { %13978 = vmatprep.subr.bf16.mxu1 %v17348_v21  ;;  %v13871_v19 = vpack.c.bf16 %v4685_v37, %v4684_v58  ;;  %v8018_v37 = vld [vmem:[#allocation5 + $0x278] sm:$0x3f]  ;;  %v14906_v58 = vld [vmem:[#allocation2 + $0x1f1] sm:$0xff] }
 0x3d9   : > { %12752 = vmatmul.mubr.msk.f32.gmra.mrb[156].mxu0 %vm1984_vm4, %v17365_v35 }
 0x3da   : > { %12754 = vmatprep.mubr.msk.f32.mxu0 %vm1984_vm4, %v17369_v22  ;;  %13332 = vmatmul.mubr.msk.f32.gmra.mrb[24].mxu1 %vm1984_vm4, %v17234_v14 }
 0x3db   : > { %13334 = vmatprep.mubr.msk.f32.mxu1 %vm1984_vm4, %v17238_v28 }
 0x3dd   : > { %12755 = vmatmul.mubr.msk.f32.gmra.mrb[158].mxu0 %vm1984_vm4, %v17377_v34 }
 0x3de   : > { %13335 = vmatmul.mubr.msk.f32.gmra.mrb[26].mxu1 %vm1984_vm4, %v14893_v47  ;;  %12765 = vmatprep.mubr.msk.f32.mxu0 %vm1984_vm4, %v17245_v59  ;;  %v17397_v47 = vpack.c.bf16 %v4980_v53, %v4979_v17  ;;  %v17486_v53 = vld [vmem:[#allocation2 + $0x111] sm:$0xff]  ;;  %v17492_v17 = vld [vmem:[#allocation2 + $0x121] sm:$0xff] }
 0x3df   : > { %13337 = vmatprep.mubr.msk.f32.mxu1 %vm1984_vm4, %v16618_v16  ;;  %v14900_v59 = vld [vmem:[#allocation2 + $0x221] sm:$0xff] }
 0x3e1   : > { %12766 = vmatmul.mubr.msk.f32.vlgmr.msra.gmra.mrb[128].mxu0 %vm1984_vm4, %v17200_v41  ;;  %v17508_v41 = vld [vmem:[#allocation2 + $0xc1] sm:$0xff] }
 0x3e2   : > { %12768 = vmatprep.mubr.msk.f32.mxu0 %vm1984_vm4, %v17206_v60  ;;  %13338 = vmatmul.mubr.msk.f32.gmra.mrb[28].mxu1 %vm1984_vm4, %v16626_v20  ;;  %v17480_v60 = vld [vmem:[#allocation2 + $0x101] sm:$0xff] }
 0x3e3   : > { %13340 = vmatprep.mubr.msk.f32.mxu1 %vm1984_vm4, %v16632_v50  ;;  %13870 = vmatpush3.bf16.msra.mxu0 %v17217_v29  ;;  %v8323_v29 = vld [vmem:[#allocation5 + $0x288] sm:$0xff] }
 0x3e4   : > { %13873 = vmatprep.subr.msk.bf16.mxu0 %vm15813_vm7, %v13871_v19 }
 0x3e5   : > { %12769 = vmatmul.mubr.msk.f32.gmra.mrb[130].mxu0 %vm1984_vm4, %v17210_v44  ;;  %v8322_v44 = vld [vmem:[#allocation5 + $0x280] sm:$0xff] }
 0x3e6   : > { %12771 = vmatprep.mubr.msk.f32.mxu0 %vm1984_vm4, %v17221_v25  ;;  %13341 = vmatmul.mubr.msk.f32.gmra.mrb[30].mxu1 %vm1984_vm4, %v16638_v23  ;;  %v17512_v25 = vld [vmem:[#allocation2 + $0xd1] sm:$0xff] }
 0x3e7   : > { %13343 = vmatprep.mubr.msk.f32.mxu1 %vm1984_vm4, %v16644_v26  ;;  %13876 = vmatpush3.bf16.msk.msra.mxu0 %vm15813_vm7, %v13871_v19  ;;  %v17496_v19 = vld [vmem:[#allocation2 + $0x131] sm:$0xff] }
 0x3e8   : > { %13878 = vmatprep.subr.bf16.mxu0 %v17397_v47 }
 0x3e9   : > { %12772 = vmatmul.mubr.msk.f32.gmra.mrb[132].mxu0 %vm1984_vm4, %v17225_v24  ;;  %v14897_v24 = vld [vmem:[#allocation2 + $0x201] sm:$0xff] }
 0x3ea   : > { %12774 = vmatprep.mubr.msk.f32.mxu0 %vm1984_vm4, %v17234_v14  ;;  %13344 = vmatmul.mubr.msk.f32.gmra.mrb[0].mxu1 %vm1984_vm4, %v16650_v51  ;;  %v17524_v14 = vld [vmem:[#allocation2 + $0xe1] sm:$0xff] }
 0x3eb   : > { %13346 = vmatprep.mubr.msk.f32.mxu1 %vm1984_vm4, %v16656_v30 }
 0x3ed   : > { %12775 = vmatmul.mubr.msk.f32.gmra.mrb[134].mxu0 %vm1984_vm4, %v17238_v28  ;;  %v17528_v28 = vld [vmem:[#allocation2 + $0xf1] sm:$0xff] }
 0x3ee   : > { %13347 = vmatmul.mubr.msk.f32.gmra.mrb[2].mxu1 %vm1984_vm4, %v16664_v43  ;;  %12777 = vmatprep.mubr.msk.f32.mxu0 %vm1984_vm4, %v16660_v18  ;;  %v17474_v18 = vld [vmem:[#allocation2 + $0xf1] sm:$0xff] }
 0x3ef   : > { %13349 = vmatprep.mubr.msk.f32.mxu1 %vm1984_vm4, %v17281_v61 }
 0x3f1   : > { %12778 = vmatmul.mubr.msk.f32.gmra.mrb[136].mxu0 %vm1984_vm4, %v16618_v16 }
 0x3f2   : > { %12780 = vmatprep.mubr.msk.f32.mxu0 %vm1984_vm4, %v16626_v20  ;;  %13350 = vmatmul.mubr.msk.f32.gmra.mrb[4].mxu1 %vm1984_vm4, %v17287_v9  ;;  %v17456_v20 = vld [vmem:[#allocation2 + $0xc1] sm:$0xff] }
 0x3f3   : > { %13352 = vmatprep.mubr.msk.f32.mxu1 %vm1984_vm4, %v17293_v15 }
 0x3f5   : > { %12781 = vmatmul.mubr.msk.f32.gmra.mrb[138].mxu0 %vm1984_vm4, %v16632_v50 }
 0x3f6   : > { %12783 = vmatprep.mubr.msk.f32.mxu0 %vm1984_vm4, %v16638_v23  ;;  %13353 = vmatmul.mubr.msk.f32.gmra.mrb[6].mxu1 %vm1984_vm4, %v17299_v10  ;;  %v17462_v23 = vld [vmem:[#allocation2 + $0xd1] sm:$0xff] }
 0x3f7   : > { %13355 = vmatprep.mubr.msk.f32.mxu1 %vm1984_vm4, %v17305_v32 }
 0x3f9   : > { %12784 = vmatmul.mubr.msk.f32.gmra.mrb[140].mxu0 %vm1984_vm4, %v16644_v26 }
 0x3fa   : > { %12786 = vmatprep.mubr.msk.f32.mxu0 %vm1984_vm4, %v16650_v51  ;;  %13356 = vmatmul.mubr.msk.f32.gmra.mrb[8].mxu1 %vm1984_vm4, %v17311_v0  ;;  %v17468_v51 = vld [vmem:[#allocation2 + $0xe1] sm:$0xff] }
 0x3fb   : > { %13358 = vmatprep.mubr.msk.f32.mxu1 %vm1984_vm4, %v17317_v5 }
 0x3fd   : > { %12787 = vmatmul.mubr.msk.f32.gmra.mrb[142].mxu0 %vm1984_vm4, %v16656_v30 }
 0x3fe   : > { %12789 = vmatprep.mubr.msk.f32.mxu0 %vm1984_vm4, %v17325_v62  ;;  %13359 = vmatmul.mubr.msk.f32.gmra.mrb[10].mxu1 %vm1984_vm4, %v17321_v42  ;;  %v17542_v62 = vld [vmem:[#allocation2 + $0x111] sm:$0xff] }
 0x3ff   : > { %13361 = vmatprep.mubr.msk.f32.mxu1 %vm1984_vm4, %v17456_v20 }
 0x401   : > { %12790 = vmatmul.mubr.msk.f32.gmra.mrb[144].mxu0 %vm1984_vm4, %v17333_v48 }
 0x402   : > { %12792 = vmatprep.mubr.msk.f32.mxu0 %vm1984_vm4, %v17337_v13  ;;  %13362 = vmatmul.mubr.msk.f32.gmra.mrb[12].mxu1 %vm1984_vm4, %v17462_v23  ;;  %v17500_v13 = vld [vmem:[#allocation2 + $0xb1] sm:$0xff] }
 0x403   : > { %13364 = vmatprep.mubr.msk.f32.mxu1 %vm1984_vm4, %v17468_v51 }
 0x405   : > { %12793 = vmatmul.mubr.msk.f32.gmra.mrb[146].mxu0 %vm1984_vm4, %v17350_v56  ;;  %v4981_v56 = vld [vmem:[#allocation5 + $0x130] sm:$0xff] }
 0x406   : > { %12795 = vmatprep.mubr.msk.f32.mxu0 %vm1984_vm4, %v17354_v11  ;;  %13365 = vmatmul.mubr.msk.f32.gmra.mrb[14].mxu1 %vm1984_vm4, %v17474_v18  ;;  %v8017_v11 = vld [vmem:[#allocation5 + $0x270] sm:$0xff] }
 0x407   : > { %13367 = vmatprep.mubr.msk.f32.mxu1 %vm1984_vm4, %v17480_v60  ;;  %v13981_v48 = vpack.c.bf16 %v8018_v37, %v8017_v11  ;;  %v14909_v11 = vld [vmem:[#allocation2 + $0x251] sm:$0xff]  ;;  %v17619_v37 = vld [vmem:[#allocation2 + $0x22] sm:$0xff] }
 0x409   : > { %12796 = vmatmul.mubr.msk.f32.gmra.mrb[148].mxu0 %vm1984_vm4, %v17365_v35  ;;  %v4982_v35 = vld [vmem:[#allocation5 + $0x138] sm:$0x3f] }
 0x40a   : > { %12798 = vmatprep.mubr.msk.f32.mxu0 %vm1984_vm4, %v17369_v22  ;;  %13368 = vmatmul.mubr.msk.f32.gmra.mrb[16].mxu1 %vm1984_vm4, %v17486_v53  ;;  %v14905_v22 = vld [vmem:[#allocation2 + $0x1e1] sm:$0xff] }
 0x40b   : > { %13370 = vmatprep.mubr.msk.f32.mxu1 %vm1984_vm4, %v17492_v17 }
 0x40d   : > { %12799 = vmatmul.mubr.msk.f32.gmra.mrb[150].mxu0 %vm1984_vm4, %v17377_v34  ;;  %v13881_v34 = vpack.c.bf16 %v4982_v35, %v4981_v56  ;;  %v17675_v56 = vld [vmem:[#allocation2 + $0x32] sm:$0xff]  ;;  %v17688_v35 = vld [vmem:[#allocation2 + $0x42] sm:$0xff] }
 0x40e   : > { %12801 = vmatprep.mubr.msk.f32.mxu0 %vm1984_vm4, %v17500_v13  ;;  %13371 = vmatmul.mubr.msk.f32.gmra.mrb[18].mxu1 %vm1984_vm4, %v17496_v19 }
 0x40f   : > { %13381 = vmatprep.mubr.msk.f32.mxu1 %vm1984_vm4, %v16618_v16  ;;  %v17522_v16 = vpack.c.bf16 %v8323_v29, %v8322_v44  ;;  %v17637_v44 = vld [vmem:[#allocation2 + $0x52] sm:$0xff] }
 0x410   : > { %v17649_v29 = vld [vmem:[#allocation2 + $0x72] sm:$0xff] }
 0x411   : > { %12802 = vmatmul.mubr.msk.f32.gmra.mrb[152].mxu0 %vm1984_vm4, %v17508_v41 }
 0x412   : > { %12804 = vmatprep.mubr.msk.f32.mxu0 %vm1984_vm4, %v17512_v25  ;;  %13382 = vmatmul.mubr.msk.f32.vlgmr.msra.gmra.mrb[20].mxu1 %vm1984_vm4, %v14897_v24 }
 0x413   : > { %13980 = vmatpush3.bf16.msra.mxu1 %v17348_v21  ;;  %13384 = vmatprep.mubr.msk.f32.mxu1 %vm1984_vm4, %v16632_v50  ;;  %v17538_v50 = vld [vmem:[#allocation2 + $0x101] sm:$0xff] }
 0x414   : > { %13983 = vmatprep.subr.msk.bf16.mxu1 %vm15813_vm7, %v13981_v48  ;;  %v14903_v21 = vld [vmem:[#allocation2 + $0x241] sm:$0xff] }
 0x415   : > { %12805 = vmatmul.mubr.msk.f32.gmra.mrb[154].mxu0 %vm1984_vm4, %v17524_v14 }
 0x416   : > { %12807 = vmatprep.mubr.msk.f32.mxu0 %vm1984_vm4, %v17528_v28  ;;  %13385 = vmatmul.mubr.msk.f32.gmra.mrb[22].mxu1 %vm1984_vm4, %v14900_v59 }
 0x417   : > { %13387 = vmatprep.mubr.msk.f32.mxu1 %vm1984_vm4, %v16644_v26  ;;  %13986 = vmatpush3.bf16.msk.msra.mxu1 %vm15813_vm7, %v13981_v48  ;;  %v17549_v26 = vld [vmem:[#allocation2 + $0x121] sm:$0xff]  ;;  %v17625_v48 = vld [vmem:[#allocation2 + $0x32] sm:$0xff] }
 0x418   : > { %13988 = vmatprep.subr.bf16.mxu1 %v17522_v16 }
 0x419   : > { %12808 = vmatmul.mubr.msk.f32.gmra.mrb[156].mxu0 %vm1984_vm4, %v17538_v50 }
 0x41a   : > { %12810 = vmatprep.mubr.msk.f32.mxu0 %vm1984_vm4, %v17542_v62  ;;  %13388 = vmatmul.mubr.msk.f32.gmra.mrb[24].mxu1 %vm1984_vm4, %v14903_v21 }
 0x41b   : > { %13390 = vmatprep.mubr.msk.f32.mxu1 %vm1984_vm4, %v16656_v30  ;;  %v14907_v30 = vld [vmem:[#allocation2 + $0x211] sm:$0xff] }
 0x41d   : > { %12811 = vmatmul.mubr.msk.f32.gmra.mrb[158].mxu0 %vm1984_vm4, %v17549_v26 }
 0x41e   : > { %13391 = vmatmul.mubr.msk.f32.gmra.mrb[26].mxu1 %vm1984_vm4, %v16664_v43  ;;  %12821 = vmatprep.mubr.msk.f32.mxu0 %vm1984_vm4, %v14905_v22  ;;  %v18377_v43 = vld [vmem:[#allocation10_spill] sm:$0xff]  ;;  %v17692_v22 = vld [vmem:[#allocation2 + $0x52] sm:$0xff] }
 0x41f   : > { %13393 = vmatprep.mubr.msk.f32.mxu1 %vm1984_vm4, %v16798_v57 }
 0x421   : > { %12822 = vmatmul.mubr.msk.f32.vlgmr.msra.gmra.mrb[128].mxu0 %vm1984_vm4, %v14906_v58  ;;  %v14924_v58 = vld [vmem:[#allocation2 + $0x1b2] sm:$0xff] }
 0x422   : > { %12824 = vmatprep.mubr.msk.f32.mxu0 %vm1984_vm4, %v14897_v24  ;;  %13394 = vmatmul.mubr.msk.f32.gmra.mrb[28].mxu1 %vm1984_vm4, %v16806_v40  ;;  %v17659_v24 = vld [vmem:[#allocation2 + $0x92] sm:$0xff] }
 0x423   : > { %13396 = vmatprep.mubr.msk.f32.mxu1 %vm1984_vm4, %v16812_v52  ;;  %13880 = vmatpush3.bf16.msra.mxu0 %v17397_v47  ;;  %v14908_v47 = vld [vmem:[#allocation2 + $0x231] sm:$0xff] }
 0x424   : > { %13883 = vmatprep.subr.msk.bf16.mxu0 %vm15813_vm7, %v13881_v34 }
 0x425   : > { %12825 = vmatmul.mubr.msk.f32.gmra.mrb[130].mxu0 %vm1984_vm4, %v14907_v30  ;;  %v8646_v30 = vld [vmem:[#allocation5 + $0x2b8] sm:$0x3f] }
 0x426   : > { %12827 = vmatprep.mubr.msk.f32.mxu0 %vm1984_vm4, %v14900_v59  ;;  %13397 = vmatmul.mubr.msk.f32.gmra.mrb[30].mxu1 %vm1984_vm4, %v16818_v6  ;;  %v17663_v59 = vld [vmem:[#allocation2 + $0x12] sm:$0xff] }
 0x427   : > { %13399 = vmatprep.mubr.msk.f32.mxu1 %vm1984_vm4, %v16824_v8  ;;  %13886 = vmatpush3.bf16.msk.msra.mxu0 %vm15813_vm7, %v13881_v34  ;;  %v14923_v34 = vld [vmem:[#allocation2 + $0x1a2] sm:$0xff] }
 0x428   : > { %13888 = vmatprep.subr.bf16.mxu0 %v18377_v43 }
 0x429   : > { %12828 = vmatmul.mubr.msk.f32.gmra.mrb[132].mxu0 %vm1984_vm4, %v14908_v47  ;;  %v14926_v47 = vld [vmem:[#allocation2 + $0x20] sm:$0xff] }
 0x42a   : > { %12830 = vmatprep.mubr.msk.f32.mxu0 %vm1984_vm4, %v14903_v21  ;;  %13400 = vmatmul.mubr.msk.f32.gmra.mrb[0].mxu1 %vm1984_vm4, %v16830_v39  ;;  %v8643_v21 = vld [vmem:[#allocation5 + $0x2a0] sm:$0xff] }
 0x42b   : > { %13402 = vmatprep.mubr.msk.f32.mxu1 %vm1984_vm4, %v16836_v33 }
 0x42d   : > { %12831 = vmatmul.mubr.msk.f32.gmra.mrb[134].mxu0 %vm1984_vm4, %v14909_v11 }
 0x42e   : > { %13403 = vmatmul.mubr.msk.f32.gmra.mrb[2].mxu1 %vm1984_vm4, %v16844_v27  ;;  %12833 = vmatprep.mubr.msk.f32.mxu0 %vm1984_vm4, %v16840_v1 }
 0x42f   : > { %13405 = vmatprep.mubr.msk.f32.mxu1 %vm1984_vm4, %v17456_v20 }
 0x431   : > { %12834 = vmatmul.mubr.msk.f32.gmra.mrb[136].mxu0 %vm1984_vm4, %v16798_v57 }
 0x432   : > { %12836 = vmatprep.mubr.msk.f32.mxu0 %vm1984_vm4, %v16806_v40  ;;  %13406 = vmatmul.mubr.msk.f32.gmra.mrb[4].mxu1 %vm1984_vm4, %v17462_v23 }
 0x433   : > { %13408 = vmatprep.mubr.msk.f32.mxu1 %vm1984_vm4, %v17468_v51 }
 0x435   : > { %12837 = vmatmul.mubr.msk.f32.gmra.mrb[138].mxu0 %vm1984_vm4, %v16812_v52 }
 0x436   : > { %12839 = vmatprep.mubr.msk.f32.mxu0 %vm1984_vm4, %v16818_v6  ;;  %13409 = vmatmul.mubr.msk.f32.gmra.mrb[6].mxu1 %vm1984_vm4, %v17474_v18 }
 0x437   : > { %13411 = vmatprep.mubr.msk.f32.mxu1 %vm1984_vm4, %v17480_v60 }
 0x439   : > { %12840 = vmatmul.mubr.msk.f32.gmra.mrb[140].mxu0 %vm1984_vm4, %v16824_v8 }
 0x43a   : > { %12842 = vmatprep.mubr.msk.f32.mxu0 %vm1984_vm4, %v16830_v39  ;;  %13412 = vmatmul.mubr.msk.f32.gmra.mrb[8].mxu1 %vm1984_vm4, %v17486_v53 }
 0x43b   : > { %13414 = vmatprep.mubr.msk.f32.mxu1 %vm1984_vm4, %v17492_v17 }
 0x43d   : > { %12843 = vmatmul.mubr.msk.f32.gmra.mrb[142].mxu0 %vm1984_vm4, %v16836_v33 }
 0x43e   : > { %12845 = vmatprep.mubr.msk.f32.mxu0 %vm1984_vm4, %v17500_v13  ;;  %13415 = vmatmul.mubr.msk.f32.gmra.mrb[10].mxu1 %vm1984_vm4, %v17496_v19  ;;  %v17631_v13 = vld [vmem:[#allocation2 + $0x42] sm:$0xff] }
 0x43f   : > { %13417 = vmatprep.mubr.msk.f32.mxu1 %vm1984_vm4, %v17619_v37 }
 0x441   : > { %12846 = vmatmul.mubr.msk.f32.gmra.mrb[144].mxu0 %vm1984_vm4, %v17508_v41  ;;  %v17643_v41 = vld [vmem:[#allocation2 + $0x62] sm:$0xff] }
 0x442   : > { %12848 = vmatprep.mubr.msk.f32.mxu0 %vm1984_vm4, %v17512_v25  ;;  %13418 = vmatmul.mubr.msk.f32.gmra.mrb[12].mxu1 %vm1984_vm4, %v17625_v48  ;;  %v17655_v25 = vld [vmem:[#allocation2 + $0x82] sm:$0xff] }
 0x443   : > { %13420 = vmatprep.mubr.msk.f32.mxu1 %vm1984_vm4, %v17631_v13 }
 0x445   : > { %12849 = vmatmul.mubr.msk.f32.gmra.mrb[146].mxu0 %vm1984_vm4, %v17524_v14  ;;  %v8324_v14 = vld [vmem:[#allocation5 + $0x290] sm:$0xff] }
 0x446   : > { %12851 = vmatprep.mubr.msk.f32.mxu0 %vm1984_vm4, %v17528_v28  ;;  %13421 = vmatmul.mubr.msk.f32.gmra.mrb[14].mxu1 %vm1984_vm4, %v17637_v44  ;;  %v8325_v28 = vld [vmem:[#allocation5 + $0x298] sm:$0x3f] }
 0x447   : > { %13423 = vmatprep.mubr.msk.f32.mxu1 %vm1984_vm4, %v17643_v41 }
 0x449   : > { %12852 = vmatmul.mubr.msk.f32.gmra.mrb[148].mxu0 %vm1984_vm4, %v17538_v50  ;;  %v13991_v50 = vpack.c.bf16 %v8325_v28, %v8324_v14  ;;  %v14927_v14 = vld [vmem:[#allocation2 + $0xc2] sm:$0xff] }
 0x44a   : > { %12854 = vmatprep.mubr.msk.f32.mxu0 %vm1984_vm4, %v17542_v62  ;;  %13424 = vmatmul.mubr.msk.f32.gmra.mrb[16].mxu1 %vm1984_vm4, %v17649_v29  ;;  %v17671_v62 = vld [vmem:[#allocation2 + $0x22] sm:$0xff] }
 0x44b   : > { %13426 = vmatprep.mubr.msk.f32.mxu1 %vm1984_vm4, %v17655_v25  ;;  %v8940_v28 = vld [vmem:[#allocation5 + $0x2c0] sm:$0xff] }
 0x44d   : > { %12855 = vmatmul.mubr.msk.f32.gmra.mrb[150].mxu0 %vm1984_vm4, %v17549_v26  ;;  %v8644_v26 = vld [vmem:[#allocation5 + $0x2a8] sm:$0xff] }
 0x44e   : > { %12857 = vmatprep.mubr.msk.f32.mxu0 %vm1984_vm4, %v17663_v59  ;;  %13427 = vmatmul.mubr.msk.f32.gmra.mrb[18].mxu1 %vm1984_vm4, %v17659_v24 }
 0x44f   : > { %13437 = vmatprep.mubr.msk.f32.mxu1 %vm1984_vm4, %v16798_v57  ;;  %v17686_v57 = vpack.c.bf16 %v8644_v26, %v8643_v21  ;;  %v14930_v21 = vld [vmem:[#allocation2 + $0x40] sm:$0xff] }
 0x451   : > { %12858 = vmatmul.mubr.msk.f32.gmra.mrb[152].mxu0 %vm1984_vm4, %v17671_v62 }
 0x452   : > { %12860 = vmatprep.mubr.msk.f32.mxu0 %vm1984_vm4, %v17675_v56  ;;  %13438 = vmatmul.mubr.msk.f32.vlgmr.msra.gmra.mrb[20].mxu1 %vm1984_vm4, %v16806_v40  ;;  %v17703_v40 = vld [vmem:[#allocation2 + $0x62] sm:$0xff] }
 0x453   : > { %13990 = vmatpush3.bf16.msra.mxu1 %v17522_v16  ;;  %13440 = vmatprep.mubr.msk.f32.mxu1 %vm1984_vm4, %v16812_v52  ;;  %v17707_v52 = vld [vmem:[#allocation2 + $0x72] sm:$0xff] }
 0x454   : > { %13993 = vmatprep.subr.msk.bf16.mxu1 %vm15813_vm7, %v13991_v50  ;;  %v14922_v16 = vld [vmem:[#allocation2 + $0x192] sm:$0xff] }
 0x455   : > { %12861 = vmatmul.mubr.msk.f32.gmra.mrb[154].mxu0 %vm1984_vm4, %v17688_v35 }
 0x456   : > { %12863 = vmatprep.mubr.msk.f32.mxu0 %vm1984_vm4, %v17692_v22  ;;  %13441 = vmatmul.mubr.msk.f32.gmra.mrb[22].mxu1 %vm1984_vm4, %v16818_v6  ;;  %v17715_v6 = vld [vmem:[#allocation2 + $0x82] sm:$0xff] }
 0x457   : > { %13443 = vmatprep.mubr.msk.f32.mxu1 %vm1984_vm4, %v16824_v8  ;;  %13996 = vmatpush3.bf16.msk.msra.mxu1 %vm15813_vm7, %v13991_v50  ;;  %v14918_v8 = vld [vmem:[#allocation2 + $0x152] sm:$0xff] }
 0x458   : > { %13998 = vmatprep.subr.bf16.mxu1 %v17686_v57  ;;  %v14928_v50 = vld [vmem:[#allocation2 + $0xd2] sm:$0xff] }
 0x459   : > { %12864 = vmatmul.mubr.msk.f32.gmra.mrb[156].mxu0 %vm1984_vm4, %v17703_v40 }
 0x45a   : > { %12866 = vmatprep.mubr.msk.f32.mxu0 %vm1984_vm4, %v17707_v52  ;;  %13444 = vmatmul.mubr.msk.f32.gmra.mrb[24].mxu1 %vm1984_vm4, %v16830_v39  ;;  %v14919_v39 = vld [vmem:[#allocation2 + $0x162] sm:$0xff] }
 0x45b   : > { %13446 = vmatprep.mubr.msk.f32.mxu1 %vm1984_vm4, %v16836_v33  ;;  %v18378_v33 = vld [vmem:[#allocation11_spill] sm:$0xff] }
 0x45d   : > { %12867 = vmatmul.mubr.msk.f32.gmra.mrb[158].mxu0 %vm1984_vm4, %v17715_v6 }
 0x45e   : > { %13447 = vmatmul.mubr.msk.f32.gmra.mrb[26].mxu1 %vm1984_vm4, %v16844_v27  ;;  %12877 = vmatprep.mubr.msk.f32.mxu0 %vm1984_vm4, %v16840_v1  ;;  %v14920_v1 = vld [vmem:[#allocation2 + $0x172] sm:$0xff]  ;;  %v14921_v27 = vld [vmem:[#allocation2 + $0x182] sm:$0xff] }
 0x45f   : > { %13449 = vmatprep.mubr.msk.f32.mxu1 %vm1984_vm4, %v16944_v55 }
 0x461   : > { %12878 = vmatmul.mubr.msk.f32.vlgmr.msra.gmra.mrb[128].mxu0 %vm1984_vm4, %v14918_v8  ;;  %v14938_v8 = vld [vmem:[#allocation2 + $0x122] sm:$0xff] }
 0x462   : > { %12880 = vmatprep.mubr.msk.f32.mxu0 %vm1984_vm4, %v14919_v39  ;;  %13450 = vmatmul.mubr.msk.f32.gmra.mrb[28].mxu1 %vm1984_vm4, %v16952_v49  ;;  %v14939_v39 = vld [vmem:[#allocation2 + $0x10] sm:$0xff] }
 0x463   : > { %13452 = vmatprep.mubr.msk.f32.mxu1 %vm1984_vm4, %v16958_v7  ;;  %13890 = vmatpush3.bf16.msra.mxu0 %v18377_v43  ;;  %v14925_v43 = vld [vmem:[#allocation2 + $0xb2] sm:$0xff] }
 0x464   : > { %13893 = vmatprep.subr.msk.bf16.mxu0 %vm15813_vm7, %v18378_v33 }
 0x465   : > { %12881 = vmatmul.mubr.msk.f32.gmra.mrb[130].mxu0 %vm1984_vm4, %v14920_v1  ;;  %v18380_v1 = vld [vmem:[#allocation25_spill] sm:$0xff] }
 0x466   : > { %12883 = vmatprep.mubr.msk.f32.mxu0 %vm1984_vm4, %v14921_v27  ;;  %13453 = vmatmul.mubr.msk.f32.gmra.mrb[30].mxu1 %vm1984_vm4, %v16964_v38  ;;  %v18381_v27 = vld [vmem:[#allocation12_spill] sm:$0xff] }
 0x467   : > { %13455 = vmatprep.mubr.msk.f32.mxu1 %vm1984_vm4, %v16970_v3  ;;  %13896 = vmatpush3.bf16.msk.msra.mxu0 %vm15813_vm7, %v18378_v33  ;;  %v18379_v33 = vld [vmem:[#allocation16_spill] sm:$0xff] }
 0x469   : > { %12884 = vmatmul.mubr.msk.f32.gmra.mrb[132].mxu0 %vm1984_vm4, %v14922_v16  ;;  %v18382_v16 = vld [vmem:[#allocation26_spill] sm:$0xff] }
 0x46a   : > { %12886 = vmatprep.mubr.msk.f32.mxu0 %vm1984_vm4, %v14923_v34  ;;  %13456 = vmatmul.mubr.msk.f32.gmra.mrb[0].mxu1 %vm1984_vm4, %v16976_v46  ;;  %v18383_v34 = vld [vmem:[#allocation13_spill] sm:$0xff] }
 0x46b   : > { %13458 = vmatprep.mubr.msk.f32.mxu1 %vm1984_vm4, %v16982_v54 }
 0x46d   : > { %12887 = vmatmul.mubr.msk.f32.gmra.mrb[134].mxu0 %vm1984_vm4, %v14924_v58  ;;  %v18384_v58 = vld [vmem:[#allocation14_spill] sm:$0xff] }
 0x46e   : > { %13459 = vmatmul.mubr.msk.f32.gmra.mrb[2].mxu1 %vm1984_vm4, %v16990_v4  ;;  %12889 = vmatprep.mubr.msk.f32.mxu0 %vm1984_vm4, %v16986_v63  ;;  %v17827_v63 = vld [vmem:[#allocation2 + $0x132] sm:$0xff] }
 0x46f   : > { %13461 = vmatprep.mubr.msk.f32.mxu1 %vm1984_vm4, %v17619_v37  ;;  %v8645_v4 = vld [vmem:[#allocation5 + $0x2b0] sm:$0xff] }
 0x470   : > { %v14001_v11 = vpack.c.bf16 %v8646_v30, %v8645_v4  ;;  %v18385_v4 = vld [vmem:[#allocation27_spill] sm:$0xff]  ;;  %v8304_v30 = vld [vmem:[#allocation2 + $0x160] sm:$0xff] }
 0x471   : > { %12890 = vmatmul.mubr.msk.f32.gmra.mrb[136].mxu0 %vm1984_vm4, %v16944_v55  ;;  %v17787_v55 = vld [vmem:[#allocation2 + $0xc2] sm:$0xff] }
 0x472   : > { %12892 = vmatprep.mubr.msk.f32.mxu0 %vm1984_vm4, %v16952_v49  ;;  %13462 = vmatmul.mubr.msk.f32.gmra.mrb[4].mxu1 %vm1984_vm4, %v17625_v48  ;;  %v17793_v49 = vld [vmem:[#allocation2 + $0xd2] sm:$0xff] }
 0x473   : > { %13464 = vmatprep.mubr.msk.f32.mxu1 %vm1984_vm4, %v17631_v13 }
 0x475   : > { %12893 = vmatmul.mubr.msk.f32.gmra.mrb[138].mxu0 %vm1984_vm4, %v16958_v7  ;;  %v17799_v7 = vld [vmem:[#allocation2 + $0xe2] sm:$0xff] }
 0x476   : > { %12895 = vmatprep.mubr.msk.f32.mxu0 %vm1984_vm4, %v16964_v38  ;;  %13465 = vmatmul.mubr.msk.f32.gmra.mrb[6].mxu1 %vm1984_vm4, %v17637_v44  ;;  %v17805_v38 = vld [vmem:[#allocation2 + $0xf2] sm:$0xff] }
 0x477   : > { %13467 = vmatprep.mubr.msk.f32.mxu1 %vm1984_vm4, %v17643_v41 }
 0x479   : > { %12896 = vmatmul.mubr.msk.f32.gmra.mrb[140].mxu0 %vm1984_vm4, %v16970_v3  ;;  %v17811_v3 = vld [vmem:[#allocation2 + $0x102] sm:$0xff] }
 0x47a   : > { %12898 = vmatprep.mubr.msk.f32.mxu0 %vm1984_vm4, %v16976_v46  ;;  %13468 = vmatmul.mubr.msk.f32.gmra.mrb[8].mxu1 %vm1984_vm4, %v17649_v29  ;;  %v17817_v46 = vld [vmem:[#allocation2 + $0x112] sm:$0xff] }
 0x47b   : > { %13470 = vmatprep.mubr.msk.f32.mxu1 %vm1984_vm4, %v17655_v25 }
 0x47d   : > { %12899 = vmatmul.mubr.msk.f32.gmra.mrb[142].mxu0 %vm1984_vm4, %v16982_v54  ;;  %v17823_v54 = vld [vmem:[#allocation2 + $0x122] sm:$0xff] }
 0x47e   : > { %12901 = vmatprep.mubr.msk.f32.mxu0 %vm1984_vm4, %v17663_v59  ;;  %13471 = vmatmul.mubr.msk.f32.gmra.mrb[10].mxu1 %vm1984_vm4, %v17659_v24  ;;  %v8941_v59 = vld [vmem:[#allocation5 + $0x2c8] sm:$0xff] }
 0x47f   : > { %13473 = vmatprep.mubr.msk.f32.mxu1 %vm1984_vm4, %v17787_v55  ;;  %v17842_v26 = vpack.c.bf16 %v8941_v59, %v8940_v28  ;;  %v8307_v28 = vld [vmem:[#allocation2 + $0x190] sm:$0xff]  ;;  %v8308_v59 = vld [vmem:[#allocation2 + $0x1a0] sm:$0xff] }
 0x481   : > { %12902 = vmatmul.mubr.msk.f32.gmra.mrb[144].mxu0 %vm1984_vm4, %v17671_v62  ;;  %v14929_v62 = vld [vmem:[#allocation2 + $0x30] sm:$0xff] }
 0x482   : > { %12904 = vmatprep.mubr.msk.f32.mxu0 %vm1984_vm4, %v17675_v56  ;;  %13474 = vmatmul.mubr.msk.f32.gmra.mrb[12].mxu1 %vm1984_vm4, %v17793_v49  ;;  %v14931_v56 = vld [vmem:[#allocation2 + $0xe2] sm:$0xff] }
 0x483   : > { %13476 = vmatprep.mubr.msk.f32.mxu1 %vm1984_vm4, %v17799_v7 }
 0x485   : > { %12905 = vmatmul.mubr.msk.f32.gmra.mrb[146].mxu0 %vm1984_vm4, %v17688_v35  ;;  %v14932_v35 = vld [vmem:[#allocation2 + $0xf2] sm:$0xff] }
 0x486   : > { %12907 = vmatprep.mubr.msk.f32.mxu0 %vm1984_vm4, %v17692_v22  ;;  %13477 = vmatmul.mubr.msk.f32.gmra.mrb[14].mxu1 %vm1984_vm4, %v17805_v38  ;;  %v14933_v22 = vld [vmem:[#allocation2 + $0x50] sm:$0xff] }
 0x487   : > { %13479 = vmatprep.mubr.msk.f32.mxu1 %vm1984_vm4, %v17811_v3 }
 0x489   : > { %12908 = vmatmul.mubr.msk.f32.gmra.mrb[148].mxu0 %vm1984_vm4, %v17703_v40  ;;  %v14934_v40 = vld [vmem:[#allocation2 + $0x60] sm:$0xff] }
 0x48a   : > { %12910 = vmatprep.mubr.msk.f32.mxu0 %vm1984_vm4, %v17707_v52  ;;  %13480 = vmatmul.mubr.msk.f32.gmra.mrb[16].mxu1 %vm1984_vm4, %v17817_v46  ;;  %v14936_v52 = vld [vmem:[#allocation2 + $0x112] sm:$0xff] }
 0x48b   : > { %13482 = vmatprep.mubr.msk.f32.mxu1 %vm1984_vm4, %v17823_v54 }
 0x48d   : > { %12911 = vmatmul.mubr.msk.f32.gmra.mrb[150].mxu0 %vm1984_vm4, %v17715_v6  ;;  %v14937_v6 = vld [vmem:[#allocation2 + $0x70] sm:$0xff] }
 0x48e   : > { %12913 = vmatprep.mubr.msk.f32.mxu0 %vm1984_vm4, %v14925_v43  ;;  %13483 = vmatmul.mubr.msk.f32.gmra.mrb[18].mxu1 %vm1984_vm4, %v17827_v63  ;;  %v18386_v43 = vld [vmem:[#allocation28_spill] sm:$0xff] }
 0x48f   : > { %13493 = vmatprep.mubr.msk.f32.mxu1 %vm1984_vm4, %v14926_v47 }
 0x491   : > { %12914 = vmatmul.mubr.msk.f32.gmra.mrb[152].mxu0 %vm1984_vm4, %v14927_v14  ;;  %v8306_v14 = vld [vmem:[#allocation2 + $0x180] sm:$0xff] }
 0x492   : > { %12916 = vmatprep.mubr.msk.f32.mxu0 %vm1984_vm4, %v14928_v50  ;;  %13494 = vmatmul.mubr.msk.f32.vlgmr.msra.gmra.mrb[20].mxu1 %vm1984_vm4, %v14929_v62  ;;  %v8309_v50 = vld [vmem:[#allocation2 + $0x1b0] sm:$0xff] }
 0x493   : > { %14000 = vmatpush3.bf16.msra.mxu1 %v17686_v57  ;;  %13496 = vmatprep.mubr.msk.f32.mxu1 %vm1984_vm4, %v14930_v21  ;;  %v14935_v57 = vld [vmem:[#allocation2 + $0x102] sm:$0xff] }
 0x494   : > { %14003 = vmatprep.subr.msk.bf16.mxu1 %vm15813_vm7, %v14001_v11 }
 0x495   : > { %12917 = vmatmul.mubr.msk.f32.gmra.mrb[154].mxu0 %vm1984_vm4, %v14931_v56  ;;  %v8313_v56 = vld [vmem:[#allocation2 + $0x200] sm:$0xff] }
 0x496   : > { %12919 = vmatprep.mubr.msk.f32.mxu0 %vm1984_vm4, %v14932_v35  ;;  %13497 = vmatmul.mubr.msk.f32.gmra.mrb[22].mxu1 %vm1984_vm4, %v14933_v22  ;;  %v8314_v35 = vld [vmem:[#allocation2 + $0x210] sm:$0xff] }
 0x497   : > { %13499 = vmatprep.mubr.msk.f32.mxu1 %vm1984_vm4, %v14934_v40  ;;  %14006 = vmatpush3.bf16.msk.msra.mxu1 %vm15813_vm7, %v14001_v11  ;;  %v18387_v11 = vld [vmem:[#allocation15_spill] sm:$0xff] }
 0x498   : > { %14008 = vmatprep.subr.bf16.mxu1 %v17842_v26 }
 0x499   : > { %12920 = vmatmul.mubr.msk.f32.gmra.mrb[156].mxu0 %vm1984_vm4, %v14935_v57  ;;  %v8317_v57 = vld [vmem:[#allocation2 + $0x240] sm:$0xff] }
 0x49a   : > { %12922 = vmatprep.mubr.msk.f32.mxu0 %vm1984_vm4, %v14936_v52  ;;  %13500 = vmatmul.mubr.msk.f32.gmra.mrb[24].mxu1 %vm1984_vm4, %v14937_v6  ;;  %v8318_v52 = vld [vmem:[#allocation2 + $0x250] sm:$0xff] }
 0x49b   : > { %13502 = vmatprep.mubr.msk.f32.mxu1 %vm1984_vm4, %v17092_v36 }
 0x49d   : > { %12923 = vmatmul.mubr.msk.f32.gmra.mrb[158].mxu0 %vm1984_vm4, %v14938_v8  ;;  %v8320_v8 = vld [vmem:[#allocation2 + $0x270] sm:$0xff] }
 0x49e   : > { %12933 = vmatprep.mubr.msk.f32.mxu0 %vm1984_vm4, %v14939_v39  ;;  %13503 = vmatmul.mubr.msk.f32.gmra.mrb[26].mxu1 %vm1984_vm4, %v18379_v33  ;;  %v8942_v39 = vld [vmem:[#allocation5 + $0x2d0] sm:$0xff]  ;;  %v8943_v33 = vld [vmem:[#allocation5 + $0x2d8] sm:$0x3f] }
 0x49f   : > { %13505 = vmatprep.mubr.msk.f32.mxu1 %vm1984_vm4, %v17104_v2 }
 0x4a1   : > { %12934 = vmatmul.mubr.msk.f32.vlgmr.msra.gmra.mrb[128].mxu0 %vm1984_vm4, %v14926_v47  ;;  %v8305_v47 = vld [vmem:[#allocation2 + $0x170] sm:$0xff] }
 0x4a2   : > { %12936 = vmatprep.mubr.msk.f32.mxu0 %vm1984_vm4, %v14929_v62  ;;  %13506 = vmatmul.mubr.msk.f32.gmra.mrb[28].mxu1 %vm1984_vm4, %v17110_v45  ;;  %v8310_v62 = vld [vmem:[#allocation2 + $0x1c0] sm:$0xff] }
 0x4a3   : > { %13508 = vmatprep.mubr.msk.f32.mxu1 %vm1984_vm4, %v17116_v31 }
 0x4a5   : > { %12937 = vmatmul.mubr.msk.f32.gmra.mrb[130].mxu0 %vm1984_vm4, %v14930_v21  ;;  %v8311_v21 = vld [vmem:[#allocation2 + $0x1d0] sm:$0xff] }
 0x4a6   : > { %12939 = vmatprep.mubr.msk.f32.mxu0 %vm1984_vm4, %v14933_v22  ;;  %13509 = vmatmul.mubr.msk.f32.gmra.mrb[30].mxu1 %vm1984_vm4, %v18380_v1  ;;  %v8315_v22 = vld [vmem:[#allocation2 + $0x220] sm:$0xff] }
 0x4a7   : > { %13511 = vmatprep.mubr.msk.f32.mxu1 %vm1984_vm4, %v18381_v27 }
 0x4a9   : > { %12940 = vmatmul.mubr.msk.f32.gmra.mrb[132].mxu0 %vm1984_vm4, %v14934_v40  ;;  %v8316_v40 = vld [vmem:[#allocation2 + $0x230] sm:$0xff] }
 0x4aa   : > { %12942 = vmatprep.mubr.msk.f32.mxu0 %vm1984_vm4, %v14937_v6  ;;  %13512 = vmatmul.mubr.msk.f32.gmra.mrb[0].mxu1 %vm1984_vm4, %v18382_v16  ;;  %v8319_v6 = vld [vmem:[#allocation2 + $0x260] sm:$0xff] }
 0x4ab   : > { %13514 = vmatprep.mubr.msk.f32.mxu1 %vm1984_vm4, %v18383_v34 }
 0x4ad   : > { %12943 = vmatmul.mubr.msk.f32.gmra.mrb[134].mxu0 %vm1984_vm4, %v17092_v36  ;;  %v18388_v36 = vld [vmem:[#allocation29_spill] sm:$0xff] }
 0x4ae   : > { %12945 = vmatprep.mubr.msk.f32.mxu0 %vm1984_vm4, %v18384_v58  ;;  %13515 = vmatmul.mubr.msk.f32.gmra.mrb[2].mxu1 %vm1984_vm4, %v18385_v4  ;;  %v14011_v58 = vpack.c.bf16 %v8943_v33, %v8942_v39 }
 0x4af   : > { %13517 = vmatprep.mubr.msk.f32.mxu1 %vm1984_vm4, %v8304_v30  ;;  %v9237_v30 = vld [vmem:[#allocation5 + $0x2e0] sm:$0xff] }
 0x4b1   : > { %12946 = vmatmul.mubr.msk.f32.gmra.mrb[136].mxu0 %vm1984_vm4, %v18386_v43  ;;  %v9238_v43 = vld [vmem:[#allocation5 + $0x2e8] sm:$0xff] }
 0x4b2   : > { %12948 = vmatprep.mubr.msk.f32.mxu0 %vm1984_vm4, %v18387_v11  ;;  %13518 = vmatmul.mubr.msk.f32.gmra.mrb[4].mxu1 %vm1984_vm4, %v8305_v47  ;;  %v14017_v47 = vpack.c.bf16 %v9238_v43, %v9237_v30  ;;  %v9240_v11 = vld [vmem:[#allocation5 + $0x2f8] sm:$0x3f] }
 0x4b3   : > { %13520 = vmatprep.mubr.msk.f32.mxu1 %vm1984_vm4, %v8306_v14 }
 0x4b5   : > { %12949 = vmatmul.mubr.msk.f32.gmra.mrb[138].mxu0 %vm1984_vm4, %v18388_v36  ;;  %v9534_v36 = vld [vmem:[#allocation5 + $0x300] sm:$0xff] }
 0x4b6   : > { %13521 = vmatmul.mubr.msk.f32.gmra.mrb[6].mxu1 %vm1984_vm4, %v8307_v28  ;;  %v9535_v28 = vld [vmem:[#allocation5 + $0x308] sm:$0xff] }
 0x4b7   : > { %13523 = vmatprep.mubr.msk.f32.mxu1 %vm1984_vm4, %v8308_v59  ;;  %v14027_v59 = vpack.c.bf16 %v9535_v28, %v9534_v36  ;;  %v9232_v36 = vld [vmem:[#allocation2 + $0x1a2] sm:$0xff] }
 0x4ba   : > { %13524 = vmatmul.mubr.msk.f32.gmra.mrb[8].mxu1 %vm1984_vm4, %v8309_v50 }
 0x4bb   : > { %13526 = vmatprep.mubr.msk.f32.mxu1 %vm1984_vm4, %v8310_v62 }
 0x4be   : > { %13527 = vmatmul.mubr.msk.f32.gmra.mrb[10].mxu1 %vm1984_vm4, %v8311_v21  ;;  %v9536_v21 = vld [vmem:[#allocation5 + $0x310] sm:$0xff] }
 0x4bf   : > { %13529 = vmatprep.mubr.msk.f32.mxu1 %vm1984_vm4, %v8313_v56 }
 0x4c2   : > { %13530 = vmatmul.mubr.msk.f32.gmra.mrb[12].mxu1 %vm1984_vm4, %v8314_v35 }
 0x4c3   : > { %13532 = vmatprep.mubr.msk.f32.mxu1 %vm1984_vm4, %v8315_v22 }
 0x4c6   : > { %13533 = vmatmul.mubr.msk.f32.gmra.mrb[14].mxu1 %vm1984_vm4, %v8316_v40 }
 0x4c7   : > { %13535 = vmatprep.mubr.msk.f32.mxu1 %vm1984_vm4, %v8317_v57 }
 0x4ca   : > { %13536 = vmatmul.mubr.msk.f32.gmra.mrb[16].mxu1 %vm1984_vm4, %v8318_v52 }
 0x4cb   : > { %13538 = vmatprep.mubr.msk.f32.mxu1 %vm1984_vm4, %v8319_v6 }
 0x4ce   : > { %13539 = vmatmul.mubr.msk.f32.gmra.mrb[18].mxu1 %vm1984_vm4, %v8320_v8 }
 0x4cf   : > { %13549 = vmatprep.mubr.msk.f32.mxu1 %vm1984_vm4, %v17104_v2  ;;  %v8634_v2 = vld [vmem:[#allocation2 + $0x161] sm:$0xff] }
 0x4d2   : > { %13550 = vmatmul.mubr.msk.f32.vlgmr.msra.gmra.mrb[20].mxu1 %vm1984_vm4, %v17110_v45  ;;  %v8635_v45 = vld [vmem:[#allocation2 + $0x171] sm:$0xff] }
 0x4d3   : > { %14010 = vmatpush3.bf16.msra.mxu1 %v17842_v26  ;;  %13552 = vmatprep.mubr.msk.f32.mxu1 %vm1984_vm4, %v17116_v31  ;;  %v8636_v31 = vld [vmem:[#allocation2 + $0x181] sm:$0xff]  ;;  %v8637_v26 = vld [vmem:[#allocation2 + $0x191] sm:$0xff] }
 0x4d4   : > { %14013 = vmatprep.subr.msk.bf16.mxu1 %vm15813_vm7, %v14011_v58 }
 0x4d6   : > { %13553 = vmatmul.mubr.msk.f32.gmra.mrb[22].mxu1 %vm1984_vm4, %v18380_v1  ;;  %v8638_v1 = vld [vmem:[#allocation2 + $0x1a1] sm:$0xff] }
 0x4d7   : > { %13555 = vmatprep.mubr.msk.f32.mxu1 %vm1984_vm4, %v18381_v27  ;;  %14016 = vmatpush3.bf16.msk.msra.mxu1 %vm15813_vm7, %v14011_v58  ;;  %v8639_v27 = vld [vmem:[#allocation2 + $0x1b1] sm:$0xff] }
 0x4d8   : > { %14018 = vmatprep.subr.bf16.mxu1 %v14017_v47 }
 0x4da   : > { %13556 = vmatmul.mubr.msk.f32.gmra.mrb[24].mxu1 %vm1984_vm4, %v18382_v16  ;;  %v8640_v16 = vld [vmem:[#allocation2 + $0x1c1] sm:$0xff] }
 0x4db   : > { %13558 = vmatprep.mubr.msk.f32.mxu1 %vm1984_vm4, %v18383_v34  ;;  %v8641_v34 = vld [vmem:[#allocation2 + $0x1d1] sm:$0xff] }
 0x4de   : > { %13559 = vmatmul.mubr.msk.f32.gmra.mrb[26].mxu1 %vm1984_vm4, %v18385_v4  ;;  %v9239_v4 = vld [vmem:[#allocation5 + $0x2f0] sm:$0xff] }
 0x4df   : > { %13561 = vmatprep.mubr.msk.f32.mxu1 %vm1984_vm4, %v17281_v61  ;;  %v14021_v14 = vpack.c.bf16 %v9240_v11, %v9239_v4 }
 0x4e2   : > { %13562 = vmatmul.mubr.msk.f32.gmra.mrb[28].mxu1 %vm1984_vm4, %v17287_v9 }
 0x4e3   : > { %13564 = vmatprep.mubr.msk.f32.mxu1 %vm1984_vm4, %v17293_v15 }
 0x4e6   : > { %13565 = vmatmul.mubr.msk.f32.gmra.mrb[30].mxu1 %vm1984_vm4, %v17299_v10 }
 0x4e7   : > { %13567 = vmatprep.mubr.msk.f32.mxu1 %vm1984_vm4, %v17305_v32 }
 0x4ea   : > { %13568 = vmatmul.mubr.msk.f32.gmra.mrb[0].mxu1 %vm1984_vm4, %v17311_v0 }
 0x4eb   : > { %13570 = vmatprep.mubr.msk.f32.mxu1 %vm1984_vm4, %v17317_v5 }
 0x4ee   : > { %13571 = vmatmul.mubr.msk.f32.gmra.mrb[2].mxu1 %vm1984_vm4, %v17321_v42 }
 0x4ef   : > { %13573 = vmatprep.mubr.msk.f32.mxu1 %vm1984_vm4, %v8313_v56  ;;  %v9537_v56 = vld [vmem:[#allocation5 + $0x318] sm:$0x3f] }
 0x4f2   : > { %13574 = vmatmul.mubr.msk.f32.gmra.mrb[4].mxu1 %vm1984_vm4, %v8314_v35 }
 0x4f3   : > { %13576 = vmatprep.mubr.msk.f32.mxu1 %vm1984_vm4, %v8315_v22  ;;  %v14031_v22 = vpack.c.bf16 %v9537_v56, %v9536_v21 }
 0x4f6   : > { %13577 = vmatmul.mubr.msk.f32.gmra.mrb[6].mxu1 %vm1984_vm4, %v8316_v40 }
 0x4f7   : > { %13579 = vmatprep.mubr.msk.f32.mxu1 %vm1984_vm4, %v8317_v57 }
 0x4fa   : > { %13580 = vmatmul.mubr.msk.f32.gmra.mrb[8].mxu1 %vm1984_vm4, %v8318_v52 }
 0x4fb   : > { %13582 = vmatprep.mubr.msk.f32.mxu1 %vm1984_vm4, %v8319_v6 }
 0x4fe   : > { %13583 = vmatmul.mubr.msk.f32.gmra.mrb[10].mxu1 %vm1984_vm4, %v8320_v8 }
 0x4ff   : > { %13585 = vmatprep.mubr.msk.f32.mxu1 %vm1984_vm4, %v8634_v2 }
 0x502   : > { %13586 = vmatmul.mubr.msk.f32.gmra.mrb[12].mxu1 %vm1984_vm4, %v8635_v45 }
 0x503   : > { %13588 = vmatprep.mubr.msk.f32.mxu1 %vm1984_vm4, %v8636_v31 }
 0x506   : > { %13589 = vmatmul.mubr.msk.f32.gmra.mrb[14].mxu1 %vm1984_vm4, %v8637_v26 }
 0x507   : > { %13591 = vmatprep.mubr.msk.f32.mxu1 %vm1984_vm4, %v8638_v1 }
 0x50a   : > { %13592 = vmatmul.mubr.msk.f32.gmra.mrb[16].mxu1 %vm1984_vm4, %v8639_v27 }
 0x50b   : > { %13594 = vmatprep.mubr.msk.f32.mxu1 %vm1984_vm4, %v8640_v16 }
 0x50e   : > { %13595 = vmatmul.mubr.msk.f32.gmra.mrb[18].mxu1 %vm1984_vm4, %v8641_v34 }
 0x50f   : > { %13605 = vmatprep.mubr.msk.f32.mxu1 %vm1984_vm4, %v17281_v61  ;;  %v8931_v61 = vld [vmem:[#allocation2 + $0x201] sm:$0xff] }
 0x512   : > { %13606 = vmatmul.mubr.msk.f32.vlgmr.msra.gmra.mrb[20].mxu1 %vm1984_vm4, %v17287_v9  ;;  %v8932_v9 = vld [vmem:[#allocation2 + $0x211] sm:$0xff] }
 0x513   : > { %14020 = vmatpush3.bf16.msra.mxu1 %v14017_v47  ;;  %13608 = vmatprep.mubr.msk.f32.mxu1 %vm1984_vm4, %v17293_v15  ;;  %v8933_v15 = vld [vmem:[#allocation2 + $0x221] sm:$0xff] }
 0x514   : > { %14023 = vmatprep.subr.msk.bf16.mxu1 %vm15813_vm7, %v14021_v14 }
 0x516   : > { %13609 = vmatmul.mubr.msk.f32.gmra.mrb[22].mxu1 %vm1984_vm4, %v17299_v10  ;;  %v8934_v10 = vld [vmem:[#allocation2 + $0x231] sm:$0xff] }
 0x517   : > { %13611 = vmatprep.mubr.msk.f32.mxu1 %vm1984_vm4, %v17305_v32  ;;  %14026 = vmatpush3.bf16.msk.msra.mxu1 %vm15813_vm7, %v14021_v14  ;;  %v8935_v32 = vld [vmem:[#allocation2 + $0x241] sm:$0xff]  ;;  %v9231_v14 = vld [vmem:[#allocation2 + $0x192] sm:$0xff] }
 0x518   : > { %14028 = vmatprep.subr.bf16.mxu1 %v14027_v59 }
 0x51a   : > { %13612 = vmatmul.mubr.msk.f32.gmra.mrb[24].mxu1 %vm1984_vm4, %v17311_v0  ;;  %v8936_v0 = vld [vmem:[#allocation2 + $0x251] sm:$0xff] }
 0x51b   : > { %13614 = vmatprep.mubr.msk.f32.mxu1 %vm1984_vm4, %v17317_v5  ;;  %v8937_v5 = vld [vmem:[#allocation2 + $0x261] sm:$0xff] }
 0x51e   : > { %13615 = vmatmul.mubr.msk.f32.gmra.mrb[26].mxu1 %vm1984_vm4, %v17321_v42  ;;  %v8938_v42 = vld [vmem:[#allocation2 + $0x271] sm:$0xff] }
 0x51f   : > { %13617 = vmatprep.mubr.msk.f32.mxu1 %vm1984_vm4, %v17456_v20 }
 0x522   : > { %13618 = vmatmul.mubr.msk.f32.gmra.mrb[28].mxu1 %vm1984_vm4, %v17462_v23 }
 0x523   : > { %13620 = vmatprep.mubr.msk.f32.mxu1 %vm1984_vm4, %v17468_v51 }
 0x526   : > { %13621 = vmatmul.mubr.msk.f32.gmra.mrb[30].mxu1 %vm1984_vm4, %v17474_v18 }
 0x527   : > { %13623 = vmatprep.mubr.msk.f32.mxu1 %vm1984_vm4, %v17480_v60 }
 0x52a   : > { %13624 = vmatmul.mubr.msk.f32.gmra.mrb[0].mxu1 %vm1984_vm4, %v17486_v53 }
 0x52b   : > { %13626 = vmatprep.mubr.msk.f32.mxu1 %vm1984_vm4, %v17492_v17 }
 0x52e   : > { %13627 = vmatmul.mubr.msk.f32.gmra.mrb[2].mxu1 %vm1984_vm4, %v17496_v19 }
 0x52f   : > { %13629 = vmatprep.mubr.msk.f32.mxu1 %vm1984_vm4, %v8634_v2 }
 0x532   : > { %13630 = vmatmul.mubr.msk.f32.gmra.mrb[4].mxu1 %vm1984_vm4, %v8635_v45 }
 0x533   : > { %13632 = vmatprep.mubr.msk.f32.mxu1 %vm1984_vm4, %v8636_v31 }
 0x536   : > { %13633 = vmatmul.mubr.msk.f32.gmra.mrb[6].mxu1 %vm1984_vm4, %v8637_v26  ;;  %v9228_v26 = vld [vmem:[#allocation2 + $0x162] sm:$0xff] }
 0x537   : > { %13635 = vmatprep.mubr.msk.f32.mxu1 %vm1984_vm4, %v8638_v1 }
 0x53a   : > { %13636 = vmatmul.mubr.msk.f32.gmra.mrb[8].mxu1 %vm1984_vm4, %v8639_v27 }
 0x53b   : > { %13638 = vmatprep.mubr.msk.f32.mxu1 %vm1984_vm4, %v8640_v16  ;;  %v9229_v16 = vld [vmem:[#allocation2 + $0x172] sm:$0xff] }
 0x53e   : > { %13639 = vmatmul.mubr.msk.f32.gmra.mrb[10].mxu1 %vm1984_vm4, %v8641_v34  ;;  %v9230_v34 = vld [vmem:[#allocation2 + $0x182] sm:$0xff] }
 0x53f   : > { %13641 = vmatprep.mubr.msk.f32.mxu1 %vm1984_vm4, %v8931_v61 }
 0x542   : > { %13642 = vmatmul.mubr.msk.f32.gmra.mrb[12].mxu1 %vm1984_vm4, %v8932_v9 }
 0x543   : > { %13644 = vmatprep.mubr.msk.f32.mxu1 %vm1984_vm4, %v8933_v15 }
 0x546   : > { %13645 = vmatmul.mubr.msk.f32.gmra.mrb[14].mxu1 %vm1984_vm4, %v8934_v10 }
 0x547   : > { %13647 = vmatprep.mubr.msk.f32.mxu1 %vm1984_vm4, %v8935_v32 }
 0x54a   : > { %13648 = vmatmul.mubr.msk.f32.gmra.mrb[16].mxu1 %vm1984_vm4, %v8936_v0 }
 0x54b   : > { %13650 = vmatprep.mubr.msk.f32.mxu1 %vm1984_vm4, %v8937_v5 }
 0x54c   : > { %v18012_v50 = vpop.f32.mrb[140].mxu0 }
 0x54d   : > { %v18014_v62 = vpop.f32.mrb[141].mxu0 }
 0x54e   : > { %13651 = vmatmul.mubr.msk.f32.gmra.mrb[18].mxu1 %vm1984_vm4, %v8938_v42 }
 0x54f   : > { %13661 = vmatprep.mubr.msk.f32.mxu1 %vm1984_vm4, %v17456_v20 }
 0x550   : > { %v18019_v35 = vpop.f32.mrb[142].mxu0 }
 0x551   : > { %v18021_v40 = vpop.f32.mrb[143].mxu0 }
 0x552   : > { %13662 = vmatmul.mubr.msk.f32.vlgmr.msra.gmra.mrb[20].mxu1 %vm1984_vm4, %v17462_v23 }
 0x553   : > { %14030 = vmatpush3.bf16.msra.mxu1 %v14027_v59  ;;  %13664 = vmatprep.mubr.msk.f32.mxu1 %vm1984_vm4, %v17468_v51 }
 0x554   : > { %v18027_v57 = vpop.f32.mrb[144].mxu0  ;;  %14033 = vmatprep.subr.msk.bf16.mxu1 %vm15813_vm7, %v14031_v22 }
 0x555   : > { %v18031_v52 = vpop.f32.mrb[145].mxu0 }
 0x556   : > { %13665 = vmatmul.mubr.msk.f32.gmra.mrb[22].mxu1 %vm1984_vm4, %v17474_v18 }
 0x557   : > { %13667 = vmatprep.mubr.msk.f32.mxu1 %vm1984_vm4, %v17480_v60  ;;  %14036 = vmatpush3.bf16.msk.msra.mxu1 %vm15813_vm7, %v14031_v22  ;;  %v18184_v22 = vld [vmem:[#allocation7] ss:$0 sm:$0xff] }
 0x558   : > { %v18039_v20 = vpop.f32.mrb[146].mxu0 }
 0x559   : > { %v18041_v23 = vpop.f32.mrb[147].mxu0 }
 0x55a   : > { %13668 = vmatmul.mubr.msk.f32.gmra.mrb[24].mxu1 %vm1984_vm4, %v17486_v53 }
 0x55b   : > { %13670 = vmatprep.mubr.msk.f32.mxu1 %vm1984_vm4, %v17492_v17 }
 0x55c   : > { %v18047_v51 = vpop.f32.mrb[148].mxu0 }
 0x55d   : > { %v18049_v6 = vpop.f32.mrb[149].mxu0 }
 0x55e   : > { %13671 = vmatmul.mubr.msk.f32.gmra.mrb[26].mxu1 %vm1984_vm4, %v17496_v19 }
 0x55f   : > { %13673 = vmatprep.mubr.msk.f32.mxu1 %vm1984_vm4, %v17619_v37 }
 0x560   : > { %v18055_v12 = vpop.f32.mrb[150].mxu0 }
 0x561   : > { %v18057_v18 = vpop.f32.mrb[151].mxu0 }
 0x562   : > { %13674 = vmatmul.mubr.msk.f32.gmra.mrb[28].mxu1 %vm1984_vm4, %v17625_v48 }
 0x563   : > { %13676 = vmatprep.mubr.msk.f32.mxu1 %vm1984_vm4, %v17631_v13 }
 0x564   : > { %v18063_v60 = vpop.f32.mrb[152].mxu0 }
 0x565   : > { %v18065_v53 = vpop.f32.mrb[153].mxu0 }
 0x566   : > { %13677 = vmatmul.mubr.msk.f32.gmra.mrb[30].mxu1 %vm1984_vm4, %v17637_v44 }
 0x567   : > { %13679 = vmatprep.mubr.msk.f32.mxu1 %vm1984_vm4, %v17643_v41 }
 0x568   : > { %v18071_v17 = vpop.f32.mrb[154].mxu0 }
 0x569   : > { %v18073_v19 = vpop.f32.mrb[155].mxu0 }
 0x56a   : > { %13680 = vmatmul.mubr.msk.f32.gmra.mrb[0].mxu1 %vm1984_vm4, %v17649_v29 }
 0x56b   : > { %13682 = vmatprep.mubr.msk.f32.mxu1 %vm1984_vm4, %v17655_v25 }
 0x56c   : > { %v18079_v8 = vpop.f32.mrb[156].mxu0 }
 0x56d   : > { %v18081_v39 = vpop.f32.mrb[157].mxu0 }
 0x56e   : > { %13683 = vmatmul.mubr.msk.f32.gmra.mrb[2].mxu1 %vm1984_vm4, %v17659_v24 }
 0x56f   : > { %13685 = vmatprep.mubr.msk.f32.mxu1 %vm1984_vm4, %v8931_v61  ;;  %v9233_v61 = vld [vmem:[#allocation2 + $0x1b2] sm:$0xff] }
 0x570   : > { %v18086_v33 = vpop.f32.mrb[158].mxu0 }
 0x571   : > { %v18088_v58 = vpop.f32.mrb[159].mxu0 }
 0x572   : > { %13686 = vmatmul.mubr.msk.f32.gmra.mrb[4].mxu1 %vm1984_vm4, %v8932_v9  ;;  %v9234_v9 = vld [vmem:[#allocation2 + $0x1c2] sm:$0xff] }
 0x573   : > { %13688 = vmatprep.mubr.msk.f32.mxu1 %vm1984_vm4, %v8933_v15  ;;  %v9235_v15 = vld [vmem:[#allocation2 + $0x1d2] sm:$0xff] }
 0x574   : > { %v18092_v30 = vpop.f32.mrb[128].mxu0 }
 0x575   : > { %v18094_v43 = vpop.f32.mrb[129].mxu0 }
 0x576   : > { %13689 = vmatmul.mubr.msk.f32.gmra.mrb[6].mxu1 %vm1984_vm4, %v8934_v10 }
 0x577   : > { %13691 = vmatprep.mubr.msk.f32.mxu1 %vm1984_vm4, %v8935_v32 }
 0x578   : > { %v18098_v47 = vpop.f32.mrb[130].mxu0 }
 0x579   : > { %v18100_v2 = vpop.f32.mrb[131].mxu0 }
 0x57a   : > { %13692 = vmatmul.mubr.msk.f32.gmra.mrb[8].mxu1 %vm1984_vm4, %v8936_v0 }
 0x57b   : > { %13694 = vmatprep.mubr.msk.f32.mxu1 %vm1984_vm4, %v8937_v5 }
 0x57c   : > { %v18104_v45 = vpop.f32.mrb[132].mxu0 }
 0x57d   : > { %v18106_v31 = vpop.f32.mrb[133].mxu0 }
 0x57e   : > { %13695 = vmatmul.mubr.msk.f32.gmra.mrb[10].mxu1 %vm1984_vm4, %v8938_v42 }
 0x57f   : > { %13697 = vmatprep.mubr.msk.f32.mxu1 %vm1984_vm4, %v9228_v26 }
 0x580   : > { %v18110_v1 = vpop.f32.mrb[134].mxu0 }
 0x581   : > { %v18112_v27 = vpop.f32.mrb[135].mxu0 }
 0x582   : > { %13698 = vmatmul.mubr.msk.f32.gmra.mrb[12].mxu1 %vm1984_vm4, %v9229_v16 }
 0x583   : > { %13700 = vmatprep.mubr.msk.f32.mxu1 %vm1984_vm4, %v9230_v34 }
 0x584   : > { %v18116_v4 = vpop.f32.mrb[136].mxu0 }
 0x585   : > { %v18118_v11 = vpop.f32.mrb[137].mxu0 }
 0x586   : > { %13701 = vmatmul.mubr.msk.f32.gmra.mrb[14].mxu1 %vm1984_vm4, %v9231_v14 }
 0x587   : > { %13703 = vmatprep.mubr.msk.f32.mxu1 %vm1984_vm4, %v9232_v36 }
 0x588   : > { %v18122_v28 = vpop.f32.mrb[138].mxu0 }
 0x589   : > { %v18124_v59 = vpop.f32.mrb[139].mxu0 }
 0x58a   : > { %13704 = vmatmul.mubr.msk.f32.gmra.mrb[16].mxu1 %vm1984_vm4, %v9233_v61 }
 0x58b   : > { %13706 = vmatprep.mubr.msk.f32.mxu1 %vm1984_vm4, %v9234_v9 }
 0x58e   : > { %13707 = vmatmul.mubr.msk.f32.gmra.mrb[18].mxu1 %vm1984_vm4, %v9235_v15 }
 0x58f   : > { %13717 = vmatprep.mubr.msk.f32.mxu1 %vm1984_vm4, %v17619_v37  ;;  %v9525_v37 = vld [vmem:[#allocation2 + $0x202] sm:$0xff] }
 0x592   : > { %13718 = vmatmul.mubr.msk.f32.vlgmr.msra.gmra.mrb[20].mxu1 %vm1984_vm4, %v17625_v48  ;;  %v9526_v48 = vld [vmem:[#allocation2 + $0x212] sm:$0xff] }
 0x593   : > { %13720 = vmatprep.mubr.msk.f32.mxu1 %vm1984_vm4, %v17631_v13  ;;  %v9527_v13 = vld [vmem:[#allocation2 + $0x222] sm:$0xff] }
 0x596   : > { %13721 = vmatmul.mubr.msk.f32.gmra.mrb[22].mxu1 %vm1984_vm4, %v17637_v44  ;;  %v9528_v44 = vld [vmem:[#allocation2 + $0x232] sm:$0xff] }
 0x597   : > { %13723 = vmatprep.mubr.msk.f32.mxu1 %vm1984_vm4, %v17643_v41  ;;  %v9529_v41 = vld [vmem:[#allocation2 + $0x242] sm:$0xff] }
 0x59a   : > { %13724 = vmatmul.mubr.msk.f32.gmra.mrb[24].mxu1 %vm1984_vm4, %v17649_v29  ;;  %v9530_v29 = vld [vmem:[#allocation2 + $0x252] sm:$0xff] }
 0x59b   : > { %13726 = vmatprep.mubr.msk.f32.mxu1 %vm1984_vm4, %v17655_v25  ;;  %v9531_v25 = vld [vmem:[#allocation2 + $0x262] sm:$0xff] }
 0x59e   : > { %13727 = vmatmul.mubr.msk.f32.gmra.mrb[26].mxu1 %vm1984_vm4, %v17659_v24  ;;  %v9532_v24 = vld [vmem:[#allocation2 + $0x272] sm:$0xff] }
 0x59f   : > { %13729 = vmatprep.mubr.msk.f32.mxu1 %vm1984_vm4, %v17787_v55 }
 0x5a2   : > { %13730 = vmatmul.mubr.msk.f32.gmra.mrb[28].mxu1 %vm1984_vm4, %v17793_v49 }
 0x5a3   : > { %13732 = vmatprep.mubr.msk.f32.mxu1 %vm1984_vm4, %v17799_v7 }
 0x5a6   : > { %13733 = vmatmul.mubr.msk.f32.gmra.mrb[30].mxu1 %vm1984_vm4, %v17805_v38 }
 0x5a7   : > { %13735 = vmatprep.mubr.msk.f32.mxu1 %vm1984_vm4, %v17811_v3 }
 0x5aa   : > { %13736 = vmatmul.mubr.msk.f32.gmra.mrb[0].mxu1 %vm1984_vm4, %v17817_v46 }
 0x5ab   : > { %13738 = vmatprep.mubr.msk.f32.mxu1 %vm1984_vm4, %v17823_v54 }
 0x5ae   : > { %13739 = vmatmul.mubr.msk.f32.gmra.mrb[2].mxu1 %vm1984_vm4, %v17827_v63 }
 0x5af   : > { %13741 = vmatprep.mubr.msk.f32.mxu1 %vm1984_vm4, %v9228_v26 }
 0x5b2   : > { %13742 = vmatmul.mubr.msk.f32.gmra.mrb[4].mxu1 %vm1984_vm4, %v9229_v16 }
 0x5b3   : > { %13744 = vmatprep.mubr.msk.f32.mxu1 %vm1984_vm4, %v9230_v34 }
 0x5b6   : > { %13745 = vmatmul.mubr.msk.f32.gmra.mrb[6].mxu1 %vm1984_vm4, %v9231_v14 }
 0x5b7   : > { %13747 = vmatprep.mubr.msk.f32.mxu1 %vm1984_vm4, %v9232_v36 }
 0x5ba   : > { %13748 = vmatmul.mubr.msk.f32.gmra.mrb[8].mxu1 %vm1984_vm4, %v9233_v61 }
 0x5bb   : > { %13750 = vmatprep.mubr.msk.f32.mxu1 %vm1984_vm4, %v9234_v9 }
 0x5be   : > { %13751 = vmatmul.mubr.msk.f32.gmra.mrb[10].mxu1 %vm1984_vm4, %v9235_v15 }
 0x5bf   : > { %13753 = vmatprep.mubr.msk.f32.mxu1 %vm1984_vm4, %v9525_v37 }
 0x5c2   : > { %13754 = vmatmul.mubr.msk.f32.gmra.mrb[12].mxu1 %vm1984_vm4, %v9526_v48 }
 0x5c3   : > { %13756 = vmatprep.mubr.msk.f32.mxu1 %vm1984_vm4, %v9527_v13 }
 0x5c6   : > { %13757 = vmatmul.mubr.msk.f32.gmra.mrb[14].mxu1 %vm1984_vm4, %v9528_v44 }
 0x5c7   : > { %13759 = vmatprep.mubr.msk.f32.mxu1 %vm1984_vm4, %v9529_v41 }
 0x5ca   : > { %13760 = vmatmul.mubr.msk.f32.gmra.mrb[16].mxu1 %vm1984_vm4, %v9530_v29 }
 0x5cb   : > { %13762 = vmatprep.mubr.msk.f32.mxu1 %vm1984_vm4, %v9531_v25 }
 0x5ce   : > { %13763 = vmatmul.mubr.msk.f32.gmra.mrb[18].mxu1 %vm1984_vm4, %v9532_v24 }
 0x665   : > { %v13719_v55 = vpop.f32.mrb[20].mxu1 }
 0x666   : > { %v14041_v49 = vadd.f32 %v13719_v55, %v18092_v30  ;;  %v9631_v7 = vpop.f32.mrb[21].mxu1 }
 0x667   : > { %v14042_v38 = vadd.f32 %v9631_v7, %v18094_v43 }
 0x669   : > { %v13722_v3 = vpop.f32.mrb[22].mxu1  ;;  %v9829_v16 = vadd.f32 %v14042_v38, %v18184_v22 }
 0x66a   : > { %v14043_v46 = vadd.f32 %v13722_v3, %v18098_v47  ;;  %v9641_v54 = vpop.f32.mrb[23].mxu1  ;;  %v9830_v47 = vadd.f32 %v14041_v49, %v18184_v22 }
 0x66b   : > { %v14044_v63 = vadd.f32 %v9641_v54, %v18100_v2  ;;  %v9861_v15 = vmax.f32 %v9829_v16, 0.0 }
 0x66c   : > { %v9862_v14 = vmax.f32 %v9830_v47, 0.0  ;;  %v9832_v36 = vadd.f32 %v14043_v46, %v18184_v22 }
 0x66d   : > { %v13725_v10 = vpop.f32.mrb[24].mxu1 }
 0x66e   : > { %v14045_v32 = vadd.f32 %v13725_v10, %v18104_v45  ;;  %v9651_v0 = vpop.f32.mrb[25].mxu1  ;;  %v9864_v25 = vmax.f32 %v9832_v36, 0.0 }
 0x66f   : > { %v14046_v5 = vadd.f32 %v9651_v0, %v18106_v31 }
 0x670   : > { %v9834_v24 = vadd.f32 %v14045_v32, %v18184_v22 }
 0x671   : > { %v13728_v42 = vpop.f32.mrb[26].mxu1  ;;  %v9833_v38 = vadd.f32 %v14046_v5, %v18184_v22 }
 0x672   : > { %v14047_v21 = vadd.f32 %v13728_v42, %v18110_v1  ;;  %v9661_v56 = vpop.f32.mrb[27].mxu1  ;;  %v9866_v32 = vmax.f32 %v9834_v24, 0.0 }
 0x673   : > { %v14048_v30 = vadd.f32 %v9661_v56, %v18112_v27  ;;  %v9865_v5 = vmax.f32 %v9833_v38, 0.0 }
 0x674   : > { %v9836_v42 = vadd.f32 %v14047_v21, %v18184_v22 }
 0x675   : > { %v13731_v43 = vpop.f32.mrb[28].mxu1  ;;  %v9835_v47 = vadd.f32 %v14048_v30, %v18184_v22 }
 0x676   : > { %v14049_v26 = vadd.f32 %v13731_v43, %v18116_v4  ;;  %v9671_v2 = vpop.f32.mrb[29].mxu1  ;;  %v9831_v4 = vadd.f32 %v14044_v63, %v18184_v22  ;;  %v9868_v21 = vmax.f32 %v9836_v42, 0.0 }
 0x677   : > { %v14050_v45 = vadd.f32 %v9671_v2, %v18118_v11  ;;  %v9867_v36 = vmax.f32 %v9835_v47, 0.0 }
 0x678   : > { %v9838_v31 = vadd.f32 %v14049_v26, %v18184_v22  ;;  %v9863_v7 = vmax.f32 %v9831_v4, 0.0 }
 0x679   : > { %v9837_v34 = vadd.f32 %v14050_v45, %v18184_v22  ;;  %v13734_v1 = vpop.f32.mrb[30].mxu1 }
 0x67a   : > { %v9870_v61 = vmax.f32 %v9838_v31, 0.0  ;;  %v14051_v27 = vadd.f32 %v13734_v1, %v18122_v28  ;;  %v9681_v9 = vpop.f32.mrb[31].mxu1 }
 0x67b   : > { %v9869_v37 = vmax.f32 %v9837_v34, 0.0  ;;  %v14052_v48 = vadd.f32 %v9681_v9, %v18124_v59 }
 0x67c   : > { %v18197_v13 = vmax.f32 %v9862_v14, %v9870_v61  ;;  %v9840_v11 = vadd.f32 %v14051_v27, %v18184_v22 }
 0x67d   : > { %v18200_v44 = vmax.f32 %v9861_v15, %v9869_v37  ;;  %v9839_v41 = vadd.f32 %v14052_v48, %v18184_v22  ;;  %v13737_v29 = vpop.f32.mrb[0].mxu1 }
 0x67e   : > { %v9872_v28 = vmax.f32 %v9840_v11, 0.0  ;;  %v14053_v55 = vadd.f32 %v13737_v29, %v18012_v50  ;;  %v9691_v49 = vpop.f32.mrb[1].mxu1 }
 0x67f   : > { %v9871_v59 = vmax.f32 %v9839_v41, 0.0  ;;  %v14054_v3 = vadd.f32 %v9691_v49, %v18014_v62 }
 0x680   : > { %v18207_v46 = vmax.f32 %v9864_v25, %v9872_v28  ;;  %v9842_v54 = vadd.f32 %v14053_v55, %v18184_v22 }
 0x681   : > { %v18210_v63 = vmax.f32 %v9863_v7, %v9871_v59  ;;  %v9841_v10 = vadd.f32 %v14054_v3, %v18184_v22  ;;  %v13740_v0 = vpop.f32.mrb[2].mxu1 }
 0x682   : > { %v9874_v50 = vmax.f32 %v9842_v54, 0.0  ;;  %v14055_v56 = vadd.f32 %v13740_v0, %v18019_v35  ;;  %v9701_v43 = vpop.f32.mrb[3].mxu1 }
 0x683   : > { %v9873_v62 = vmax.f32 %v9841_v10, 0.0  ;;  %v14056_v26 = vadd.f32 %v9701_v43, %v18021_v40 }
 0x684   : > { %v18217_v2 = vmax.f32 %v9866_v32, %v9874_v50  ;;  %v9844_v16 = vadd.f32 %v14055_v56, %v18184_v22 }
 0x685   : > { %v18220_v45 = vmax.f32 %v9865_v5, %v9873_v62  ;;  %v9843_v31 = vadd.f32 %v14056_v26, %v18184_v22  ;;  %v13743_v34 = vpop.f32.mrb[4].mxu1 }
 0x686   : > { %v9876_v1 = vmax.f32 %v9844_v16, 0.0  ;;  %v14057_v35 = vadd.f32 %v13743_v34, %v18027_v57  ;;  %v9711_v14 = vpop.f32.mrb[5].mxu1 }
 0x687   : > { %v9875_v61 = vmax.f32 %v9843_v31, 0.0  ;;  %v14058_v30 = vadd.f32 %v9711_v14, %v18031_v52 }
 0x688   : > { %v18225_v27 = vmax.f32 %v9868_v21, %v9876_v1  ;;  %v9846_v55 = vadd.f32 %v14057_v35, %v18184_v22 }
 0x689   : > { %v18227_v40 = vmax.f32 %v9867_v36, %v9875_v61  ;;  %v13746_v9 = vpop.f32.mrb[6].mxu1 }
 0x68a   : > { %v14059_v15 = vadd.f32 %v13746_v9, %v18039_v20  ;;  %v9721_v4 = vpop.f32.mrb[7].mxu1  ;;  %v9878_v59 = vmax.f32 %v9846_v55, 0.0 }
 0x68b   : > { %v14060_v37 = vadd.f32 %v9721_v4, %v18041_v23  ;;  %v9845_v23 = vadd.f32 %v14058_v30, %v18184_v22 }
 0x68d   : > { %v13749_v48 = vpop.f32.mrb[8].mxu1  ;;  %v9877_v10 = vmax.f32 %v9845_v23, 0.0 }
 0x68e   : > { %v14061_v11 = vadd.f32 %v13749_v48, %v18047_v51  ;;  %v9731_v41 = vpop.f32.mrb[9].mxu1 }
 0x68f   : > { %v14062_v57 = vadd.f32 %v9731_v41, %v18049_v6 }
 0x690   : > { %v9850_v50 = vadd.f32 %v14061_v11, %v18184_v22 }
 0x691   : > { %v13752_v29 = vpop.f32.mrb[10].mxu1  ;;  %v9849_v56 = vadd.f32 %v14062_v57, %v18184_v22 }
 0x692   : > { %v14063_v52 = vadd.f32 %v13752_v29, %v18055_v12  ;;  %v9741_v25 = vpop.f32.mrb[11].mxu1  ;;  %v9848_v12 = vadd.f32 %v14059_v15, %v18184_v22  ;;  %v9882_v36 = vmax.f32 %v9850_v50, 0.0 }
 0x693   : > { %v14064_v24 = vadd.f32 %v9741_v25, %v18057_v18  ;;  %v9881_v61 = vmax.f32 %v9849_v56, 0.0 }
 0x695   : > { %v13755_v28 = vpop.f32.mrb[12].mxu1 }
 0x696   : > { %v14065_v20 = vadd.f32 %v13755_v28, %v18063_v60  ;;  %v9751_v49 = vpop.f32.mrb[13].mxu1  ;;  %v9847_v60 = vadd.f32 %v14060_v37, %v18184_v22  ;;  %v9851_v37 = vadd.f32 %v14064_v24, %v18184_v22 }
 0x697   : > { %v14066_v51 = vadd.f32 %v9751_v49, %v18065_v53 }
 0x698   : > { %v9854_v7 = vadd.f32 %v14065_v20, %v18184_v22  ;;  %v9879_v31 = vmax.f32 %v9847_v60, 0.0  ;;  %v9883_v24 = vmax.f32 %v9851_v37, 0.0 }
 0x699   : > { %v9853_v6 = vadd.f32 %v14066_v51, %v18184_v22  ;;  %v13758_v38 = vpop.f32.mrb[14].mxu1 }
 0x69a   : > { %v9886_v18 = vmax.f32 %v9854_v7, 0.0  ;;  %v14067_v3 = vadd.f32 %v13758_v38, %v18071_v17  ;;  %v9761_v54 = vpop.f32.mrb[15].mxu1 }
 0x69b   : > { %v9885_v0 = vmax.f32 %v9853_v6, 0.0  ;;  %v14068_v32 = vadd.f32 %v9761_v54, %v18073_v19  ;;  %v9880_v19 = vmax.f32 %v9848_v12, 0.0 }
 0x69c   : > { %v9902_v53 = vmax.f32 %v9878_v59, %v9886_v18  ;;  %v9856_v42 = vadd.f32 %v14067_v3, %v18184_v22 }
 0x69d   : > { %v9901_v17 = vmax.f32 %v9877_v10, %v9885_v0  ;;  %v9855_v43 = vadd.f32 %v14068_v32, %v18184_v22  ;;  %v13761_v5 = vpop.f32.mrb[16].mxu1 }
 0x69e   : > { %v9910_v47 = vmax.f32 %v18197_v13, %v9902_v53  ;;  %v9888_v62 = vmax.f32 %v9856_v42, 0.0  ;;  %v14069_v26 = vadd.f32 %v13761_v5, %v18079_v8  ;;  %v9771_v16 = vpop.f32.mrb[17].mxu1 }
 0x69f   : > { %v9909_v34 = vmax.f32 %v18200_v44, %v9901_v17  ;;  %v9887_v21 = vmax.f32 %v9855_v43, 0.0  ;;  %v14070_v1 = vadd.f32 %v9771_v16, %v18081_v39  ;;  %v9852_v44 = vadd.f32 %v14063_v52, %v18184_v22 }
 0x6a0   : > { %9919 = vst.msk [vmem:[%s18252_s8 + $0x8] sm:$0xff] %vm9917_vm8, %v9910_v47  ;;  %v9904_v35 = vmax.f32 %v9880_v19, %v9888_v62  ;;  %v9858_v14 = vadd.f32 %v14069_v26, %v18184_v22 }
 0x6a1   : > { %9918 = vst.msk [vmem:[%s18252_s8] sm:$0xff] %vm9917_vm8, %v9909_v34  ;;  %v9903_v13 = vmax.f32 %v9879_v31, %v9887_v21  ;;  %v9857_v8 = vadd.f32 %v14070_v1, %v18184_v22  ;;  %v13764_v30 = vpop.f32.mrb[18].mxu1  ;;  %v9884_v52 = vmax.f32 %v9852_v44, 0.0 }
 0x6a2   : > { %v9912_v9 = vmax.f32 %v18207_v46, %v9904_v35  ;;  %v9890_v39 = vmax.f32 %v9858_v14, 0.0  ;;  %v14071_v15 = vadd.f32 %v13764_v30, %v18086_v33  ;;  %v9781_v4 = vpop.f32.mrb[19].mxu1 }
 0x6a3   : > { %v9911_v48 = vmax.f32 %v18210_v63, %v9903_v13  ;;  %v9889_v11 = vmax.f32 %v9857_v8, 0.0  ;;  %v14072_v41 = vadd.f32 %v9781_v4, %v18088_v58 }
 0x6a4   : > { %9921 = vst.msk [vmem:[%s18252_s8 + $0x18] sm:$0xff] %vm9917_vm8, %v9912_v9  ;;  %v9906_v57 = vmax.f32 %v9882_v36, %v9890_v39  ;;  %v9860_v29 = vadd.f32 %v14071_v15, %v18184_v22 }
 0x6a5   : > { %9920 = vst.msk [vmem:[%s18252_s8 + $0x10] sm:$0xff] %vm9917_vm8, %v9911_v48  ;;  %v9905_v33 = vmax.f32 %v9881_v61, %v9889_v11  ;;  %v9859_v46 = vadd.f32 %v14072_v41, %v18184_v22 }
 0x6a6   : > { %v9914_v25 = vmax.f32 %v18217_v2, %v9906_v57  ;;  %v9892_v63 = vmax.f32 %v9860_v29, 0.0 }
 0x6a7   : > { %v9913_v28 = vmax.f32 %v18220_v45, %v9905_v33  ;;  %v9891_v58 = vmax.f32 %v9859_v46, 0.0 }
 0x6a8   : > { %9923 = vst.msk [vmem:[%s18252_s8 + $0x28] sm:$0xff] %vm9917_vm8, %v9914_v25  ;;  %v9908_v55 = vmax.f32 %v9884_v52, %v9892_v63 }
 0x6a9   : > { %9922 = vst.msk [vmem:[%s18252_s8 + $0x20] sm:$0xff] %vm9917_vm8, %v9913_v28  ;;  %v9907_v20 = vmax.f32 %v9883_v24, %v9891_v58 }
 0x6aa   : > { %v9916_v49 = vmax.f32 %v18225_v27, %v9908_v55 }
 0x6ab   : > { %v9915_v23 = vmax.f32 %v18227_v40, %v9907_v20 }
 0x6ac   : > { %9925 = vst.msk [vmem:[%s18252_s8 + $0x38] sm:$0xff] %vm9917_vm8, %v9916_v49 }
 0x6ad   : > { %9924 = vst.msk [vmem:[%s18252_s8 + $0x30] sm:$0xff] %vm9917_vm8, %v9915_v23 }
 0x6ae PF: > { %s17_s18 = sadd.s32 1, %s15038_s18  }
 0x6af   : > { %p14_p2 = scmp.ge.s32.totalorder %s17_s18, 4  }
 0x6b1   :  { %16 = sbr.rel (!%p14_p2) target bundleno = 2 (0x2), region = 118 }
 0x6b8   :  { %9947 = vsyncpa [#allocation4], 1 }
 0x6b9   :  { %9949 = vsyncpa [#allocation4 + $0x1], 1 }
 0x6ba   :  { %9950 = vsyncpa [#allocation6], 1 }

</bundles_post_ra>
